<compile_context>
chip_gen: v7x
topology: tpu7x:2x2x1
jax: 0.10.0
libtpu: 0.0.40
codegen_flags: <defaults>
</compile_context>

<pallas_src>
import jax
import jax.numpy as jnp
from jax.experimental import pallas as pl
from jax.experimental.pallas import tpu as pltpu


def convgru_kernel(h_ref, xp_ref, wx_ref, whzr_ref, whq_ref, b_ref,
                   out_ref, padh_ref):
    # Block shapes:
    #   h_ref    (1, H, W, HID)        f32   (exact hidden state)
    #   xp_ref   (1, H+2, Wp, IN)      bf16  (pre-padded input features)
    #   wx_ref   (9, IN, 3*HID)        bf16  (x-part of z|r|q weights)
    #   whzr_ref (9, HID, 2*HID)       bf16  (h-part of z|r weights)
    #   whq_ref  (9, HID, HID)         bf16  (h-part of q weights, acts on r*h)
    #   b_ref    (1, 3*HID)            f32   (bz|br|bq)
    #   out_ref  (1, H, W, HID)        f32
    #   padh_ref (H+2, Wp, HID) VMEM   bf16  (padded hidden-state scratch)
    H = h_ref.shape[1]
    W = h_ref.shape[2]
    HID = h_ref.shape[3]
    IN = xp_ref.shape[3]
    Wp = padh_ref.shape[1]
    cdtype = padh_ref.dtype  # bf16 MXU operand dtype

    # Zero only the 1-wide halo of the hidden-state scratch.  The interior is
    # fully overwritten below.  Done every grid step (cheap, ~few KB) so it is
    # correct even when the batch axis is sharded across TensorCores.
    padh_ref[0:1, :, :] = jnp.zeros((1, Wp, HID), cdtype)
    padh_ref[H + 1:H + 2, :, :] = jnp.zeros((1, Wp, HID), cdtype)
    padh_ref[:, 0:1, :] = jnp.zeros((H + 2, 1, HID), cdtype)
    padh_ref[:, W + 1:W + 2, :] = jnp.zeros((H + 2, 1, HID), cdtype)

    h = h_ref[0]                        # (H, W, HID) f32 (kept exact)
    h_flat = h.reshape(H * W, HID)

    padh_ref[1:H + 1, 1:W + 1, :] = h.astype(cdtype)

    xp = xp_ref[0]                      # (H+2, Wp, IN) bf16, halo already zero

    def conv3x3_x(n_out):
        # 3x3 "same" conv of x == sum of 9 shifted (H*W, IN) @ (IN, n_out).
        acc = jnp.zeros((H * W, n_out), jnp.float32)
        for k in range(9):
            dy, dx = k // 3, k % 3
            patch = xp[dy:dy + H, dx:dx + W, :].reshape(H * W, IN)
            acc = acc + jnp.dot(patch, wx_ref[k],
                                preferred_element_type=jnp.float32)
        return acc

    def conv3x3_h(w_ref, n_out):
        acc = jnp.zeros((H * W, n_out), jnp.float32)
        for k in range(9):
            dy, dx = k // 3, k % 3
            patch = padh_ref[dy:dy + H, dx:dx + W, :].reshape(H * W, HID)
            acc = acc + jnp.dot(patch, w_ref[k],
                                preferred_element_type=jnp.float32)
        return acc

    # x contribution to all three gates at once (+ biases): (H*W, [z|r|q]).
    acc_x = conv3x3_x(3 * HID) + b_ref[...]
    # Hidden-state contribution to z and r, fused: (H*W, [z|r]).
    acc_hzr = conv3x3_h(whzr_ref, 2 * HID)

    z = jax.nn.sigmoid(acc_x[:, :HID] + acc_hzr[:, :HID])
    r = jax.nn.sigmoid(acc_x[:, HID:2 * HID] + acc_hzr[:, HID:])

    # q's hidden input is r*h: overwrite the scratch interior (halo stays 0).
    padh_ref[1:H + 1, 1:W + 1, :] = (
        (r * h_flat).reshape(H, W, HID).astype(cdtype))

    acc_q = conv3x3_h(whq_ref, HID)
    q = jnp.tanh(acc_x[:, 2 * HID:] + acc_q)

    # h_new = (1 - z) * h + z * q, rewritten to save one multiply.
    h_new = h_flat + z * (q - h_flat)
    out_ref[0] = h_new.reshape(H, W, HID)


def convgru_pallas(h, x, wz, wr, wq, bz, br, bq):
    """h: (N,H,W,HID), x: (N,H,W,IN).  Conv weights in PyTorch OIHW layout."""
    N, H, W, HID = h.shape
    IN = x.shape[3]
    Wp = ((W + 2 + 7) // 8) * 8          # sublane-aligned padded width
    cdtype = jnp.bfloat16

    def prep_w(w_oihw):                  # OIHW -> (kH*kW, C_in, C_out)
        return jnp.transpose(w_oihw, (2, 3, 1, 0)).reshape(9, HID + IN, HID)

    wz_k, wr_k, wq_k = prep_w(wz), prep_w(wr), prep_w(wq)
    # conv(concat(a, x), W) = conv(a, W_h) + conv(x, W_x); fuse across gates.
    wx_all = jnp.concatenate(
        [wz_k[:, HID:, :], wr_k[:, HID:, :], wq_k[:, HID:, :]],
        axis=-1).astype(cdtype)                         # (9, IN, 3*HID)
    wh_zr = jnp.concatenate(
        [wz_k[:, :HID, :], wr_k[:, :HID, :]], axis=-1).astype(cdtype)
    wh_q = wq_k[:, :HID, :].astype(cdtype)              # (9, HID, HID)
    b_all = jnp.concatenate([bz, br, bq]).reshape(1, 3 * HID).astype(jnp.float32)

    # Pre-pad x with the conv halo and sublane-align the width once in HBM
    # (layout plumbing), so the kernel never copies or zero-fills x.
    xp = jnp.pad(x, ((0, 0), (1, 1), (1, Wp - W - 1), (0, 0))).astype(cdtype)

    return pl.pallas_call(
        convgru_kernel,
        out_shape=jax.ShapeDtypeStruct((N, H, W, HID), jnp.float32),
        grid_spec=pltpu.PrefetchScalarGridSpec(
            num_scalar_prefetch=0,
            grid=(N,),
            in_specs=[
                pl.BlockSpec((1, H, W, HID), lambda n: (n, 0, 0, 0)),
                pl.BlockSpec((1, H + 2, Wp, IN), lambda n: (n, 0, 0, 0)),
                pl.BlockSpec((9, IN, 3 * HID), lambda n: (0, 0, 0)),
                pl.BlockSpec((9, HID, 2 * HID), lambda n: (0, 0, 0)),
                pl.BlockSpec((9, HID, HID), lambda n: (0, 0, 0)),
                pl.BlockSpec((1, 3 * HID), lambda n: (0, 0)),
            ],
            out_specs=pl.BlockSpec((1, H, W, HID), lambda n: (n, 0, 0, 0)),
            scratch_shapes=[pltpu.VMEM((H + 2, Wp, HID), cdtype)],
        ),
        compiler_params=pltpu.CompilerParams(
            dimension_semantics=("parallel",)),
    )(h, xp, wx_all, wh_zr, wh_q, b_all)


def convgru_ref(h, x, wz, wr, wq, bz, br, bq):
    """Pure-JAX f32 reference (NHWC), matches PyTorch ConvGRU semantics."""
    def conv(inp, w_oihw, b):
        out = jax.lax.conv_general_dilated(
            inp, jnp.transpose(w_oihw, (2, 3, 1, 0)),
            window_strides=(1, 1), padding="SAME",
            dimension_numbers=("NHWC", "HWIO", "NHWC"))
        return out + b
    hx = jnp.concatenate([h, x], axis=-1)
    z = jax.nn.sigmoid(conv(hx, wz, bz))
    r = jax.nn.sigmoid(conv(hx, wr, br))
    q = jnp.tanh(conv(jnp.concatenate([r * h, x], axis=-1), wq, bq))
    return (1.0 - z) * h + z * q


if __name__ == "__main__":
    # Small shapes consistent with the module (hidden_dim, input_dim scaled down).
    N, H, W = 2, 16, 16
    HID, IN = 32, 64
    CIN = HID + IN

    key = jax.random.PRNGKey(0)
    keys = jax.random.split(key, 8)
    h = jax.random.normal(keys[0], (N, H, W, HID), jnp.float32)
    x = jax.random.normal(keys[1], (N, H, W, IN), jnp.float32)
    # Deterministic synthetic parameters (PyTorch Conv2d shapes: O,I,kH,kW).
    scale = 0.05
    wz = scale * jax.random.normal(keys[2], (HID, CIN, 3, 3), jnp.float32)
    wr = scale * jax.random.normal(keys[3], (HID, CIN, 3, 3), jnp.float32)
    wq = scale * jax.random.normal(keys[4], (HID, CIN, 3, 3), jnp.float32)
    bz = scale * jax.random.normal(keys[5], (HID,), jnp.float32)
    br = scale * jax.random.normal(keys[6], (HID,), jnp.float32)
    bq = scale * jax.random.normal(keys[7], (HID,), jnp.float32)

    out = convgru_pallas(h, x, wz, wr, wq, bz, br, bq)
    out = jax.block_until_ready(out)

    ref = convgru_ref(h, x, wz, wr, wq, bz, br, bq)
    ref = jax.block_until_ready(ref)

    assert out.shape == (N, H, W, HID)
    # Tolerance loosened vs. pure-f32: MXU operands are bf16 (f32 accumulation
    # and f32 gate/state math), which bounds the error well under 3e-2 here.
    assert jnp.allclose(out, ref, atol=3e-2, rtol=3e-2), (
        f"max err {jnp.max(jnp.abs(out - ref))}")
    print("KERNEL_OK")
</pallas_src>

<mosaic_0001>
module attributes {stable_mosaic.version = 11 : i64} {
  func.func @convgru_kernel(%arg0: i32, %arg1: memref<1x16x16x32xf32, #tpu.memory_space<vmem>>, %arg2: memref<1x18x24x64xbf16, #tpu.memory_space<vmem>>, %arg3: memref<9x64x96xbf16, #tpu.memory_space<vmem>>, %arg4: memref<9x32x64xbf16, #tpu.memory_space<vmem>>, %arg5: memref<9x32x32xbf16, #tpu.memory_space<vmem>>, %arg6: memref<1x96xf32, #tpu.memory_space<vmem>>, %arg7: memref<1x16x16x32xf32, #tpu.memory_space<vmem>>, %arg8: memref<18x24x32xbf16, #tpu.memory_space<vmem>>) attributes {dimension_semantics = [#tpu.dimension_semantics<parallel>], iteration_bounds = array<i64: 2>, scalar_prefetch = 0 : i64, scratch_operands = 1 : i64, tpu.core_type = #tpu.core_type<tc>, window_params = [{transform_indices = @transform_0, window_bounds = array<i64: 1, 16, 16, 32>}, {transform_indices = @transform_1, window_bounds = array<i64: 1, 18, 24, 64>}, {pipeline_mode = #tpu.pipeline_mode<synchronous>, transform_indices = @transform_2, window_bounds = array<i64: 9, 64, 96>}, {pipeline_mode = #tpu.pipeline_mode<synchronous>, transform_indices = @transform_3, window_bounds = array<i64: 9, 32, 64>}, {pipeline_mode = #tpu.pipeline_mode<synchronous>, transform_indices = @transform_4, window_bounds = array<i64: 9, 32, 32>}, {pipeline_mode = #tpu.pipeline_mode<synchronous>, transform_indices = @transform_5, window_bounds = array<i64: 1, 96>}, {transform_indices = @transform_6, window_bounds = array<i64: 1, 16, 16, 32>}]} {
    %cst = arith.constant 0.000000e+00 : bf16
    %0 = vector.broadcast %cst : bf16 to vector<1x24x32xbf16>
    %c0 = arith.constant 0 : index
    %c0_0 = arith.constant 0 : index
    %c0_1 = arith.constant 0 : index
    %1 = vector.load %arg8[%c0, %c0_0, %c0_1] : memref<18x24x32xbf16, #tpu.memory_space<vmem>>, vector<1x24x32xbf16>
    tpu.vector_store %arg8[%c0, %c0_0, %c0_1], %0 {strides = array<i32>} : memref<18x24x32xbf16, #tpu.memory_space<vmem>>, vector<1x24x32xbf16>,
    %cst_2 = arith.constant 0.000000e+00 : bf16
    %2 = vector.broadcast %cst_2 : bf16 to vector<1x24x32xbf16>
    %c17 = arith.constant 17 : index
    %c0_3 = arith.constant 0 : index
    %c0_4 = arith.constant 0 : index
    %3 = vector.load %arg8[%c17, %c0_3, %c0_4] : memref<18x24x32xbf16, #tpu.memory_space<vmem>>, vector<1x24x32xbf16>
    tpu.vector_store %arg8[%c17, %c0_3, %c0_4], %2 {strides = array<i32>} : memref<18x24x32xbf16, #tpu.memory_space<vmem>>, vector<1x24x32xbf16>,
    %cst_5 = arith.constant 0.000000e+00 : bf16
    %4 = vector.broadcast %cst_5 : bf16 to vector<18x1x32xbf16>
    %c0_6 = arith.constant 0 : index
    %c0_7 = arith.constant 0 : index
    %c0_8 = arith.constant 0 : index
    %5 = vector.load %arg8[%c0_6, %c0_7, %c0_8] : memref<18x24x32xbf16, #tpu.memory_space<vmem>>, vector<18x1x32xbf16>
    tpu.vector_store %arg8[%c0_6, %c0_7, %c0_8], %4 {strides = array<i32>} : memref<18x24x32xbf16, #tpu.memory_space<vmem>>, vector<18x1x32xbf16>,
    %cst_9 = arith.constant 0.000000e+00 : bf16
    %6 = vector.broadcast %cst_9 : bf16 to vector<18x1x32xbf16>
    %c0_10 = arith.constant 0 : index
    %c17_11 = arith.constant 17 : index
    %c0_12 = arith.constant 0 : index
    %7 = vector.load %arg8[%c0_10, %c17_11, %c0_12] : memref<18x24x32xbf16, #tpu.memory_space<vmem>>, vector<18x1x32xbf16>
    tpu.vector_store %arg8[%c0_10, %c17_11, %c0_12], %6 {strides = array<i32>} : memref<18x24x32xbf16, #tpu.memory_space<vmem>>, vector<18x1x32xbf16>,
    %c0_13 = arith.constant 0 : index
    %c0_14 = arith.constant 0 : index
    %c0_15 = arith.constant 0 : index
    %c0_16 = arith.constant 0 : index
    %8 = vector.load %arg1[%c0_13, %c0_14, %c0_15, %c0_16] : memref<1x16x16x32xf32, #tpu.memory_space<vmem>>, vector<1x16x16x32xf32>
    %9 = vector.shape_cast %8 : vector<1x16x16x32xf32> to vector<16x16x32xf32>
    %10 = vector.shape_cast %9 : vector<16x16x32xf32> to vector<256x32xf32>
    %11 = arith.truncf %9 : vector<16x16x32xf32> to vector<16x16x32xbf16>
    %c1 = arith.constant 1 : index
    %c1_17 = arith.constant 1 : index
    %c0_18 = arith.constant 0 : index
    %12 = vector.load %arg8[%c1, %c1_17, %c0_18] : memref<18x24x32xbf16, #tpu.memory_space<vmem>>, vector<16x16x32xbf16>
    tpu.vector_store %arg8[%c1, %c1_17, %c0_18], %11 {strides = array<i32>} : memref<18x24x32xbf16, #tpu.memory_space<vmem>>, vector<16x16x32xbf16>,
    %c0_19 = arith.constant 0 : index
    %c0_20 = arith.constant 0 : index
    %c0_21 = arith.constant 0 : index
    %c0_22 = arith.constant 0 : index
    %13 = vector.load %arg2[%c0_19, %c0_20, %c0_21, %c0_22] : memref<1x18x24x64xbf16, #tpu.memory_space<vmem>>, vector<1x18x24x64xbf16>
    %14 = vector.shape_cast %13 : vector<1x18x24x64xbf16> to vector<18x24x64xbf16>
    %cst_23 = arith.constant 0.000000e+00 : f32
    %15 = vector.broadcast %cst_23 : f32 to vector<256x96xf32>
    %16 = vector.extract_strided_slice %14 {offsets = [0, 0, 0], sizes = [16, 16, 64], strides = [1, 1, 1]} : vector<18x24x64xbf16> to vector<16x16x64xbf16>
    %17 = vector.shape_cast %16 : vector<16x16x64xbf16> to vector<256x64xbf16>
    %c0_24 = arith.constant 0 : index
    %c0_25 = arith.constant 0 : index
    %c0_26 = arith.constant 0 : index
    %18 = vector.load %arg3[%c0_24, %c0_25, %c0_26] : memref<9x64x96xbf16, #tpu.memory_space<vmem>>, vector<1x64x96xbf16>
    %19 = vector.shape_cast %18 : vector<1x64x96xbf16> to vector<64x96xbf16>
    %cst_27 = arith.constant dense<0.000000e+00> : vector<256x96xf32>
    %20 = tpu.matmul %17, %19, %cst_27 {dimension_numbers = #tpu.dot_dimension_numbers<[1], [0], [0], [1], [0, 0, 1, 1], [], []>} : vector<256x64xbf16>, vector<64x96xbf16>, vector<256x96xf32> -> vector<256x96xf32>
    %21 = arith.addf %15, %20 : vector<256x96xf32>
    %22 = vector.extract_strided_slice %14 {offsets = [0, 1, 0], sizes = [16, 16, 64], strides = [1, 1, 1]} : vector<18x24x64xbf16> to vector<16x16x64xbf16>
    %23 = vector.shape_cast %22 : vector<16x16x64xbf16> to vector<256x64xbf16>
    %c1_28 = arith.constant 1 : index
    %c0_29 = arith.constant 0 : index
    %c0_30 = arith.constant 0 : index
    %24 = vector.load %arg3[%c1_28, %c0_29, %c0_30] : memref<9x64x96xbf16, #tpu.memory_space<vmem>>, vector<1x64x96xbf16>
    %25 = vector.shape_cast %24 : vector<1x64x96xbf16> to vector<64x96xbf16>
    %cst_31 = arith.constant dense<0.000000e+00> : vector<256x96xf32>
    %26 = tpu.matmul %23, %25, %cst_31 {dimension_numbers = #tpu.dot_dimension_numbers<[1], [0], [0], [1], [0, 0, 1, 1], [], []>} : vector<256x64xbf16>, vector<64x96xbf16>, vector<256x96xf32> -> vector<256x96xf32>
    %27 = arith.addf %21, %26 : vector<256x96xf32>
    %28 = vector.extract_strided_slice %14 {offsets = [0, 2, 0], sizes = [16, 16, 64], strides = [1, 1, 1]} : vector<18x24x64xbf16> to vector<16x16x64xbf16>
    %29 = vector.shape_cast %28 : vector<16x16x64xbf16> to vector<256x64xbf16>
    %c2 = arith.constant 2 : index
    %c0_32 = arith.constant 0 : index
    %c0_33 = arith.constant 0 : index
    %30 = vector.load %arg3[%c2, %c0_32, %c0_33] : memref<9x64x96xbf16, #tpu.memory_space<vmem>>, vector<1x64x96xbf16>
    %31 = vector.shape_cast %30 : vector<1x64x96xbf16> to vector<64x96xbf16>
    %cst_34 = arith.constant dense<0.000000e+00> : vector<256x96xf32>
    %32 = tpu.matmul %29, %31, %cst_34 {dimension_numbers = #tpu.dot_dimension_numbers<[1], [0], [0], [1], [0, 0, 1, 1], [], []>} : vector<256x64xbf16>, vector<64x96xbf16>, vector<256x96xf32> -> vector<256x96xf32>
    %33 = arith.addf %27, %32 : vector<256x96xf32>
    %34 = vector.extract_strided_slice %14 {offsets = [1, 0, 0], sizes = [16, 16, 64], strides = [1, 1, 1]} : vector<18x24x64xbf16> to vector<16x16x64xbf16>
    %35 = vector.shape_cast %34 : vector<16x16x64xbf16> to vector<256x64xbf16>
    %c3 = arith.constant 3 : index
    %c0_35 = arith.constant 0 : index
    %c0_36 = arith.constant 0 : index
    %36 = vector.load %arg3[%c3, %c0_35, %c0_36] : memref<9x64x96xbf16, #tpu.memory_space<vmem>>, vector<1x64x96xbf16>
    %37 = vector.shape_cast %36 : vector<1x64x96xbf16> to vector<64x96xbf16>
    %cst_37 = arith.constant dense<0.000000e+00> : vector<256x96xf32>
    %38 = tpu.matmul %35, %37, %cst_37 {dimension_numbers = #tpu.dot_dimension_numbers<[1], [0], [0], [1], [0, 0, 1, 1], [], []>} : vector<256x64xbf16>, vector<64x96xbf16>, vector<256x96xf32> -> vector<256x96xf32>
    %39 = arith.addf %33, %38 : vector<256x96xf32>
    %40 = vector.extract_strided_slice %14 {offsets = [1, 1, 0], sizes = [16, 16, 64], strides = [1, 1, 1]} : vector<18x24x64xbf16> to vector<16x16x64xbf16>
    %41 = vector.shape_cast %40 : vector<16x16x64xbf16> to vector<256x64xbf16>
    %c4 = arith.constant 4 : index
    %c0_38 = arith.constant 0 : index
    %c0_39 = arith.constant 0 : index
    %42 = vector.load %arg3[%c4, %c0_38, %c0_39] : memref<9x64x96xbf16, #tpu.memory_space<vmem>>, vector<1x64x96xbf16>
    %43 = vector.shape_cast %42 : vector<1x64x96xbf16> to vector<64x96xbf16>
    %cst_40 = arith.constant dense<0.000000e+00> : vector<256x96xf32>
    %44 = tpu.matmul %41, %43, %cst_40 {dimension_numbers = #tpu.dot_dimension_numbers<[1], [0], [0], [1], [0, 0, 1, 1], [], []>} : vector<256x64xbf16>, vector<64x96xbf16>, vector<256x96xf32> -> vector<256x96xf32>
    %45 = arith.addf %39, %44 : vector<256x96xf32>
    %46 = vector.extract_strided_slice %14 {offsets = [1, 2, 0], sizes = [16, 16, 64], strides = [1, 1, 1]} : vector<18x24x64xbf16> to vector<16x16x64xbf16>
    %47 = vector.shape_cast %46 : vector<16x16x64xbf16> to vector<256x64xbf16>
    %c5 = arith.constant 5 : index
    %c0_41 = arith.constant 0 : index
    %c0_42 = arith.constant 0 : index
    %48 = vector.load %arg3[%c5, %c0_41, %c0_42] : memref<9x64x96xbf16, #tpu.memory_space<vmem>>, vector<1x64x96xbf16>
    %49 = vector.shape_cast %48 : vector<1x64x96xbf16> to vector<64x96xbf16>
    %cst_43 = arith.constant dense<0.000000e+00> : vector<256x96xf32>
    %50 = tpu.matmul %47, %49, %cst_43 {dimension_numbers = #tpu.dot_dimension_numbers<[1], [0], [0], [1], [0, 0, 1, 1], [], []>} : vector<256x64xbf16>, vector<64x96xbf16>, vector<256x96xf32> -> vector<256x96xf32>
    %51 = arith.addf %45, %50 : vector<256x96xf32>
    %52 = vector.extract_strided_slice %14 {offsets = [2, 0, 0], sizes = [16, 16, 64], strides = [1, 1, 1]} : vector<18x24x64xbf16> to vector<16x16x64xbf16>
    %53 = vector.shape_cast %52 : vector<16x16x64xbf16> to vector<256x64xbf16>
    %c6 = arith.constant 6 : index
    %c0_44 = arith.constant 0 : index
    %c0_45 = arith.constant 0 : index
    %54 = vector.load %arg3[%c6, %c0_44, %c0_45] : memref<9x64x96xbf16, #tpu.memory_space<vmem>>, vector<1x64x96xbf16>
    %55 = vector.shape_cast %54 : vector<1x64x96xbf16> to vector<64x96xbf16>
    %cst_46 = arith.constant dense<0.000000e+00> : vector<256x96xf32>
    %56 = tpu.matmul %53, %55, %cst_46 {dimension_numbers = #tpu.dot_dimension_numbers<[1], [0], [0], [1], [0, 0, 1, 1], [], []>} : vector<256x64xbf16>, vector<64x96xbf16>, vector<256x96xf32> -> vector<256x96xf32>
    %57 = arith.addf %51, %56 : vector<256x96xf32>
    %58 = vector.extract_strided_slice %14 {offsets = [2, 1, 0], sizes = [16, 16, 64], strides = [1, 1, 1]} : vector<18x24x64xbf16> to vector<16x16x64xbf16>
    %59 = vector.shape_cast %58 : vector<16x16x64xbf16> to vector<256x64xbf16>
    %c7 = arith.constant 7 : index
    %c0_47 = arith.constant 0 : index
    %c0_48 = arith.constant 0 : index
    %60 = vector.load %arg3[%c7, %c0_47, %c0_48] : memref<9x64x96xbf16, #tpu.memory_space<vmem>>, vector<1x64x96xbf16>
    %61 = vector.shape_cast %60 : vector<1x64x96xbf16> to vector<64x96xbf16>
    %cst_49 = arith.constant dense<0.000000e+00> : vector<256x96xf32>
    %62 = tpu.matmul %59, %61, %cst_49 {dimension_numbers = #tpu.dot_dimension_numbers<[1], [0], [0], [1], [0, 0, 1, 1], [], []>} : vector<256x64xbf16>, vector<64x96xbf16>, vector<256x96xf32> -> vector<256x96xf32>
    %63 = arith.addf %57, %62 : vector<256x96xf32>
    %64 = vector.extract_strided_slice %14 {offsets = [2, 2, 0], sizes = [16, 16, 64], strides = [1, 1, 1]} : vector<18x24x64xbf16> to vector<16x16x64xbf16>
    %65 = vector.shape_cast %64 : vector<16x16x64xbf16> to vector<256x64xbf16>
    %c8 = arith.constant 8 : index
    %c0_50 = arith.constant 0 : index
    %c0_51 = arith.constant 0 : index
    %66 = vector.load %arg3[%c8, %c0_50, %c0_51] : memref<9x64x96xbf16, #tpu.memory_space<vmem>>, vector<1x64x96xbf16>
    %67 = vector.shape_cast %66 : vector<1x64x96xbf16> to vector<64x96xbf16>
    %cst_52 = arith.constant dense<0.000000e+00> : vector<256x96xf32>
    %68 = tpu.matmul %65, %67, %cst_52 {dimension_numbers = #tpu.dot_dimension_numbers<[1], [0], [0], [1], [0, 0, 1, 1], [], []>} : vector<256x64xbf16>, vector<64x96xbf16>, vector<256x96xf32> -> vector<256x96xf32>
    %69 = arith.addf %63, %68 : vector<256x96xf32>
    %c0_53 = arith.constant 0 : index
    %c0_54 = arith.constant 0 : index
    %70 = vector.load %arg6[%c0_53, %c0_54] : memref<1x96xf32, #tpu.memory_space<vmem>>, vector<1x96xf32>
    %71 = vector.broadcast %70 : vector<1x96xf32> to vector<256x96xf32>
    %72 = arith.addf %69, %71 : vector<256x96xf32>
    %cst_55 = arith.constant 0.000000e+00 : f32
    %73 = vector.broadcast %cst_55 : f32 to vector<256x64xf32>
    %c0_56 = arith.constant 0 : index
    %c0_57 = arith.constant 0 : index
    %c0_58 = arith.constant 0 : index
    %74 = vector.load %arg8[%c0_56, %c0_57, %c0_58] : memref<18x24x32xbf16, #tpu.memory_space<vmem>>, vector<16x16x32xbf16>
    %75 = vector.shape_cast %74 : vector<16x16x32xbf16> to vector<256x32xbf16>
    %c0_59 = arith.constant 0 : index
    %c0_60 = arith.constant 0 : index
    %c0_61 = arith.constant 0 : index
    %76 = vector.load %arg4[%c0_59, %c0_60, %c0_61] : memref<9x32x64xbf16, #tpu.memory_space<vmem>>, vector<1x32x64xbf16>
    %77 = vector.shape_cast %76 : vector<1x32x64xbf16> to vector<32x64xbf16>
    %cst_62 = arith.constant dense<0.000000e+00> : vector<256x64xf32>
    %78 = tpu.matmul %75, %77, %cst_62 {dimension_numbers = #tpu.dot_dimension_numbers<[1], [0], [0], [1], [0, 0, 1, 1], [], []>} : vector<256x32xbf16>, vector<32x64xbf16>, vector<256x64xf32> -> vector<256x64xf32>
    %79 = arith.addf %73, %78 : vector<256x64xf32>
    %c0_63 = arith.constant 0 : index
    %c1_64 = arith.constant 1 : index
    %c0_65 = arith.constant 0 : index
    %80 = vector.load %arg8[%c0_63, %c1_64, %c0_65] : memref<18x24x32xbf16, #tpu.memory_space<vmem>>, vector<16x16x32xbf16>
    %81 = vector.shape_cast %80 : vector<16x16x32xbf16> to vector<256x32xbf16>
    %c1_66 = arith.constant 1 : index
    %c0_67 = arith.constant 0 : index
    %c0_68 = arith.constant 0 : index
    %82 = vector.load %arg4[%c1_66, %c0_67, %c0_68] : memref<9x32x64xbf16, #tpu.memory_space<vmem>>, vector<1x32x64xbf16>
    %83 = vector.shape_cast %82 : vector<1x32x64xbf16> to vector<32x64xbf16>
    %cst_69 = arith.constant dense<0.000000e+00> : vector<256x64xf32>
    %84 = tpu.matmul %81, %83, %cst_69 {dimension_numbers = #tpu.dot_dimension_numbers<[1], [0], [0], [1], [0, 0, 1, 1], [], []>} : vector<256x32xbf16>, vector<32x64xbf16>, vector<256x64xf32> -> vector<256x64xf32>
    %85 = arith.addf %79, %84 : vector<256x64xf32>
    %c0_70 = arith.constant 0 : index
    %c2_71 = arith.constant 2 : index
    %c0_72 = arith.constant 0 : index
    %86 = vector.load %arg8[%c0_70, %c2_71, %c0_72] : memref<18x24x32xbf16, #tpu.memory_space<vmem>>, vector<16x16x32xbf16>
    %87 = vector.shape_cast %86 : vector<16x16x32xbf16> to vector<256x32xbf16>
    %c2_73 = arith.constant 2 : index
    %c0_74 = arith.constant 0 : index
    %c0_75 = arith.constant 0 : index
    %88 = vector.load %arg4[%c2_73, %c0_74, %c0_75] : memref<9x32x64xbf16, #tpu.memory_space<vmem>>, vector<1x32x64xbf16>
    %89 = vector.shape_cast %88 : vector<1x32x64xbf16> to vector<32x64xbf16>
    %cst_76 = arith.constant dense<0.000000e+00> : vector<256x64xf32>
    %90 = tpu.matmul %87, %89, %cst_76 {dimension_numbers = #tpu.dot_dimension_numbers<[1], [0], [0], [1], [0, 0, 1, 1], [], []>} : vector<256x32xbf16>, vector<32x64xbf16>, vector<256x64xf32> -> vector<256x64xf32>
    %91 = arith.addf %85, %90 : vector<256x64xf32>
    %c1_77 = arith.constant 1 : index
    %c0_78 = arith.constant 0 : index
    %c0_79 = arith.constant 0 : index
    %92 = vector.load %arg8[%c1_77, %c0_78, %c0_79] : memref<18x24x32xbf16, #tpu.memory_space<vmem>>, vector<16x16x32xbf16>
    %93 = vector.shape_cast %92 : vector<16x16x32xbf16> to vector<256x32xbf16>
    %c3_80 = arith.constant 3 : index
    %c0_81 = arith.constant 0 : index
    %c0_82 = arith.constant 0 : index
    %94 = vector.load %arg4[%c3_80, %c0_81, %c0_82] : memref<9x32x64xbf16, #tpu.memory_space<vmem>>, vector<1x32x64xbf16>
    %95 = vector.shape_cast %94 : vector<1x32x64xbf16> to vector<32x64xbf16>
    %cst_83 = arith.constant dense<0.000000e+00> : vector<256x64xf32>
    %96 = tpu.matmul %93, %95, %cst_83 {dimension_numbers = #tpu.dot_dimension_numbers<[1], [0], [0], [1], [0, 0, 1, 1], [], []>} : vector<256x32xbf16>, vector<32x64xbf16>, vector<256x64xf32> -> vector<256x64xf32>
    %97 = arith.addf %91, %96 : vector<256x64xf32>
    %c1_84 = arith.constant 1 : index
    %c1_85 = arith.constant 1 : index
    %c0_86 = arith.constant 0 : index
    %98 = vector.load %arg8[%c1_84, %c1_85, %c0_86] : memref<18x24x32xbf16, #tpu.memory_space<vmem>>, vector<16x16x32xbf16>
    %99 = vector.shape_cast %98 : vector<16x16x32xbf16> to vector<256x32xbf16>
    %c4_87 = arith.constant 4 : index
    %c0_88 = arith.constant 0 : index
    %c0_89 = arith.constant 0 : index
    %100 = vector.load %arg4[%c4_87, %c0_88, %c0_89] : memref<9x32x64xbf16, #tpu.memory_space<vmem>>, vector<1x32x64xbf16>
    %101 = vector.shape_cast %100 : vector<1x32x64xbf16> to vector<32x64xbf16>
    %cst_90 = arith.constant dense<0.000000e+00> : vector<256x64xf32>
    %102 = tpu.matmul %99, %101, %cst_90 {dimension_numbers = #tpu.dot_dimension_numbers<[1], [0], [0], [1], [0, 0, 1, 1], [], []>} : vector<256x32xbf16>, vector<32x64xbf16>, vector<256x64xf32> -> vector<256x64xf32>
    %103 = arith.addf %97, %102 : vector<256x64xf32>
    %c1_91 = arith.constant 1 : index
    %c2_92 = arith.constant 2 : index
    %c0_93 = arith.constant 0 : index
    %104 = vector.load %arg8[%c1_91, %c2_92, %c0_93] : memref<18x24x32xbf16, #tpu.memory_space<vmem>>, vector<16x16x32xbf16>
    %105 = vector.shape_cast %104 : vector<16x16x32xbf16> to vector<256x32xbf16>
    %c5_94 = arith.constant 5 : index
    %c0_95 = arith.constant 0 : index
    %c0_96 = arith.constant 0 : index
    %106 = vector.load %arg4[%c5_94, %c0_95, %c0_96] : memref<9x32x64xbf16, #tpu.memory_space<vmem>>, vector<1x32x64xbf16>
    %107 = vector.shape_cast %106 : vector<1x32x64xbf16> to vector<32x64xbf16>
    %cst_97 = arith.constant dense<0.000000e+00> : vector<256x64xf32>
    %108 = tpu.matmul %105, %107, %cst_97 {dimension_numbers = #tpu.dot_dimension_numbers<[1], [0], [0], [1], [0, 0, 1, 1], [], []>} : vector<256x32xbf16>, vector<32x64xbf16>, vector<256x64xf32> -> vector<256x64xf32>
    %109 = arith.addf %103, %108 : vector<256x64xf32>
    %c2_98 = arith.constant 2 : index
    %c0_99 = arith.constant 0 : index
    %c0_100 = arith.constant 0 : index
    %110 = vector.load %arg8[%c2_98, %c0_99, %c0_100] : memref<18x24x32xbf16, #tpu.memory_space<vmem>>, vector<16x16x32xbf16>
    %111 = vector.shape_cast %110 : vector<16x16x32xbf16> to vector<256x32xbf16>
    %c6_101 = arith.constant 6 : index
    %c0_102 = arith.constant 0 : index
    %c0_103 = arith.constant 0 : index
    %112 = vector.load %arg4[%c6_101, %c0_102, %c0_103] : memref<9x32x64xbf16, #tpu.memory_space<vmem>>, vector<1x32x64xbf16>
    %113 = vector.shape_cast %112 : vector<1x32x64xbf16> to vector<32x64xbf16>
    %cst_104 = arith.constant dense<0.000000e+00> : vector<256x64xf32>
    %114 = tpu.matmul %111, %113, %cst_104 {dimension_numbers = #tpu.dot_dimension_numbers<[1], [0], [0], [1], [0, 0, 1, 1], [], []>} : vector<256x32xbf16>, vector<32x64xbf16>, vector<256x64xf32> -> vector<256x64xf32>
    %115 = arith.addf %109, %114 : vector<256x64xf32>
    %c2_105 = arith.constant 2 : index
    %c1_106 = arith.constant 1 : index
    %c0_107 = arith.constant 0 : index
    %116 = vector.load %arg8[%c2_105, %c1_106, %c0_107] : memref<18x24x32xbf16, #tpu.memory_space<vmem>>, vector<16x16x32xbf16>
    %117 = vector.shape_cast %116 : vector<16x16x32xbf16> to vector<256x32xbf16>
    %c7_108 = arith.constant 7 : index
    %c0_109 = arith.constant 0 : index
    %c0_110 = arith.constant 0 : index
    %118 = vector.load %arg4[%c7_108, %c0_109, %c0_110] : memref<9x32x64xbf16, #tpu.memory_space<vmem>>, vector<1x32x64xbf16>
    %119 = vector.shape_cast %118 : vector<1x32x64xbf16> to vector<32x64xbf16>
    %cst_111 = arith.constant dense<0.000000e+00> : vector<256x64xf32>
    %120 = tpu.matmul %117, %119, %cst_111 {dimension_numbers = #tpu.dot_dimension_numbers<[1], [0], [0], [1], [0, 0, 1, 1], [], []>} : vector<256x32xbf16>, vector<32x64xbf16>, vector<256x64xf32> -> vector<256x64xf32>
    %121 = arith.addf %115, %120 : vector<256x64xf32>
    %c2_112 = arith.constant 2 : index
    %c2_113 = arith.constant 2 : index
    %c0_114 = arith.constant 0 : index
    %122 = vector.load %arg8[%c2_112, %c2_113, %c0_114] : memref<18x24x32xbf16, #tpu.memory_space<vmem>>, vector<16x16x32xbf16>
    %123 = vector.shape_cast %122 : vector<16x16x32xbf16> to vector<256x32xbf16>
    %c8_115 = arith.constant 8 : index
    %c0_116 = arith.constant 0 : index
    %c0_117 = arith.constant 0 : index
    %124 = vector.load %arg4[%c8_115, %c0_116, %c0_117] : memref<9x32x64xbf16, #tpu.memory_space<vmem>>, vector<1x32x64xbf16>
    %125 = vector.shape_cast %124 : vector<1x32x64xbf16> to vector<32x64xbf16>
    %cst_118 = arith.constant dense<0.000000e+00> : vector<256x64xf32>
    %126 = tpu.matmul %123, %125, %cst_118 {dimension_numbers = #tpu.dot_dimension_numbers<[1], [0], [0], [1], [0, 0, 1, 1], [], []>} : vector<256x32xbf16>, vector<32x64xbf16>, vector<256x64xf32> -> vector<256x64xf32>
    %127 = arith.addf %121, %126 : vector<256x64xf32>
    %128 = vector.extract_strided_slice %72 {offsets = [0, 0], sizes = [256, 32], strides = [1, 1]} : vector<256x96xf32> to vector<256x32xf32>
    %129 = vector.extract_strided_slice %127 {offsets = [0, 0], sizes = [256, 32], strides = [1, 1]} : vector<256x64xf32> to vector<256x32xf32>
    %130 = arith.addf %128, %129 : vector<256x32xf32>
    %131 = arith.negf %130 : vector<256x32xf32>
    %132 = math.exp %131 : vector<256x32xf32>
    %cst_119 = arith.constant 1.000000e+00 : f32
    %133 = vector.broadcast %cst_119 : f32 to vector<256x32xf32>
    %134 = arith.addf %133, %132 : vector<256x32xf32>
    %135 = arith.divf %133, %134 : vector<256x32xf32>
    %136 = vector.extract_strided_slice %72 {offsets = [0, 32], sizes = [256, 32], strides = [1, 1]} : vector<256x96xf32> to vector<256x32xf32>
    %137 = vector.extract_strided_slice %127 {offsets = [0, 32], sizes = [256, 32], strides = [1, 1]} : vector<256x64xf32> to vector<256x32xf32>
    %138 = arith.addf %136, %137 : vector<256x32xf32>
    %139 = arith.negf %138 : vector<256x32xf32>
    %140 = math.exp %139 : vector<256x32xf32>
    %cst_120 = arith.constant 1.000000e+00 : f32
    %141 = vector.broadcast %cst_120 : f32 to vector<256x32xf32>
    %142 = arith.addf %141, %140 : vector<256x32xf32>
    %143 = arith.divf %141, %142 : vector<256x32xf32>
    %144 = arith.mulf %143, %10 : vector<256x32xf32>
    %145 = vector.shape_cast %144 : vector<256x32xf32> to vector<16x16x32xf32>
    %146 = arith.truncf %145 : vector<16x16x32xf32> to vector<16x16x32xbf16>
    %c1_121 = arith.constant 1 : index
    %c1_122 = arith.constant 1 : index
    %c0_123 = arith.constant 0 : index
    %147 = vector.load %arg8[%c1_121, %c1_122, %c0_123] : memref<18x24x32xbf16, #tpu.memory_space<vmem>>, vector<16x16x32xbf16>
    tpu.vector_store %arg8[%c1_121, %c1_122, %c0_123], %146 {strides = array<i32>} : memref<18x24x32xbf16, #tpu.memory_space<vmem>>, vector<16x16x32xbf16>,
    %cst_124 = arith.constant 0.000000e+00 : f32
    %148 = vector.broadcast %cst_124 : f32 to vector<256x32xf32>
    %c0_125 = arith.constant 0 : index
    %c0_126 = arith.constant 0 : index
    %c0_127 = arith.constant 0 : index
    %149 = vector.load %arg8[%c0_125, %c0_126, %c0_127] : memref<18x24x32xbf16, #tpu.memory_space<vmem>>, vector<16x16x32xbf16>
    %150 = vector.shape_cast %149 : vector<16x16x32xbf16> to vector<256x32xbf16>
    %c0_128 = arith.constant 0 : index
    %c0_129 = arith.constant 0 : index
    %c0_130 = arith.constant 0 : index
    %151 = vector.load %arg5[%c0_128, %c0_129, %c0_130] : memref<9x32x32xbf16, #tpu.memory_space<vmem>>, vector<1x32x32xbf16>
    %152 = vector.shape_cast %151 : vector<1x32x32xbf16> to vector<32x32xbf16>
    %cst_131 = arith.constant dense<0.000000e+00> : vector<256x32xf32>
    %153 = tpu.matmul %150, %152, %cst_131 {dimension_numbers = #tpu.dot_dimension_numbers<[1], [0], [0], [1], [0, 0, 1, 1], [], []>} : vector<256x32xbf16>, vector<32x32xbf16>, vector<256x32xf32> -> vector<256x32xf32>
    %154 = arith.addf %148, %153 : vector<256x32xf32>
    %c0_132 = arith.constant 0 : index
    %c1_133 = arith.constant 1 : index
    %c0_134 = arith.constant 0 : index
    %155 = vector.load %arg8[%c0_132, %c1_133, %c0_134] : memref<18x24x32xbf16, #tpu.memory_space<vmem>>, vector<16x16x32xbf16>
    %156 = vector.shape_cast %155 : vector<16x16x32xbf16> to vector<256x32xbf16>
    %c1_135 = arith.constant 1 : index
    %c0_136 = arith.constant 0 : index
    %c0_137 = arith.constant 0 : index
    %157 = vector.load %arg5[%c1_135, %c0_136, %c0_137] : memref<9x32x32xbf16, #tpu.memory_space<vmem>>, vector<1x32x32xbf16>
    %158 = vector.shape_cast %157 : vector<1x32x32xbf16> to vector<32x32xbf16>
    %cst_138 = arith.constant dense<0.000000e+00> : vector<256x32xf32>
    %159 = tpu.matmul %156, %158, %cst_138 {dimension_numbers = #tpu.dot_dimension_numbers<[1], [0], [0], [1], [0, 0, 1, 1], [], []>} : vector<256x32xbf16>, vector<32x32xbf16>, vector<256x32xf32> -> vector<256x32xf32>
    %160 = arith.addf %154, %159 : vector<256x32xf32>
    %c0_139 = arith.constant 0 : index
    %c2_140 = arith.constant 2 : index
    %c0_141 = arith.constant 0 : index
    %161 = vector.load %arg8[%c0_139, %c2_140, %c0_141] : memref<18x24x32xbf16, #tpu.memory_space<vmem>>, vector<16x16x32xbf16>
    %162 = vector.shape_cast %161 : vector<16x16x32xbf16> to vector<256x32xbf16>
    %c2_142 = arith.constant 2 : index
    %c0_143 = arith.constant 0 : index
    %c0_144 = arith.constant 0 : index
    %163 = vector.load %arg5[%c2_142, %c0_143, %c0_144] : memref<9x32x32xbf16, #tpu.memory_space<vmem>>, vector<1x32x32xbf16>
    %164 = vector.shape_cast %163 : vector<1x32x32xbf16> to vector<32x32xbf16>
    %cst_145 = arith.constant dense<0.000000e+00> : vector<256x32xf32>
    %165 = tpu.matmul %162, %164, %cst_145 {dimension_numbers = #tpu.dot_dimension_numbers<[1], [0], [0], [1], [0, 0, 1, 1], [], []>} : vector<256x32xbf16>, vector<32x32xbf16>, vector<256x32xf32> -> vector<256x32xf32>
    %166 = arith.addf %160, %165 : vector<256x32xf32>
    %c1_146 = arith.constant 1 : index
    %c0_147 = arith.constant 0 : index
    %c0_148 = arith.constant 0 : index
    %167 = vector.load %arg8[%c1_146, %c0_147, %c0_148] : memref<18x24x32xbf16, #tpu.memory_space<vmem>>, vector<16x16x32xbf16>
    %168 = vector.shape_cast %167 : vector<16x16x32xbf16> to vector<256x32xbf16>
    %c3_149 = arith.constant 3 : index
    %c0_150 = arith.constant 0 : index
    %c0_151 = arith.constant 0 : index
    %169 = vector.load %arg5[%c3_149, %c0_150, %c0_151] : memref<9x32x32xbf16, #tpu.memory_space<vmem>>, vector<1x32x32xbf16>
    %170 = vector.shape_cast %169 : vector<1x32x32xbf16> to vector<32x32xbf16>
    %cst_152 = arith.constant dense<0.000000e+00> : vector<256x32xf32>
    %171 = tpu.matmul %168, %170, %cst_152 {dimension_numbers = #tpu.dot_dimension_numbers<[1], [0], [0], [1], [0, 0, 1, 1], [], []>} : vector<256x32xbf16>, vector<32x32xbf16>, vector<256x32xf32> -> vector<256x32xf32>
    %172 = arith.addf %166, %171 : vector<256x32xf32>
    %c1_153 = arith.constant 1 : index
    %c1_154 = arith.constant 1 : index
    %c0_155 = arith.constant 0 : index
    %173 = vector.load %arg8[%c1_153, %c1_154, %c0_155] : memref<18x24x32xbf16, #tpu.memory_space<vmem>>, vector<16x16x32xbf16>
    %174 = vector.shape_cast %173 : vector<16x16x32xbf16> to vector<256x32xbf16>
    %c4_156 = arith.constant 4 : index
    %c0_157 = arith.constant 0 : index
    %c0_158 = arith.constant 0 : index
    %175 = vector.load %arg5[%c4_156, %c0_157, %c0_158] : memref<9x32x32xbf16, #tpu.memory_space<vmem>>, vector<1x32x32xbf16>
    %176 = vector.shape_cast %175 : vector<1x32x32xbf16> to vector<32x32xbf16>
    %cst_159 = arith.constant dense<0.000000e+00> : vector<256x32xf32>
    %177 = tpu.matmul %174, %176, %cst_159 {dimension_numbers = #tpu.dot_dimension_numbers<[1], [0], [0], [1], [0, 0, 1, 1], [], []>} : vector<256x32xbf16>, vector<32x32xbf16>, vector<256x32xf32> -> vector<256x32xf32>
    %178 = arith.addf %172, %177 : vector<256x32xf32>
    %c1_160 = arith.constant 1 : index
    %c2_161 = arith.constant 2 : index
    %c0_162 = arith.constant 0 : index
    %179 = vector.load %arg8[%c1_160, %c2_161, %c0_162] : memref<18x24x32xbf16, #tpu.memory_space<vmem>>, vector<16x16x32xbf16>
    %180 = vector.shape_cast %179 : vector<16x16x32xbf16> to vector<256x32xbf16>
    %c5_163 = arith.constant 5 : index
    %c0_164 = arith.constant 0 : index
    %c0_165 = arith.constant 0 : index
    %181 = vector.load %arg5[%c5_163, %c0_164, %c0_165] : memref<9x32x32xbf16, #tpu.memory_space<vmem>>, vector<1x32x32xbf16>
    %182 = vector.shape_cast %181 : vector<1x32x32xbf16> to vector<32x32xbf16>
    %cst_166 = arith.constant dense<0.000000e+00> : vector<256x32xf32>
    %183 = tpu.matmul %180, %182, %cst_166 {dimension_numbers = #tpu.dot_dimension_numbers<[1], [0], [0], [1], [0, 0, 1, 1], [], []>} : vector<256x32xbf16>, vector<32x32xbf16>, vector<256x32xf32> -> vector<256x32xf32>
    %184 = arith.addf %178, %183 : vector<256x32xf32>
    %c2_167 = arith.constant 2 : index
    %c0_168 = arith.constant 0 : index
    %c0_169 = arith.constant 0 : index
    %185 = vector.load %arg8[%c2_167, %c0_168, %c0_169] : memref<18x24x32xbf16, #tpu.memory_space<vmem>>, vector<16x16x32xbf16>
    %186 = vector.shape_cast %185 : vector<16x16x32xbf16> to vector<256x32xbf16>
    %c6_170 = arith.constant 6 : index
    %c0_171 = arith.constant 0 : index
    %c0_172 = arith.constant 0 : index
    %187 = vector.load %arg5[%c6_170, %c0_171, %c0_172] : memref<9x32x32xbf16, #tpu.memory_space<vmem>>, vector<1x32x32xbf16>
    %188 = vector.shape_cast %187 : vector<1x32x32xbf16> to vector<32x32xbf16>
    %cst_173 = arith.constant dense<0.000000e+00> : vector<256x32xf32>
    %189 = tpu.matmul %186, %188, %cst_173 {dimension_numbers = #tpu.dot_dimension_numbers<[1], [0], [0], [1], [0, 0, 1, 1], [], []>} : vector<256x32xbf16>, vector<32x32xbf16>, vector<256x32xf32> -> vector<256x32xf32>
    %190 = arith.addf %184, %189 : vector<256x32xf32>
    %c2_174 = arith.constant 2 : index
    %c1_175 = arith.constant 1 : index
    %c0_176 = arith.constant 0 : index
    %191 = vector.load %arg8[%c2_174, %c1_175, %c0_176] : memref<18x24x32xbf16, #tpu.memory_space<vmem>>, vector<16x16x32xbf16>
    %192 = vector.shape_cast %191 : vector<16x16x32xbf16> to vector<256x32xbf16>
    %c7_177 = arith.constant 7 : index
    %c0_178 = arith.constant 0 : index
    %c0_179 = arith.constant 0 : index
    %193 = vector.load %arg5[%c7_177, %c0_178, %c0_179] : memref<9x32x32xbf16, #tpu.memory_space<vmem>>, vector<1x32x32xbf16>
    %194 = vector.shape_cast %193 : vector<1x32x32xbf16> to vector<32x32xbf16>
    %cst_180 = arith.constant dense<0.000000e+00> : vector<256x32xf32>
    %195 = tpu.matmul %192, %194, %cst_180 {dimension_numbers = #tpu.dot_dimension_numbers<[1], [0], [0], [1], [0, 0, 1, 1], [], []>} : vector<256x32xbf16>, vector<32x32xbf16>, vector<256x32xf32> -> vector<256x32xf32>
    %196 = arith.addf %190, %195 : vector<256x32xf32>
    %c2_181 = arith.constant 2 : index
    %c2_182 = arith.constant 2 : index
    %c0_183 = arith.constant 0 : index
    %197 = vector.load %arg8[%c2_181, %c2_182, %c0_183] : memref<18x24x32xbf16, #tpu.memory_space<vmem>>, vector<16x16x32xbf16>
    %198 = vector.shape_cast %197 : vector<16x16x32xbf16> to vector<256x32xbf16>
    %c8_184 = arith.constant 8 : index
    %c0_185 = arith.constant 0 : index
    %c0_186 = arith.constant 0 : index
    %199 = vector.load %arg5[%c8_184, %c0_185, %c0_186] : memref<9x32x32xbf16, #tpu.memory_space<vmem>>, vector<1x32x32xbf16>
    %200 = vector.shape_cast %199 : vector<1x32x32xbf16> to vector<32x32xbf16>
    %cst_187 = arith.constant dense<0.000000e+00> : vector<256x32xf32>
    %201 = tpu.matmul %198, %200, %cst_187 {dimension_numbers = #tpu.dot_dimension_numbers<[1], [0], [0], [1], [0, 0, 1, 1], [], []>} : vector<256x32xbf16>, vector<32x32xbf16>, vector<256x32xf32> -> vector<256x32xf32>
    %202 = arith.addf %196, %201 : vector<256x32xf32>
    %203 = vector.extract_strided_slice %72 {offsets = [0, 64], sizes = [256, 32], strides = [1, 1]} : vector<256x96xf32> to vector<256x32xf32>
    %204 = arith.addf %203, %202 : vector<256x32xf32>
    %205 = math.tanh %204 : vector<256x32xf32>
    %206 = arith.subf %205, %10 : vector<256x32xf32>
    %207 = arith.mulf %135, %206 : vector<256x32xf32>
    %208 = arith.addf %10, %207 : vector<256x32xf32>
    %209 = vector.shape_cast %208 : vector<256x32xf32> to vector<16x16x32xf32>
    %c0_188 = arith.constant 0 : index
    %c0_189 = arith.constant 0 : index
    %c0_190 = arith.constant 0 : index
    %c0_191 = arith.constant 0 : index
    %210 = vector.load %arg7[%c0_188, %c0_189, %c0_190, %c0_191] : memref<1x16x16x32xf32, #tpu.memory_space<vmem>>, vector<1x16x16x32xf32>
    %211 = vector.shape_cast %210 : vector<1x16x16x32xf32> to vector<16x16x32xf32>
    %212 = vector.shape_cast %209 : vector<16x16x32xf32> to vector<1x16x16x32xf32>
    tpu.vector_store %arg7[%c0_188, %c0_189, %c0_190, %c0_191], %212 {strides = array<i32>} : memref<1x16x16x32xf32, #tpu.memory_space<vmem>>, vector<1x16x16x32xf32>,
    return
  }
  func.func @transform_0(%arg0: i32) -> (i32, i32, i32, i32) {
    %c0_i32 = arith.constant 0 : i32
    %c0_i32_0 = arith.constant 0 : i32
    %c0_i32_1 = arith.constant 0 : i32
    %c0_i32_2 = arith.constant 0 : i32
    return %arg0, %c0_i32, %c0_i32_0, %c0_i32_1 : i32, i32, i32, i32
  }
  func.func @transform_1(%arg0: i32) -> (i32, i32, i32, i32) {
    %c0_i32 = arith.constant 0 : i32
    %c0_i32_0 = arith.constant 0 : i32
    %c0_i32_1 = arith.constant 0 : i32
    %c0_i32_2 = arith.constant 0 : i32
    return %arg0, %c0_i32, %c0_i32_0, %c0_i32_1 : i32, i32, i32, i32
  }
  func.func @transform_2(%arg0: i32) -> (i32, i32, i32) {
    %c0_i32 = arith.constant 0 : i32
    %c0_i32_0 = arith.constant 0 : i32
    %c0_i32_1 = arith.constant 0 : i32
    %c0_i32_2 = arith.constant 0 : i32
    return %c0_i32, %c0_i32_0, %c0_i32_1 : i32, i32, i32
  }
  func.func @transform_3(%arg0: i32) -> (i32, i32, i32) {
    %c0_i32 = arith.constant 0 : i32
    %c0_i32_0 = arith.constant 0 : i32
    %c0_i32_1 = arith.constant 0 : i32
    %c0_i32_2 = arith.constant 0 : i32
    return %c0_i32, %c0_i32_0, %c0_i32_1 : i32, i32, i32
  }
  func.func @transform_4(%arg0: i32) -> (i32, i32, i32) {
    %c0_i32 = arith.constant 0 : i32
    %c0_i32_0 = arith.constant 0 : i32
    %c0_i32_1 = arith.constant 0 : i32
    %c0_i32_2 = arith.constant 0 : i32
    return %c0_i32, %c0_i32_0, %c0_i32_1 : i32, i32, i32
  }
  func.func @transform_5(%arg0: i32) -> (i32, i32) {
    %c0_i32 = arith.constant 0 : i32
    %c0_i32_0 = arith.constant 0 : i32
    %c0_i32_1 = arith.constant 0 : i32
    return %c0_i32, %c0_i32_0 : i32, i32
  }
  func.func @transform_6(%arg0: i32) -> (i32, i32, i32, i32) {
    %c0_i32 = arith.constant 0 : i32
    %c0_i32_0 = arith.constant 0 : i32
    %c0_i32_1 = arith.constant 0 : i32
    %c0_i32_2 = arith.constant 0 : i32
    return %arg0, %c0_i32, %c0_i32_0, %c0_i32_1 : i32, i32, i32, i32
  }
}

</mosaic_0001>

<bundles_post_ra>
// kernel: tpu_custom_call.1
= control target key start
LH: loop header
LB: loop body
LE: loop exit
PB: predicated region body
PF: predicated region fallthrough
CT: control target
= control target key end

     0   :  { %s24850_s0 = inlined_call_operand.hbm [shape: f32[2,16,16,32], index: 0, kind: input, shape index: {}]   ;;  %s24851_s1 = inlined_call_operand.hbm [shape: bf16[2,18,24,64], index: 1, kind: input, shape index: {}]   ;;  %s24852_s2 = inlined_call_operand.hbm [shape: bf16[9,64,96], index: 2, kind: input, shape index: {}]   ;;  %s24853_s3 = inlined_call_operand.hbm [shape: bf16[9,32,64], index: 3, kind: input, shape index: {}]   ;;  %s24854_s4 = inlined_call_operand.hbm [shape: bf16[9,32,32], index: 4, kind: input, shape index: {}]   ;;  %s24855_s5 = inlined_call_operand.vmem [shape: f32[1,96], index: 5, kind: input, shape index: {}]   ;;  %s24856_s6 = inlined_call_operand.hbm [shape: f32[2,16,16,32], index: 6, kind: output, shape index: {}]  }
   0x1   :  { %25106 = sst [smem:[#allocation142_spill]] %s24850_s0 }
   0x2   :  { %25107 = sst [smem:[#allocation143_spill]] %s24852_s2 }
   0x3   :  { %25108 = sst [smem:[#allocation144_spill]] %s24853_s3 }
   0x4   :  { %25109 = sst [smem:[#allocation145_spill]] %s24854_s4 }
   0x5   :  { %11 = vsyncpa [#allocation4], 0 }
   0x6   :  { %13 = vsyncpa [#allocation4 + $0x1], 0 }
   0x7   :  { %14 = vsyncpa [#allocation7], 0 }
   0x8   :  { %16 = vsyncpa [#allocation7 + $0x1], 0 }
   0x9   :  { %17 = vsyncpa [#allocation10], 0 }
   0xa   :  { %18 = vsyncpa [#allocation5], 0 }
   0xb   :  { %20 = vsyncpa [#allocation5 + $0x1], 0  ;;  %s19357_s21 = smov 0   ;;  %s19359_s22 = smov 0  }
   0xc   :  { %s19361_s23 = smov 0   ;;  %s19363_s24 = smov 0  }
   0xd LB: > { %s19378_s25 = sadd.s32 4294967295, %s19304_s24   ;;  %s15050_s26 = sadd.s32 4294967294, %s19304_s24   ;;  %s19304_s24 = sphi %s19363_s24, %s25736_s24   ;;  %s19300_s23 = sphi %s19361_s23, %s25735_s23   ;;  %s19296_s22 = sphi %s19359_s22, %s25734_s22   ;;  %s19292_s21 = sphi %s19357_s21, %s25733_s21  }
   0xe   : > { %p46_p0 = scmp.ne.s32.totalorder %s19296_s22, %s19292_s21  ;;  %p24857_p1 = scmp.eq.s32.totalorder %s19378_s25, 0 }
   0xf   : > { %p186_p3 = scmp.eq.s32.totalorder %s15050_s26, 1  ;;  %p15051_p5 = scmp.ge.s32.totalorder %s19304_s24, 1 }
  0x10   : > { %p19387_p4 = por %p24857_p1, %p46_p0  ;;  %p193_p7 = scmp.lt.s32.totalorder %s19304_s24, 3 }
  0x11   : > { %p19392_p6 = por %p186_p3, %p46_p0  ;;  %s19306_s30 = smov [#allocation8]  }
  0x12   : > { %s25110_s27 = scalar_select %p19387_p4, 1, 0 }
  0x13   : > { %s25111_s28 = scalar_select %p19392_p6, 1, 0 }
  0x14   : > { %p19397_p8 = pnand %p15051_p5, %p193_p7  ;;  %s205_s7 = sshll.u32 %s19306_s30, 4  ;;  %s19401_s7 = int_to_ptr.vmem [resolvable:$true] %s205_s7 }
  0x15   : > { %s19307_s9 = smov [#allocation9]   ;;  %s19308_s11 = smov [#allocation11]  }
  0x16   : > { %s25112_s29 = scalar_select %p19397_p8, 1, 0 }
  0x17   : > { %p18499_p9 = pneg %p19397_p8  ;;  %s218_s10 = sshll.u32 %s19307_s9, 4  ;;  %s19412_s10 = int_to_ptr.vmem [resolvable:$true] %s218_s10 }
  0x18   : > { %s19414_s12 = sshll.u32 %s19308_s11, 4  ;;  %s25114_s2 = sld [smem:[#allocation143_spill]]  ;;  %s232_s12 = int_to_ptr.vmem [resolvable:$true] %s19414_s12 }
  0x19   : > { %p19408_p11 = pnand %p18499_p9, %p24857_p1 }
  0x1b   : > { %p19424_p13 = pneg %p19408_p11 }
  0x1e   : > { %s19082_s15 = scalar_lea.hbm %s25114_s2, 4608 }
  0x1f   : > { %p19083_p12 = scmp.ne.s32.totalorder %s25114_s2, %s19082_s15  ;;  %p19089_p5 = scmp.lt.u32.totalorder %s19082_s15, %s25114_s2 }
  0x21   : > { %p19085_p0 = pnand %p19424_p13, %p19083_p12 }
  0x23   : > { %p19086_p3 = pneg %p19085_p0 }
  0x25   : > { %p19091_p7 = pnand %p19089_p5, %p19086_p3 }
  0x27   : > { %19094 = shalt.err (!%p19091_p7)
}
  0x28   : > { %s19095_s26 = scalar_lea.vmem %s19401_s7, 4608  ;;  %p19103_p2 = scmp.lt.s32.totalorder %s19401_s7, %s19401_s7 }
  0x29   : > { %p19096_p9 = scmp.ne.s32.totalorder %s19401_s7, %s19095_s26  ;;  %p19104_p6 = scmp.lt.s32.totalorder %s19095_s26, %s19095_s26 }
  0x2b   : > { %p19098_p10 = pnand %p19096_p9, %p19424_p13  ;;  %p19105_p12 = por %p19104_p6, %p19103_p2 }
  0x2d   : > { %p19099_p1 = pneg %p19098_p10 }
  0x2f   : > { %p19106_p0 = pnand %p19105_p12, %p19099_p1 }
  0x31   : > { %19109 = shalt.err (!%p19106_p0)
}
  0x32   : > { %s24860_s30 = smov 64   ;;  %s24861_s9 = smov 4  }
  0x33   : > { %18502 = dma.hbm_to_vmem [thread:$0]  (!%p19408_p11), %s25114_s2, 4608, %s19401_s7, [#allocation7], %s24860_s30, %s24860_s30, %s24861_s9  }
  0x34   : > { %s25116_s3 = sld [smem:[#allocation144_spill]] }
  0x3a   : > { %s19110_s16 = scalar_lea.hbm %s25116_s3, 2304 }
  0x3b   : > { %p19111_p1 = scmp.ne.s32.totalorder %s25116_s3, %s19110_s16  ;;  %p19117_p10 = scmp.lt.u32.totalorder %s19110_s16, %s25116_s3 }
  0x3d   : > { %p19113_p2 = pnand %p19111_p1, %p19424_p13 }
  0x3f   : > { %p19114_p6 = pneg %p19113_p2 }
  0x41   : > { %p19119_p3 = pnand %p19117_p10, %p19114_p6 }
  0x43   : > { %19122 = shalt.err (!%p19119_p3)
}
  0x44   : > { %s19123_s7 = scalar_lea.vmem %s19412_s10, 2304  ;;  %p19131_p12 = scmp.lt.s32.totalorder %s19412_s10, %s19412_s10 }
  0x45   : > { %p19124_p5 = scmp.ne.s32.totalorder %s19412_s10, %s19123_s7  ;;  %p19132_p0 = scmp.lt.s32.totalorder %s19123_s7, %s19123_s7 }
  0x47   : > { %p19126_p7 = pnand %p19124_p5, %p19424_p13  ;;  %p19133_p1 = por %p19132_p0, %p19131_p12 }
  0x49   : > { %p19127_p9 = pneg %p19126_p7 }
  0x4b   : > { %p19134_p2 = pnand %p19133_p1, %p19127_p9 }
  0x4d   : > { %19137 = shalt.err (!%p19134_p2)
}
  0x4e   : > { %18505 = dma.hbm_to_vmem [thread:$0]  (!%p19408_p11), %s25116_s3, 2304, %s19412_s10, [#allocation10], %s24860_s30, %s24860_s30, %s24861_s9  }
  0x4f   : > { %s25117_s4 = sld [smem:[#allocation145_spill]] }
  0x55   : > { %s19138_s16 = scalar_lea.hbm %s25117_s4, 2304 }
  0x56   : > { %p19139_p6 = scmp.ne.s32.totalorder %s25117_s4, %s19138_s16  ;;  %p19145_p5 = scmp.lt.u32.totalorder %s19138_s16, %s25117_s4 }
  0x58   : > { %p19141_p10 = pnand %p19139_p6, %p19424_p13 }
  0x5a   : > { %p19142_p3 = pneg %p19141_p10 }
  0x5c   : > { %p19147_p7 = pnand %p19145_p5, %p19142_p3 }
  0x5e   : > { %19150 = shalt.err (!%p19147_p7)
}
  0x5f   : > { %s19151_s7 = scalar_lea.vmem %s232_s12, 2304  ;;  %p19159_p1 = scmp.lt.s32.totalorder %s232_s12, %s232_s12 }
  0x60   : > { %p19152_p9 = scmp.ne.s32.totalorder %s232_s12, %s19151_s7  ;;  %p19160_p2 = scmp.lt.s32.totalorder %s19151_s7, %s19151_s7 }
  0x62   : > { %p19154_p12 = pnand %p19152_p9, %p19424_p13  ;;  %p19161_p4 = por %p19160_p2, %p19159_p1 }
  0x64   : > { %p19155_p0 = pneg %p19154_p12 }
  0x66   : > { %p19162_p8 = pnand %p19161_p4, %p19155_p0 }
  0x68   : > { %19165 = shalt.err (!%p19162_p8)
}
  0x69   : > { %18508 = dma.hbm_to_vmem [thread:$0]  (!%p19408_p11), %s25117_s4, 2304, %s232_s12, [#allocation10], %s24860_s30, %s24860_s30, %s24861_s9  }
  0x6a   : > { %s19497_s18 = sadd.s32 1, %s19304_s24   ;;  %s33_s13 = sadd.s32 1, %s19300_s23 }
  0x6b   : > { %s30_s8 = ssub.s32 %s19304_s24, %s19497_s18  ;;  %p40_p8 = scmp.ne.s32.totalorder %s19300_s23, %s19296_s22 }
  0x6c   : > { %p31_p4 = scmp.eq.s32.totalorder %s30_s8, 0  ;;  %p41_p13 = scmp.eq.s32.totalorder %s19304_s24, 0 }
  0x6d   : > { %p18523_p6 = scmp.lt.s32.totalorder %s19304_s24, 2  ;;  %p25118_p3 = scmp.eq.s32.totalorder %s19378_s25, 1 }
  0x6e   : > { %s19507_s14 = scalar_select %p31_p4, %s19300_s23, %s33_s13  }
  0x6f   : > { %p42_p10 = por %p41_p13, %p40_p8  ;;  %p19511_p5 = por %p25118_p3, %p40_p8 }
  0x70   : > { %s19516_s16 = sand.u32 1, %s19300_s23   ;;  %s16128_s12 = sshll.u32 %s19304_s24, 12 }
  0x71   : > { %s15056_s17 = sshll.u32 %s19516_s16, 8  ;;  %s25120_s0 = sld [smem:[#allocation142_spill]] }
  0x72   : > { %s252_s7 = scalar_lea.vmem [#allocation3], %s15056_s17  ;;  %p19525_p11 = pnand %p18523_p6, %p42_p10 }
  0x73   : > { %s259_s10 = sshll.u32 %s252_s7, 4  ;;  %s249_s8 = scalar_lea.sflag [#allocation4], %s19516_s16  ;;  %s19529_s10 = int_to_ptr.vmem [resolvable:$true] %s259_s10 }
  0x74   : > { %p19168_p9 = pneg %p19525_p11 }
  0x77   : > { %s19523_s26 = scalar_lea.hbm %s25120_s0, %s16128_s12  ;;  %s19171_s19 = scalar_lea.hbm %s25120_s0, 8192 }
  0x78   : > { %s19166_s13 = scalar_lea.hbm %s19523_s26, 4096  ;;  %p19172_p1 = scmp.lt.u32.totalorder %s19523_s26, %s25120_s0 }
  0x79   : > { %p19167_p7 = scmp.ne.s32.totalorder %s19523_s26, %s19166_s13  ;;  %p19173_p2 = scmp.lt.u32.totalorder %s19171_s19, %s19166_s13 }
  0x7a   : > { %p19175_p8 = scmp.lt.u32.totalorder %s19166_s13, %s19523_s26 }
  0x7b   : > { %p19169_p12 = pnand %p19168_p9, %p19167_p7  ;;  %p19174_p4 = por %p19173_p2, %p19172_p1 }
  0x7d   : > { %p19170_p0 = pneg %p19169_p12  ;;  %p19176_p13 = por %p19175_p8, %p19174_p4 }
  0x7f   : > { %p19177_p6 = pnand %p19176_p13, %p19170_p0 }
  0x81   : > { %19180 = shalt.err (!%p19177_p6)
}
  0x82   : > { %s19181_s30 = scalar_lea.vmem %s19529_s10, 4096  ;;  %s19311_s12 = smov [#allocation3]  }
  0x83   : > { %p19182_p10 = scmp.ne.s32.totalorder %s19529_s10, %s19181_s30  ;;  %s19186_s17 = sshll.u32 %s19311_s12, 4  ;;  %s19187_s17 = int_to_ptr.vmem [resolvable:$false] %s19186_s17 }
  0x84   : > { %s19188_s20 = scalar_lea.vmem %s19187_s17, 8192  ;;  %p19189_p12 = scmp.lt.s32.totalorder %s19529_s10, %s19187_s17 }
  0x85   : > { %p19184_p3 = pnand %p19182_p10, %p19168_p9  ;;  %p19190_p1 = scmp.lt.s32.totalorder %s19188_s20, %s19181_s30 }
  0x87   : > { %p19185_p7 = pneg %p19184_p3  ;;  %p19191_p2 = por %p19190_p1, %p19189_p12 }
  0x89   : > { %p19192_p4 = pnand %p19191_p2, %p19185_p7 }
  0x8b   : > { %19195 = shalt.err (!%p19192_p4)
}
  0x8c   : > { %s19312_s13 = smov 128   ;;  %s19313_s19 = smov 8  }
  0x8d   : > { %18512 = dma.hbm_to_vmem [thread:$0]  (!%p19525_p11), %s19523_s26, 4096, %s19529_s10, %s249_s8, %s19312_s13, %s19312_s13, %s19313_s19  }
  0x8e   : > { %s269_s7 = sand.u32 1, %s19304_s24   ;;  %s18478_s12 = smul.u32 216, %s19516_s16 }
  0x8f   : > { %s18479_s17 = smul.u32 3456, %s19304_s24  ;;  %s19569_s3 = scalar_lea.sflag [#allocation7], %s269_s7 }
  0x90   : > { %s273_s0 = scalar_lea.vmem [#allocation6], %s18478_s12  ;;  %s19201_s10 = scalar_lea.hbm %s24851_s1, 6912 }
  0x91   : > { %s19565_s9 = scalar_lea.hbm %s24851_s1, %s18479_s17  ;;  %s280_s2 = sshll.u32 %s273_s0, 4  ;;  %s19567_s2 = int_to_ptr.vmem [resolvable:$true] %s280_s2 }
  0x92   : > { %s19196_s4 = scalar_lea.hbm %s19565_s9, 3456  ;;  %p19202_p6 = scmp.lt.u32.totalorder %s19565_s9, %s24851_s1 }
  0x93   : > { %p19197_p0 = scmp.ne.s32.totalorder %s19565_s9, %s19196_s4  ;;  %p19203_p10 = scmp.lt.u32.totalorder %s19201_s10, %s19196_s4 }
  0x94   : > { %p19205_p7 = scmp.lt.u32.totalorder %s19196_s4, %s19565_s9 }
  0x95   : > { %p19199_p8 = pnand %p19197_p0, %p19168_p9  ;;  %p19204_p3 = por %p19203_p10, %p19202_p6 }
  0x97   : > { %p19200_p13 = pneg %p19199_p8  ;;  %p19206_p12 = por %p19205_p7, %p19204_p3 }
  0x99   : > { %p19207_p1 = pnand %p19206_p12, %p19200_p13 }
  0x9b   : > { %19210 = shalt.err (!%p19207_p1)
}
  0x9c   : > { %s19211_s0 = scalar_lea.vmem %s19567_s2, 3456  ;;  %s19314_s19 = smov [#allocation6]  }
  0x9d   : > { %p19212_p2 = scmp.ne.s32.totalorder %s19567_s2, %s19211_s0  ;;  %s19216_s7 = sshll.u32 %s19314_s19, 4  ;;  %s19217_s7 = int_to_ptr.vmem [resolvable:$false] %s19216_s7 }
  0x9e   : > { %s19218_s12 = scalar_lea.vmem %s19217_s7, 6912  ;;  %p19219_p8 = scmp.lt.s32.totalorder %s19567_s2, %s19217_s7 }
  0x9f   : > { %p19214_p4 = pnand %p19212_p2, %p19168_p9  ;;  %p19220_p6 = scmp.lt.s32.totalorder %s19218_s12, %s19211_s0 }
  0xa1   : > { %p19215_p0 = pneg %p19214_p4  ;;  %p19221_p10 = por %p19220_p6, %p19219_p8 }
  0xa3   : > { %p19222_p3 = pnand %p19221_p10, %p19215_p0 }
  0xa5   : > { %19225 = shalt.err (!%p19222_p3)
}
  0xa6   : > { %s25122_s4 = smov 4   ;;  %s25123_s17 = smov 64  }
  0xa7   : > { %18515 = dma.hbm_to_vmem [thread:$0]  (!%p19525_p11), %s19565_s9, 3456, %s19567_s2, %s19569_s3, %s25123_s17, %s25123_s17, %s25122_s4  }
  0xa8   : > { %p25124_p9 = scmp.ne.s32.totalorder %s25112_s29, 0 }
  0xaa   : > { %292 = sbr.rel (%p25124_p9) target bundleno = 2510 (0x9ce), region = 44 }
  0xb1   : > { %s19601_s30 = sand.u32 1, %s19296_s22   ;;  %p25125_p13 = scmp.ne.s32.totalorder %s25110_s27, 0 }
  0xb2   : > { %s15061_s20 = sshll.u32 %s19601_s30, 8  ;;  %s295_s16 = scalar_lea.sflag [#allocation4], %s19601_s30 }
  0xb3   : > { %s19607_s11 = scalar_lea.vmem [#allocation3], %s15061_s20 }
  0xb4   : > { %19271 = dma.done.wait (%p25125_p13), %s295_s16, 4096  }
  0xb5   : > { %19273 = vsyncadd (%p25125_p13), %s295_s16, 4294963200  ;;  %s303_s2 = sand.u32 1, %s19378_s25   ;;  %s18480_s3 = smul.u32 216, %s19601_s30 }
  0xb6   : > { %s304_s29 = scalar_lea.sflag [#allocation7], %s303_s2 }
  0xb7   : > { %s19615_s9 = scalar_lea.vmem [#allocation6], %s18480_s3 }
  0xb8   : > { %19275 = dma.done.wait (%p25125_p13), %s304_s29, 3456  }
  0xb9   : > { %19277 = vsyncadd (%p25125_p13), %s304_s29, 4294963840  ;;  %p25126_p11 = scmp.eq.s32.totalorder %s19378_s25, 0 }
  0xbb   : > { %19279 = dma.done.wait (%p25126_p11), [#allocation7], 4608   ;;  %p25127_p7 = pmov %p25126_p11 }
  0xbd   : > { %19281 = vsyncadd (%p25127_p7), [#allocation7], 4294962688  ;;  %p25128_p12 = pmov %p25127_p7 }
  0xbe   : > { %p25129_p1 = pmov %p25127_p7 }
  0xbf   : > { %19283 = dma.done.wait (%p25128_p12), [#allocation10], 4608  }
  0xc0   : > { %19285 = vsyncadd (%p25129_p1), [#allocation10], 4294962688  ;;  %vm1102_vm0 = vsmask.f32 3328  ;;  %v18573_v0 = vld [vmem:[#allocation8 + $0x20] sm:$0xff]   ;;  %v18574_v1 = vld [vmem:[#allocation8 + $0x28] sm:$0xff]  }
  0xc1   : > { %16698 = vmatprep.subr.bf16.mxu0 %v18573_v0  ;;  %vm1103_vm1 = vsmask.f32 7440  ;;  %v18575_v2 = vld [vmem:[#allocation8 + $0x30] sm:$0xff]   ;;  %v18576_v11 = vld [vmem:[#allocation8 + $0x38] sm:$0xff]   ;;  %v19655_v27 = vld [vmem:[%s19615_s9 + $0x18] sm:$0xf] }
  0xc2   : > { %16699 = vmatpush3.bf16.msra.mxu0 %v18573_v0  ;;  %v19630_v3 = vld [vmem:[%s19615_s9] sm:$0xf]  ;;  %v19633_v4 = vld [vmem:[%s19615_s9 + $0x4] sm:$0xf]  ;;  %v1042_v5 = vld [vmem:[%s19615_s9 + $0x8] sm:$0xf] }
  0xc3   : > { %16700 = vmatprep.subr.bf16.mxu0 %v18574_v1  ;;  %v1106_v6 = vshrl.u32 %v19630_v3, 16  ;;  %v1109_v7 = vshll.u32 %v19630_v3, 16  ;;  %v1115_v8 = vshll.u32 %v19633_v4, 16  ;;  %v1119_v9 = vshrl.u32 %v19633_v4, 16  ;;  %v19641_v10 = vld [vmem:[%s19615_s9 + $0xc] sm:$0xf]  ;;  %vm19659_vm2 = vmor %vm1102_vm0, %vm1103_vm1 }
  0xc4   : > { %v1125_v12 = vshll.u32 %v1042_v5, 16  ;;  %v19644_v13 = vld [vmem:[%s19615_s9 + $0x10] sm:$0xf]  ;;  %v19647_v14 = vld [vmem:[%s19615_s9 + $0x14] sm:$0xf]  ;;  %v1130_v20 = vshrl.u32 %v19641_v10, 16 }
  0xc5   : > { %v1108_v15 = vrot.slane %v1106_v6, 4  ;;  %v1111_v16 = vrot.slane %v1109_v7, 5  ;;  %v1117_v17 = vrot.slane %v1115_v8, 5  ;;  %v1121_v18 = vrot.slane %v1119_v9, 4  ;;  %v19664_v32 = vld [vmem:[%s19615_s9 + $0x1c] sm:$0xf] }
  0xc6   : > { %16701 = vmatpush3.bf16.msra.mxu0 %v18574_v1  ;;  %v1127_v19 = vrot.slane %v1125_v12, 5  ;;  %v1133_v21 = vshll.u32 %v19641_v10, 16  ;;  %v1139_v22 = vshll.u32 %v19644_v13, 16  ;;  %v1143_v25 = vshrl.u32 %v19644_v13, 16  ;;  %v18577_v38 = vld [vmem:[#allocation8] sm:$0xff]   ;;  %v18578_v9 = vld [vmem:[#allocation8 + $0x8] sm:$0xff]  }
  0xc7   : > { %16702 = vmatprep.subr.bf16.mxu0 %v18575_v2  ;;  %v1112_v23 = vor.u32 %v1111_v16, %v1108_v15  ;;  %v1122_v24 = vor.u32 %v1121_v18, %v1117_v17  ;;  %v1149_v26 = vshll.u32 %v19647_v14, 16  ;;  %v1132_v29 = vrot.slane %v1130_v20, 4  ;;  %v1048_v39 = vld [vmem:[%s19615_s9 + $0x20] sm:$0xf]  ;;  %v19675_v46 = vld [vmem:[%s19615_s9 + $0x24] sm:$0xf] }
  0xc8   : > { %v1135_v30 = vrot.slane %v1133_v21, 5  ;;  %v1141_v31 = vrot.slane %v1139_v22, 5  ;;  %vm1570_vm3 = vcmask 523264   ;;  %v1145_v35 = vrot.slane %v1143_v25, 4  ;;  %v19678_v51 = vld [vmem:[%s19615_s9 + $0x28] sm:$0xf] }
  0xc9   : > { %v1113_v33 = vrot.slane %v1112_v23, 4  ;;  %v1123_v34 = vrot.slane %v1122_v24, 4  ;;  %v1151_v37 = vrot.slane %v1149_v26, 5  ;;  %v1154_v40 = vshrl.u32 %v19655_v27, 16  ;;  %v19685_v58 = vld [vmem:[%s19615_s9 + $0x2c] sm:$0xf] }
  0xca   : > { %16703 = vmatpush3.bf16.msra.mxu0 %v18575_v2  ;;  %v1136_v36 = vor.u32 %v1135_v30, %v1132_v29  ;;  %v1157_v41 = vshll.u32 %v19655_v27, 16  ;;  %v1146_v44 = vor.u32 %v1145_v35, %v1141_v31  ;;  %v1163_v45 = vshll.u32 %v19664_v32, 16  ;;  %v19693_v1 = vld [vmem:[%s19615_s9 + $0x30] sm:$0xf]  ;;  %v19698_v8 = vld [vmem:[%s19615_s9 + $0x34] sm:$0xf] }
  0xcb   : > { %16704 = vmatprep.subr.bf16.mxu0 %v18576_v11  ;;  %v1118_v42 = vsel %vm19659_vm2, %v1113_v33, %v1117_v17  ;;  %v1128_v43 = vsel %vm19659_vm2, %v1123_v34, %v1127_v19  ;;  %v1156_v49 = vrot.slane %v1154_v40, 4  ;;  %v1167_v54 = vshrl.u32 %v19664_v32, 16  ;;  %v19707_v19 = vld [vmem:[%s19615_s9 + $0x38] sm:$0xf]  ;;  %v18579_v26 = vld [vmem:[#allocation8 + $0x10] sm:$0xff]   ;;  %s19316_s27 = smov 32  }
  0xcc   : > { %v15098_v47 = vcombine.low %v1118_v42, %v1128_v43  ;;  %v1137_v48 = vrot.slane %v1136_v36, 4  ;;  %v1159_v50 = vrot.slane %v1157_v41, 5  ;;  %v1147_v52 = vrot.slane %v1146_v44, 4  ;;  %v19714_v34 = vld [vmem:[%s19615_s9 + $0x3c] sm:$0xf]  ;;  %s19317_s8 = smov 96  }
  0xcd   : > { %v1165_v53 = vrot.slane %v1163_v45, 5  ;;  %v1173_v55 = vshll.u32 %v1048_v39, 16  ;;  %v1178_v59 = vshrl.u32 %v19675_v46, 16  ;;  %v1181_v60 = vshll.u32 %v19675_v46, 16  ;;  %v19720_v39 = vld [vmem:[%s19615_s9 + $0x40] sm:$0xf] }
  0xce   : > { %16705 = vmatpush3.bf16.msra.mxu0 %v18576_v11  ;;  %16706 = vmatprep.mubr.msk.bf16.mxu0 %vm1570_vm3, %v15098_v47  ;;  %v1142_v56 = vsel %vm19659_vm2, %v1137_v48, %v1141_v31  ;;  %v1160_v57 = vor.u32 %v1159_v50, %v1156_v49  ;;  %v1152_v61 = vsel %vm19659_vm2, %v1147_v52, %v1151_v37  ;;  %v1169_v62 = vrot.slane %v1167_v54, 4  ;;  %v19727_v44 = vld [vmem:[%s19615_s9 + $0x44] sm:$0xf]  ;;  %s19318_s13 = smov 64   ;;  %s24672_s0 = scalar_lea.vmem [#allocation12], %s15061_s20 }
  0xcf   : > { %16738 = vmatprep.subr.bf16.mxu0 %v18577_v38  ;;  %v1175_v63 = vrot.slane %v1173_v55, 5  ;;  %v1187_v0 = vshll.u32 %v19678_v51, 16  ;;  %v19695_v2 = vcombine.low %v1142_v56, %v1152_v61  ;;  %v1180_v6 = vrot.slane %v1178_v59, 4  ;;  %v19736_v55 = vld [vmem:[%s19615_s9 + $0x48] sm:$0xf]  ;;  %s16193_s19 = sshll.u32 %s19378_s25, 12 }
  0xd0   : > { %v1161_v5 = vrot.slane %v1160_v57, 4  ;;  %v1183_v7 = vrot.slane %v1181_v60, 5  ;;  %v1170_v11 = vor.u32 %v1169_v62, %v1165_v53  ;;  %v1191_v15 = vshrl.u32 %v19678_v51, 16  ;;  %v18580_v56 = vld [vmem:[#allocation8 + $0x18] sm:$0xff]   ;;  %s14926_s7 = sshll.u32 %s24672_s0, 4  ;;  %s24799_s17 = scalar_lea.hbm %s24856_s6, %s16193_s19  ;;  %s24801_s7 = int_to_ptr.vmem [resolvable:$true] %s14926_s7 }
  0xd1   : > { %25132 = vst [vmem:[#allocation18_spill] sm:$0xff] %v19695_v2  ;;  %v1189_v12 = vrot.slane %v1187_v0, 5  ;;  %v1197_v16 = vshll.u32 %v19685_v58, 16  ;;  %16707 = vmatmul.mubr.msk.bf16.vlgmr.msra.gmra.mrb[0].mxu0 %vm1570_vm3, %v19695_v2  ;;  %v1202_v20 = vshrl.u32 %v19693_v1, 16  ;;  %v1205_v21 = vshll.u32 %v19693_v1, 16  ;;  %s14913_s25 = scalar_lea.sflag [#allocation5], %s19601_s30 }
  0xd2   : > { %v1166_v17 = vsel %vm19659_vm2, %v1161_v5, %v1165_v53  ;;  %v1184_v18 = vor.u32 %v1183_v7, %v1180_v6  ;;  %16739 = vmatpush3.bf16.msra.mxu0 %v18577_v38  ;;  %v1171_v22 = vrot.slane %v1170_v11, 4  ;;  %v1193_v23 = vrot.slane %v1191_v15, 4  ;;  %v19742_v62 = vld [vmem:[%s19615_s9 + $0x4c] sm:$0xf]  ;;  %v19749_v7 = vld [vmem:[%s19615_s9 + $0x50] sm:$0xf] }
  0xd3   : > { %v1199_v24 = vrot.slane %v1197_v16, 5  ;;  %v1211_v25 = vshll.u32 %v19698_v8, 16  ;;  %v1204_v30 = vrot.slane %v1202_v20, 4  ;;  %v1207_v31 = vrot.slane %v1205_v21, 5  ;;  %16740 = vmatprep.subr.bf16.mxu0 %v18578_v9  ;;  %v19903_v2 = vld [vmem:[%s19615_s9 + $0xa4] sm:$0xf] }
  0xd4   : > { %v1185_v29 = vrot.slane %v1184_v18, 4  ;;  %v1215_v33 = vshrl.u32 %v19698_v8, 16  ;;  %v1176_v35 = vsel %vm19659_vm2, %v1171_v22, %v1175_v63  ;;  %v1194_v36 = vor.u32 %v1193_v23, %v1189_v12  ;;  %v19762_v22 = vld [vmem:[#allocation8 + $0x40] sm:$0xff]   ;;  %25148 = vst [vmem:[#allocation34_spill] sm:$0xff] %v19903_v2  ;;  %s19226_s20 = scalar_lea.vmem %s24801_s7, 4096  ;;  %s19319_s16 = smov [#allocation12]  }
  0xd5   : > { %v1213_v37 = vrot.slane %v1211_v25, 5  ;;  %v1221_v38 = vshll.u32 %v19707_v19, 16  ;;  %v19722_v40 = vcombine.low %v1166_v17, %v1176_v35  ;;  %v1208_v42 = vor.u32 %v1207_v31, %v1204_v30  ;;  %p19227_p2 = scmp.ne.s32.totalorder %s24801_s7, %s19226_s20 }
  0xd6   : > { %v1190_v41 = vsel %vm19659_vm2, %v1185_v29, %v1189_v12  ;;  %v1217_v43 = vrot.slane %v1215_v33, 4  ;;  %v1195_v45 = vrot.slane %v1194_v36, 4  ;;  %v1226_v48 = vshrl.u32 %v19714_v34, 16  ;;  %16741 = vmatpush3.bf16.msra.mxu0 %v18578_v9  ;;  %v19752_v9 = vld [vmem:[%s19615_s9 + $0x54] sm:$0xf] }
  0xd7   : > { %25133 = vst [vmem:[#allocation19_spill] sm:$0xff] %v19722_v40  ;;  %v1223_v47 = vrot.slane %v1221_v38, 5  ;;  %v1229_v49 = vshll.u32 %v19714_v34, 16  ;;  %16710 = vmatprep.mubr.msk.bf16.mxu0 %vm1570_vm3, %v19722_v40  ;;  %v1209_v50 = vrot.slane %v1208_v42, 4  ;;  %v1235_v53 = vshll.u32 %v19720_v39, 16  ;;  %16742 = vmatprep.subr.bf16.mxu0 %v18579_v26  ;;  %p19228_p4 = pnand %p19227_p2, %p19511_p5 }
  0xd8   : > { %v1218_v52 = vor.u32 %v1217_v43, %v1213_v37  ;;  %v1239_v54 = vshrl.u32 %v19720_v39, 16  ;;  %v1200_v57 = vsel %vm19659_vm2, %v1195_v45, %v1199_v24  ;;  %v1228_v59 = vrot.slane %v1226_v48, 4  ;;  %v19767_v29 = vld [vmem:[%s19615_s9 + $0x58] sm:$0xf] }
  0xd9   : > { %v1231_v60 = vrot.slane %v1229_v49, 5  ;;  %v1245_v61 = vshll.u32 %v19727_v44, 16  ;;  %v19744_v63 = vcombine.low %v1190_v41, %v1200_v57  ;;  %v1214_v0 = vsel %vm19659_vm2, %v1209_v50, %v1213_v37  ;;  %v19781_v49 = vld [vmem:[%s19615_s9 + $0x60] sm:$0xf]  ;;  %p19229_p0 = pneg %p19228_p4 }
  0xda   : > { %v1219_v5 = vrot.slane %v1218_v52, 4  ;;  %v1237_v6 = vrot.slane %v1235_v53, 5  ;;  %v1241_v12 = vrot.slane %v1239_v54, 4  ;;  %v1250_v16 = vshrl.u32 %v19736_v55, 16  ;;  %16743 = vmatpush3.bf16.msra.mxu0 %v18579_v26 }
  0xdb   : > { %25134 = vst [vmem:[#allocation20_spill] sm:$0xff] %v19744_v63  ;;  %v1232_v11 = vor.u32 %v1231_v60, %v1228_v59  ;;  %v1247_v15 = vrot.slane %v1245_v61, 5  ;;  %16711 = vmatmul.mubr.msk.bf16.gmra.mrb[4].mxu0 %vm1570_vm3, %v19744_v63  ;;  %v1253_v18 = vshll.u32 %v19736_v55, 16  ;;  %v1259_v20 = vshll.u32 %v19742_v62, 16  ;;  %16744 = vmatprep.subr.bf16.mxu0 %v18580_v56 }
  0xdc   : > { %v1224_v17 = vsel %vm19659_vm2, %v1219_v5, %v1223_v47  ;;  %v1263_v21 = vshrl.u32 %v19742_v62, 16  ;;  %v1242_v25 = vor.u32 %v1241_v12, %v1237_v6  ;;  %v1252_v26 = vrot.slane %v1250_v16, 4  ;;  %v19777_v47 = vld [vmem:[%s19615_s9 + $0x5c] sm:$0xf]  ;;  %v19801_v16 = vld [vmem:[%s19615_s9 + $0x68] sm:$0xf] }
  0xdd   : > { %v19764_v23 = vcombine.low %v1214_v0, %v1224_v17  ;;  %v1233_v24 = vrot.slane %v1232_v11, 4  ;;  %v1255_v30 = vrot.slane %v1253_v18, 5  ;;  %v1261_v31 = vrot.slane %v1259_v20, 5  ;;  %25136 = vst [vmem:[#allocation22_spill] sm:$0xff] %v19777_v47  ;;  %25138 = vst [vmem:[#allocation24_spill] sm:$0xff] %v19801_v16 }
  0xde   : > { %v1265_v33 = vrot.slane %v1263_v21, 4  ;;  %v1269_v35 = vshll.u32 %v19749_v7, 16  ;;  %v1243_v37 = vrot.slane %v1242_v25, 4  ;;  %v1274_v38 = vshrl.u32 %v19752_v9, 16  ;;  %16745 = vmatpush3.bf16.msra.mxu0 %v18580_v56  ;;  %v19788_v56 = vld [vmem:[%s19615_s9 + $0x64] sm:$0xf] }
  0xdf   : > { %25135 = vst [vmem:[#allocation21_spill] sm:$0xff] %v19764_v23  ;;  %16714 = vmatprep.mubr.msk.bf16.mxu0 %vm1570_vm3, %v19764_v23  ;;  %v1238_v36 = vsel %vm19659_vm2, %v1233_v24, %v1237_v6  ;;  %v1277_v41 = vshll.u32 %v19752_v9, 16  ;;  %v1256_v42 = vor.u32 %v1255_v30, %v1252_v26  ;;  %v1283_v48 = vshll.u32 %v19767_v29, 16  ;;  %16778 = vmatprep.subr.bf16.mxu0 %v19762_v22  ;;  %v19806_v20 = vld [vmem:[%s19615_s9 + $0x6c] sm:$0xf] }
  0xe0   : > { %v1266_v43 = vor.u32 %v1265_v33, %v1261_v31  ;;  %v1271_v45 = vrot.slane %v1269_v35, 5  ;;  %v1248_v50 = vsel %vm19659_vm2, %v1243_v37, %v1247_v15  ;;  %v1276_v52 = vrot.slane %v1274_v38, 4  ;;  %v19811_v30 = vld [vmem:[%s19615_s9 + $0x70] sm:$0xf] }
  0xe1   : > { %v1279_v53 = vrot.slane %v1277_v41, 5  ;;  %v1287_v54 = vshrl.u32 %v19767_v29, 16  ;;  %v19790_v57 = vcombine.low %v1238_v36, %v1248_v50  ;;  %v1257_v59 = vrot.slane %v1256_v42, 4  ;;  %v19820_v42 = vld [vmem:[%s19615_s9 + $0x74] sm:$0xf] }
  0xe2   : > { %v1267_v60 = vrot.slane %v1266_v43, 4  ;;  %v1285_v61 = vrot.slane %v1283_v48, 5  ;;  %v1293_v6 = vshll.u32 %v19777_v47, 16  ;;  %v1298_v11 = vshrl.u32 %v19781_v49, 16  ;;  %25140 = vst [vmem:[#allocation26_spill] sm:$0xff] %v19820_v42 }
  0xe3   : > { %25137 = vst [vmem:[#allocation23_spill] sm:$0xff] %v19790_v57  ;;  %v1280_v0 = vor.u32 %v1279_v53, %v1276_v52  ;;  %v1289_v5 = vrot.slane %v1287_v54, 4  ;;  %16715 = vmatmul.mubr.msk.bf16.gmra.mrb[8].mxu0 %vm1570_vm3, %v19790_v57  ;;  %v1262_v12 = vsel %vm19659_vm2, %v1257_v59, %v1261_v31  ;;  %v1301_v17 = vshll.u32 %v19781_v49, 16  ;;  %v19826_v53 = vld [vmem:[%s19615_s9 + $0x78] sm:$0xf] }
  0xe4   : > { %v1272_v15 = vsel %vm19659_vm2, %v1267_v60, %v1271_v45  ;;  %v1307_v18 = vshll.u32 %v19788_v56, 16  ;;  %v1295_v26 = vrot.slane %v1293_v6, 5  ;;  %v1300_v31 = vrot.slane %v1298_v11, 4 }
  0xe5   : > { %v19808_v21 = vcombine.low %v1262_v12, %v1272_v15  ;;  %v1281_v24 = vrot.slane %v1280_v0, 4  ;;  %v1290_v25 = vor.u32 %v1289_v5, %v1285_v61  ;;  %v1303_v33 = vrot.slane %v1301_v17, 5  ;;  %v19834_v12 = vld [vmem:[%s19615_s9 + $0x7c] sm:$0xf]  ;;  %v19837_v15 = vld [vmem:[%s19615_s9 + $0x80] sm:$0xf] }
  0xe6   : > { %v1309_v35 = vrot.slane %v1307_v18, 5  ;;  %v1311_v36 = vshrl.u32 %v19788_v56, 16  ;;  %v1317_v41 = vshll.u32 %v19801_v16, 16  ;;  %v1322_v43 = vshrl.u32 %v19806_v20, 16  ;;  %25142 = vst [vmem:[#allocation28_spill] sm:$0xff] %v19837_v15 }
  0xe7   : > { %25139 = vst [vmem:[#allocation25_spill] sm:$0xff] %v19808_v21  ;;  %16718 = vmatprep.mubr.msk.bf16.mxu0 %vm1570_vm3, %v19808_v21  ;;  %v1286_v37 = vsel %vm19659_vm2, %v1281_v24, %v1285_v61  ;;  %v1291_v38 = vrot.slane %v1290_v25, 4  ;;  %v1304_v45 = vor.u32 %v1303_v33, %v1300_v31  ;;  %v1325_v50 = vshll.u32 %v19806_v20, 16  ;;  %v19882_v21 = vld [vmem:[%s19615_s9 + $0x98] sm:$0xf] }
  0xe8   : > { %v1313_v48 = vrot.slane %v1311_v36, 4  ;;  %v1331_v52 = vshll.u32 %v19811_v30, 16  ;;  %v1319_v59 = vrot.slane %v1317_v41, 5  ;;  %v1324_v60 = vrot.slane %v1322_v43, 4  ;;  %25146 = vst [vmem:[#allocation32_spill] sm:$0xff] %v19882_v21 }
  0xe9   : > { %v1296_v54 = vsel %vm19659_vm2, %v1291_v38, %v1295_v26  ;;  %v1335_v61 = vshrl.u32 %v19811_v30, 16  ;;  %v1305_v5 = vrot.slane %v1304_v45, 4  ;;  %v1327_v11 = vrot.slane %v1325_v50, 5  ;;  %v19842_v26 = vld [vmem:[%s19615_s9 + $0x84] sm:$0xf] }
  0xea   : > { %v19831_v0 = vcombine.low %v1286_v37, %v1296_v54  ;;  %v1314_v6 = vor.u32 %v1313_v48, %v1309_v35  ;;  %v1333_v17 = vrot.slane %v1331_v52, 5  ;;  %v1341_v24 = vshll.u32 %v19820_v42, 16  ;;  %v19850_v38 = vld [vmem:[%s19615_s9 + $0x88] sm:$0xf]  ;;  %v19948_v16 = vld [vmem:[%s19615_s9 + $0xbc] sm:$0xf] }
  0xeb   : > { %v1337_v18 = vrot.slane %v1335_v61, 4  ;;  %v1346_v25 = vshrl.u32 %v19826_v53, 16  ;;  %v1310_v31 = vsel %vm19659_vm2, %v1305_v5, %v1309_v35  ;;  %v1328_v36 = vor.u32 %v1327_v11, %v1324_v60  ;;  %v19857_v61 = vld [vmem:[%s19615_s9 + $0x8c] sm:$0xf] }
  0xec   : > { %25141 = vst [vmem:[#allocation27_spill] sm:$0xff] %v19831_v0  ;;  %16719 = vmatmul.mubr.msk.bf16.gmra.mrb[12].mxu0 %vm1570_vm3, %v19831_v0  ;;  %v1315_v33 = vrot.slane %v1314_v6, 4  ;;  %v1349_v37 = vshll.u32 %v19826_v53, 16  ;;  %v1343_v43 = vrot.slane %v1341_v24, 5  ;;  %v1355_v48 = vshll.u32 %v19834_v12, 16  ;;  %25143 = vst [vmem:[#allocation29_spill] sm:$0xff] %v19857_v61 }
  0xed   : > { %v1338_v41 = vor.u32 %v1337_v18, %v1333_v17  ;;  %v1348_v45 = vrot.slane %v1346_v25, 4  ;;  %v1329_v52 = vrot.slane %v1328_v36, 4  ;;  %v1359_v35 = vshrl.u32 %v19834_v12, 16  ;;  %v19863_v18 = vld [vmem:[%s19615_s9 + $0x90] sm:$0xf] }
  0xee   : > { %v1320_v50 = vsel %vm19659_vm2, %v1315_v33, %v1319_v59  ;;  %v1351_v54 = vrot.slane %v1349_v37, 5  ;;  %v1357_v6 = vrot.slane %v1355_v48, 5  ;;  %v1365_v11 = vshll.u32 %v19837_v15, 16  ;;  %v19869_v33 = vld [vmem:[%s19615_s9 + $0x94] sm:$0xf] }
  0xef   : > { %v19859_v60 = vcombine.low %v1310_v31, %v1320_v50  ;;  %v1339_v5 = vrot.slane %v1338_v41, 4  ;;  %v1334_v24 = vsel %vm19659_vm2, %v1329_v52, %v1333_v17  ;;  %v1361_v0 = vrot.slane %v1359_v35, 4 }
  0xf0   : > { %v1352_v25 = vor.u32 %v1351_v54, %v1348_v45  ;;  %v1370_v59 = vshrl.u32 %v19842_v26, 16  ;;  %v1367_v36 = vrot.slane %v1365_v11, 5  ;;  %v1373_v37 = vshll.u32 %v19842_v26, 16 }
  0xf1   : > { %25144 = vst [vmem:[#allocation30_spill] sm:$0xff] %v19859_v60  ;;  %16722 = vmatprep.mubr.msk.bf16.mxu0 %vm1570_vm3, %v19859_v60  ;;  %v1344_v31 = vsel %vm19659_vm2, %v1339_v5, %v1343_v43  ;;  %v1379_v41 = vshll.u32 %v19850_v38, 16  ;;  %v1362_v48 = vor.u32 %v1361_v0, %v1357_v6  ;;  %v1383_v35 = vshrl.u32 %v19850_v38, 16  ;;  %v19885_v43 = vld [vmem:[%s19615_s9 + $0x9c] sm:$0xf] }
  0xf2   : > { %v19877_v17 = vcombine.low %v1334_v24, %v1344_v31  ;;  %v1353_v45 = vrot.slane %v1352_v25, 4  ;;  %v1372_v50 = vrot.slane %v1370_v59, 4  ;;  %v1375_v52 = vrot.slane %v1373_v37, 5  ;;  %v19894_v25 = vld [vmem:[%s19615_s9 + $0xa0] sm:$0xf] }
  0xf3   : > { %v1381_v54 = vrot.slane %v1379_v41, 5  ;;  %v1389_v60 = vshll.u32 %v19857_v61, 16  ;;  %v1363_v11 = vrot.slane %v1362_v48, 4  ;;  %v1394_v0 = vshrl.u32 %v19863_v18, 16 }
  0xf4   : > { %25145 = vst [vmem:[#allocation31_spill] sm:$0xff] %v19877_v17  ;;  %16723 = vmatmul.mubr.msk.bf16.gmra.mrb[16].mxu0 %vm1570_vm3, %v19877_v17  ;;  %v1358_v5 = vsel %vm19659_vm2, %v1353_v45, %v1357_v6  ;;  %v1397_v24 = vshll.u32 %v19863_v18, 16  ;;  %v1376_v59 = vor.u32 %v1375_v52, %v1372_v50  ;;  %v1385_v31 = vrot.slane %v1383_v35, 4 }
  0xf5   : > { %v1391_v37 = vrot.slane %v1389_v60, 5  ;;  %v1403_v41 = vshll.u32 %v19869_v33, 16  ;;  %v1368_v17 = vsel %vm19659_vm2, %v1363_v11, %v1367_v36  ;;  %v1396_v57 = vrot.slane %v1394_v0, 4  ;;  %v19908_v36 = vld [vmem:[%s19615_s9 + $0xa8] sm:$0xf] }
  0xf6   : > { %v1399_v23 = vrot.slane %v1397_v24, 5  ;;  %v1407_v6 = vshrl.u32 %v19869_v33, 16  ;;  %v19900_v45 = vcombine.low %v1358_v5, %v1368_v17  ;;  %v1377_v48 = vrot.slane %v1376_v59, 4 }
  0xf7   : > { %v1386_v63 = vor.u32 %v1385_v31, %v1381_v54  ;;  %v1405_v40 = vrot.slane %v1403_v41, 5  ;;  %v1413_v60 = vshll.u32 %v19882_v21, 16  ;;  %v1418_v35 = vshrl.u32 %v19885_v43, 16 }
  0xf8   : > { %25147 = vst [vmem:[#allocation33_spill] sm:$0xff] %v19900_v45  ;;  %v1400_v50 = vor.u32 %v1399_v23, %v1396_v57  ;;  %v1409_v52 = vrot.slane %v1407_v6, 4  ;;  %16726 = vmatprep.mubr.msk.bf16.mxu0 %vm1570_vm3, %v19900_v45  ;;  %v1382_v17 = vsel %vm19659_vm2, %v1377_v48, %v1381_v54  ;;  %v1421_v11 = vshll.u32 %v19885_v43, 16  ;;  %v19917_v57 = vld [vmem:[%s19615_s9 + $0xac] sm:$0xf] }
  0xf9   : > { %v1387_v5 = vrot.slane %v1386_v63, 4  ;;  %v1427_v23 = vshll.u32 %v19894_v25, 16  ;;  %v1415_v59 = vrot.slane %v1413_v60, 5  ;;  %v1420_v31 = vrot.slane %v1418_v35, 4  ;;  %v19923_v63 = vld [vmem:[%s19615_s9 + $0xb0] sm:$0xf] }
  0xfa   : > { %v1401_v0 = vrot.slane %v1400_v50, 4  ;;  %v1410_v24 = vor.u32 %v1409_v52, %v1405_v40  ;;  %v1423_v6 = vrot.slane %v1421_v11, 5  ;;  %v1431_v54 = vshrl.u32 %v19894_v25, 16  ;;  %25149 = vst [vmem:[#allocation35_spill] sm:$0xff] %v19923_v63  ;;  %v19931_v52 = vld [vmem:[%s19615_s9 + $0xb4] sm:$0xf] }
  0xfb   : > { %v1392_v41 = vsel %vm19659_vm2, %v1387_v5, %v1391_v37  ;;  %v1429_v45 = vrot.slane %v1427_v23, 5  ;;  %v1437_v50 = vshll.u32 %v19903_v2, 16  ;;  %v1442_v37 = vshrl.u32 %v19908_v36, 16  ;;  %v19936_v11 = vld [vmem:[%s19615_s9 + $0xb8] sm:$0xf] }
  0xfc   : > { %v19925_v48 = vcombine.low %v1382_v17, %v1392_v41  ;;  %v1406_v21 = vsel %vm19659_vm2, %v1401_v0, %v1405_v40  ;;  %v1411_v61 = vrot.slane %v1410_v24, 4  ;;  %v1424_v60 = vor.u32 %v1423_v6, %v1420_v31 }
  0xfd   : > { %v1433_v35 = vrot.slane %v1431_v54, 4  ;;  %v1445_v5 = vshll.u32 %v19908_v36, 16  ;;  %v1439_v17 = vrot.slane %v1437_v50, 5  ;;  %v1451_v23 = vshll.u32 %v19917_v57, 16 }
  0xfe   : > { %25150 = vst [vmem:[#allocation36_spill] sm:$0xff] %v19925_v48  ;;  %16727 = vmatmul.mubr.msk.bf16.gmra.mrb[20].mxu0 %vm1570_vm3, %v19925_v48  ;;  %v1416_v40 = vsel %vm19659_vm2, %v1411_v61, %v1415_v59  ;;  %v1455_v0 = vshrl.u32 %v19917_v57, 16  ;;  %v1425_v31 = vrot.slane %v1424_v60, 4  ;;  %v1444_v6 = vrot.slane %v1442_v37, 4 }
  0xff   : > { %v19944_v24 = vcombine.low %v1406_v21, %v1416_v40  ;;  %v1434_v41 = vor.u32 %v1433_v35, %v1429_v45  ;;  %v1447_v54 = vrot.slane %v1445_v5, 5  ;;  %v1453_v2 = vrot.slane %v1451_v23, 5 }
 0x100   : > { %v1457_v15 = vrot.slane %v1455_v0, 4  ;;  %v1461_v42 = vshll.u32 %v19923_v63, 16  ;;  %v1430_v61 = vsel %vm19659_vm2, %v1425_v31, %v1429_v45  ;;  %v1466_v21 = vshrl.u32 %v19931_v52, 16 }
 0x101   : > { %25151 = vst [vmem:[#allocation37_spill] sm:$0xff] %v19944_v24  ;;  %16730 = vmatprep.mubr.msk.bf16.mxu0 %vm1570_vm3, %v19944_v24  ;;  %v1435_v59 = vrot.slane %v1434_v41, 4  ;;  %v1469_v50 = vshll.u32 %v19931_v52, 16  ;;  %v1448_v60 = vor.u32 %v1447_v54, %v1444_v6  ;;  %v1475_v5 = vshll.u32 %v19936_v11, 16 }
 0x102   : > { %v1458_v35 = vor.u32 %v1457_v15, %v1453_v2  ;;  %v1463_v37 = vrot.slane %v1461_v42, 5  ;;  %v1468_v23 = vrot.slane %v1466_v21, 4  ;;  %v1479_v24 = vshrl.u32 %v19936_v11, 16 }
 0x103   : > { %v1440_v40 = vsel %vm19659_vm2, %v1435_v59, %v1439_v17  ;;  %v1471_v0 = vrot.slane %v1469_v50, 5  ;;  %v1449_v45 = vrot.slane %v1448_v60, 4  ;;  %v1477_v41 = vrot.slane %v1475_v5, 5 }
 0x104   : > { %v19960_v48 = vcombine.low %v1430_v61, %v1440_v40  ;;  %v1459_v31 = vrot.slane %v1458_v35, 4  ;;  %v1481_v47 = vrot.slane %v1479_v24, 4  ;;  %v1485_v6 = vshll.u32 %v19948_v16, 16 }
 0x105   : > { %v1472_v63 = vor.u32 %v1471_v0, %v1468_v23  ;;  %v15134_v42 = vcombine.low %v19630_v3, %v19633_v4  ;;  %v2121_v15 = vrot.slane %v19644_v13, 5  ;;  %v2124_v17 = vrot.slane %v19647_v14, 5 }
 0x106   : > { %25152 = vst [vmem:[#allocation38_spill] sm:$0xff] %v19960_v48  ;;  %16731 = vmatmul.mubr.msk.bf16.gmra.mrb[24].mxu0 %vm1570_vm3, %v19960_v48  ;;  %v1454_v54 = vsel %vm19659_vm2, %v1449_v45, %v1453_v2  ;;  %v1464_v61 = vsel %vm19659_vm2, %v1459_v31, %v1463_v37  ;;  %v1482_v21 = vor.u32 %v1481_v47, %v1477_v41  ;;  %v1487_v50 = vrot.slane %v1485_v6, 5 }
 0x107   : > { %v19973_v59 = vcombine.low %v1454_v54, %v1464_v61  ;;  %v1473_v24 = vrot.slane %v1472_v63, 4  ;;  %v19977_v3 = vcombine.low %v19693_v1, %v19698_v8  ;;  %v19981_v4 = vcombine.low %v19714_v34, %v19720_v39 }
 0x108   : > { %v19985_v14 = vcombine.low %v19736_v55, %v19742_v62  ;;  %v19989_v2 = vcombine.low %v19752_v9, %v19767_v29  ;;  %v1483_v63 = vrot.slane %v1482_v21, 4  ;;  %v19997_v60 = vcombine.low %v19781_v49, %v19788_v56 }
 0x109   : > { %25153 = vst [vmem:[#allocation39_spill] sm:$0xff] %v19973_v59  ;;  %16734 = vmatprep.mubr.msk.bf16.mxu0 %vm1570_vm3, %v19973_v59  ;;  %v1478_v47 = vsel %vm19659_vm2, %v1473_v24, %v1477_v41  ;;  %v20001_v35 = vcombine.low %v19806_v20, %v19811_v30  ;;  %v20005_v37 = vcombine.low %v19826_v53, %v19834_v12  ;;  %vm2109_vm4 = vcmask 1042432  }
 0x10a   : > { %25154 = vst [vmem:[#allocation40_spill] sm:$0xff] %v19985_v14  ;;  %25155 = vst [vmem:[#allocation41_spill] sm:$0xff] %v19989_v2  ;;  %v20009_v5 = vcombine.low %v19842_v26, %v19850_v38  ;;  %v20013_v40 = vcombine.low %v19863_v18, %v19869_v33  ;;  %v20017_v23 = vcombine.low %v19885_v43, %v19894_v25  ;;  %vm2110_vm5 = vcmask 1046532  }
 0x10b   : > { %v1488_v0 = vsel %vm19659_vm2, %v1483_v63, %v1487_v50  ;;  %v20023_v45 = vcombine.low %v19908_v36, %v19917_v57  ;;  %v20027_v31 = vcombine.low %v19931_v52, %v19936_v11  ;;  %vm20031_vm6 = vmor %vm2109_vm4, %vm2110_vm5  ;;  %v25161_v6 = vmov 0 }
 0x10c   : > { %25156 = vst [vmem:[#allocation42_spill] sm:$0xff] %v20013_v40  ;;  %25157 = vst [vmem:[#allocation43_spill] sm:$0xff] %v20017_v23  ;;  %v20029_v41 = vcombine.low %v1478_v47, %v1488_v0  ;;  %v25162_v6 = vsel %vm20031_vm6, 4294967295, %v25161_v6  ;;  %v15171_v54 = vrot.slane %v19641_v10, 9  ;;  %v2123_v61 = vrot.slane %v2121_v15, 4 }
 0x10d   : > { %25158 = vst [vmem:[#allocation44_spill] sm:$0xff] %v20023_v45  ;;  %25159 = vst [vmem:[#allocation45_spill] sm:$0xff] %v20027_v31  ;;  %v15173_v24 = vrot.slane %v19675_v46, 9  ;;  %v2135_v63 = vrot.slane %v19678_v51, 5  ;;  %v2138_v0 = vrot.slane %v19685_v58, 5  ;;  %v20050_v59 = vcombine.low %v19641_v10, %v19644_v13 }
 0x10e   : > { %25160 = vst [vmem:[#allocation46_spill] sm:$0xff] %v20029_v41  ;;  %25163 = vst [vmem:[#allocation47_spill] sm:$0xff] %v25162_v6  ;;  %16735 = vmatmul.mubr.msk.bf16.gmra.mrb[28].mxu0 %vm1570_vm3, %v20029_v41  ;;  %v2122_v21 = vsel %vm20031_vm6, %v15171_v54, %v2121_v15  ;;  %v2125_v50 = vsel %vm20031_vm6, %v2123_v61, %v2124_v17  ;;  %v20054_v41 = vcombine.low %v19655_v27, %v19664_v32  ;;  %vm362_vm7 = vcmask 253952  }
 0x10f   : > { %16746 = vmatprep.mubr.msk.bf16.mxu0 %vm1570_vm3, %v15134_v42  ;;  %v20044_v47 = vcombine.low %v2122_v21, %v2125_v50  ;;  %v15174_v42 = vrot.slane %v19693_v1, 9  ;;  %v2142_v15 = vrot.slane %v19698_v8, 5  ;;  %v20060_v17 = vcombine.low %v19675_v46, %v19678_v51  ;;  %v18588_v1 = vld [vmem:[#allocation8 + $0x48] sm:$0xff]  }
 0x110   : > { %v2136_v54 = vsel %vm20031_vm6, %v15173_v24, %v2135_v63  ;;  %v2137_v58 = vrot.slane %v2135_v63, 4  ;;  %v2145_v61 = vrot.slane %v19707_v19, 5  ;;  %v15175_v27 = vrot.slane %v19714_v34, 9  ;;  %v18593_v63 = vld [vmem:[#allocation8 + $0x50] sm:$0xff]  }
 0x111   : > { %v2143_v10 = vsel %vm20031_vm6, %v15174_v42, %v2142_v15  ;;  %v2144_v13 = vrot.slane %v2142_v15, 4  ;;  %v2149_v32 = vrot.slane %v19720_v39, 5  ;;  %v2152_v46 = vrot.slane %v19727_v44, 5 }
 0x112   : > { %v2139_v8 = vsel %vm20031_vm6, %v2137_v58, %v2138_v0  ;;  %v15176_v51 = vrot.slane %v19736_v55, 9  ;;  %v2156_v24 = vrot.slane %v19742_v62, 5  ;;  %v2159_v62 = vrot.slane %v19749_v7, 5 }
 0x113   : > { %v20074_v21 = vcombine.low %v2136_v54, %v2139_v8  ;;  %v2146_v19 = vsel %vm20031_vm6, %v2144_v13, %v2145_v61  ;;  %v2150_v34 = vsel %vm20031_vm6, %v15175_v27, %v2149_v32  ;;  %v2151_v50 = vrot.slane %v2149_v32, 4  ;;  %v25166_v54 = vld [vmem:[#allocation22_spill] sm:$0xff]  ;;  %v25169_v32 = vld [vmem:[#allocation24_spill] sm:$0xff] }
 0x114   : > { %v20082_v39 = vcombine.low %v2143_v10, %v2146_v19  ;;  %v2157_v44 = vsel %vm20031_vm6, %v15176_v51, %v2156_v24  ;;  %v2158_v55 = vrot.slane %v2156_v24, 4  ;;  %v15177_v42 = vrot.slane %v19752_v9, 9 }
 0x115   : > { %25164 = vst [vmem:[#allocation48_spill] sm:$0xff] %v20074_v21  ;;  %v2153_v0 = vsel %vm20031_vm6, %v2151_v50, %v2152_v46  ;;  %v2163_v15 = vrot.slane %v19767_v29, 5  ;;  %v2166_v58 = vrot.slane %v25166_v54, 5  ;;  %v2170_v10 = vrot.slane %v19788_v56, 5  ;;  %v25170_v56 = vld [vmem:[#allocation26_spill] sm:$0xff] }
 0x116   : > { %16747 = vmatmul.mubr.msk.bf16.vlgmr.msra.gmra.mrb[0].mxu0 %vm1570_vm3, %v20050_v59  ;;  %25165 = vst [vmem:[#allocation49_spill] sm:$0xff] %v20082_v39  ;;  %v20095_v61 = vcombine.low %v2150_v34, %v2153_v0  ;;  %v2160_v7 = vsel %vm20031_vm6, %v2158_v55, %v2159_v62  ;;  %v2173_v29 = vrot.slane %v25169_v32, 5  ;;  %v15179_v51 = vrot.slane %v19806_v20, 9 }
 0x117   : > { %16779 = vmatpush3.bf16.msra.mxu0 %v19762_v22  ;;  %16750 = vmatprep.mubr.msk.bf16.mxu0 %vm1570_vm3, %v20054_v41  ;;  %v15178_v22 = vrot.slane %v19781_v49, 9  ;;  %v20101_v13 = vcombine.low %v2157_v44, %v2160_v7  ;;  %v2164_v27 = vsel %vm20031_vm6, %v15177_v42, %v2163_v15  ;;  %v2165_v9 = vrot.slane %v2163_v15, 4  ;;  %v18598_v44 = vld [vmem:[#allocation8 + $0x58] sm:$0xff]  }
 0x118   : > { %16780 = vmatprep.subr.bf16.mxu0 %v18588_v1  ;;  %25167 = vst [vmem:[#allocation22_spill] sm:$0xff] %v20095_v61  ;;  %v2172_v46 = vrot.slane %v2170_v10, 4  ;;  %v2177_v24 = vrot.slane %v19811_v30, 5  ;;  %v2180_v19 = vrot.slane %v25170_v56, 5  ;;  %v15180_v34 = vrot.slane %v19826_v53, 9  ;;  %v25173_v53 = vld [vmem:[#allocation28_spill] sm:$0xff] }
 0x119   : > { %25168 = vst [vmem:[#allocation50_spill] sm:$0xff] %v20101_v13  ;;  %v2171_v8 = vsel %vm20031_vm6, %v15178_v22, %v2170_v10  ;;  %v2167_v49 = vsel %vm20031_vm6, %v2165_v9, %v2166_v58  ;;  %v2184_v50 = vrot.slane %v19834_v12, 5  ;;  %v2187_v15 = vrot.slane %v25173_v53, 5  ;;  %v20128_v12 = vld [vmem:[#allocation8 + $0x60] sm:$0xff]   ;;  %v25174_v22 = vld [vmem:[#allocation29_spill] sm:$0xff] }
 0x11a   : > { %v20115_v55 = vcombine.low %v2164_v27, %v2167_v49  ;;  %v2174_v62 = vsel %vm20031_vm6, %v2172_v46, %v2173_v29  ;;  %v2178_v20 = vsel %vm20031_vm6, %v15179_v51, %v2177_v24  ;;  %v2179_v30 = vrot.slane %v2177_v24, 4  ;;  %v25177_v46 = vld [vmem:[#allocation32_spill] sm:$0xff] }
 0x11b   : > { %16781 = vmatpush3.bf16.msra.mxu0 %v18588_v1  ;;  %v20121_v1 = vcombine.low %v2171_v8, %v2174_v62  ;;  %v2185_v0 = vsel %vm20031_vm6, %v15180_v34, %v2184_v50  ;;  %v2186_v42 = vrot.slane %v2184_v50, 4  ;;  %v15181_v58 = vrot.slane %v19842_v26, 9 }
 0x11c   : > { %16782 = vmatprep.subr.bf16.mxu0 %v18593_v63  ;;  %25171 = vst [vmem:[#allocation24_spill] sm:$0xff] %v20115_v55  ;;  %v2181_v54 = vsel %vm20031_vm6, %v2179_v30, %v2180_v19  ;;  %v2191_v7 = vrot.slane %v19850_v38, 5  ;;  %v2194_v10 = vrot.slane %v25174_v22, 5  ;;  %v15182_v32 = vrot.slane %v19863_v18, 9 }
 0x11d   : > { %25172 = vst [vmem:[#allocation26_spill] sm:$0xff] %v20121_v1  ;;  %v20137_v27 = vcombine.low %v2178_v20, %v2181_v54  ;;  %v2188_v9 = vsel %vm20031_vm6, %v2186_v42, %v2187_v15  ;;  %v2198_v29 = vrot.slane %v19869_v33, 5  ;;  %v2201_v51 = vrot.slane %v25177_v46, 5  ;;  %v25178_v33 = vld [vmem:[#allocation34_spill] sm:$0xff]  ;;  %v25181_v42 = vld [vmem:[#allocation35_spill] sm:$0xff] }
 0x11e   : > { %16751 = vmatmul.mubr.msk.bf16.gmra.mrb[4].mxu0 %vm1570_vm3, %v20060_v17  ;;  %v20143_v8 = vcombine.low %v2185_v0, %v2188_v9  ;;  %v2192_v26 = vsel %vm20031_vm6, %v15181_v58, %v2191_v7  ;;  %v2193_v38 = vrot.slane %v2191_v7, 4  ;;  %v15183_v49 = vrot.slane %v19885_v43, 9  ;;  %v18940_v9 = vld [vmem:[%s19615_s9 + $0x4] sm:$0xf] }
 0x11f   : > { %16754 = vmatprep.mubr.msk.bf16.mxu0 %vm1570_vm3, %v19977_v3  ;;  %16783 = vmatpush3.bf16.msra.mxu0 %v18593_v63  ;;  %25175 = vst [vmem:[#allocation28_spill] sm:$0xff] %v20137_v27  ;;  %v2199_v63 = vsel %vm20031_vm6, %v15182_v32, %v2198_v29  ;;  %v2200_v24 = vrot.slane %v2198_v29, 4  ;;  %v2205_v56 = vrot.slane %v19894_v25, 5  ;;  %v2208_v19 = vrot.slane %v25178_v33, 5  ;;  %v18941_v29 = vld [vmem:[%s19615_s9 + $0x8] sm:$0xf] }
 0x120   : > { %16784 = vmatprep.subr.bf16.mxu0 %v18598_v44  ;;  %25176 = vst [vmem:[#allocation29_spill] sm:$0xff] %v20143_v8  ;;  %v2195_v18 = vsel %vm20031_vm6, %v2193_v38, %v2194_v10  ;;  %v15184_v34 = vrot.slane %v19908_v36, 9  ;;  %v2212_v50 = vrot.slane %v19917_v57, 5  ;;  %v2215_v57 = vrot.slane %v25181_v42, 5  ;;  %v18942_v38 = vld [vmem:[%s19615_s9] sm:$0xf] }
 0x121   : > { %v20157_v62 = vcombine.low %v2192_v26, %v2195_v18  ;;  %v2202_v20 = vsel %vm20031_vm6, %v2200_v24, %v2201_v51  ;;  %v2206_v43 = vsel %vm20031_vm6, %v15183_v49, %v2205_v56  ;;  %v2207_v30 = vrot.slane %v2205_v56, 4  ;;  %v18943_v49 = vld [vmem:[%s19615_s9 + $0x1c] sm:$0xf]  ;;  %v18944_v33 = vld [vmem:[%s19615_s9 + $0x18] sm:$0xf]  ;;  %v18603_v42 = vld [vmem:[#allocation8 + $0x70] sm:$0xff]  }
 0x122   : > { %v20164_v25 = vcombine.low %v2199_v63, %v2202_v20  ;;  %v2213_v0 = vsel %vm20031_vm6, %v15184_v34, %v2212_v50  ;;  %v2214_v36 = vrot.slane %v2212_v50, 4  ;;  %v15185_v53 = vrot.slane %v19931_v52, 9  ;;  %v18945_v50 = vld [vmem:[%s19615_s9 + $0x20] sm:$0xf] }
 0x123   : > { %16785 = vmatpush3.bf16.msra.mxu0 %v18598_v44  ;;  %25179 = vst [vmem:[#allocation32_spill] sm:$0xff] %v20157_v62  ;;  %v2209_v44 = vsel %vm20031_vm6, %v2207_v30, %v2208_v19  ;;  %v2219_v15 = vrot.slane %v19936_v11, 5  ;;  %v2222_v54 = vrot.slane %v19948_v16, 5  ;;  %v2114_v32 = vrot.slane %v18940_v9, 5 }
 0x124   : > { %16818 = vmatprep.subr.bf16.mxu0 %v20128_v12  ;;  %25180 = vst [vmem:[#allocation34_spill] sm:$0xff] %v20164_v25  ;;  %v20176_v58 = vcombine.low %v2206_v43, %v2209_v44  ;;  %v2216_v7 = vsel %vm20031_vm6, %v2214_v36, %v2215_v57  ;;  %v2117_v26 = vrot.slane %v18941_v29, 5  ;;  %v15170_v46 = vrot.slane %v18942_v38, 9  ;;  %v18602_v36 = vld [vmem:[#allocation8 + $0x68] sm:$0xff]   ;;  %v18604_v57 = vld [vmem:[#allocation8 + $0x78] sm:$0xff]   ;;  %v20234_v44 = vld [vmem:[#allocation8 + $0x80] sm:$0xff]  }
 0x125   : > { %v20182_v22 = vcombine.low %v2213_v0, %v2216_v7  ;;  %v2220_v52 = vsel %vm20031_vm6, %v15185_v53, %v2219_v15  ;;  %v2221_v16 = vrot.slane %v2219_v15, 4  ;;  %v2116_v51 = vrot.slane %v2114_v32, 4  ;;  %v386_v53 = vld [vmem:[#allocation2 + $0x54] sm:$0x1]  ;;  %v488_v7 = vld [vmem:[%s19607_s11 + $0x68] sm:$0xff] }
 0x126   : > { %16755 = vmatmul.mubr.msk.bf16.gmra.mrb[8].mxu0 %vm1570_vm3, %v19981_v4  ;;  %25182 = vst [vmem:[#allocation35_spill] sm:$0xff] %v20176_v58  ;;  %v2115_v63 = vsel %vm20031_vm6, %v15170_v46, %v2114_v32  ;;  %v2128_v56 = vrot.slane %v18943_v49, 5  ;;  %v15172_v19 = vrot.slane %v18944_v33, 9  ;;  %v2131_v20 = vrot.slane %v18945_v50, 5  ;;  %v489_v32 = vld [vmem:[%s19607_s11 + $0x70] sm:$0xff]  ;;  %v490_v29 = vld [vmem:[%s19607_s11 + $0x78] sm:$0xff] }
 0x127   : > { %16758 = vmatprep.mubr.msk.bf16.mxu0 %vm1570_vm3, %v19985_v14  ;;  %25183 = vst [vmem:[#allocation51_spill] sm:$0xff] %v20182_v22  ;;  %v2223_v11 = vsel %vm20031_vm6, %v2221_v16, %v2222_v54  ;;  %v2118_v24 = vsel %vm20031_vm6, %v2116_v51, %v2117_v26  ;;  %vm363_vm8 = vsmask.f32 256  ;;  %v487_v54 = vld [vmem:[%s19607_s11 + $0x60] sm:$0xff]  ;;  %vm419_vm10 = vsmask.f32 7938 }
 0x128   : > { %v20188_v10 = vcombine.low %v2220_v52, %v2223_v11  ;;  %v15186_v18 = vcombine.low %v2115_v63, %v2118_v24  ;;  %v2130_v34 = vrot.slane %v2128_v56, 4  ;;  %v2129_v43 = vsel %vm20031_vm6, %v15172_v19, %v2128_v56  ;;  %vm20241_vm9 = vmand %vm362_vm7, %vm363_vm8  ;;  %v389_v52 = vld [vmem:[#allocation2 + $0x60] sm:$0x1]  ;;  %v442_v51 = vld [vmem:[#allocation2 + $0x5c] sm:$0x1] }
 0x129   : > { %v387_v15 = vsel %vm20241_vm9, 0, %v386_v53  ;;  %v16141_v16 = vpack.c.bf16 %v487_v54, %v487_v54  ;;  %v16142_v11 = vpack.c.bf16 %v488_v7, %v488_v7  ;;  %v390_v9 = vsel %vm20241_vm9, 0, %v389_v52  ;;  %vm20257_vm11 = vmand %vm362_vm7, %vm419_vm10  ;;  %v445_v56 = vld [vmem:[#allocation2 + $0x68] sm:$0x1] }
 0x12a   : > { %25184 = vst [vmem:[#allocation52_spill] sm:$0xff] %v20188_v10  ;;  %v2132_v30 = vsel %vm20031_vm6, %v2130_v34, %v2131_v20  ;;  %388 = vst [vmem:[#allocation2 + $0x54] sm:$0x1] %v387_v15  ;;  %v16143_v26 = vpack.c.bf16 %v489_v32, %v489_v32  ;;  %v16144_v38 = vpack.c.bf16 %v490_v29, %v490_v29  ;;  %v443_v49 = vsel %vm20257_vm11, 0, %v442_v51  ;;  %v392_v15 = vld [vmem:[#allocation2 + $0x6c] sm:$0x1] }
 0x12b   : > { %v20223_v0 = vcombine.low %v2129_v43, %v2132_v30  ;;  %391 = vst [vmem:[#allocation2 + $0x60] sm:$0x1] %v390_v9  ;;  %v708_v63 = vshrl.u32 %v16141_v16, 16  ;;  %v716_v24 = vshrl.u32 %v16142_v11, 16  ;;  %444 = vst [vmem:[#allocation2 + $0x5c] sm:$0x1] %v443_v49 }
 0x12c   : > { %v733_v33 = vshrl.u32 %v16144_v38, 16  ;;  %v711_v34 = vshll.u32 %v16141_v16, 16  ;;  %v719_v20 = vshll.u32 %v16142_v11, 16  ;;  %v446_v43 = vsel %vm20257_vm11, 0, %v445_v56  ;;  %v491_v32 = vld [vmem:[%s19607_s11 + $0x80] sm:$0xff] }
 0x12d   : > { %25185 = vst [vmem:[#allocation53_spill] sm:$0xff] %v20223_v0  ;;  %v710_v19 = vrot.slane %v708_v63, 7  ;;  %v718_v50 = vrot.slane %v716_v24, 7  ;;  %vm354_vm12 = vcmask 257024   ;;  %vm603_vm13 = vsmask.f32 4368 }
 0x12e   : > { %16759 = vmatmul.mubr.msk.bf16.gmra.mrb[12].mxu0 %vm1570_vm3, %v19989_v2  ;;  %447 = vst [vmem:[#allocation2 + $0x68] sm:$0x1] %v446_v43  ;;  %vm20270_vm14 = vmor %vm363_vm8, %vm603_vm13  ;;  %v25191_v54 = vmov 0  ;;  %v736_v9 = vshll.u32 %v16144_v38, 16  ;;  %v25194_v29 = vmov 0  ;;  %v393_v51 = vsel %vm20241_vm9, 0, %v392_v15 }
 0x12f   : > { %16762 = vmatprep.mubr.msk.bf16.mxu0 %vm1570_vm3, %v19997_v60  ;;  %v714_v53 = vrot.slane %v710_v19, 4  ;;  %v25192_v54 = vsel %vm20270_vm14, 4294967295, %v25191_v54  ;;  %v721_v7 = vor.u32 %v719_v20, %v718_v50  ;;  %vm20277_vm15 = vmand %vm354_vm12, %vm419_vm10  ;;  %v492_v63 = vld [vmem:[%s19607_s11 + $0x88] sm:$0xff]  ;;  %v16145_v24 = vpack.c.bf16 %v491_v32, %v491_v32  ;;  %394 = vst [vmem:[#allocation2 + $0x6c] sm:$0x1] %v393_v51 }
 0x130   : > { %25193 = vst [vmem:[#allocation55_spill] sm:$0xff] %v25192_v54  ;;  %v25195_v29 = vsel %vm20277_vm15, 4294967295, %v25194_v29  ;;  %v448_v20 = vld [vmem:[#allocation2 + $0x74] sm:$0x1]  ;;  %v16146_v43 = vpack.c.bf16 %v492_v63, %v492_v63  ;;  %vm4546_vm0 = vcmask 261120  }
 0x131   : > { %v970_v52 = vld [vmem:[#allocation2 + $0x54] sm:$0xf]  ;;  %25196 = vst [vmem:[#allocation56_spill] sm:$0xff] %v25195_v29  ;;  %v722_v49 = vsel %vm20270_vm14, %v714_v53, %v721_v7  ;;  %v20689_v54 = vld [vmem:[%s19615_s9 + $0xc0] sm:$0xf] }
 0x132   : > { %973 = vst.msk [vmem:[#allocation2 + $0x58] sm:$0xf] %vm354_vm12, %v722_v49  ;;  %v494_v53 = vld [vmem:[%s19607_s11 + $0x98] sm:$0xff]  ;;  %v750_v51 = vshrl.u32 %v16146_v43, 16 }
 0x133   : > { %v20306_v49 = vpack.c.bf16 %v494_v53, %v494_v53 }
 0x135   : > { %v981_v63 = vld [vmem:[#allocation2 + $0x68] sm:$0x1] }
 0x136   : > { %16763 = vmatmul.mubr.msk.bf16.gmra.mrb[16].mxu0 %vm1570_vm3, %v20001_v35 }
 0x137   : > { %16766 = vmatprep.mubr.msk.bf16.mxu0 %vm1570_vm3, %v20005_v37 }
 0x13e   : > { %16767 = vmatmul.mubr.msk.bf16.gmra.mrb[20].mxu0 %vm1570_vm3, %v20009_v5 }
 0x13f   : > { %16770 = vmatprep.mubr.msk.bf16.mxu0 %vm1570_vm3, %v20013_v40 }
 0x146   : > { %16771 = vmatmul.mubr.msk.bf16.gmra.mrb[24].mxu0 %vm1570_vm3, %v20017_v23 }
 0x147   : > { %16774 = vmatprep.mubr.msk.bf16.mxu0 %vm1570_vm3, %v20023_v45 }
 0x14e   : > { %16775 = vmatmul.mubr.msk.bf16.gmra.mrb[28].mxu0 %vm1570_vm3, %v20027_v31 }
 0x14f   : > { %16786 = vmatprep.mubr.msk.bf16.mxu0 %vm1570_vm3, %v15186_v18  ;;  %v725_v18 = vshrl.u32 %v16143_v26, 16 }
 0x151   : > { %v727_v30 = vrot.slane %v725_v18, 7 }
 0x153   : > { %v731_v11 = vrot.slane %v727_v30, 4 }
 0x156   : > { %16787 = vmatmul.mubr.msk.bf16.vlgmr.msra.gmra.mrb[0].mxu0 %vm1570_vm3, %v20044_v47 }
 0x157   : > { %16819 = vmatpush3.bf16.msra.mxu0 %v20128_v12  ;;  %16790 = vmatprep.mubr.msk.bf16.mxu0 %vm1570_vm3, %v20223_v0  ;;  %v25186_v12 = vmov 0 }
 0x158   : > { %16820 = vmatprep.subr.bf16.mxu0 %v18602_v36  ;;  %v25187_v12 = vsel %vm20241_vm9, 4294967295, %v25186_v12 }
 0x159   : > { %25188 = vst [vmem:[#allocation54_spill] sm:$0xff] %v25187_v12 }
 0x15b   : > { %16821 = vmatpush3.bf16.msra.mxu0 %v18602_v36  ;;  %v728_v36 = vshll.u32 %v16143_v26, 16  ;;  %v977_v26 = vld [vmem:[#allocation2 + $0x60] sm:$0xf] }
 0x15c   : > { %16822 = vmatprep.subr.bf16.mxu0 %v18603_v42 }
 0x15d   : > { %v730_v16 = vor.u32 %v728_v36, %v727_v30  ;;  %v742_v30 = vshrl.u32 %v16145_v24, 16 }
 0x15e   : > { %16791 = vmatmul.mubr.msk.bf16.gmra.mrb[4].mxu0 %vm1570_vm3, %v20074_v21 }
 0x15f   : > { %16794 = vmatprep.mubr.msk.bf16.mxu0 %vm1570_vm3, %v20082_v39  ;;  %16823 = vmatpush3.bf16.msra.mxu0 %v18603_v42  ;;  %v735_v42 = vrot.slane %v733_v33, 7  ;;  %v978_v18 = vsel %vm20277_vm15, %v730_v16, %v977_v26  ;;  %v395_v33 = vld [vmem:[#allocation2 + $0x78] sm:$0x1]  ;;  %v744_v32 = vrot.slane %v742_v30, 7  ;;  %v745_v26 = vshll.u32 %v16145_v24, 16 }
 0x160   : > { %16824 = vmatprep.subr.bf16.mxu0 %v18604_v57  ;;  %979 = vst [vmem:[#allocation2 + $0x60] sm:$0xf] %v978_v18  ;;  %v396_v36 = vsel %vm20241_vm9, 0, %v395_v33  ;;  %v752_v33 = vrot.slane %v750_v51, 7  ;;  %v398_v24 = vld [vmem:[#allocation2 + $0x84] sm:$0x1] }
 0x161   : > { %v738_v56 = vor.u32 %v736_v9, %v735_v42  ;;  %v740_v7 = vrot.slane %v735_v42, 4  ;;  %397 = vst [vmem:[#allocation2 + $0x78] sm:$0x1] %v396_v36  ;;  %v747_v18 = vor.u32 %v745_v26, %v744_v32  ;;  %v767_v30 = vshrl.u32 %v20306_v49, 16  ;;  %v18613_v26 = vld [vmem:[#allocation9 + $0x40] sm:$0xff]  }
 0x162   : > { %v399_v36 = vsel %vm20241_vm9, 0, %v398_v24  ;;  %17706 = vmatprep.subr.bf16.mxu1 %v18613_v26 }
 0x163   : > { %16825 = vmatpush3.bf16.msra.mxu0 %v18604_v57  ;;  %v713_v57 = vor.u32 %v711_v34, %v710_v19  ;;  %v493_v19 = vld [vmem:[%s19607_s11 + $0x90] sm:$0xff]  ;;  %v723_v34 = vrot.slane %v718_v50, 4  ;;  %v739_v15 = vsel %vm20270_vm14, %v731_v11, %v738_v56  ;;  %v451_v50 = vld [vmem:[#allocation2 + $0x80] sm:$0x1]  ;;  %v753_v11 = vshll.u32 %v16146_v43, 16  ;;  %17708 = vmatpush3.bf16.msra.mxu1 %v18613_v26 }
 0x164   : > { %16858 = vmatprep.subr.bf16.mxu0 %v20234_v44  ;;  %v20299_v16 = vpack.c.bf16 %v493_v19, %v493_v19  ;;  %980 = vst.msk [vmem:[#allocation2 + $0x64] sm:$0xf] %vm354_vm12, %v739_v15  ;;  %v452_v42 = vsel %vm20257_vm11, 0, %v451_v50  ;;  %v982_v56 = vsel %vm20241_vm9, %v740_v7, %v981_v63  ;;  %v748_v19 = vrot.slane %v744_v32, 4  ;;  %400 = vst [vmem:[#allocation2 + $0x84] sm:$0x1] %v399_v36 }
 0x165   : > { %v971_v38 = vsel %vm20277_vm15, %v713_v57, %v970_v52  ;;  %v974_v57 = vld [vmem:[#allocation2 + $0x5c] sm:$0x1]  ;;  %v449_v52 = vsel %vm20257_vm11, 0, %v448_v20  ;;  %453 = vst [vmem:[#allocation2 + $0x80] sm:$0x1] %v452_v42 }
 0x166   : > { %16795 = vmatmul.mubr.msk.bf16.gmra.mrb[8].mxu0 %vm1570_vm3, %v20095_v61  ;;  %972 = vst [vmem:[#allocation2 + $0x54] sm:$0xf] %v971_v38  ;;  %v975_v9 = vsel %vm20241_vm9, %v723_v34, %v974_v57  ;;  %450 = vst [vmem:[#allocation2 + $0x74] sm:$0x1] %v449_v52  ;;  %v759_v38 = vshrl.u32 %v20299_v16, 16  ;;  %v755_v34 = vor.u32 %v753_v11, %v752_v33 }
 0x167   : > { %16798 = vmatprep.mubr.msk.bf16.mxu0 %vm1570_vm3, %v20101_v13  ;;  %976 = vst [vmem:[#allocation2 + $0x5c] sm:$0x1] %v975_v9  ;;  %983 = vst [vmem:[#allocation2 + $0x68] sm:$0x1] %v982_v56  ;;  %v984_v20 = vld [vmem:[#allocation2 + $0x6c] sm:$0xf] }
 0x168   : > { %v20315_v43 = vrot.slane %v759_v38, 7  ;;  %v5912_v57 = vld [vmem:[#allocation2 + $0x58] sm:$0xf]  ;;  %v5914_v15 = vld [vmem:[#allocation2 + $0x60] sm:$0xf]  ;;  %v985_v7 = vsel %vm20277_vm15, %v747_v18, %v984_v20  ;;  %v756_v42 = vsel %vm20270_vm14, %v748_v19, %v755_v34  ;;  %v757_v38 = vrot.slane %v752_v33, 4 }
 0x169   : > { %v6095_v9 = vshll.u32 %v5912_v57, 16  ;;  %v6099_v32 = vshrl.u32 %v5912_v57, 16  ;;  %986 = vst [vmem:[#allocation2 + $0x6c] sm:$0xf] %v985_v7  ;;  %v6110_v63 = vshrl.u32 %v5914_v15, 16  ;;  %v6113_v11 = vshll.u32 %v5914_v15, 16 }
 0x16a   : > { %987 = vst.msk [vmem:[#allocation2 + $0x70] sm:$0xf] %vm354_vm12, %v756_v42  ;;  %v18614_v15 = vld [vmem:[#allocation9 + $0x48] sm:$0xff]  }
 0x16b   : > { %v5915_v51 = vld [vmem:[#allocation2 + $0x64] sm:$0xf]  ;;  %v6112_v20 = vrot.slane %v6110_v63, 4  ;;  %v6115_v36 = vrot.slane %v6113_v11, 5  ;;  %v770_v63 = vshll.u32 %v20306_v49, 16  ;;  %17707 = vmatprep.subr.bf16.mxu1 %v18614_v15 }
 0x16c   : > { %v6123_v7 = vshrl.u32 %v5915_v51, 16  ;;  %17709 = vmatpush3.bf16.msra.mxu1 %v18614_v15 }
 0x16d   : > { %v5911_v53 = vld [vmem:[#allocation2 + $0x54] sm:$0xf] }
 0x16e   : > { %16799 = vmatmul.mubr.msk.bf16.gmra.mrb[12].mxu0 %vm1570_vm3, %v20115_v55  ;;  %v6086_v52 = vshrl.u32 %v5911_v53, 16  ;;  %v6089_v50 = vshll.u32 %v5911_v53, 16  ;;  %v5913_v56 = vld [vmem:[#allocation2 + $0x5c] sm:$0x1]  ;;  %v6119_v53 = vshll.u32 %v5915_v51, 16 }
 0x16f   : > { %16802 = vmatprep.mubr.msk.bf16.mxu0 %vm1570_vm3, %v20121_v1  ;;  %v6101_v1 = vrot.slane %v6099_v32, 4  ;;  %v6105_v18 = vshll.u32 %v5913_v56, 16  ;;  %v988_v57 = vld [vmem:[#allocation2 + $0x74] sm:$0x1]  ;;  %v5916_v34 = vld [vmem:[#allocation2 + $0x68] sm:$0x1] }
 0x170   : > { %v6088_v24 = vrot.slane %v6086_v52, 4  ;;  %v989_v52 = vsel %vm20241_vm9, %v757_v38, %v988_v57  ;;  %v762_v32 = vshll.u32 %v20299_v16, 16  ;;  %v6129_v42 = vshll.u32 %v5916_v34, 16  ;;  %v5917_v56 = vld [vmem:[#allocation2 + $0x6c] sm:$0xf] }
 0x171   : > { %990 = vst [vmem:[#allocation2 + $0x74] sm:$0x1] %v989_v52  ;;  %v769_v38 = vrot.slane %v767_v30, 7  ;;  %v6134_v49 = vshrl.u32 %v5917_v56, 16  ;;  %v5918_v57 = vld [vmem:[#allocation2 + $0x70] sm:$0xf] }
 0x172   : > { %v6143_v15 = vshll.u32 %v5918_v57, 16  ;;  %v6147_v34 = vshrl.u32 %v5918_v57, 16 }
 0x173   : > { %v6136_v30 = vrot.slane %v6134_v49, 4  ;;  %v995_v49 = vld [vmem:[#allocation2 + $0x80] sm:$0x1] }
 0x176   : > { %16803 = vmatmul.mubr.msk.bf16.gmra.mrb[16].mxu0 %vm1570_vm3, %v20137_v27  ;;  %v6097_v27 = vrot.slane %v6095_v9, 5  ;;  %v6116_v9 = vor.u32 %v6115_v36, %v6112_v20 }
 0x177   : > { %16806 = vmatprep.mubr.msk.bf16.mxu0 %vm1570_vm3, %v20143_v8  ;;  %v6091_v8 = vrot.slane %v6089_v50, 5  ;;  %v6107_v50 = vrot.slane %v6105_v18, 5 }
 0x178   : > { %v6102_v33 = vor.u32 %v6101_v1, %v6097_v27  ;;  %v6125_v1 = vrot.slane %v6123_v7, 4  ;;  %v6117_v51 = vrot.slane %v6116_v9, 4  ;;  %v495_v7 = vld [vmem:[%s19607_s11 + $0xa0] sm:$0xff]  ;;  %v6145_v9 = vrot.slane %v6143_v15, 5  ;;  %v454_v15 = vld [vmem:[#allocation2 + $0x8c] sm:$0x1] }
 0x179   : > { %v6092_v19 = vor.u32 %v6091_v8, %v6088_v24  ;;  %v6121_v8 = vrot.slane %v6119_v53, 5  ;;  %v6131_v53 = vrot.slane %v6129_v42, 5 }
 0x17a   : > { %v6103_v11 = vrot.slane %v6102_v33, 4 }
 0x17b   : > { %v6093_v26 = vrot.slane %v6092_v19, 4  ;;  %v6126_v18 = vor.u32 %v6125_v1, %v6121_v8  ;;  %v6122_v36 = vsel %vm19659_vm2, %v6117_v51, %v6121_v8  ;;  %v6137_v19 = vshll.u32 %v5917_v56, 16  ;;  %v496_v8 = vld [vmem:[%s19607_s11 + $0xa8] sm:$0xff] }
 0x17c   : > { %v6108_v16 = vsel %vm19659_vm2, %v6103_v11, %v6107_v50  ;;  %v5919_v50 = vld [vmem:[#allocation2 + $0x74] sm:$0x1]  ;;  %v765_v11 = vrot.slane %v20315_v43, 4  ;;  %v764_v56 = vor.u32 %v762_v32, %v20315_v43  ;;  %v401_v32 = vld [vmem:[#allocation2 + $0x90] sm:$0x1] }
 0x17d   : > { %v6098_v24 = vsel %vm19659_vm2, %v6093_v26, %v6097_v27  ;;  %v6127_v33 = vrot.slane %v6126_v18, 4  ;;  %v6139_v27 = vrot.slane %v6137_v19, 5  ;;  %v6149_v26 = vrot.slane %v6147_v34, 4  ;;  %v991_v18 = vld [vmem:[#allocation2 + $0x78] sm:$0xf] }
 0x17e   : > { %16807 = vmatmul.mubr.msk.bf16.gmra.mrb[20].mxu0 %vm1570_vm3, %v20157_v62  ;;  %v15509_v20 = vcombine.low %v6098_v24, %v6108_v16  ;;  %v6153_v42 = vshll.u32 %v5919_v50, 16  ;;  %v772_v16 = vor.u32 %v770_v63, %v769_v38  ;;  %v1088_v34 = vld [vmem:[%s19615_s9 + $0xc0] sm:$0xf] }
 0x17f   : > { %16810 = vmatprep.mubr.msk.bf16.mxu0 %vm1570_vm3, %v20164_v25  ;;  %v6132_v52 = vsel %vm19659_vm2, %v6127_v33, %v6131_v53  ;;  %v6140_v51 = vor.u32 %v6139_v27, %v6136_v30  ;;  %v6150_v24 = vor.u32 %v6149_v26, %v6145_v9  ;;  %v497_v53 = vld [vmem:[%s19607_s11 + $0xb0] sm:$0xff]  ;;  %v774_v33 = vrot.slane %v769_v38, 4  ;;  %v1089_v30 = vld [vmem:[%s19615_s9 + $0xc4] sm:$0xf]  ;;  %v457_v50 = vld [vmem:[#allocation2 + $0x98] sm:$0x1] }
 0x180   : > { %17218 = vmatprep.mubr.msk.bf16.mxu1 %vm4546_vm0, %v15509_v20  ;;  %v15510_v1 = vcombine.low %v6122_v36, %v6132_v52  ;;  %v16149_v20 = vpack.c.bf16 %v495_v7, %v495_v7  ;;  %v6155_v19 = vrot.slane %v6153_v42, 5  ;;  %v16150_v36 = vpack.c.bf16 %v496_v8, %v496_v8  ;;  %v498_v63 = vld [vmem:[%s19607_s11 + $0xb8] sm:$0xff] }
 0x181   : > { %v6141_v57 = vrot.slane %v6140_v51, 4  ;;  %v6151_v27 = vrot.slane %v6150_v24, 4  ;;  %v773_v43 = vsel %vm20270_vm14, %v765_v11, %v772_v16  ;;  %v992_v7 = vsel %vm20277_vm15, %v764_v56, %v991_v18  ;;  %v998_v16 = vld [vmem:[#allocation2 + $0x84] sm:$0xf] }
 0x182   : > { %17219 = vmatmul.mubr.msk.bf16.vlgmr.msra.gmra.mrb[0].mxu1 %vm4546_vm0, %v15510_v1  ;;  %994 = vst.msk [vmem:[#allocation2 + $0x7c] sm:$0xf] %vm354_vm12, %v773_v43  ;;  %v996_v38 = vsel %vm20241_vm9, %v774_v33, %v995_v49  ;;  %v16151_v26 = vpack.c.bf16 %v497_v53, %v497_v53  ;;  %993 = vst [vmem:[#allocation2 + $0x78] sm:$0xf] %v992_v7  ;;  %v455_v11 = vsel %vm20257_vm11, 0, %v454_v15  ;;  %v779_v42 = vshll.u32 %v16149_v20, 16 }
 0x183   : > { %v6146_v52 = vsel %vm19659_vm2, %v6141_v57, %v6145_v9  ;;  %v6156_v8 = vsel %vm19659_vm2, %v6151_v27, %v6155_v19  ;;  %997 = vst [vmem:[#allocation2 + $0x80] sm:$0x1] %v996_v38  ;;  %v776_v9 = vshrl.u32 %v16149_v20, 16  ;;  %v404_v1 = vld [vmem:[#allocation2 + $0x9c] sm:$0x1]  ;;  %v784_v56 = vshrl.u32 %v16150_v36, 16 }
 0x184   : > { %v15511_v51 = vcombine.low %v6146_v52, %v6156_v8  ;;  %456 = vst [vmem:[#allocation2 + $0x8c] sm:$0x1] %v455_v11  ;;  %v787_v24 = vshll.u32 %v16150_v36, 16  ;;  %v460_v18 = vld [vmem:[#allocation2 + $0xa4] sm:$0x1]  ;;  %v402_v53 = vsel %vm20241_vm9, 0, %v401_v32  ;;  %v20377_v33 = vcombine.low %v1088_v34, %v1089_v30 }
 0x185   : > { %v778_v49 = vrot.slane %v776_v9, 7  ;;  %v458_v57 = vsel %vm20257_vm11, 0, %v457_v50  ;;  %v499_v19 = vld [vmem:[%s19607_s11 + $0xc0] sm:$0xff]  ;;  %v786_v20 = vrot.slane %v784_v56, 7  ;;  %403 = vst [vmem:[#allocation2 + $0x90] sm:$0x1] %v402_v53  ;;  %v16152_v15 = vpack.c.bf16 %v498_v63, %v498_v63 }
 0x186   : > { %16811 = vmatmul.mubr.msk.bf16.gmra.mrb[24].mxu0 %vm1570_vm3, %v20176_v58  ;;  %25197 = vst [vmem:[#allocation57_spill] sm:$0xff] %v20377_v33  ;;  %17222 = vmatprep.mubr.msk.bf16.mxu1 %vm4546_vm0, %v15511_v51  ;;  %459 = vst [vmem:[#allocation2 + $0x98] sm:$0x1] %v458_v57  ;;  %v793_v36 = vshrl.u32 %v16151_v26, 16  ;;  %v796_v32 = vshll.u32 %v16151_v26, 16  ;;  %v405_v52 = vsel %vm20241_vm9, 0, %v404_v1  ;;  %v20387_v51 = vpack.c.bf16 %v499_v19, %v499_v19 }
 0x187   : > { %16814 = vmatprep.mubr.msk.bf16.mxu0 %vm1570_vm3, %v20182_v22  ;;  %v781_v27 = vor.u32 %v779_v42, %v778_v49  ;;  %v782_v43 = vrot.slane %v778_v49, 4  ;;  %v789_v7 = vor.u32 %v787_v24, %v786_v20  ;;  %v791_v38 = vrot.slane %v786_v20, 4  ;;  %406 = vst [vmem:[#allocation2 + $0x9c] sm:$0x1] %v405_v52  ;;  %v500_v34 = vld [vmem:[%s19607_s11 + $0xc8] sm:$0xff]  ;;  %v18606_v30 = vld [vmem:[#allocation8 + $0x88] sm:$0xff]  }
 0x188   : > { %v795_v50 = vrot.slane %v793_v36, 7  ;;  %v804_v9 = vshll.u32 %v16152_v15, 16  ;;  %v461_v63 = vsel %vm20257_vm11, 0, %v460_v18 }
 0x189   : > { %v5921_v8 = vld [vmem:[#allocation2 + $0x7c] sm:$0xf]  ;;  %v999_v11 = vsel %vm20277_vm15, %v781_v27, %v998_v16  ;;  %v5920_v26 = vld [vmem:[#allocation2 + $0x78] sm:$0xf]  ;;  %v790_v24 = vsel %vm20270_vm14, %v782_v43, %v789_v7  ;;  %462 = vst [vmem:[#allocation2 + $0xa4] sm:$0x1] %v461_v63 }
 0x18a   : > { %v5922_v42 = vld [vmem:[#allocation2 + $0x80] sm:$0x1]  ;;  %v6167_v1 = vshll.u32 %v5921_v8, 16  ;;  %v6171_v56 = vshrl.u32 %v5921_v8, 16  ;;  %1000 = vst [vmem:[#allocation2 + $0x84] sm:$0xf] %v999_v11  ;;  %v798_v49 = vor.u32 %v796_v32, %v795_v50  ;;  %v16154_v8 = vpack.c.bf16 %v500_v34, %v500_v34 }
 0x18b   : > { %v6158_v53 = vshrl.u32 %v5920_v26, 16  ;;  %v6161_v57 = vshll.u32 %v5920_v26, 16  ;;  %v6177_v20 = vshll.u32 %v5922_v42, 16  ;;  %1001 = vst.msk [vmem:[#allocation2 + $0x88] sm:$0xf] %vm354_vm12, %v790_v24  ;;  %v18607_v42 = vld [vmem:[#allocation8 + $0x90] sm:$0xff]  }
 0x18c   : > { %v1002_v16 = vld [vmem:[#allocation2 + $0x8c] sm:$0x1]  ;;  %v6169_v18 = vrot.slane %v6167_v1, 5  ;;  %v6173_v19 = vrot.slane %v6171_v56, 4  ;;  %v1005_v7 = vld [vmem:[#allocation2 + $0x90] sm:$0xf] }
 0x18d   : > { %v1003_v36 = vsel %vm20241_vm9, %v791_v38, %v1002_v16  ;;  %v6160_v43 = vrot.slane %v6158_v53, 4  ;;  %v6163_v52 = vrot.slane %v6161_v57, 5  ;;  %v6179_v32 = vrot.slane %v6177_v20, 5  ;;  %v407_v26 = vld [vmem:[#allocation2 + $0xa8] sm:$0x1] }
 0x18e   : > { %16815 = vmatmul.mubr.msk.bf16.gmra.mrb[28].mxu0 %vm1570_vm3, %v20188_v10  ;;  %1004 = vst [vmem:[#allocation2 + $0x8c] sm:$0x1] %v1003_v36  ;;  %v1006_v38 = vsel %vm20277_vm15, %v798_v49, %v1005_v7  ;;  %v810_v34 = vshrl.u32 %v20387_v51, 16  ;;  %v813_v56 = vshll.u32 %v20387_v51, 16  ;;  %v501_v24 = vld [vmem:[%s19607_s11 + $0xd0] sm:$0xff]  ;;  %v821_v49 = vshll.u32 %v16154_v8, 16 }
 0x18f   : > { %16826 = vmatprep.mubr.msk.bf16.mxu0 %vm1570_vm3, %v20050_v59  ;;  %v801_v59 = vshrl.u32 %v16152_v15, 16  ;;  %v799_v15 = vrot.slane %v795_v50, 4  ;;  %v6174_v50 = vor.u32 %v6173_v19, %v6169_v18  ;;  %v6164_v1 = vor.u32 %v6163_v52, %v6160_v43  ;;  %1007 = vst [vmem:[#allocation2 + $0x90] sm:$0xf] %v1006_v38 }
 0x190   : > { %v812_v19 = vrot.slane %v810_v34, 7  ;;  %v408_v51 = vsel %vm20241_vm9, 0, %v407_v26 }
 0x191   : > { %v803_v27 = vrot.slane %v801_v59, 7  ;;  %v1009_v59 = vld [vmem:[#allocation2 + $0x98] sm:$0x1]  ;;  %v6175_v53 = vrot.slane %v6174_v50, 4  ;;  %v6165_v20 = vrot.slane %v6164_v1, 4 }
 0x192   : > { %v5923_v16 = vld [vmem:[#allocation2 + $0x84] sm:$0xf]  ;;  %409 = vst [vmem:[#allocation2 + $0xa8] sm:$0x1] %v408_v51  ;;  %v815_v38 = vor.u32 %v813_v56, %v812_v19 }
 0x193   : > { %v806_v11 = vor.u32 %v804_v9, %v803_v27  ;;  %v808_v63 = vrot.slane %v803_v27, 4  ;;  %v18608_v27 = vld [vmem:[#allocation8 + $0x98] sm:$0xff]   ;;  %v6180_v43 = vsel %vm19659_vm2, %v6175_v53, %v6179_v32  ;;  %v6182_v52 = vshrl.u32 %v5923_v16, 16 }
 0x194   : > { %v6185_v7 = vshll.u32 %v5923_v16, 16  ;;  %v6170_v50 = vsel %vm19659_vm2, %v6165_v20, %v6169_v18  ;;  %v1016_v16 = vld [vmem:[#allocation2 + $0xa4] sm:$0x1]  ;;  %v502_v18 = vld [vmem:[%s19607_s11 + $0xd8] sm:$0xff] }
 0x195   : > { %v807_v9 = vsel %vm20270_vm14, %v799_v15, %v806_v11  ;;  %v1010_v57 = vsel %vm20241_vm9, %v808_v63, %v1009_v59  ;;  %v5924_v15 = vld [vmem:[#allocation2 + $0x88] sm:$0xf]  ;;  %v1012_v59 = vld [vmem:[#allocation2 + $0x9c] sm:$0xf]  ;;  %v15512_v26 = vcombine.low %v6170_v50, %v6180_v43  ;;  %v5925_v1 = vld [vmem:[#allocation2 + $0x8c] sm:$0x1] }
 0x196   : > { %16827 = vmatmul.mubr.msk.bf16.vlgmr.msra.gmra.mrb[0].mxu0 %vm1570_vm3, %v20054_v41  ;;  %1008 = vst.msk [vmem:[#allocation2 + $0x94] sm:$0xf] %vm354_vm12, %v807_v9  ;;  %1011 = vst [vmem:[#allocation2 + $0x98] sm:$0x1] %v1010_v57  ;;  %v6191_v11 = vshll.u32 %v5924_v15, 16  ;;  %v6195_v63 = vshrl.u32 %v5924_v15, 16  ;;  %v1013_v43 = vsel %vm20277_vm15, %v815_v38, %v1012_v59  ;;  %v20433_v59 = vpack.c.bf16 %v502_v18, %v502_v18 }
 0x197   : > { %16859 = vmatpush3.bf16.msra.mxu0 %v20234_v44  ;;  %16830 = vmatprep.mubr.msk.bf16.mxu0 %vm1570_vm3, %v20060_v17  ;;  %v818_v44 = vshrl.u32 %v16154_v8, 16  ;;  %v20413_v8 = vpack.c.bf16 %v501_v24, %v501_v24  ;;  %v6184_v34 = vrot.slane %v6182_v52, 4  ;;  %v6187_v32 = vrot.slane %v6185_v7, 5  ;;  %v5926_v20 = vld [vmem:[#allocation2 + $0x90] sm:$0xf]  ;;  %v20426_v15 = vld [vmem:[#allocation8 + $0xa0] sm:$0xff]  }
 0x198   : > { %16860 = vmatprep.subr.bf16.mxu0 %v18606_v30  ;;  %v6193_v24 = vrot.slane %v6191_v11, 5  ;;  %v6197_v53 = vrot.slane %v6195_v63, 4  ;;  %v6201_v9 = vshll.u32 %v5925_v1, 16  ;;  %17223 = vmatmul.mubr.msk.bf16.gmra.mrb[4].mxu1 %vm4546_vm0, %v15512_v26  ;;  %v6206_v7 = vshrl.u32 %v5926_v20, 16  ;;  %1014 = vst [vmem:[#allocation2 + $0x9c] sm:$0xf] %v1013_v43 }
 0x199   : > { %v820_v36 = vrot.slane %v818_v44, 7  ;;  %v816_v44 = vrot.slane %v812_v19, 4  ;;  %v6188_v56 = vor.u32 %v6187_v32, %v6184_v34  ;;  %v6209_v50 = vshll.u32 %v5926_v20, 16 }
 0x19a   : > { %v6203_v52 = vrot.slane %v6201_v9, 5  ;;  %v6208_v1 = vrot.slane %v6206_v7, 4  ;;  %v1019_v7 = vld [vmem:[#allocation2 + $0xa8] sm:$0xf] }
 0x19b   : > { %16861 = vmatpush3.bf16.msra.mxu0 %v18606_v30  ;;  %v463_v30 = vld [vmem:[#allocation2 + $0xb0] sm:$0x1]  ;;  %v823_v57 = vor.u32 %v821_v49, %v820_v36  ;;  %v825_v51 = vrot.slane %v820_v36, 4  ;;  %v6198_v49 = vor.u32 %v6197_v53, %v6193_v24  ;;  %v6211_v26 = vrot.slane %v6209_v50, 5  ;;  %v503_v50 = vld [vmem:[%s19607_s11 + $0xe0] sm:$0xff] }
 0x19c   : > { %16862 = vmatprep.subr.bf16.mxu0 %v18607_v42  ;;  %v464_v19 = vsel %vm20257_vm11, 0, %v463_v30 }
 0x19d   : > { %465 = vst [vmem:[#allocation2 + $0xb0] sm:$0x1] %v464_v19  ;;  %v5927_v11 = vld [vmem:[#allocation2 + $0x94] sm:$0xf]  ;;  %v5928_v36 = vld [vmem:[#allocation2 + $0x98] sm:$0x1]  ;;  %v824_v63 = vsel %vm20270_vm14, %v816_v44, %v823_v57  ;;  %v1017_v38 = vsel %vm20241_vm9, %v825_v51, %v1016_v16 }
 0x19e   : > { %16831 = vmatmul.mubr.msk.bf16.gmra.mrb[4].mxu0 %vm1570_vm3, %v19977_v3  ;;  %v6199_v30 = vrot.slane %v6198_v49, 4  ;;  %v6215_v34 = vshll.u32 %v5927_v11, 16  ;;  %1015 = vst.msk [vmem:[#allocation2 + $0xa0] sm:$0xf] %vm354_vm12, %v824_v63  ;;  %1018 = vst [vmem:[#allocation2 + $0xa4] sm:$0x1] %v1017_v38 }
 0x19f   : > { %16834 = vmatprep.mubr.msk.bf16.mxu0 %vm1570_vm3, %v19981_v4  ;;  %16863 = vmatpush3.bf16.msra.mxu0 %v18607_v42  ;;  %v6189_v42 = vrot.slane %v6188_v56, 4  ;;  %v6219_v53 = vshrl.u32 %v5927_v11, 16  ;;  %v6225_v9 = vshll.u32 %v5928_v36, 16  ;;  %v827_v44 = vshrl.u32 %v20413_v8, 16  ;;  %v410_v57 = vld [vmem:[#allocation2 + $0xb4] sm:$0x1] }
 0x1a0   : > { %16864 = vmatprep.subr.bf16.mxu0 %v18608_v27  ;;  %v18618_v16 = vld [vmem:[#allocation9 + $0x50] sm:$0xff]   ;;  %v6204_v18 = vsel %vm19659_vm2, %v6199_v30, %v6203_v52  ;;  %v6212_v56 = vor.u32 %v6211_v26, %v6208_v1  ;;  %v6217_v20 = vrot.slane %v6215_v34, 5  ;;  %v835_v11 = vshrl.u32 %v20433_v59, 16  ;;  %v18619_v63 = vld [vmem:[#allocation9 + $0x58] sm:$0xff]  }
 0x1a1   : > { %v6194_v32 = vsel %vm19659_vm2, %v6189_v42, %v6193_v24  ;;  %v466_v51 = vld [vmem:[#allocation2 + $0xbc] sm:$0x1]  ;;  %v6221_v24 = vrot.slane %v6219_v53, 4  ;;  %v6227_v19 = vrot.slane %v6225_v9, 5  ;;  %v829_v49 = vrot.slane %v827_v44, 7  ;;  %17238 = vmatprep.subr.bf16.mxu1 %v18618_v16 }
 0x1a2   : > { %v15513_v43 = vcombine.low %v6194_v32, %v6204_v18  ;;  %v6213_v42 = vrot.slane %v6212_v56, 4  ;;  %v838_v52 = vshll.u32 %v20433_v59, 16  ;;  %v411_v36 = vsel %vm20241_vm9, 0, %v410_v57  ;;  %17239 = vmatpush3.bf16.msra.mxu1 %v18618_v16  ;;  %v5929_v30 = vld [vmem:[#allocation2 + $0x9c] sm:$0xf] }
 0x1a3   : > { %16865 = vmatpush3.bf16.msra.mxu0 %v18608_v27  ;;  %v830_v27 = vshll.u32 %v20413_v8, 16  ;;  %v504_v8 = vld [vmem:[%s19607_s11 + $0xe8] sm:$0xff]  ;;  %v6222_v38 = vor.u32 %v6221_v24, %v6217_v20  ;;  %v833_v26 = vrot.slane %v829_v49, 4  ;;  %412 = vst [vmem:[#allocation2 + $0xb4] sm:$0x1] %v411_v36  ;;  %v467_v34 = vsel %vm20257_vm11, 0, %v466_v51  ;;  %17240 = vmatprep.subr.bf16.mxu1 %v18619_v63 }
 0x1a4   : > { %16898 = vmatprep.subr.bf16.mxu0 %v20426_v15  ;;  %17226 = vmatprep.mubr.msk.bf16.mxu1 %vm4546_vm0, %v15513_v43  ;;  %v6218_v59 = vsel %vm19659_vm2, %v6213_v42, %v6217_v20  ;;  %v6230_v32 = vshrl.u32 %v5929_v30, 16  ;;  %v6233_v53 = vshll.u32 %v5929_v30, 16  ;;  %v837_v9 = vrot.slane %v835_v11, 7  ;;  %v1023_v44 = vld [vmem:[#allocation2 + $0xb0] sm:$0x1] }
 0x1a5   : > { %v832_v1 = vor.u32 %v830_v27, %v829_v49  ;;  %468 = vst [vmem:[#allocation2 + $0xbc] sm:$0x1] %v467_v34  ;;  %v6223_v57 = vrot.slane %v6222_v38, 4  ;;  %v5930_v16 = vld [vmem:[#allocation2 + $0xa0] sm:$0xf]  ;;  %v16157_v27 = vpack.c.bf16 %v503_v50, %v503_v50  ;;  %v16158_v43 = vpack.c.bf16 %v504_v8, %v504_v8 }
 0x1a6   : > { %16835 = vmatmul.mubr.msk.bf16.gmra.mrb[8].mxu0 %vm1570_vm3, %v19985_v14  ;;  %v5931_v18 = vld [vmem:[#allocation2 + $0xa4] sm:$0x1]  ;;  %v6232_v24 = vrot.slane %v6230_v32, 4  ;;  %v6235_v51 = vrot.slane %v6233_v53, 5  ;;  %v6239_v49 = vshll.u32 %v5930_v16, 16  ;;  %v6243_v36 = vshrl.u32 %v5930_v16, 16  ;;  %17241 = vmatpush3.bf16.msra.mxu1 %v18619_v63 }
 0x1a7   : > { %16838 = vmatprep.mubr.msk.bf16.mxu0 %vm1570_vm3, %v19989_v2  ;;  %v1020_v56 = vsel %vm20277_vm15, %v832_v1, %v1019_v7  ;;  %v413_v20 = vld [vmem:[#allocation2 + $0xc0] sm:$0x1]  ;;  %v469_v42 = vld [vmem:[#allocation2 + $0xc8] sm:$0x1]  ;;  %v6228_v11 = vsel %vm19659_vm2, %v6223_v57, %v6227_v19  ;;  %v6249_v38 = vshll.u32 %v5931_v18, 16  ;;  %v840_v30 = vor.u32 %v838_v52, %v837_v9  ;;  %v506_v57 = vld [vmem:[%s19607_s11 + $0xf8] sm:$0xff] }
 0x1a8   : > { %1021 = vst [vmem:[#allocation2 + $0xa8] sm:$0xf] %v1020_v56  ;;  %v842_v34 = vrot.slane %v837_v9, 4  ;;  %v505_v2 = vld [vmem:[%s19607_s11 + $0xf0] sm:$0xff]  ;;  %v15514_v14 = vcombine.low %v6218_v59, %v6228_v11  ;;  %v6236_v7 = vor.u32 %v6235_v51, %v6232_v24  ;;  %v6241_v50 = vrot.slane %v6239_v49, 5  ;;  %v475_v11 = vld [vmem:[%s19607_s11] sm:$0xff] }
 0x1a9   : > { %v6245_v8 = vrot.slane %v6243_v36, 4  ;;  %v6251_v1 = vrot.slane %v6249_v38, 5  ;;  %v841_v32 = vsel %vm20270_vm14, %v833_v26, %v840_v30  ;;  %v844_v63 = vshrl.u32 %v16157_v27, 16  ;;  %v368_v16 = vld [vmem:[#allocation2 + $0xc] sm:$0x1] }
 0x1aa   : > { %v1024_v53 = vsel %vm20241_vm9, %v842_v34, %v1023_v44  ;;  %17227 = vmatmul.mubr.msk.bf16.gmra.mrb[8].mxu1 %vm4546_vm0, %v15514_v14  ;;  %v6237_v19 = vrot.slane %v6236_v7, 4  ;;  %1022 = vst.msk [vmem:[#allocation2 + $0xac] sm:$0xf] %vm354_vm12, %v841_v32  ;;  %v847_v59 = vshll.u32 %v16157_v27, 16  ;;  %v852_v9 = vshrl.u32 %v16158_v43, 16 }
 0x1ab   : > { %v6246_v52 = vor.u32 %v6245_v8, %v6241_v50  ;;  %1025 = vst [vmem:[#allocation2 + $0xb0] sm:$0x1] %v1024_v53  ;;  %v846_v26 = vrot.slane %v844_v63, 7  ;;  %v855_v44 = vshll.u32 %v16158_v43, 16  ;;  %v1026_v18 = vld [vmem:[#allocation2 + $0xb4] sm:$0xf]  ;;  %v16159_v36 = vpack.c.bf16 %v505_v2, %v505_v2 }
 0x1ac   : > { %v414_v56 = vsel %vm20241_vm9, 0, %v413_v20  ;;  %v470_v14 = vsel %vm20257_vm11, 0, %v469_v42  ;;  %v6242_v24 = vsel %vm19659_vm2, %v6237_v19, %v6241_v50  ;;  %v854_v51 = vrot.slane %v852_v9, 7  ;;  %v1030_v49 = vld [vmem:[#allocation2 + $0xbc] sm:$0x1] }
 0x1ad   : > { %v6247_v27 = vrot.slane %v6246_v52, 4  ;;  %415 = vst [vmem:[#allocation2 + $0xc0] sm:$0x1] %v414_v56  ;;  %471 = vst [vmem:[#allocation2 + $0xc8] sm:$0x1] %v470_v14  ;;  %v849_v30 = vor.u32 %v847_v59, %v846_v26  ;;  %v850_v43 = vrot.slane %v846_v26, 4  ;;  %v16160_v34 = vpack.c.bf16 %v506_v57, %v506_v57 }
 0x1ae   : > { %16839 = vmatmul.mubr.msk.bf16.gmra.mrb[12].mxu0 %vm1570_vm3, %v19997_v60  ;;  %v369_v20 = vsel %vm20241_vm9, 0, %v368_v16  ;;  %v857_v50 = vor.u32 %v855_v44, %v854_v51  ;;  %v859_v53 = vrot.slane %v854_v51, 4  ;;  %v861_v63 = vshrl.u32 %v16159_v36, 16  ;;  %v424_v57 = vld [vmem:[#allocation2 + $0x14] sm:$0x1] }
 0x1af   : > { %16842 = vmatprep.mubr.msk.bf16.mxu0 %vm1570_vm3, %v20001_v35  ;;  %v5932_v38 = vld [vmem:[#allocation2 + $0xa8] sm:$0xf]  ;;  %v6252_v42 = vsel %vm19659_vm2, %v6247_v27, %v6251_v1  ;;  %370 = vst [vmem:[#allocation2 + $0xc] sm:$0x1] %v369_v20  ;;  %v1027_v2 = vsel %vm20277_vm15, %v849_v30, %v1026_v18  ;;  %v864_v9 = vshll.u32 %v16159_v36, 16  ;;  %v869_v18 = vshrl.u32 %v16160_v34, 16 }
 0x1b0   : > { %v6254_v7 = vshrl.u32 %v5932_v38, 16  ;;  %v6257_v8 = vshll.u32 %v5932_v38, 16  ;;  %v15515_v32 = vcombine.low %v6242_v24, %v6252_v42  ;;  %v858_v59 = vsel %vm20270_vm14, %v850_v43, %v857_v50  ;;  %1028 = vst [vmem:[#allocation2 + $0xb4] sm:$0xf] %v1027_v2  ;;  %v371_v36 = vld [vmem:[#allocation2 + $0x18] sm:$0x1] }
 0x1b1   : > { %v20490_v1 = vld [vmem:[#allocation2 + $0xac] sm:$0xf]  ;;  %1029 = vst.msk [vmem:[#allocation2 + $0xb8] sm:$0xf] %vm354_vm12, %v858_v59  ;;  %v1031_v26 = vsel %vm20241_vm9, %v859_v53, %v1030_v49  ;;  %v863_v44 = vrot.slane %v861_v63, 7  ;;  %v16129_v56 = vpack.c.bf16 %v475_v11, %v475_v11  ;;  %v871_v30 = vrot.slane %v869_v18, 7 }
 0x1b2   : > { %v6256_v19 = vrot.slane %v6254_v7, 4  ;;  %v6259_v52 = vrot.slane %v6257_v8, 5  ;;  %17230 = vmatprep.mubr.msk.bf16.mxu1 %vm4546_vm0, %v15515_v32  ;;  %v20492_v16 = vld [vmem:[#allocation2 + $0xb0] sm:$0x1]  ;;  %v6263_v24 = vshll.u32 %v20490_v1, 16  ;;  %v6267_v27 = vshrl.u32 %v20490_v1, 16 }
 0x1b3   : > { %v6273_v51 = vshll.u32 %v20492_v16, 16  ;;  %1032 = vst [vmem:[#allocation2 + $0xbc] sm:$0x1] %v1031_v26  ;;  %v866_v49 = vor.u32 %v864_v9, %v863_v44  ;;  %v867_v38 = vrot.slane %v863_v44, 4  ;;  %v872_v43 = vshll.u32 %v16160_v34, 16  ;;  %v476_v20 = vld [vmem:[%s19607_s11 + $0x8] sm:$0xff] }
 0x1b4   : > { %v6260_v14 = vor.u32 %v6259_v52, %v6256_v19  ;;  %v1033_v11 = vld [vmem:[#allocation2 + $0xc0] sm:$0xf]  ;;  %v6265_v7 = vrot.slane %v6263_v24, 5  ;;  %v6269_v8 = vrot.slane %v6267_v27, 4  ;;  %v1037_v32 = vld [vmem:[#allocation2 + $0xc8] sm:$0x1]  ;;  %v16130_v34 = vpack.c.bf16 %v476_v20, %v476_v20 }
 0x1b5   : > { %v6275_v50 = vrot.slane %v6273_v51, 5  ;;  %v874_v53 = vor.u32 %v872_v43, %v871_v30  ;;  %v876_v2 = vrot.slane %v871_v30, 4  ;;  %v1034_v63 = vsel %vm20277_vm15, %v866_v49, %v1033_v11  ;;  %v427_v43 = vld [vmem:[#allocation2 + $0x20] sm:$0x1]  ;;  %v21641_v6 = vld [vmem:[#allocation2 + $0xa4] sm:$0x1] }
 0x1b6   : > { %16843 = vmatmul.mubr.msk.bf16.gmra.mrb[16].mxu0 %vm1570_vm3, %v20005_v37  ;;  %v6261_v42 = vrot.slane %v6260_v14, 4  ;;  %v425_v19 = vsel %vm20257_vm11, 0, %v424_v57  ;;  %v6270_v59 = vor.u32 %v6269_v8, %v6265_v7  ;;  %1035 = vst [vmem:[#allocation2 + $0xc0] sm:$0xf] %v1034_v63  ;;  %v606_v9 = vshrl.u32 %v16129_v56, 16 }
 0x1b7   : > { %16846 = vmatprep.mubr.msk.bf16.mxu0 %vm1570_vm3, %v20009_v5  ;;  %426 = vst [vmem:[#allocation2 + $0x14] sm:$0x1] %v425_v19  ;;  %v5935_v26 = vld [vmem:[#allocation2 + $0xb4] sm:$0xf]  ;;  %v875_v44 = vsel %vm20270_vm14, %v867_v38, %v874_v53  ;;  %v1038_v18 = vsel %vm20241_vm9, %v876_v2, %v1037_v32  ;;  %v609_v14 = vshll.u32 %v16129_v56, 16  ;;  %v372_v24 = vsel %vm20241_vm9, 0, %v371_v36 }
 0x1b8   : > { %v6266_v52 = vsel %vm19659_vm2, %v6261_v42, %v6265_v7  ;;  %v6271_v57 = vrot.slane %v6270_v59, 4  ;;  %v20517_v27 = vld [vmem:[#allocation2 + $0xb8] sm:$0xf]  ;;  %v6278_v51 = vshrl.u32 %v5935_v26, 16  ;;  %v6281_v49 = vshll.u32 %v5935_v26, 16  ;;  %v477_v2 = vld [vmem:[%s19607_s11 + $0x10] sm:$0xff] }
 0x1b9   : > { %1036 = vst.msk [vmem:[#allocation2 + $0xc4] sm:$0xf] %vm354_vm12, %v875_v44  ;;  %1039 = vst [vmem:[#allocation2 + $0xc8] sm:$0x1] %v1038_v18  ;;  %v608_v30 = vrot.slane %v606_v9, 7  ;;  %v6287_v11 = vshll.u32 %v20517_v27, 16 }
 0x1ba   : > { %373 = vst [vmem:[#allocation2 + $0x18] sm:$0x1] %v372_v24  ;;  %v20520_v38 = vld [vmem:[#allocation2 + $0xbc] sm:$0x1]  ;;  %v6291_v56 = vshrl.u32 %v20517_v27, 16  ;;  %v614_v36 = vshrl.u32 %v16130_v34, 16  ;;  %v6276_v42 = vsel %vm19659_vm2, %v6271_v57, %v6275_v50 }
 0x1bb   : > { %v617_v20 = vshll.u32 %v16130_v34, 16  ;;  %v6280_v7 = vrot.slane %v6278_v51, 4  ;;  %v6283_v8 = vrot.slane %v6281_v49, 5  ;;  %v6297_v32 = vshll.u32 %v20520_v38, 16  ;;  %v928_v53 = vld [vmem:[#allocation2 + $0xc] sm:$0xf] }
 0x1bc   : > { %v15516_v63 = vcombine.low %v6266_v52, %v6276_v42  ;;  %v6289_v19 = vrot.slane %v6287_v11, 5  ;;  %v6293_v59 = vrot.slane %v6291_v56, 4  ;;  %v611_v34 = vor.u32 %v609_v14, %v608_v30  ;;  %v478_v9 = vld [vmem:[%s19607_s11 + $0x18] sm:$0xff]  ;;  %v479_v50 = vld [vmem:[%s19607_s11 + $0x20] sm:$0xff] }
 0x1bd   : > { %v6284_v26 = vor.u32 %v6283_v8, %v6280_v7  ;;  %v6299_v44 = vrot.slane %v6297_v32, 5  ;;  %v612_v18 = vrot.slane %v608_v30, 4  ;;  %v616_v24 = vrot.slane %v614_v36, 7  ;;  %v5938_v51 = vld [vmem:[#allocation2 + $0xc0] sm:$0xf] }
 0x1be   : > { %16847 = vmatmul.mubr.msk.bf16.gmra.mrb[20].mxu0 %vm1570_vm3, %v20013_v40  ;;  %17231 = vmatmul.mubr.msk.bf16.gmra.mrb[12].mxu1 %vm4546_vm0, %v15516_v63  ;;  %v6294_v57 = vor.u32 %v6293_v59, %v6289_v19  ;;  %v929_v49 = vsel %vm20277_vm15, %v611_v34, %v928_v53  ;;  %v932_v40 = vld [vmem:[#allocation2 + $0x14] sm:$0x1]  ;;  %v428_v52 = vsel %vm20257_vm11, 0, %v427_v43  ;;  %v16131_v11 = vpack.c.bf16 %v477_v2, %v477_v2 }
 0x1bf   : > { %16850 = vmatprep.mubr.msk.bf16.mxu0 %vm1570_vm3, %v20017_v23  ;;  %v6285_v56 = vrot.slane %v6284_v26, 4  ;;  %v6302_v14 = vshrl.u32 %v5938_v51, 16  ;;  %v6305_v42 = vshll.u32 %v5938_v51, 16  ;;  %v619_v7 = vor.u32 %v617_v20, %v616_v24  ;;  %930 = vst [vmem:[#allocation2 + $0xc] sm:$0xf] %v929_v49 }
 0x1c0   : > { %429 = vst [vmem:[#allocation2 + $0x20] sm:$0x1] %v428_v52  ;;  %v6295_v30 = vrot.slane %v6294_v57, 4  ;;  %v20539_v36 = vld [vmem:[#allocation2 + $0xc4] sm:$0xf]  ;;  %v621_v32 = vrot.slane %v616_v24, 4  ;;  %v16132_v63 = vpack.c.bf16 %v478_v9, %v478_v9  ;;  %v20543_v59 = vpack.c.bf16 %v479_v50, %v479_v50 }
 0x1c1   : > { %v20541_v8 = vld [vmem:[#allocation2 + $0xc8] sm:$0x1]  ;;  %v6290_v53 = vsel %vm19659_vm2, %v6285_v56, %v6289_v19  ;;  %v6304_v43 = vrot.slane %v6302_v14, 4  ;;  %v6307_v2 = vrot.slane %v6305_v42, 5  ;;  %v6311_v34 = vshll.u32 %v20539_v36, 16 }
 0x1c2   : > { %v374_v20 = vld [vmem:[#allocation2 + $0x24] sm:$0x1]  ;;  %v6300_v26 = vsel %vm19659_vm2, %v6295_v30, %v6299_v44  ;;  %v6315_v57 = vshrl.u32 %v20539_v36, 16  ;;  %v6321_v51 = vshll.u32 %v20541_v8, 16  ;;  %v620_v9 = vsel %vm20270_vm14, %v612_v18, %v619_v7  ;;  %v430_v52 = vld [vmem:[#allocation2 + $0x2c] sm:$0x1] }
 0x1c3   : > { %v15517_v19 = vcombine.low %v6290_v53, %v6300_v26  ;;  %v6308_v24 = vor.u32 %v6307_v2, %v6304_v43  ;;  %v6313_v50 = vrot.slane %v6311_v34, 5  ;;  %931 = vst.msk [vmem:[#allocation2 + $0x10] sm:$0xf] %vm354_vm12, %v620_v9  ;;  %v933_v49 = vsel %vm20241_vm9, %v621_v32, %v932_v40  ;;  %v480_v44 = vld [vmem:[%s19607_s11 + $0x28] sm:$0xff]  ;;  %v935_v43 = vld [vmem:[#allocation2 + $0x18] sm:$0xf] }
 0x1c4   : > { %v6317_v56 = vrot.slane %v6315_v57, 4  ;;  %v6323_v14 = vrot.slane %v6321_v51, 5  ;;  %934 = vst [vmem:[#allocation2 + $0x14] sm:$0x1] %v933_v49  ;;  %v623_v18 = vshrl.u32 %v16131_v11, 16  ;;  %v626_v42 = vshll.u32 %v16131_v11, 16 }
 0x1c5   : > { %17234 = vmatprep.mubr.msk.bf16.mxu1 %vm4546_vm0, %v15517_v19  ;;  %v6309_v7 = vrot.slane %v6308_v24, 4  ;;  %v631_v30 = vshrl.u32 %v16132_v63, 16  ;;  %v634_v53 = vshll.u32 %v16132_v63, 16  ;;  %v375_v2 = vsel %vm20241_vm9, 0, %v374_v20  ;;  %v377_v40 = vld [vmem:[#allocation2 + $0x30] sm:$0x1] }
 0x1c6   : > { %16851 = vmatmul.mubr.msk.bf16.gmra.mrb[24].mxu0 %vm1570_vm3, %v20023_v45  ;;  %v6318_v32 = vor.u32 %v6317_v56, %v6313_v50  ;;  %v6631_v34 = vld [vmem:[#allocation2 + $0xc] sm:$0xe]  ;;  %v625_v26 = vrot.slane %v623_v18, 7  ;;  %376 = vst [vmem:[#allocation2 + $0x24] sm:$0x1] %v375_v2  ;;  %v431_v57 = vsel %vm20257_vm11, 0, %v430_v52  ;;  %v16134_v11 = vpack.c.bf16 %v480_v44, %v480_v44 }
 0x1c7   : > { %16854 = vmatprep.mubr.msk.bf16.mxu0 %vm1570_vm3, %v20027_v31  ;;  %v939_v9 = vld [vmem:[#allocation2 + $0x20] sm:$0x1]  ;;  %v6314_v51 = vsel %vm19659_vm2, %v6309_v7, %v6313_v50  ;;  %v15537_v19 = vrot.slane %v6631_v34, 9  ;;  %v633_v63 = vrot.slane %v631_v30, 7  ;;  %432 = vst [vmem:[#allocation2 + $0x2c] sm:$0x1] %v431_v57 }
 0x1c8   : > { %v640_v24 = vshrl.u32 %v20543_v59, 16  ;;  %v6319_v20 = vrot.slane %v6318_v32, 4  ;;  %v628_v49 = vor.u32 %v626_v42, %v625_v26  ;;  %v629_v56 = vrot.slane %v625_v26, 4  ;;  %v433_v31 = vld [vmem:[#allocation2 + $0x38] sm:$0x1]  ;;  %v481_v44 = vld [vmem:[%s19607_s11 + $0x30] sm:$0xff] }
 0x1c9   : > { %v643_v18 = vshll.u32 %v20543_v59, 16  ;;  %v636_v2 = vor.u32 %v634_v53, %v633_v63  ;;  %v638_v45 = vrot.slane %v633_v63, 4  ;;  %v648_v52 = vshrl.u32 %v16134_v11, 16  ;;  %v482_v57 = vld [vmem:[%s19607_s11 + $0x38] sm:$0xff] }
 0x1ca   : > { %v642_v23 = vrot.slane %v640_v24, 7  ;;  %v6324_v50 = vsel %vm19659_vm2, %v6319_v20, %v6323_v14  ;;  %v5894_v7 = vld [vmem:[#allocation2 + $0x10] sm:$0xf]  ;;  %v936_v30 = vsel %vm20277_vm15, %v628_v49, %v935_v43  ;;  %v651_v34 = vshll.u32 %v16134_v11, 16  ;;  %v25198_v43 = vld [vmem:[#allocation18_spill] sm:$0xff] }
 0x1cb   : > { %v378_v42 = vsel %vm20241_vm9, 0, %v377_v40  ;;  %v15518_v59 = vcombine.low %v6314_v51, %v6324_v50  ;;  %v5895_v53 = vld [vmem:[#allocation2 + $0x14] sm:$0x1]  ;;  %v6697_v32 = vrot.slane %v5894_v7, 5  ;;  %v637_v26 = vsel %vm20270_vm14, %v629_v56, %v636_v2  ;;  %937 = vst [vmem:[#allocation2 + $0x18] sm:$0xf] %v936_v30 }
 0x1cc   : > { %v940_v14 = vsel %vm20241_vm9, %v638_v45, %v939_v9  ;;  %379 = vst [vmem:[#allocation2 + $0x30] sm:$0x1] %v378_v42  ;;  %v6700_v11 = vrot.slane %v5895_v53, 5  ;;  %938 = vst.msk [vmem:[#allocation2 + $0x1c] sm:$0xf] %vm354_vm12, %v637_v26  ;;  %v645_v40 = vor.u32 %v643_v18, %v642_v23  ;;  %v646_v51 = vrot.slane %v642_v23, 4 }
 0x1cd   : > { %941 = vst [vmem:[#allocation2 + $0x20] sm:$0x1] %v940_v14  ;;  %v650_v63 = vrot.slane %v648_v52, 7  ;;  %v380_v24 = vld [vmem:[#allocation2 + $0x3c] sm:$0x1]  ;;  %17235 = vmatmul.mubr.msk.bf16.gmra.mrb[16].mxu1 %vm4546_vm0, %v15518_v59  ;;  %v6698_v20 = vsel %vm20031_vm6, %v15537_v19, %v6697_v32  ;;  %v6699_v45 = vrot.slane %v6697_v32, 4  ;;  %v16135_v56 = vpack.c.bf16 %v481_v44, %v481_v44 }
 0x1ce   : > { %16855 = vmatmul.mubr.msk.bf16.gmra.mrb[28].mxu0 %vm1570_vm3, %v20377_v33  ;;  %v942_v9 = vld [vmem:[#allocation2 + $0x24] sm:$0xf]  ;;  %v434_v49 = vsel %vm20257_vm11, 0, %v433_v31  ;;  %v946_v18 = vld [vmem:[#allocation2 + $0x2c] sm:$0x1]  ;;  %v16136_v52 = vpack.c.bf16 %v482_v57, %v482_v57  ;;  %v483_v30 = vld [vmem:[%s19607_s11 + $0x40] sm:$0xff] }
 0x1cf   : > { %16866 = vmatprep.mubr.msk.bf16.mxu0 %vm1570_vm3, %v25198_v43  ;;  %v653_v2 = vor.u32 %v651_v34, %v650_v63  ;;  %v655_v50 = vrot.slane %v650_v63, 4  ;;  %v943_v23 = vsel %vm20277_vm15, %v645_v40, %v942_v9  ;;  %435 = vst [vmem:[#allocation2 + $0x38] sm:$0x1] %v434_v49  ;;  %v436_v7 = vld [vmem:[#allocation2 + $0x44] sm:$0x1]  ;;  %v6701_v19 = vsel %vm20031_vm6, %v6699_v45, %v6700_v11  ;;  %v485_v57 = vld [vmem:[%s19607_s11 + $0x50] sm:$0xff] }
 0x1d0   : > { %944 = vst [vmem:[#allocation2 + $0x24] sm:$0xf] %v943_v23  ;;  %v657_v42 = vshrl.u32 %v16135_v56, 16  ;;  %v660_v59 = vshll.u32 %v16135_v56, 16  ;;  %v381_v31 = vsel %vm20241_vm9, 0, %v380_v24  ;;  %v484_v44 = vld [vmem:[%s19607_s11 + $0x48] sm:$0xff]  ;;  %v15553_v53 = vcombine.low %v6698_v20, %v6701_v19 }
 0x1d1   : > { %v383_v34 = vld [vmem:[#allocation2 + $0x48] sm:$0x1]  ;;  %v654_v32 = vsel %vm20270_vm14, %v646_v51, %v653_v2  ;;  %v947_v26 = vsel %vm20241_vm9, %v655_v50, %v946_v18  ;;  %v665_v14 = vshrl.u32 %v16136_v52, 16  ;;  %382 = vst [vmem:[#allocation2 + $0x3c] sm:$0x1] %v381_v31  ;;  %v18611_v43 = vld [vmem:[#allocation8 + $0xa8] sm:$0xff]   ;;  %v16137_v24 = vpack.c.bf16 %v483_v30, %v483_v30 }
 0x1d2   : > { %945 = vst.msk [vmem:[#allocation2 + $0x28] sm:$0xf] %vm354_vm12, %v654_v32  ;;  %948 = vst [vmem:[#allocation2 + $0x2c] sm:$0x1] %v947_v26  ;;  %v659_v11 = vrot.slane %v657_v42, 7  ;;  %v668_v40 = vshll.u32 %v16136_v52, 16  ;;  %17242 = vmatprep.mubr.msk.bf16.mxu1 %vm4546_vm0, %v15553_v53  ;;  %v16138_v9 = vpack.c.bf16 %v484_v44, %v484_v44 }
 0x1d3   : > { %v437_v63 = vsel %vm20257_vm11, 0, %v436_v7  ;;  %v6632_v20 = vld [vmem:[#allocation2 + $0x18] sm:$0xe]  ;;  %v667_v51 = vrot.slane %v665_v14, 7  ;;  %v949_v45 = vld [vmem:[#allocation2 + $0x30] sm:$0xf]  ;;  %v20614_v7 = vpack.c.bf16 %v485_v57, %v485_v57 }
 0x1d4   : > { %438 = vst [vmem:[#allocation2 + $0x44] sm:$0x1] %v437_v63  ;;  %v384_v49 = vsel %vm20241_vm9, 0, %v383_v34  ;;  %v25199_v56 = vld [vmem:[#allocation19_spill] sm:$0xff]  ;;  %v5897_v2 = vld [vmem:[#allocation2 + $0x1c] sm:$0xf]  ;;  %v662_v18 = vor.u32 %v660_v59, %v659_v11 }
 0x1d5   : > { %v5898_v50 = vld [vmem:[#allocation2 + $0x20] sm:$0x1]  ;;  %v15538_v23 = vrot.slane %v6632_v20, 9  ;;  %v663_v52 = vrot.slane %v659_v11, 4  ;;  %385 = vst [vmem:[#allocation2 + $0x48] sm:$0x1] %v384_v49  ;;  %v670_v44 = vor.u32 %v668_v40, %v667_v51 }
 0x1d6   : > { %16867 = vmatmul.mubr.msk.bf16.vlgmr.msra.gmra.mrb[0].mxu0 %vm1570_vm3, %v25199_v56  ;;  %v25200_v30 = vld [vmem:[#allocation20_spill] sm:$0xff]  ;;  %v6704_v42 = vrot.slane %v5897_v2, 5  ;;  %v6707_v31 = vrot.slane %v5898_v50, 5  ;;  %v672_v34 = vrot.slane %v667_v51, 4  ;;  %v439_v53 = vld [vmem:[#allocation2 + $0x50] sm:$0x1]  ;;  %v950_v59 = vsel %vm20277_vm15, %v662_v18, %v949_v45 }
 0x1d7   : > { %16899 = vmatpush3.bf16.msra.mxu0 %v20426_v15  ;;  %16870 = vmatprep.mubr.msk.bf16.mxu0 %vm1570_vm3, %v25200_v30  ;;  %v18612_v19 = vld [vmem:[#allocation8 + $0xb0] sm:$0xff]   ;;  %v674_v26 = vshrl.u32 %v16137_v24, 16  ;;  %v677_v14 = vshll.u32 %v16137_v24, 16  ;;  %v682_v57 = vshrl.u32 %v16138_v9, 16  ;;  %v486_v11 = vld [vmem:[%s19607_s11 + $0x58] sm:$0xff]  ;;  %v671_v49 = vsel %vm20270_vm14, %v663_v52, %v670_v44  ;;  %v18615_v51 = vld [vmem:[#allocation8 + $0xb8] sm:$0xff]  }
 0x1d8   : > { %16900 = vmatprep.subr.bf16.mxu0 %v18611_v43  ;;  %v953_v32 = vld [vmem:[#allocation2 + $0x38] sm:$0x1]  ;;  %v6705_v15 = vsel %vm20031_vm6, %v15538_v23, %v6704_v42  ;;  %v6706_v63 = vrot.slane %v6704_v42, 4  ;;  %v6633_v20 = vld [vmem:[#allocation2 + $0x24] sm:$0xe]  ;;  %v685_v50 = vshll.u32 %v16138_v9, 16  ;;  %v16140_v44 = vpack.c.bf16 %v486_v11, %v486_v11 }
 0x1d9   : > { %951 = vst [vmem:[#allocation2 + $0x30] sm:$0xf] %v950_v59  ;;  %v954_v40 = vsel %vm20241_vm9, %v672_v34, %v953_v32  ;;  %v15539_v2 = vrot.slane %v6633_v20, 9  ;;  %952 = vst.msk [vmem:[#allocation2 + $0x34] sm:$0xf] %vm354_vm12, %v671_v49  ;;  %v676_v24 = vrot.slane %v674_v26, 7 }
 0x1da   : > { %955 = vst [vmem:[#allocation2 + $0x38] sm:$0x1] %v954_v40  ;;  %v684_v45 = vrot.slane %v682_v57, 7  ;;  %v956_v18 = vld [vmem:[#allocation2 + $0x3c] sm:$0xf]  ;;  %v6708_v23 = vsel %vm20031_vm6, %v6706_v63, %v6707_v31  ;;  %v440_v52 = vsel %vm20257_vm11, 0, %v439_v53 }
 0x1db   : > { %16901 = vmatpush3.bf16.msra.mxu0 %v18611_v43  ;;  %v5900_v42 = vld [vmem:[#allocation2 + $0x28] sm:$0xf]  ;;  %v5901_v30 = vld [vmem:[#allocation2 + $0x2c] sm:$0x1]  ;;  %v691_v34 = vshrl.u32 %v20614_v7, 16  ;;  %v15554_v59 = vcombine.low %v6705_v15, %v6708_v23  ;;  %v679_v26 = vor.u32 %v677_v14, %v676_v24  ;;  %v680_v9 = vrot.slane %v676_v24, 4 }
 0x1dc   : > { %16902 = vmatprep.subr.bf16.mxu0 %v18612_v19  ;;  %v6711_v32 = vrot.slane %v5900_v42, 5  ;;  %v6714_v20 = vrot.slane %v5901_v30, 5  ;;  %v960_v57 = vld [vmem:[#allocation2 + $0x44] sm:$0x1]  ;;  %441 = vst [vmem:[#allocation2 + $0x50] sm:$0x1] %v440_v52  ;;  %v687_v43 = vor.u32 %v685_v50, %v684_v45 }
 0x1dd   : > { %v689_v49 = vrot.slane %v684_v45, 4  ;;  %v693_v40 = vrot.slane %v691_v34, 7  ;;  %v25201_v31 = vld [vmem:[#allocation21_spill] sm:$0xff]  ;;  %17243 = vmatmul.mubr.msk.bf16.vlgmr.msra.gmra.mrb[20].mxu1 %vm4546_vm0, %v15554_v59  ;;  %v957_v15 = vsel %vm20277_vm15, %v679_v26, %v956_v18  ;;  %v694_v30 = vshll.u32 %v20614_v7, 16  ;;  %v25202_v14 = vld [vmem:[#allocation23_spill] sm:$0xff]  ;;  %v20644_v63 = vld [vmem:[#allocation8 + $0xc0] sm:$0xff]  }
 0x1de   : > { %16871 = vmatmul.mubr.msk.bf16.gmra.mrb[4].mxu0 %vm1570_vm3, %v25201_v31  ;;  %v6712_v53 = vsel %vm20031_vm6, %v15539_v2, %v6711_v32  ;;  %v6713_v11 = vrot.slane %v6711_v32, 4  ;;  %v688_v24 = vsel %vm20270_vm14, %v680_v9, %v687_v43  ;;  %958 = vst [vmem:[#allocation2 + $0x3c] sm:$0xf] %v957_v15  ;;  %v699_v2 = vshrl.u32 %v16140_v44, 16  ;;  %v963_v50 = vld [vmem:[#allocation2 + $0x48] sm:$0xf] }
 0x1df   : > { %16874 = vmatprep.mubr.msk.bf16.mxu0 %vm1570_vm3, %v25202_v14  ;;  %16903 = vmatpush3.bf16.msra.mxu0 %v18612_v19  ;;  %v961_v45 = vsel %vm20241_vm9, %v689_v49, %v960_v57  ;;  %959 = vst.msk [vmem:[#allocation2 + $0x40] sm:$0xf] %vm354_vm12, %v688_v24  ;;  %v696_v19 = vor.u32 %v694_v30, %v693_v40  ;;  %v697_v23 = vrot.slane %v693_v40, 4  ;;  %v702_v42 = vshll.u32 %v16140_v44, 16  ;;  %v18624_v15 = vld [vmem:[#allocation9 + $0x60] sm:$0xff]  }
 0x1e0   : > { %16904 = vmatprep.subr.bf16.mxu0 %v18615_v51  ;;  %v6715_v18 = vsel %vm20031_vm6, %v6713_v11, %v6714_v20  ;;  %v6634_v7 = vld [vmem:[#allocation2 + $0x30] sm:$0xe]  ;;  %962 = vst [vmem:[#allocation2 + $0x44] sm:$0x1] %v961_v45  ;;  %v5903_v34 = vld [vmem:[#allocation2 + $0x34] sm:$0xf]  ;;  %17274 = vmatprep.subr.bf16.mxu1 %v18624_v15 }
 0x1e1   : > { %v15555_v52 = vcombine.low %v6712_v53, %v6715_v18  ;;  %v5904_v59 = vld [vmem:[#allocation2 + $0x38] sm:$0x1]  ;;  %v15540_v32 = vrot.slane %v6634_v7, 9  ;;  %v701_v26 = vrot.slane %v699_v2, 7  ;;  %v6718_v9 = vrot.slane %v5903_v34, 5  ;;  %17275 = vmatpush3.bf16.msra.mxu1 %v18624_v15  ;;  %v18625_v2 = vld [vmem:[#allocation9 + $0x68] sm:$0xff]  }
 0x1e2   : > { %v6721_v57 = vrot.slane %v5904_v59, 5  ;;  %v964_v43 = vsel %vm20277_vm15, %v696_v19, %v963_v50  ;;  %v25204_v50 = vld [vmem:[#allocation27_spill] sm:$0xff]  ;;  %17276 = vmatprep.subr.bf16.mxu1 %v18625_v2  ;;  %v18956_v14 = vld [vmem:[#allocation2 + $0x80] sm:$0x1]  ;;  %v18957_v56 = vld [vmem:[#allocation2 + $0x8c] sm:$0x1] }
 0x1e3   : > { %16905 = vmatpush3.bf16.msra.mxu0 %v18615_v51  ;;  %17246 = vmatprep.mubr.msk.bf16.mxu1 %vm4546_vm0, %v15555_v52  ;;  %v704_v20 = vor.u32 %v702_v42, %v701_v26  ;;  %v706_v49 = vrot.slane %v701_v26, 4  ;;  %965 = vst [vmem:[#allocation2 + $0x48] sm:$0xf] %v964_v43  ;;  %v967_v11 = vld [vmem:[#allocation2 + $0x50] sm:$0x1]  ;;  %v6719_v44 = vsel %vm20031_vm6, %v15540_v32, %v6718_v9  ;;  %v6720_v40 = vrot.slane %v6718_v9, 4 }
 0x1e4   : > { %16938 = vmatprep.subr.bf16.mxu0 %v20644_v63  ;;  %v25203_v51 = vld [vmem:[#allocation25_spill] sm:$0xff]  ;;  %v18946_v42 = vld [vmem:[#allocation2 + $0x58] sm:$0xf]  ;;  %v6637_v32 = vld [vmem:[#allocation2 + $0x54] sm:$0xe]  ;;  %v6763_v31 = vrot.slane %v18956_v14, 5 }
 0x1e5   : > { %v705_v53 = vsel %vm20270_vm14, %v697_v23, %v704_v20  ;;  %v968_v30 = vsel %vm20241_vm9, %v706_v49, %v967_v11  ;;  %v6722_v24 = vsel %vm20031_vm6, %v6720_v40, %v6721_v57  ;;  %v6635_v45 = vld [vmem:[#allocation2 + $0x3c] sm:$0xe]  ;;  %v6739_v52 = vrot.slane %v18946_v42, 5  ;;  %17277 = vmatpush3.bf16.msra.mxu1 %v18625_v2  ;;  %v18947_v43 = vld [vmem:[#allocation2 + $0x5c] sm:$0x1]  ;;  %v25206_v2 = vld [vmem:[#allocation31_spill] sm:$0xff] }
 0x1e6   : > { %16875 = vmatmul.mubr.msk.bf16.gmra.mrb[8].mxu0 %vm1570_vm3, %v25203_v51  ;;  %966 = vst.msk [vmem:[#allocation2 + $0x4c] sm:$0xf] %vm354_vm12, %v705_v53  ;;  %969 = vst [vmem:[#allocation2 + $0x50] sm:$0x1] %v968_v30  ;;  %v15556_v18 = vcombine.low %v6719_v44, %v6722_v24  ;;  %v5906_v7 = vld [vmem:[#allocation2 + $0x40] sm:$0xf] }
 0x1e7   : > { %16878 = vmatprep.mubr.msk.bf16.mxu0 %vm1570_vm3, %v25204_v50  ;;  %v5907_v19 = vld [vmem:[#allocation2 + $0x44] sm:$0x1]  ;;  %v15541_v23 = vrot.slane %v6635_v45, 9  ;;  %v6725_v34 = vrot.slane %v5906_v7, 5  ;;  %v6742_v20 = vrot.slane %v18947_v43, 5  ;;  %v15543_v49 = vrot.slane %v6637_v32, 9 }
 0x1e8   : > { %v6728_v59 = vrot.slane %v5907_v19, 5  ;;  %17247 = vmatmul.mubr.msk.bf16.gmra.mrb[24].mxu1 %vm4546_vm0, %v15556_v18  ;;  %v6741_v11 = vrot.slane %v6739_v52, 4  ;;  %v6638_v24 = vld [vmem:[#allocation2 + $0x60] sm:$0xe]  ;;  %v25205_v45 = vld [vmem:[#allocation30_spill] sm:$0xff] }
 0x1e9   : > { %v6726_v26 = vsel %vm20031_vm6, %v15541_v23, %v6725_v34  ;;  %v6727_v9 = vrot.slane %v6725_v34, 4  ;;  %v18948_v19 = vld [vmem:[#allocation2 + $0x64] sm:$0xf]  ;;  %v6740_v42 = vsel %vm20031_vm6, %v15543_v49, %v6739_v52  ;;  %v18949_v32 = vld [vmem:[#allocation2 + $0x70] sm:$0xf]  ;;  %v15544_v43 = vrot.slane %v6638_v24, 9 }
 0x1ea   : > { %v6636_v57 = vld [vmem:[#allocation2 + $0x48] sm:$0xe]  ;;  %v6746_v23 = vrot.slane %v18948_v19, 5  ;;  %v6743_v34 = vsel %vm20031_vm6, %v6741_v11, %v6742_v20  ;;  %v18951_v11 = vld [vmem:[#allocation2 + $0x74] sm:$0x1] }
 0x1eb   : > { %v6729_v15 = vsel %vm20031_vm6, %v6727_v9, %v6728_v59  ;;  %v15542_v44 = vrot.slane %v6636_v57, 9  ;;  %v6639_v59 = vld [vmem:[#allocation2 + $0x6c] sm:$0xe]  ;;  %v6756_v29 = vrot.slane %v18951_v11, 5  ;;  %v6640_v11 = vld [vmem:[#allocation2 + $0x78] sm:$0xe] }
 0x1ec   : > { %v15557_v40 = vcombine.low %v6726_v26, %v6729_v15  ;;  %v6753_v26 = vrot.slane %v18949_v32, 5  ;;  %v15545_v19 = vrot.slane %v6639_v59, 9  ;;  %v2781_v32 = vshrl.u32 %v20689_v54, 16 }
 0x1ed   : > { %v5909_v53 = vld [vmem:[#allocation2 + $0x4c] sm:$0xf]  ;;  %v5910_v30 = vld [vmem:[#allocation2 + $0x50] sm:$0x1]  ;;  %v15546_v51 = vrot.slane %v6640_v11, 9 }
 0x1ee   : > { %16879 = vmatmul.mubr.msk.bf16.gmra.mrb[12].mxu0 %vm1570_vm3, %v25205_v45  ;;  %v6732_v18 = vrot.slane %v5909_v53, 5  ;;  %v6735_v7 = vrot.slane %v5910_v30, 5  ;;  %17250 = vmatprep.mubr.msk.bf16.mxu1 %vm4546_vm0, %v15557_v40  ;;  %v15559_v40 = vcombine.low %v6740_v42, %v6743_v34  ;;  %v6748_v53 = vrot.slane %v6746_v23, 4  ;;  %v18950_v30 = vld [vmem:[#allocation2 + $0x68] sm:$0x1]  ;;  %v25207_v42 = vld [vmem:[#allocation33_spill] sm:$0xff] }
 0x1ef   : > { %16882 = vmatprep.mubr.msk.bf16.mxu0 %vm1570_vm3, %v25206_v2  ;;  %v6749_v52 = vrot.slane %v18950_v30, 5  ;;  %v6755_v20 = vrot.slane %v6753_v26, 4  ;;  %v6747_v34 = vsel %vm20031_vm6, %v15544_v43, %v6746_v23  ;;  %v6754_v30 = vsel %vm20031_vm6, %v15545_v19, %v6753_v26  ;;  %v6641_v23 = vld [vmem:[#allocation2 + $0x84] sm:$0xe] }
 0x1f0   : > { %v6733_v9 = vsel %vm20031_vm6, %v15542_v44, %v6732_v18  ;;  %v6734_v57 = vrot.slane %v6732_v18, 4  ;;  %v2784_v44 = vshll.u32 %v20689_v54, 16  ;;  %v20694_v18 = vld [vmem:[%s19615_s9 + $0xc4] sm:$0xf]  ;;  %v2783_v2 = vrot.slane %v2781_v32, 4 }
 0x1f1   : > { %v2794_v24 = vshrl.u32 %v20694_v18, 16  ;;  %v6750_v59 = vsel %vm20031_vm6, %v6748_v53, %v6749_v52  ;;  %v20713_v52 = vld [vmem:[%s19615_s9 + $0xc8] sm:$0xf]  ;;  %v15547_v26 = vrot.slane %v6641_v23, 9 }
 0x1f2   : > { %v6736_v15 = vsel %vm20031_vm6, %v6734_v57, %v6735_v7  ;;  %v2790_v7 = vshll.u32 %v20694_v18, 16  ;;  %v2786_v43 = vrot.slane %v2784_v44, 5  ;;  %v15560_v53 = vcombine.low %v6747_v34, %v6750_v59  ;;  %v25209_v44 = vld [vmem:[#allocation37_spill] sm:$0xff] }
 0x1f3   : > { %v15558_v49 = vcombine.low %v6733_v9, %v6736_v15  ;;  %v18954_v9 = vld [vmem:[#allocation2 + $0x7c] sm:$0xf]  ;;  %v2796_v50 = vrot.slane %v2794_v24, 4  ;;  %v2800_v32 = vshll.u32 %v20713_v52, 16  ;;  %v18959_v59 = vld [vmem:[#allocation2 + $0xa0] sm:$0xf] }
 0x1f4   : > { %v6760_v57 = vrot.slane %v18954_v9, 5  ;;  %v25208_v15 = vld [vmem:[#allocation36_spill] sm:$0xff]  ;;  %v2792_v45 = vrot.slane %v2790_v7, 5  ;;  %v18958_v7 = vld [vmem:[#allocation2 + $0x94] sm:$0xf] }
 0x1f5   : > { %17251 = vmatmul.mubr.msk.bf16.gmra.mrb[28].mxu1 %vm4546_vm0, %v15558_v49  ;;  %v6757_v49 = vsel %vm20031_vm6, %v6755_v20, %v6756_v29  ;;  %v6770_v29 = vrot.slane %v18957_v56, 5  ;;  %v2787_v20 = vor.u32 %v2786_v43, %v2783_v2  ;;  %v6774_v34 = vrot.slane %v18958_v7, 5  ;;  %v6642_v2 = vld [vmem:[#allocation2 + $0x90] sm:$0xe]  ;;  %v18960_v43 = vld [vmem:[#allocation2 + $0x98] sm:$0x1] }
 0x1f6   : > { %16883 = vmatmul.mubr.msk.bf16.gmra.mrb[16].mxu0 %vm1570_vm3, %v25207_v42  ;;  %17254 = vmatprep.mubr.msk.bf16.mxu1 %vm4546_vm0, %v15559_v40  ;;  %v18955_v40 = vld [vmem:[#allocation2 + $0x88] sm:$0xf]  ;;  %v15561_v9 = vcombine.low %v6754_v30, %v6757_v49  ;;  %v2797_v33 = vor.u32 %v2796_v50, %v2792_v45  ;;  %v6761_v24 = vsel %vm20031_vm6, %v15546_v51, %v6760_v57  ;;  %v6781_v30 = vrot.slane %v18959_v59, 5  ;;  %v6643_v49 = vld [vmem:[#allocation2 + $0x9c] sm:$0xe] }
 0x1f7   : > { %16886 = vmatprep.mubr.msk.bf16.mxu0 %vm1570_vm3, %v25208_v15  ;;  %v6767_v42 = vrot.slane %v18955_v40, 5  ;;  %v6762_v15 = vrot.slane %v6760_v57, 4  ;;  %v2788_v11 = vrot.slane %v2787_v20, 4  ;;  %v2802_v57 = vrot.slane %v2800_v32, 5  ;;  %v25211_v32 = vld [vmem:[#allocation46_spill] sm:$0xff] }
 0x1f8   : > { %v2798_v51 = vrot.slane %v2797_v33, 4  ;;  %v6776_v23 = vrot.slane %v6774_v34, 4  ;;  %v6783_v7 = vrot.slane %v6781_v30, 4 }
 0x1f9   : > { %v6769_v19 = vrot.slane %v6767_v42, 4  ;;  %v6764_v14 = vsel %vm20031_vm6, %v6762_v15, %v6763_v31  ;;  %v6768_v56 = vsel %vm20031_vm6, %v15547_v26, %v6767_v42  ;;  %v15548_v15 = vrot.slane %v6642_v2, 9 }
 0x1fa   : > { %v15562_v40 = vcombine.low %v6761_v24, %v6764_v14  ;;  %v2793_v26 = vsel %vm19659_vm2, %v2788_v11, %v2792_v45  ;;  %v2803_v33 = vsel %vm19659_vm2, %v2798_v51, %v2802_v57  ;;  %v6644_v14 = vld [vmem:[#allocation2 + $0xa8] sm:$0xe] }
 0x1fb   : > { %v6771_v50 = vsel %vm20031_vm6, %v6769_v19, %v6770_v29  ;;  %v25210_v19 = vld [vmem:[#allocation39_spill] sm:$0xff]  ;;  %v6775_v29 = vsel %vm20031_vm6, %v15548_v15, %v6774_v34  ;;  %v20750_v2 = vcombine.low %v2793_v26, %v2803_v33  ;;  %v18620_v26 = vld [vmem:[#allocation8 + $0xd0] sm:$0xff]  }
 0x1fc   : > { %v15563_v31 = vcombine.low %v6768_v56, %v6771_v50  ;;  %v6795_v56 = vrot.slane %v20517_v27, 5  ;;  %v6645_v50 = vld [vmem:[#allocation2 + $0xb4] sm:$0xe] }
 0x1fd   : > { %17255 = vmatmul.mubr.msk.bf16.gmra.mrb[0].mxu1 %vm4546_vm0, %v15560_v53  ;;  %v6777_v53 = vrot.slane %v18960_v43, 5  ;;  %25212 = vst [vmem:[#allocation18_spill] sm:$0xff] %v20750_v2  ;;  %v15551_v51 = vrot.slane %v6645_v50, 9  ;;  %v18648_v50 = vld [vmem:[#allocation9 + $0x78] sm:$0xff]  }
 0x1fe   : > { %16887 = vmatmul.mubr.msk.bf16.gmra.mrb[20].mxu0 %vm1570_vm3, %v25209_v44  ;;  %17258 = vmatprep.mubr.msk.bf16.mxu1 %vm4546_vm0, %v15561_v9  ;;  %v15549_v9 = vrot.slane %v6643_v49, 9  ;;  %v15550_v49 = vrot.slane %v6644_v14, 9  ;;  %v6797_v57 = vrot.slane %v6795_v56, 4  ;;  %v18628_v14 = vld [vmem:[#allocation2 + $0x30] sm:$0xff]  }
 0x1ff   : > { %16890 = vmatprep.mubr.msk.bf16.mxu0 %vm1570_vm3, %v19960_v48  ;;  %v18961_v48 = vld [vmem:[#allocation2 + $0xa4] sm:$0x1]  ;;  %v6778_v20 = vsel %vm20031_vm6, %v6776_v23, %v6777_v53 }
 0x200   : > { %v6784_v42 = vrot.slane %v18961_v48, 5  ;;  %v6788_v48 = vrot.slane %v20490_v1, 5  ;;  %v6782_v45 = vsel %vm20031_vm6, %v15549_v9, %v6781_v30  ;;  %v15564_v34 = vcombine.low %v6775_v29, %v6778_v20  ;;  %v18626_v29 = vld [vmem:[#allocation2 + $0x18] sm:$0xff]  }
 0x201   : > { %v6791_v1 = vrot.slane %v20492_v16, 5  ;;  %v6802_v16 = vrot.slane %v20539_v36, 5 }
 0x202   : > { %v6785_v24 = vsel %vm20031_vm6, %v6783_v7, %v6784_v42  ;;  %v6790_v11 = vrot.slane %v6788_v48, 4  ;;  %v6789_v27 = vsel %vm20031_vm6, %v15550_v49, %v6788_v48  ;;  %v6805_v7 = vrot.slane %v20541_v8, 5  ;;  %v25213_v49 = vld [vmem:[#allocation26_spill] sm:$0xff] }
 0x203   : > { %v15565_v59 = vcombine.low %v6782_v45, %v6785_v24  ;;  %v6804_v9 = vrot.slane %v6802_v16, 4  ;;  %v19315_v42 = vmov 0   ;;  %v18621_v45 = vld [vmem:[#allocation8 + $0xd8] sm:$0xff]  }
 0x204   : > { %v6792_v30 = vsel %vm20031_vm6, %v6790_v11, %v6791_v1  ;;  %359 = vst.msk [vmem:[#allocation2 + $0xcc] sm:$0xf] %vm354_vm12, %v19315_v42  ;;  %360 = vst.msk [vmem:[#allocation2 + $0xd0] sm:$0xf] %vm354_vm12, %v19315_v42  ;;  %v18627_v24 = vld [vmem:[#allocation2 + $0x24] sm:$0xff]   ;;  %v25214_v11 = vld [vmem:[#allocation28_spill] sm:$0xff] }
 0x205   : > { %17259 = vmatmul.mubr.msk.bf16.gmra.mrb[4].mxu1 %vm4546_vm0, %v15562_v40  ;;  %v6798_v40 = vrot.slane %v20520_v38, 5  ;;  %v6796_v38 = vsel %vm20031_vm6, %v15551_v51, %v6795_v56  ;;  %v15566_v23 = vcombine.low %v6789_v27, %v6792_v30  ;;  %355 = vst.msk [vmem:[#allocation2] sm:$0xf] %vm354_vm12, %v19315_v42  ;;  %356 = vst.msk [vmem:[#allocation2 + $0x4] sm:$0xf] %vm354_vm12, %v19315_v42  ;;  %v18647_v56 = vld [vmem:[#allocation9 + $0x70] sm:$0xff]  }
 0x206   : > { %16891 = vmatmul.mubr.msk.bf16.gmra.mrb[24].mxu0 %vm1570_vm3, %v25210_v19  ;;  %17262 = vmatprep.mubr.msk.bf16.mxu1 %vm4546_vm0, %v15563_v31  ;;  %v6646_v31 = vld [vmem:[#allocation2 + $0xc0] sm:$0xe]  ;;  %357 = vst.msk [vmem:[#allocation2 + $0x8] sm:$0xf] %vm354_vm12, %v19315_v42  ;;  %361 = vst.msk [vmem:[#allocation2 + $0xd4] sm:$0xf] %vm354_vm12, %v19315_v42  ;;  %v6806_v8 = vsel %vm20031_vm6, %v6804_v9, %v6805_v7 }
 0x207   : > { %16894 = vmatprep.mubr.msk.bf16.mxu0 %vm1570_vm3, %v25211_v32  ;;  %v6799_v15 = vsel %vm20031_vm6, %v6797_v57, %v6798_v40  ;;  %v15552_v43 = vrot.slane %v6646_v31, 9  ;;  %17310 = vmatprep.subr.bf16.mxu1 %v18647_v56  ;;  %v18632_v1 = vld [vmem:[#allocation2 + $0x54] sm:$0xff]   ;;  %v18633_v51 = vld [vmem:[#allocation2 + $0x60] sm:$0xff]   ;;  %v18635_v40 = vld [vmem:[#allocation2 + $0x6c] sm:$0xff]   ;;  %v3039_v30 = vrot.slane %v20694_v18, 5  ;;  %v3042_v9 = vrot.slane %v20713_v52, 5 }
 0x208   : > { %v15567_v53 = vcombine.low %v6796_v38, %v6799_v15  ;;  %v25215_v57 = vld [vmem:[#allocation29_spill] sm:$0xff]  ;;  %v18636_v27 = vld [vmem:[#allocation2 + $0x78] sm:$0xff]   ;;  %v18639_v7 = vld [vmem:[#allocation2 + $0x90] sm:$0xff]  }
 0x209   : > { %v6803_v36 = vsel %vm20031_vm6, %v15552_v43, %v6802_v16  ;;  %v7484_v31 = vld [vmem:[#allocation2 + $0x18] sm:$0xf]  ;;  %v18638_v16 = vld [vmem:[#allocation2 + $0x84] sm:$0xff]   ;;  %v20823_v38 = vld [vmem:[#allocation2 + $0x1c] sm:$0xf]  ;;  %v15264_v43 = vrot.slane %v20689_v54, 9 }
 0x20a   : > { %v15568_v33 = vcombine.low %v6803_v36, %v6806_v8  ;;  %v7533_v15 = vshrl.u32 %v7484_v31, 16  ;;  %v7487_v42 = vld [vmem:[#allocation2 + $0x24] sm:$0xf]  ;;  %v7542_v18 = vshll.u32 %v20823_v38, 16  ;;  %v7546_v36 = vshrl.u32 %v20823_v38, 16 }
 0x20b   : > { %v416_v20 = vld [vmem:[#allocation2 + $0xcc] sm:$0x1]  ;;  %v3040_v54 = vsel %vm20031_vm6, %v15264_v43, %v3039_v30 }
 0x20c   : > { %v417_v48 = vsel %vm20241_vm9, 0, %v416_v20  ;;  %v7535_v8 = vrot.slane %v7533_v15, 4 }
 0x20d   : > { %17263 = vmatmul.mubr.msk.bf16.gmra.mrb[8].mxu1 %vm4546_vm0, %v15564_v34  ;;  %418 = vst [vmem:[#allocation2 + $0xcc] sm:$0x1] %v417_v48  ;;  %v18630_v34 = vld [vmem:[#allocation2 + $0x3c] sm:$0xff]  }
 0x20e   : > { %16895 = vmatmul.mubr.msk.bf16.gmra.mrb[28].mxu0 %vm1570_vm3, %v20750_v2  ;;  %17266 = vmatprep.mubr.msk.bf16.mxu1 %vm4546_vm0, %v15565_v59  ;;  %v18631_v59 = vld [vmem:[#allocation2 + $0x48] sm:$0xff]  }
 0x20f   : > { %16906 = vmatprep.mubr.msk.bf16.mxu0 %vm1570_vm3, %v20044_v47  ;;  %v18617_v47 = vld [vmem:[#allocation8 + $0xc8] sm:$0xff]  }
 0x215   : > { %17267 = vmatmul.mubr.msk.bf16.gmra.mrb[12].mxu1 %vm4546_vm0, %v15566_v23  ;;  %v7536_v23 = vshll.u32 %v7484_v31, 16  ;;  %v20851_v31 = vld [vmem:[#allocation2 + $0x40] sm:$0xf] }
 0x216   : > { %16907 = vmatmul.mubr.msk.bf16.vlgmr.msra.gmra.mrb[0].mxu0 %vm1570_vm3, %v20223_v0  ;;  %17270 = vmatprep.mubr.msk.bf16.mxu1 %vm4546_vm0, %v15567_v53  ;;  %v3041_v53 = vrot.slane %v3039_v30, 4  ;;  %v7493_v30 = vld [vmem:[#allocation2 + $0x3c] sm:$0xf] }
 0x217   : > { %16939 = vmatpush3.bf16.msra.mxu0 %v20644_v63  ;;  %16910 = vmatprep.mubr.msk.bf16.mxu0 %vm1570_vm3, %v20074_v21  ;;  %v20795_v63 = vld [vmem:[#allocation8 + $0xe0] sm:$0xff]  }
 0x218   : > { %16940 = vmatprep.subr.bf16.mxu0 %v18617_v47  ;;  %v3043_v52 = vsel %vm20031_vm6, %v3041_v53, %v3042_v9  ;;  %v20981_v21 = vld [vmem:[#allocation2 + $0x88] sm:$0xf] }
 0x21b   : > { %16941 = vmatpush3.bf16.msra.mxu0 %v18617_v47  ;;  %v20827_v47 = vld [vmem:[#allocation2 + $0x28] sm:$0xf] }
 0x21c   : > { %16942 = vmatprep.subr.bf16.mxu0 %v18620_v26  ;;  %v7566_v20 = vshll.u32 %v20827_v47, 16  ;;  %v7570_v48 = vshrl.u32 %v20827_v47, 16 }
 0x21d   : > { %17271 = vmatmul.mubr.msk.bf16.gmra.mrb[16].mxu1 %vm4546_vm0, %v15568_v33  ;;  %v7557_v33 = vshrl.u32 %v7487_v42, 16 }
 0x21e   : > { %16911 = vmatmul.mubr.msk.bf16.gmra.mrb[4].mxu0 %vm1570_vm3, %v20082_v39  ;;  %17278 = vmatprep.mubr.msk.bf16.mxu1 %vm4546_vm0, %v18626_v29  ;;  %v7560_v29 = vshll.u32 %v7487_v42, 16  ;;  %v20855_v15 = vrot.slane %v7566_v20, 5  ;;  %v7605_v42 = vshrl.u32 %v7493_v30, 16 }
 0x21f   : > { %16914 = vmatprep.mubr.msk.bf16.mxu0 %vm1570_vm3, %v20095_v61  ;;  %16943 = vmatpush3.bf16.msra.mxu0 %v18620_v26  ;;  %v7538_v26 = vrot.slane %v7536_v23, 5  ;;  %v7572_v23 = vrot.slane %v7570_v48, 4  ;;  %v7511_v61 = vld [vmem:[#allocation2 + $0x84] sm:$0xf] }
 0x220   : > { %16944 = vmatprep.subr.bf16.mxu0 %v18621_v45  ;;  %v7752_v0 = vshll.u32 %v7511_v61, 16 }
 0x221   : > { %v7573_v20 = vor.u32 %v7572_v23, %v20855_v15 }
 0x223   : > { %16945 = vmatpush3.bf16.msra.mxu0 %v18621_v45  ;;  %v18641_v45 = vld [vmem:[#allocation2 + $0x9c] sm:$0xff]  }
 0x224   : > { %16978 = vmatprep.subr.bf16.mxu0 %v20795_v63 }
 0x225   : > { %17279 = vmatmul.mubr.msk.bf16.vlgmr.msra.gmra.mrb[20].mxu1 %vm4546_vm0, %v18627_v24  ;;  %v7490_v24 = vld [vmem:[#allocation2 + $0x30] sm:$0xf] }
 0x226   : > { %16915 = vmatmul.mubr.msk.bf16.gmra.mrb[8].mxu0 %vm1570_vm3, %v20101_v13  ;;  %17282 = vmatprep.mubr.msk.bf16.mxu1 %vm4546_vm0, %v18628_v14  ;;  %v18642_v14 = vld [vmem:[#allocation2 + $0xa8] sm:$0xff]   ;;  %v7581_v43 = vshrl.u32 %v7490_v24, 16  ;;  %v7584_v53 = vshll.u32 %v7490_v24, 16  ;;  %v20952_v13 = vld [vmem:[#allocation2 + $0x7c] sm:$0xf] }
 0x227   : > { %16918 = vmatprep.mubr.msk.bf16.mxu0 %vm1570_vm3, %v20115_v55  ;;  %17311 = vmatpush3.bf16.msra.mxu1 %v18647_v56  ;;  %v20843_v56 = vld [vmem:[#allocation2 + $0x20] sm:$0x1]  ;;  %v20911_v55 = vld [vmem:[#allocation2 + $0x50] sm:$0x1] }
 0x228   : > { %17312 = vmatprep.subr.bf16.mxu1 %v18648_v50  ;;  %v7583_v48 = vrot.slane %v7581_v43, 4  ;;  %v7586_v24 = vrot.slane %v7584_v53, 5 }
 0x22b   : > { %17313 = vmatpush3.bf16.msra.mxu1 %v18648_v50  ;;  %v20845_v50 = vrot.slane %v7542_v18, 5  ;;  %v7608_v18 = vshll.u32 %v7493_v30, 16  ;;  %v7496_v30 = vld [vmem:[#allocation2 + $0x48] sm:$0xf] }
 0x22d   : > { %17283 = vmatmul.mubr.msk.bf16.gmra.mrb[24].mxu1 %vm4546_vm0, %v18630_v34  ;;  %v7548_v34 = vrot.slane %v7546_v36, 4  ;;  %v7614_v36 = vshll.u32 %v20851_v31, 16 }
 0x22e   : > { %16919 = vmatmul.mubr.msk.bf16.gmra.mrb[12].mxu0 %vm1570_vm3, %v25213_v49  ;;  %17286 = vmatprep.mubr.msk.bf16.mxu1 %vm4546_vm0, %v18631_v59  ;;  %v20847_v59 = vld [vmem:[#allocation2 + $0x34] sm:$0xf] }
 0x22f   : > { %16922 = vmatprep.mubr.msk.bf16.mxu0 %vm1570_vm3, %v25214_v11  ;;  %v7590_v9 = vshll.u32 %v20847_v59, 16  ;;  %v7632_v11 = vshll.u32 %v7496_v30, 16 }
 0x235   : > { %17287 = vmatmul.mubr.msk.bf16.gmra.mrb[28].mxu1 %vm4546_vm0, %v18632_v1  ;;  %v20849_v1 = vcombine.low %v3040_v54, %v3043_v52 }
 0x236   : > { %16923 = vmatmul.mubr.msk.bf16.gmra.mrb[16].mxu0 %vm1570_vm3, %v25215_v57  ;;  %17290 = vmatprep.mubr.msk.bf16.mxu1 %vm4546_vm0, %v18633_v51  ;;  %v7539_v51 = vor.u32 %v7538_v26, %v7535_v8  ;;  %v7618_v8 = vshrl.u32 %v20851_v31, 16  ;;  %v7549_v26 = vor.u32 %v7548_v34, %v20845_v50  ;;  %v20873_v34 = vld [vmem:[#allocation2 + $0x38] sm:$0x1]  ;;  %v7587_v57 = vor.u32 %v7586_v24, %v7583_v48 }
 0x237   : > { %16926 = vmatprep.mubr.msk.bf16.mxu0 %vm1570_vm3, %v20157_v62  ;;  %25216 = vst [vmem:[#allocation37_spill] sm:$0xff] %v20849_v1  ;;  %v7574_v62 = vrot.slane %v7573_v20, 4 }
 0x238   : > { %v20868_v52 = vrot.slane %v7539_v51, 4  ;;  %v20879_v51 = vld [vmem:[#allocation2 + $0x4c] sm:$0xf]  ;;  %v7550_v23 = vrot.slane %v7549_v26, 4  ;;  %v18623_v26 = vld [vmem:[#allocation8 + $0xe8] sm:$0xff]  }
 0x23d   : > { %17291 = vmatmul.mubr.msk.bf16.gmra.mrb[0].mxu1 %vm4546_vm0, %v18635_v40  ;;  %v7559_v40 = vrot.slane %v7557_v33, 4  ;;  %v7552_v33 = vshll.u32 %v20843_v56, 16 }
 0x23e   : > { %16927 = vmatmul.mubr.msk.bf16.gmra.mrb[20].mxu0 %vm1570_vm3, %v20164_v25  ;;  %17294 = vmatprep.mubr.msk.bf16.mxu1 %vm4546_vm0, %v18636_v27  ;;  %v7562_v27 = vrot.slane %v7560_v29, 5  ;;  %v20881_v25 = vld [vmem:[#allocation2 + $0x44] sm:$0x1] }
 0x23f   : > { %16930 = vmatprep.mubr.msk.bf16.mxu0 %vm1570_vm3, %v20176_v58  ;;  %v7554_v43 = vrot.slane %v7552_v33, 5  ;;  %v7545_v33 = vsel %vm19659_vm2, %v20868_v52, %v20845_v50  ;;  %v7624_v20 = vshll.u32 %v20881_v25, 16 }
 0x240   : > { %v7563_v29 = vor.u32 %v7562_v27, %v7559_v40  ;;  %v20875_v40 = vrot.slane %v7590_v9, 5  ;;  %v7629_v9 = vshrl.u32 %v7496_v30, 16 }
 0x241   : > { %v7555_v48 = vsel %vm19659_vm2, %v7550_v23, %v7554_v43 }
 0x242   : > { %v7564_v53 = vrot.slane %v7563_v29, 4  ;;  %v7631_v52 = vrot.slane %v7629_v9, 4 }
 0x244   : > { %v7569_v24 = vsel %vm19659_vm2, %v7564_v53, %v20855_v15 }
 0x245   : > { %17295 = vmatmul.mubr.msk.bf16.gmra.mrb[4].mxu1 %vm4546_vm0, %v18638_v16  ;;  %v20853_v16 = vld [vmem:[#allocation2 + $0x2c] sm:$0x1] }
 0x246   : > { %16931 = vmatmul.mubr.msk.bf16.gmra.mrb[24].mxu0 %vm1570_vm3, %v20182_v22  ;;  %17298 = vmatprep.mubr.msk.bf16.mxu1 %vm4546_vm0, %v18639_v7  ;;  %v7594_v7 = vshrl.u32 %v20847_v59, 16  ;;  %v7576_v54 = vshll.u32 %v20853_v16, 16  ;;  %v20877_v22 = vrot.slane %v7614_v36, 5  ;;  %v7638_v36 = vshll.u32 %v20879_v51, 16 }
 0x247   : > { %16934 = vmatprep.mubr.msk.bf16.mxu0 %vm1570_vm3, %v20188_v10  ;;  %v7607_v10 = vrot.slane %v7605_v42, 4 }
 0x248   : > { %v7596_v27 = vrot.slane %v7594_v7, 4  ;;  %v7578_v58 = vrot.slane %v7576_v54, 5  ;;  %v7499_v7 = vld [vmem:[#allocation2 + $0x54] sm:$0xf]  ;;  %v20909_v23 = vrot.slane %v7638_v36, 5 }
 0x249   : > { %v7653_v30 = vshrl.u32 %v7499_v7, 16  ;;  %v7656_v49 = vshll.u32 %v7499_v7, 16  ;;  %v7626_v7 = vrot.slane %v7624_v20, 5  ;;  %v7648_v20 = vshll.u32 %v20911_v55, 16 }
 0x24a   : > { %v7597_v42 = vor.u32 %v7596_v27, %v20875_v40  ;;  %v20899_v27 = vld [vmem:[#allocation2 + $0x58] sm:$0xf]  ;;  %v7579_v50 = vsel %vm19659_vm2, %v7574_v62, %v7578_v58  ;;  %v18646_v58 = vld [vmem:[#allocation2 + $0xcc] sm:$0xff]  }
 0x24b   : > { %v7662_v62 = vshll.u32 %v20899_v27, 16 }
 0x24c   : > { %v7598_v15 = vrot.slane %v7597_v42, 4  ;;  %v20915_v42 = vld [vmem:[#allocation2 + $0x64] sm:$0xf] }
 0x24d   : > { %17299 = vmatmul.mubr.msk.bf16.gmra.mrb[8].mxu1 %vm4546_vm0, %v18641_v45  ;;  %v18643_v45 = vld [vmem:[#allocation2 + $0xb4] sm:$0xff]  }
 0x24e   : > { %16935 = vmatmul.mubr.msk.bf16.gmra.mrb[28].mxu0 %vm1570_vm3, %v20849_v1  ;;  %17302 = vmatprep.mubr.msk.bf16.mxu1 %vm4546_vm0, %v18642_v14  ;;  %v7610_v1 = vrot.slane %v7608_v18, 5  ;;  %v7620_v14 = vrot.slane %v7618_v8, 4  ;;  %v7600_v18 = vshll.u32 %v20873_v34, 16  ;;  %v7642_v8 = vshrl.u32 %v20879_v51, 16 }
 0x24f   : > { %16946 = vmatprep.mubr.msk.bf16.mxu0 %vm1570_vm3, %v20054_v41  ;;  %v18644_v41 = vld [vmem:[#allocation2 + $0xc0] sm:$0xff]  }
 0x250   : > { %v7611_v29 = vor.u32 %v7610_v1, %v7607_v10  ;;  %v7621_v54 = vor.u32 %v7620_v14, %v20877_v22  ;;  %v18629_v10 = vld [vmem:[#allocation8 + $0xf0] sm:$0xff]   ;;  %v7588_v1 = vrot.slane %v7587_v57, 4  ;;  %v7602_v14 = vrot.slane %v7600_v18, 5 }
 0x251   : > { %v7644_v43 = vrot.slane %v7642_v8, 4  ;;  %v7666_v57 = vshrl.u32 %v20899_v27, 16  ;;  %v15622_v8 = vcombine.low %v7569_v24, %v7579_v50  ;;  %v20931_v24 = vrot.slane %v7662_v62, 5 }
 0x252   : > { %v7612_v53 = vrot.slane %v7611_v29, 4  ;;  %v7593_v29 = vsel %vm19659_vm2, %v7588_v1, %v20875_v40  ;;  %v7505_v40 = vld [vmem:[#allocation2 + $0x6c] sm:$0xf]  ;;  %v7650_v62 = vrot.slane %v7648_v20, 5 }
 0x253   : > { %v7668_v1 = vrot.slane %v7666_v57, 4 }
 0x255   : > { %17303 = vmatmul.mubr.msk.bf16.gmra.mrb[12].mxu1 %vm4546_vm0, %v18643_v45  ;;  %v7634_v45 = vrot.slane %v7632_v11, 5  ;;  %v7655_v11 = vrot.slane %v7653_v30, 4  ;;  %v20922_v30 = vld [vmem:[#allocation2 + $0x5c] sm:$0x1] }
 0x256   : > { %16947 = vmatmul.mubr.msk.bf16.vlgmr.msra.gmra.mrb[0].mxu0 %vm1570_vm3, %v20060_v17  ;;  %17306 = vmatprep.mubr.msk.bf16.mxu1 %vm4546_vm0, %v18644_v41  ;;  %v7502_v17 = vld [vmem:[#allocation2 + $0x60] sm:$0xf]  ;;  %v7622_v41 = vrot.slane %v7621_v54, 4  ;;  %v7645_v54 = vor.u32 %v7644_v43, %v20909_v23  ;;  %v20936_v43 = vld [vmem:[#allocation2 + $0x70] sm:$0xf] }
 0x257   : > { %16979 = vmatpush3.bf16.msra.mxu0 %v20795_v63  ;;  %16950 = vmatprep.mubr.msk.bf16.mxu0 %vm1570_vm3, %v19977_v3  ;;  %v7658_v63 = vrot.slane %v7656_v49, 5  ;;  %v15621_v3 = vcombine.low %v7545_v33, %v7555_v48  ;;  %v7635_v9 = vor.u32 %v7634_v45, %v7631_v52  ;;  %v7677_v18 = vshrl.u32 %v7502_v17, 16  ;;  %v18634_v49 = vld [vmem:[#allocation8 + $0xf8] sm:$0xff]  }
 0x258   : > { %16980 = vmatprep.subr.bf16.mxu0 %v18623_v26  ;;  %v7680_v36 = vshll.u32 %v7502_v17, 16  ;;  %v7603_v33 = vsel %vm19659_vm2, %v7598_v15, %v7602_v14  ;;  %v7627_v48 = vsel %vm19659_vm2, %v7622_v41, %v7626_v7  ;;  %v7686_v52 = vshll.u32 %v20915_v42, 16  ;;  %v25217_v41 = vld [vmem:[#allocation40_spill] sm:$0xff] }
 0x259   : > { %v7659_v50 = vor.u32 %v7658_v63, %v7655_v11  ;;  %v7690_v45 = vshrl.u32 %v20915_v42, 16  ;;  %v20943_v15 = vrot.slane %v7635_v9, 4  ;;  %v7672_v14 = vshll.u32 %v20922_v30, 16  ;;  %v7508_v63 = vld [vmem:[#allocation2 + $0x78] sm:$0xf] }
 0x25a   : > { %v7679_v17 = vrot.slane %v7677_v18, 4  ;;  %v7646_v7 = vrot.slane %v7645_v54, 4  ;;  %v7704_v11 = vshll.u32 %v7505_v40, 16  ;;  %v7714_v9 = vshrl.u32 %v20936_v43, 16  ;;  %v472_v18 = vld [vmem:[#allocation2 + $0xd4] sm:$0x1] }
 0x25b   : > { %16981 = vmatpush3.bf16.msra.mxu0 %v18623_v26  ;;  %v7617_v26 = vsel %vm19659_vm2, %v7612_v53, %v20877_v22  ;;  %v20940_v22 = vld [vmem:[#allocation8 + $0x100] sm:$0xff]   ;;  %v7682_v53 = vrot.slane %v7680_v36, 5  ;;  %v20954_v36 = vrot.slane %v7659_v50, 4  ;;  %v20957_v54 = vrot.slane %v7686_v52, 5  ;;  %v20967_v50 = vld [vmem:[#allocation2 + $0x74] sm:$0x1] }
 0x25c   : > { %16982 = vmatprep.subr.bf16.mxu0 %v18629_v10  ;;  %v20948_v57 = vcombine.low %v7617_v26, %v7627_v48  ;;  %v7692_v20 = vrot.slane %v7690_v45, 4  ;;  %v7728_v26 = vshll.u32 %v7508_v63, 16  ;;  %v7641_v48 = vsel %vm19659_vm2, %v20943_v15, %v20909_v23 }
 0x25d   : > { %17307 = vmatmul.mubr.msk.bf16.gmra.mrb[16].mxu1 %vm4546_vm0, %v18646_v58  ;;  %v7701_v58 = vshrl.u32 %v7505_v40, 16  ;;  %v20959_v40 = vrot.slane %v7672_v14, 5  ;;  %v7738_v52 = vshrl.u32 %v20952_v13, 16  ;;  %v473_v45 = vsel %vm20257_vm11, 0, %v472_v18  ;;  %v18652_v14 = vld [vmem:[#allocation9 + $0x80] sm:$0xff]  }
 0x25e   : > { %16951 = vmatmul.mubr.msk.bf16.gmra.mrb[4].mxu0 %vm1570_vm3, %v19981_v4  ;;  %17314 = vmatprep.mubr.msk.bf16.mxu1 %vm4546_vm0, %v15621_v3  ;;  %v15623_v4 = vcombine.low %v7593_v29, %v7603_v33  ;;  %v7710_v3 = vshll.u32 %v20936_v43, 16  ;;  %v7683_v29 = vor.u32 %v7682_v53, %v7679_v17  ;;  %v7725_v33 = vshrl.u32 %v7508_v63, 16  ;;  %474 = vst [vmem:[#allocation2 + $0xd4] sm:$0x1] %v473_v45  ;;  %v18653_v45 = vld [vmem:[#allocation9 + $0x88] sm:$0xff]  }
 0x25f   : > { %16954 = vmatprep.mubr.msk.bf16.mxu0 %vm1570_vm3, %v25217_v41  ;;  %16983 = vmatpush3.bf16.msra.mxu0 %v18629_v10  ;;  %v7669_v10 = vor.u32 %v7668_v1, %v20931_v24  ;;  %v20961_v41 = vld [vmem:[#allocation2 + $0x68] sm:$0x1]  ;;  %v7734_v1 = vshll.u32 %v20952_v13, 16  ;;  %v7703_v17 = vrot.slane %v7701_v58, 4  ;;  %v7706_v53 = vrot.slane %v7704_v11, 5  ;;  %v25218_v58 = vld [vmem:[#allocation41_spill] sm:$0xff] }
 0x260   : > { %16984 = vmatprep.subr.bf16.mxu0 %v18634_v49  ;;  %v7716_v63 = vrot.slane %v7714_v9, 4  ;;  %v7651_v23 = vsel %vm19659_vm2, %v7646_v7, %v7650_v62  ;;  %v7693_v39 = vor.u32 %v7692_v20, %v20957_v54  ;;  %v7696_v18 = vshll.u32 %v20961_v41, 16  ;;  %17346 = vmatprep.subr.bf16.mxu1 %v18652_v14  ;;  %v20989_v7 = vld [vmem:[#allocation2 + $0x80] sm:$0x1] }
 0x261   : > { %v7670_v15 = vrot.slane %v7669_v10, 4  ;;  %v7684_v11 = vrot.slane %v7683_v29, 4  ;;  %v7730_v9 = vrot.slane %v7728_v26, 5  ;;  %v20991_v62 = vrot.slane %v7734_v1, 5 }
 0x262   : > { %v7740_v10 = vrot.slane %v7738_v52, 4  ;;  %v7749_v20 = vshrl.u32 %v7511_v61, 16  ;;  %v7758_v29 = vshll.u32 %v20981_v21, 16  ;;  %v15625_v26 = vcombine.low %v7641_v48, %v7651_v23  ;;  %v7514_v48 = vld [vmem:[#allocation2 + $0x90] sm:$0xf] }
 0x263   : > { %16985 = vmatpush3.bf16.msra.mxu0 %v18634_v49  ;;  %v20974_v49 = vrot.slane %v7710_v3, 5  ;;  %v7720_v3 = vshll.u32 %v20967_v50, 16  ;;  %v7694_v1 = vrot.slane %v7693_v39, 4  ;;  %v7698_v2 = vrot.slane %v7696_v18, 5 }
 0x264   : > { %17018 = vmatprep.subr.bf16.mxu0 %v20940_v22  ;;  %v7675_v61 = vsel %vm19659_vm2, %v7670_v15, %v20959_v40  ;;  %v7689_v52 = vsel %vm19659_vm2, %v7684_v11, %v20957_v54  ;;  %v7751_v39 = vrot.slane %v7749_v20, 4  ;;  %v21012_v40 = vld [vmem:[#allocation2 + $0x8c] sm:$0x1]  ;;  %v21014_v15 = vrot.slane %v7758_v29, 5  ;;  %v7517_v20 = vld [vmem:[#allocation2 + $0x9c] sm:$0xf] }
 0x265   : > { %17315 = vmatmul.mubr.msk.bf16.vlgmr.msra.gmra.mrb[20].mxu1 %vm4546_vm0, %v15622_v8  ;;  %v7727_v8 = vrot.slane %v7725_v33, 4  ;;  %v7762_v33 = vshrl.u32 %v20981_v21, 16  ;;  %v7699_v11 = vsel %vm19659_vm2, %v7694_v1, %v7698_v2  ;;  %v21028_v29 = vld [vmem:[#allocation2 + $0xa0] sm:$0xf]  ;;  %v21037_v1 = vld [vmem:[#allocation2 + $0x98] sm:$0x1] }
 0x266   : > { %16955 = vmatmul.mubr.msk.bf16.gmra.mrb[8].mxu0 %vm1570_vm3, %v25218_v58  ;;  %17318 = vmatprep.mubr.msk.bf16.mxu1 %vm4546_vm0, %v15623_v4  ;;  %v7707_v58 = vor.u32 %v7706_v53, %v7703_v17  ;;  %v7717_v4 = vor.u32 %v7716_v63, %v20974_v49  ;;  %v7744_v17 = vshll.u32 %v20989_v7, 16  ;;  %v21009_v53 = vld [vmem:[#allocation2 + $0x94] sm:$0xf] }
 0x267   : > { %16958 = vmatprep.mubr.msk.bf16.mxu0 %vm1570_vm3, %v19997_v60  ;;  %17347 = vmatpush3.bf16.msra.mxu1 %v18652_v14  ;;  %v7665_v60 = vsel %vm19659_vm2, %v20954_v36, %v20931_v24  ;;  %v21006_v14 = vrot.slane %v7720_v3, 5  ;;  %v7731_v63 = vor.u32 %v7730_v9, %v7727_v8  ;;  %v7741_v24 = vor.u32 %v7740_v10, %v20991_v62 }
 0x268   : > { %17348 = vmatprep.subr.bf16.mxu1 %v18653_v45  ;;  %v7754_v36 = vrot.slane %v7752_v0, 5  ;;  %v7708_v23 = vrot.slane %v7707_v58, 4  ;;  %v7718_v18 = vrot.slane %v7717_v4, 4  ;;  %v7764_v54 = vrot.slane %v7762_v33, 4 }
 0x269   : > { %v7773_v3 = vshrl.u32 %v7514_v48, 16  ;;  %v7776_v8 = vshll.u32 %v7514_v48, 16  ;;  %v7782_v9 = vshll.u32 %v21009_v53, 16  ;;  %v15626_v0 = vcombine.low %v7665_v60, %v7675_v61 }
 0x26a   : > { %v7786_v10 = vshrl.u32 %v21009_v53, 16  ;;  %v7742_v58 = vrot.slane %v7741_v24, 4  ;;  %v7755_v2 = vor.u32 %v7754_v36, %v7751_v39  ;;  %v7768_v4 = vshll.u32 %v21012_v40, 16  ;;  %v21043_v36 = vld [vmem:[#allocation2 + $0xac] sm:$0xf] }
 0x26b   : > { %17349 = vmatpush3.bf16.msra.mxu1 %v18653_v45  ;;  %v7746_v45 = vrot.slane %v7744_v17, 5  ;;  %v15627_v33 = vcombine.low %v7689_v52, %v7699_v11  ;;  %v7765_v60 = vor.u32 %v7764_v54, %v21014_v15  ;;  %v7778_v61 = vrot.slane %v7776_v8, 5 }
 0x26c   : > { %v21039_v17 = vrot.slane %v7782_v9, 5  ;;  %v7797_v48 = vshrl.u32 %v7517_v20, 16  ;;  %v7788_v24 = vrot.slane %v7786_v10, 4  ;;  %v7800_v52 = vshll.u32 %v7517_v20, 16 }
 0x26d   : > { %17319 = vmatmul.mubr.msk.bf16.gmra.mrb[24].mxu1 %vm4546_vm0, %v20948_v57  ;;  %v7732_v57 = vrot.slane %v7731_v63, 4  ;;  %v7520_v63 = vld [vmem:[#allocation2 + $0xa8] sm:$0xf]  ;;  %v7806_v39 = vshll.u32 %v21028_v29, 16  ;;  %v7770_v54 = vrot.slane %v7768_v4, 5  ;;  %v7766_v11 = vrot.slane %v7765_v60, 4 }
 0x26e   : > { %16959 = vmatmul.mubr.msk.bf16.gmra.mrb[12].mxu0 %vm1570_vm3, %v20001_v35  ;;  %17322 = vmatprep.mubr.msk.bf16.mxu1 %vm4546_vm0, %v15625_v26  ;;  %v7713_v35 = vsel %vm19659_vm2, %v7708_v23, %v20974_v49  ;;  %v7723_v26 = vsel %vm19659_vm2, %v7718_v18, %v21006_v14  ;;  %v7810_v49 = vshrl.u32 %v21028_v29, 16  ;;  %v7747_v23 = vsel %vm19659_vm2, %v7742_v58, %v7746_v45  ;;  %v21062_v60 = vld [vmem:[#allocation2 + $0xa4] sm:$0x1] }
 0x26f   : > { %16962 = vmatprep.mubr.msk.bf16.mxu0 %vm1570_vm3, %v20005_v37  ;;  %v7775_v37 = vrot.slane %v7773_v3, 4  ;;  %v7737_v14 = vsel %vm19659_vm2, %v7732_v57, %v20991_v62  ;;  %v7756_v18 = vrot.slane %v7755_v2, 4  ;;  %v7792_v3 = vshll.u32 %v21037_v1, 16  ;;  %v25219_v2 = vld [vmem:[#allocation42_spill] sm:$0xff]  ;;  %25220 = vst [vmem:[#allocation40_spill] sm:$0xff] %v21062_v60 }
 0x270   : > { %v7821_v8 = vshrl.u32 %v7520_v63, 16  ;;  %v7824_v9 = vshll.u32 %v7520_v63, 16  ;;  %v7799_v20 = vrot.slane %v7797_v48, 4  ;;  %v7830_v32 = vshll.u32 %v21043_v36, 16  ;;  %v7523_v48 = vld [vmem:[#allocation2 + $0xb4] sm:$0xf] }
 0x271   : > { %v7779_v10 = vor.u32 %v7778_v61, %v7775_v37  ;;  %v7834_v19 = vshrl.u32 %v21043_v36, 16  ;;  %v7789_v62 = vor.u32 %v7788_v24, %v21039_v17  ;;  %v7802_v45 = vrot.slane %v7800_v52, 5  ;;  %v21069_v52 = vld [vmem:[#allocation2 + $0xb0] sm:$0x1] }
 0x272   : > { %v21058_v57 = vrot.slane %v7806_v39, 5  ;;  %v7812_v58 = vrot.slane %v7810_v49, 4  ;;  %v15629_v4 = vcombine.low %v7737_v14, %v7747_v23  ;;  %v7761_v37 = vsel %vm19659_vm2, %v7756_v18, %v21014_v15  ;;  %25221 = vst [vmem:[#allocation41_spill] sm:$0xff] %v21069_v52  ;;  %v21075_v15 = vld [vmem:[#allocation2 + $0xb8] sm:$0xf] }
 0x273   : > { %v7826_v61 = vrot.slane %v7824_v9, 5  ;;  %v7780_v63 = vrot.slane %v7779_v10, 4  ;;  %v7794_v24 = vrot.slane %v7792_v3, 5  ;;  %v21071_v39 = vrot.slane %v7830_v32, 5  ;;  %25222 = vst [vmem:[#allocation42_spill] sm:$0xff] %v21075_v15 }
 0x274   : > { %v7803_v49 = vor.u32 %v7802_v45, %v7799_v20  ;;  %v7813_v14 = vor.u32 %v7812_v58, %v21058_v57  ;;  %v7816_v23 = vshll.u32 %v21062_v60, 16  ;;  %v7845_v9 = vshrl.u32 %v7523_v48, 16  ;;  %v21078_v10 = vld [vmem:[#allocation2 + $0xc4] sm:$0xf]  ;;  %v25224_v45 = vld [vmem:[#allocation43_spill] sm:$0xff] }
 0x275   : > { %17323 = vmatmul.mubr.msk.bf16.gmra.mrb[28].mxu1 %vm4546_vm0, %v15626_v0  ;;  %v15628_v0 = vcombine.low %v7713_v35, %v7723_v26  ;;  %v7836_v35 = vrot.slane %v7834_v19, 4  ;;  %v7790_v26 = vrot.slane %v7789_v62, 4  ;;  %v7848_v3 = vshll.u32 %v7523_v48, 16  ;;  %25223 = vst [vmem:[#allocation58_spill] sm:$0xff] %v21078_v10  ;;  %v21096_v60 = vld [vmem:[#allocation2 + $0xbc] sm:$0x1] }
 0x276   : > { %16963 = vmatmul.mubr.msk.bf16.gmra.mrb[16].mxu0 %vm1570_vm3, %v20009_v5  ;;  %17326 = vmatprep.mubr.msk.bf16.mxu1 %vm4546_vm0, %v15627_v33  ;;  %v7771_v5 = vsel %vm19659_vm2, %v7766_v11, %v7770_v54  ;;  %v7823_v33 = vrot.slane %v7821_v8, 4  ;;  %v7526_v54 = vld [vmem:[#allocation2 + $0xc0] sm:$0xf]  ;;  %v7840_v8 = vshll.u32 %v21069_v52, 16  ;;  %v7785_v19 = vsel %vm19659_vm2, %v7780_v63, %v21039_v17  ;;  %25226 = vst [vmem:[#allocation43_spill] sm:$0xff] %v21096_v60 }
 0x277   : > { %16966 = vmatprep.mubr.msk.bf16.mxu0 %vm1570_vm3, %v25219_v2  ;;  %v15630_v18 = vcombine.low %v7761_v37, %v7771_v5  ;;  %v7837_v32 = vor.u32 %v7836_v35, %v21071_v39  ;;  %v7854_v20 = vshll.u32 %v21075_v15, 16  ;;  %v7858_v62 = vshrl.u32 %v21075_v15, 16  ;;  %v25225_v5 = vld [vmem:[#allocation44_spill] sm:$0xff] }
 0x278   : > { %v7827_v11 = vor.u32 %v7826_v61, %v7823_v33  ;;  %v7795_v58 = vsel %vm19659_vm2, %v7790_v26, %v7794_v24  ;;  %v7804_v2 = vrot.slane %v7803_v49, 4  ;;  %v7818_v37 = vrot.slane %v7816_v23, 5  ;;  %v7529_v23 = vld [vmem:[#allocation2 + $0xcc] sm:$0xf] }
 0x279   : > { %v7869_v17 = vshrl.u32 %v7526_v54, 16  ;;  %v7872_v33 = vshll.u32 %v7526_v54, 16  ;;  %v7878_v61 = vshll.u32 %v21078_v10, 16  ;;  %v7882_v48 = vshrl.u32 %v21078_v10, 16 }
 0x27a   : > { %v7828_v63 = vrot.slane %v7827_v11, 4  ;;  %v7842_v35 = vrot.slane %v7840_v8, 5  ;;  %v7850_v15 = vrot.slane %v7848_v3, 5  ;;  %v7838_v52 = vrot.slane %v7837_v32, 4  ;;  %v21102_v3 = vld [vmem:[#allocation2 + $0xd0] sm:$0xf] }
 0x27b   : > { %v21098_v24 = vrot.slane %v7854_v20, 5  ;;  %v7860_v26 = vrot.slane %v7858_v62, 4  ;;  %v7871_v54 = vrot.slane %v7869_v17, 4  ;;  %v7874_v11 = vrot.slane %v7872_v33, 5  ;;  %25227 = vst [vmem:[#allocation44_spill] sm:$0xff] %v21102_v3 }
 0x27c   : > { %v7880_v8 = vrot.slane %v7878_v61, 5  ;;  %v7809_v32 = vsel %vm19659_vm2, %v7804_v2, %v21058_v57  ;;  %v7833_v62 = vsel %vm19659_vm2, %v7828_v63, %v21071_v39  ;;  %v21116_v17 = vld [vmem:[%s19615_s9 + $0xcc] sm:$0xf]  ;;  %v21119_v33 = vld [vmem:[%s19615_s9 + $0xd0] sm:$0xf]  ;;  %v7843_v57 = vsel %vm19659_vm2, %v7838_v52, %v7842_v35 }
 0x27d   : > { %17327 = vmatmul.mubr.msk.bf16.gmra.mrb[0].mxu1 %vm4546_vm0, %v15628_v0  ;;  %v7814_v0 = vrot.slane %v7813_v14, 4  ;;  %v15631_v14 = vcombine.low %v7785_v19, %v7795_v58  ;;  %v7864_v19 = vshll.u32 %v21096_v60, 16  ;;  %v21113_v58 = vld [vmem:[#allocation2 + $0xc8] sm:$0x1]  ;;  %v7893_v61 = vshrl.u32 %v7529_v23, 16 }
 0x27e   : > { %16967 = vmatmul.mubr.msk.bf16.gmra.mrb[20].mxu0 %vm1570_vm3, %v25224_v45  ;;  %17330 = vmatprep.mubr.msk.bf16.mxu1 %vm4546_vm0, %v15629_v4  ;;  %v7847_v45 = vrot.slane %v7845_v9, 4  ;;  %v365_v4 = vld [vmem:[#allocation2] sm:$0x1]  ;;  %v7884_v9 = vrot.slane %v7882_v48, 4  ;;  %v7896_v48 = vshll.u32 %v7529_v23, 16  ;;  %v7902_v63 = vshll.u32 %v21102_v3, 16 }
 0x27f   : > { %16970 = vmatprep.mubr.msk.bf16.mxu0 %vm1570_vm3, %v25225_v5  ;;  %v366_v49 = vsel %vm20241_vm9, 0, %v365_v4  ;;  %v7819_v20 = vsel %vm19659_vm2, %v7814_v0, %v7818_v37  ;;  %v421_v5 = vld [vmem:[#allocation2 + $0x8] sm:$0x1]  ;;  %v7861_v0 = vor.u32 %v7860_v26, %v21098_v24  ;;  %v25228_v37 = vld [vmem:[#allocation45_spill] sm:$0xff]  ;;  %v7875_v52 = vor.u32 %v7874_v11, %v7871_v54 }
 0x280   : > { %367 = vst [vmem:[#allocation2] sm:$0x1] %v366_v49  ;;  %v7851_v2 = vor.u32 %v7850_v15, %v7847_v45  ;;  %v422_v39 = vsel %vm20257_vm11, 0, %v421_v5  ;;  %v25229_v4 = vld [vmem:[#allocation57_spill] sm:$0xff]  ;;  %v7885_v15 = vor.u32 %v7884_v9, %v7880_v8  ;;  %v7888_v46 = vshll.u32 %v21113_v58, 16 }
 0x281   : > { %423 = vst [vmem:[#allocation2 + $0x8] sm:$0x1] %v422_v39  ;;  %v15286_v35 = vcombine.low %v21116_v17, %v21119_v33  ;;  %v15632_v45 = vcombine.low %v7809_v32, %v7819_v20  ;;  %v15633_v26 = vcombine.low %v7833_v62, %v7843_v57  ;;  %v7866_v23 = vrot.slane %v7864_v19, 5  ;;  %v25230_v62 = vld [vmem:[#allocation19_spill] sm:$0xff] }
 0x282   : > { %v7852_v49 = vrot.slane %v7851_v2, 4  ;;  %v7895_v5 = vrot.slane %v7893_v61, 4  ;;  %v7904_v12 = vrot.slane %v7902_v63, 5  ;;  %v7876_v39 = vrot.slane %v7875_v52, 4  ;;  %v8222_v2 = vld [vmem:[#allocation2 + $0x18] sm:$0xe] }
 0x283   : > { %v7886_v60 = vrot.slane %v7885_v15, 4  ;;  %v7890_v10 = vrot.slane %v7888_v46, 5  ;;  %v8288_v57 = vrot.slane %v20823_v38, 5  ;;  %v8291_v15 = vrot.slane %v20843_v56, 5  ;;  %v18645_v46 = vld [vmem:[#allocation8 + $0x108] sm:$0xff]  }
 0x284   : > { %v7857_v54 = vsel %vm19659_vm2, %v7852_v49, %v21098_v24  ;;  %v7881_v19 = vsel %vm19659_vm2, %v7876_v39, %v7880_v8  ;;  %v25232_v8 = vld [vmem:[#allocation21_spill] sm:$0xff]  ;;  %v8302_v49 = vrot.slane %v20847_v59, 5 }
 0x285   : > { %17331 = vmatmul.mubr.msk.bf16.gmra.mrb[4].mxu1 %vm4546_vm0, %v15630_v18  ;;  %v7906_v18 = vshrl.u32 %v21102_v3, 16  ;;  %v7891_v24 = vsel %vm19659_vm2, %v7886_v60, %v7890_v10  ;;  %v8290_v52 = vrot.slane %v8288_v57, 4  ;;  %v8295_v10 = vrot.slane %v20827_v47, 5 }
 0x286   : > { %16971 = vmatmul.mubr.msk.bf16.gmra.mrb[24].mxu0 %vm1570_vm3, %v25228_v37  ;;  %17334 = vmatprep.mubr.msk.bf16.mxu1 %vm4546_vm0, %v15631_v14  ;;  %v7862_v14 = vrot.slane %v7861_v0, 4  ;;  %v7898_v37 = vrot.slane %v7896_v48, 5  ;;  %v15635_v61 = vcombine.low %v7881_v19, %v7891_v24  ;;  %v8225_v24 = vld [vmem:[#allocation2 + $0x3c] sm:$0xe] }
 0x287   : > { %16974 = vmatprep.mubr.msk.bf16.mxu0 %vm1570_vm3, %v25229_v4  ;;  %v7908_v3 = vrot.slane %v7906_v18, 4  ;;  %v21137_v4 = vld [vmem:[#allocation2 + $0xd4] sm:$0x1] }
 0x288   : > { %v7867_v11 = vsel %vm19659_vm2, %v7862_v14, %v7866_v23  ;;  %v7899_v9 = vor.u32 %v7898_v37, %v7895_v5  ;;  %v7912_v20 = vshll.u32 %v21137_v4, 16  ;;  %v8224_v14 = vld [vmem:[#allocation2 + $0x30] sm:$0xe]  ;;  %v8297_v37 = vrot.slane %v8295_v10, 4 }
 0x289   : > { %v7909_v32 = vor.u32 %v7908_v3, %v7904_v12  ;;  %v15634_v0 = vcombine.low %v7857_v54, %v7867_v11  ;;  %v15655_v3 = vrot.slane %v8222_v2, 9  ;;  %v15657_v39 = vrot.slane %v8224_v14, 9  ;;  %v21191_v2 = vld [vmem:[#allocation9 + $0x10] sm:$0xff]  }
 0x28a   : > { %v7900_v48 = vrot.slane %v7899_v9, 4  ;;  %v7914_v18 = vrot.slane %v7912_v20, 5  ;;  %v8304_v54 = vrot.slane %v8302_v49, 4  ;;  %v8305_v11 = vrot.slane %v20873_v34, 5  ;;  %v18650_v9 = vld [vmem:[#allocation8 + $0x118] sm:$0xff]  }
 0x28b   : > { %v7910_v63 = vrot.slane %v7909_v32, 4  ;;  %v8289_v56 = vsel %vm20031_vm6, %v15655_v3, %v8288_v57  ;;  %v25233_v32 = vld [vmem:[#allocation23_spill] sm:$0xff]  ;;  %v8309_v20 = vrot.slane %v20851_v31, 5  ;;  %v8303_v34 = vsel %vm20031_vm6, %v15657_v39, %v8302_v49 }
 0x28c   : > { %v7905_v38 = vsel %vm19659_vm2, %v7900_v48, %v7904_v12  ;;  %v18649_v12 = vld [vmem:[#allocation8 + $0x110] sm:$0xff]   ;;  %v8306_v19 = vsel %vm20031_vm6, %v8304_v54, %v8305_v11  ;;  %v8316_v57 = vrot.slane %v20879_v51, 5  ;;  %v15658_v31 = vrot.slane %v8225_v24, 9  ;;  %v25235_v51 = vld [vmem:[#allocation27_spill] sm:$0xff]  ;;  %v8229_v54 = vld [vmem:[#allocation2 + $0x6c] sm:$0xe] }
 0x28d   : > { %17335 = vmatmul.mubr.msk.bf16.gmra.mrb[8].mxu1 %vm4546_vm0, %v15632_v45  ;;  %v7915_v60 = vsel %vm19659_vm2, %v7910_v63, %v7914_v18  ;;  %v8292_v45 = vsel %vm20031_vm6, %v8290_v52, %v8291_v15  ;;  %v15673_v48 = vcombine.low %v8303_v34, %v8306_v19  ;;  %v8311_v63 = vrot.slane %v8309_v20, 4 }
 0x28e   : > { %16975 = vmatmul.mubr.msk.bf16.gmra.mrb[28].mxu0 %vm1570_vm3, %v15286_v35  ;;  %17338 = vmatprep.mubr.msk.bf16.mxu1 %vm4546_vm0, %v15633_v26  ;;  %v25231_v35 = vld [vmem:[#allocation20_spill] sm:$0xff]  ;;  %v8223_v26 = vld [vmem:[#allocation2 + $0x24] sm:$0xe]  ;;  %v15636_v23 = vcombine.low %v7905_v38, %v7915_v60  ;;  %v15671_v5 = vcombine.low %v8289_v56, %v8292_v45  ;;  %v8312_v18 = vrot.slane %v20881_v25, 5  ;;  %v8318_v52 = vrot.slane %v8316_v57, 4  ;;  %v25236_v38 = vld [vmem:[#allocation30_spill] sm:$0xff] }
 0x28f   : > { %16986 = vmatprep.mubr.msk.bf16.mxu0 %vm1570_vm3, %v25230_v62  ;;  %v15656_v47 = vrot.slane %v8223_v26, 9  ;;  %v25234_v62 = vld [vmem:[#allocation25_spill] sm:$0xff]  ;;  %v8319_v15 = vrot.slane %v20911_v55, 5  ;;  %v8326_v14 = vrot.slane %v20922_v30, 5  ;;  %v8344_v11 = vrot.slane %v20952_v13, 5  ;;  %v25239_v13 = vld [vmem:[#allocation36_spill] sm:$0xff] }
 0x290   : > { %v8313_v25 = vsel %vm20031_vm6, %v8311_v63, %v8312_v18  ;;  %v8228_v56 = vld [vmem:[#allocation2 + $0x60] sm:$0xe]  ;;  %v8347_v19 = vrot.slane %v20989_v7, 5  ;;  %v3511_v24 = vshrl.u32 %v21116_v17, 16  ;;  %v8231_v18 = vld [vmem:[#allocation2 + $0x84] sm:$0xe] }
 0x291   : > { %v8296_v59 = vsel %vm20031_vm6, %v15656_v47, %v8295_v10  ;;  %v8320_v60 = vsel %vm20031_vm6, %v8318_v52, %v8319_v15  ;;  %v8227_v10 = vld [vmem:[#allocation2 + $0x54] sm:$0xe]  ;;  %v25238_v30 = vld [vmem:[#allocation33_spill] sm:$0xff]  ;;  %v8346_v34 = vrot.slane %v8344_v11, 4  ;;  %v8232_v15 = vld [vmem:[#allocation2 + $0x90] sm:$0xe] }
 0x292   : > { %v15660_v49 = vrot.slane %v8227_v10, 9  ;;  %v25237_v47 = vld [vmem:[#allocation31_spill] sm:$0xff]  ;;  %v3513_v52 = vrot.slane %v3511_v24, 4  ;;  %v15665_v10 = vrot.slane %v8232_v15, 9  ;;  %v25245_v24 = vld [vmem:[#allocation42_spill] sm:$0xff] }
 0x293   : > { %v8348_v63 = vsel %vm20031_vm6, %v8346_v34, %v8347_v19 }
 0x295   : > { %17339 = vmatmul.mubr.msk.bf16.gmra.mrb[12].mxu1 %vm4546_vm0, %v15634_v0  ;;  %v8226_v0 = vld [vmem:[#allocation2 + $0x48] sm:$0xe] }
 0x296   : > { %16987 = vmatmul.mubr.msk.bf16.vlgmr.msra.gmra.mrb[0].mxu0 %vm1570_vm3, %v25231_v35  ;;  %17342 = vmatprep.mubr.msk.bf16.mxu1 %vm4546_vm0, %v15635_v61  ;;  %v15659_v3 = vrot.slane %v8226_v0, 9  ;;  %v8323_v35 = vrot.slane %v20899_v27, 5  ;;  %v15661_v27 = vrot.slane %v8228_v56, 9  ;;  %v3524_v0 = vshrl.u32 %v21119_v33, 16 }
 0x297   : > { %17019 = vmatpush3.bf16.msra.mxu0 %v20940_v22  ;;  %16990 = vmatprep.mubr.msk.bf16.mxu0 %vm1570_vm3, %v25232_v8  ;;  %v8298_v22 = vrot.slane %v20853_v16, 5  ;;  %v8330_v8 = vrot.slane %v20915_v42, 5  ;;  %v8361_v56 = vrot.slane %v21037_v1, 5  ;;  %v25241_v1 = vld [vmem:[#allocation39_spill] sm:$0xff] }
 0x298   : > { %17020 = vmatprep.subr.bf16.mxu0 %v18645_v46  ;;  %v8317_v55 = vsel %vm20031_vm6, %v15659_v3, %v8316_v57  ;;  %v8324_v42 = vsel %vm20031_vm6, %v15660_v49, %v8323_v35  ;;  %v3514_v57 = vshll.u32 %v21116_v17, 16  ;;  %v8358_v3 = vrot.slane %v21009_v53, 5  ;;  %v25240_v49 = vld [vmem:[#allocation38_spill] sm:$0xff] }
 0x299   : > { %v8299_v16 = vsel %vm20031_vm6, %v8297_v37, %v8298_v22  ;;  %v15675_v26 = vcombine.low %v8317_v55, %v8320_v60  ;;  %v8337_v22 = vrot.slane %v20936_v43, 5  ;;  %v15664_v55 = vrot.slane %v8231_v18, 9 }
 0x29a   : > { %v15672_v61 = vcombine.low %v8296_v59, %v8299_v16  ;;  %v15662_v16 = vrot.slane %v8229_v54, 9  ;;  %v8354_v60 = vrot.slane %v21012_v40, 5 }
 0x29b   : > { %17021 = vmatpush3.bf16.msra.mxu0 %v18645_v46  ;;  %v8310_v46 = vsel %vm20031_vm6, %v15658_v31, %v8309_v20  ;;  %v8339_v20 = vrot.slane %v8337_v22, 4 }
 0x29c   : > { %17022 = vmatprep.subr.bf16.mxu0 %v18649_v12  ;;  %v15674_v45 = vcombine.low %v8310_v46, %v8313_v25  ;;  %v3526_v25 = vrot.slane %v3524_v0, 4  ;;  %v25246_v0 = vld [vmem:[#allocation18_spill] sm:$0xff] }
 0x29d   : > { %17343 = vmatmul.mubr.msk.bf16.gmra.mrb[16].mxu1 %vm4546_vm0, %v15636_v23  ;;  %v8332_v23 = vrot.slane %v8330_v8, 4 }
 0x29e   : > { %16991 = vmatmul.mubr.msk.bf16.gmra.mrb[4].mxu0 %vm1570_vm3, %v25233_v32  ;;  %17350 = vmatprep.mubr.msk.bf16.mxu1 %vm4546_vm0, %v15671_v5  ;;  %v8333_v5 = vrot.slane %v20961_v41, 5  ;;  %v8331_v41 = vsel %vm20031_vm6, %v15661_v27, %v8330_v8  ;;  %v8360_v8 = vrot.slane %v8358_v3, 4  ;;  %v8359_v27 = vsel %vm20031_vm6, %v15665_v10, %v8358_v3 }
 0x29f   : > { %16994 = vmatprep.mubr.msk.bf16.mxu0 %vm1570_vm3, %v25234_v62  ;;  %17023 = vmatpush3.bf16.msra.mxu0 %v18649_v12  ;;  %v8325_v12 = vrot.slane %v8323_v35, 4  ;;  %v8340_v62 = vrot.slane %v20967_v50, 5  ;;  %v8338_v50 = vsel %vm20031_vm6, %v15662_v16, %v8337_v22  ;;  %v25243_v16 = vld [vmem:[#allocation41_spill] sm:$0xff] }
 0x2a0   : > { %17024 = vmatprep.subr.bf16.mxu0 %v18650_v9  ;;  %v8334_v39 = vsel %vm20031_vm6, %v8332_v23, %v8333_v5  ;;  %v8362_v23 = vsel %vm20031_vm6, %v8360_v8, %v8361_v56  ;;  %v8233_v5 = vld [vmem:[#allocation2 + $0x9c] sm:$0xe]  ;;  %v25250_v8 = vld [vmem:[#allocation53_spill] sm:$0xff] }
 0x2a1   : > { %v8327_v37 = vsel %vm20031_vm6, %v8325_v12, %v8326_v14  ;;  %v15677_v59 = vcombine.low %v8331_v41, %v8334_v39  ;;  %v8341_v7 = vsel %vm20031_vm6, %v8339_v20, %v8340_v62  ;;  %v8365_v14 = vrot.slane %v21028_v29, 5 }
 0x2a2   : > { %v15676_v32 = vcombine.low %v8324_v42, %v8327_v37  ;;  %v15678_v35 = vcombine.low %v8338_v50, %v8341_v7  ;;  %v8234_v42 = vld [vmem:[#allocation2 + $0xa8] sm:$0xe]  ;;  %v15681_v39 = vcombine.low %v8359_v27, %v8362_v23  ;;  %v15666_v54 = vrot.slane %v8233_v5, 9  ;;  %v8235_v50 = vld [vmem:[#allocation2 + $0xb4] sm:$0xe]  ;;  %v25252_v5 = vld [vmem:[#allocation49_spill] sm:$0xff] }
 0x2a3   : > { %17025 = vmatpush3.bf16.msra.mxu0 %v18650_v9  ;;  %v8230_v9 = vld [vmem:[#allocation2 + $0x78] sm:$0xe]  ;;  %v8367_v29 = vrot.slane %v8365_v14, 4  ;;  %v8375_v20 = vrot.slane %v25243_v16, 5  ;;  %v25247_v7 = vld [vmem:[#allocation58_spill] sm:$0xff] }
 0x2a4   : > { %17058 = vmatprep.subr.bf16.mxu0 %v21191_v2  ;;  %v15663_v43 = vrot.slane %v8230_v9, 9  ;;  %v8366_v34 = vsel %vm20031_vm6, %v15666_v54, %v8365_v14  ;;  %v18654_v14 = vld [vmem:[#allocation9 + $0x18] sm:$0xff]   ;;  %v21350_v16 = vld [vmem:[#allocation2 + $0x10] sm:$0xf] }
 0x2a5   : > { %17351 = vmatmul.mubr.msk.bf16.vlgmr.msra.gmra.mrb[20].mxu1 %vm4546_vm0, %v15672_v61  ;;  %v3520_v61 = vshll.u32 %v21119_v33, 16  ;;  %v21342_v54 = vld [vmem:[#allocation2 + $0x4] sm:$0xf] }
 0x2a6   : > { %16995 = vmatmul.mubr.msk.bf16.gmra.mrb[8].mxu0 %vm1570_vm3, %v25235_v51  ;;  %17354 = vmatprep.mubr.msk.bf16.mxu1 %vm4546_vm0, %v15673_v48  ;;  %v8351_v48 = vrot.slane %v20981_v21, 5  ;;  %v8345_v31 = vsel %vm20031_vm6, %v15663_v43, %v8344_v11  ;;  %v3516_v51 = vrot.slane %v3514_v57, 5  ;;  %v25242_v11 = vld [vmem:[#allocation40_spill] sm:$0xff]  ;;  %v8379_v57 = vrot.slane %v25245_v24, 5 }
 0x2a7   : > { %16998 = vmatprep.mubr.msk.bf16.mxu0 %vm1570_vm3, %v25236_v38  ;;  %v3522_v46 = vrot.slane %v3520_v61, 5  ;;  %v21253_v38 = vld [vmem:[%s19615_s9 + $0xd4] sm:$0xf]  ;;  %v15679_v21 = vcombine.low %v8345_v31, %v8348_v63  ;;  %v8368_v9 = vrot.slane %v25242_v11, 5  ;;  %v8236_v31 = vld [vmem:[#allocation2 + $0xc0] sm:$0xe] }
 0x2a8   : > { %v3530_v53 = vshll.u32 %v21253_v38, 16  ;;  %v8352_v12 = vsel %vm20031_vm6, %v15664_v55, %v8351_v48  ;;  %v8381_v15 = vrot.slane %v8379_v57, 4 }
 0x2a9   : > { %v8369_v19 = vsel %vm20031_vm6, %v8367_v29, %v8368_v9  ;;  %v4107_v9 = vshll.u32 %v21342_v54, 16 }
 0x2aa   : > { %v15682_v18 = vcombine.low %v8366_v34, %v8369_v19 }
 0x2ad   : > { %17355 = vmatmul.mubr.msk.bf16.gmra.mrb[24].mxu1 %vm4546_vm0, %v15674_v45  ;;  %v3517_v45 = vor.u32 %v3516_v51, %v3513_v52  ;;  %v15668_v52 = vrot.slane %v8235_v50, 9  ;;  %v25248_v51 = vld [vmem:[#allocation43_spill] sm:$0xff]  ;;  %v15328_v50 = vrot.slane %v21116_v17, 9 }
 0x2ae   : > { %16999 = vmatmul.mubr.msk.bf16.gmra.mrb[12].mxu0 %vm1570_vm3, %v25237_v47  ;;  %17358 = vmatprep.mubr.msk.bf16.mxu1 %vm4546_vm0, %v15675_v26  ;;  %v3527_v26 = vor.u32 %v3526_v25, %v3522_v46  ;;  %v8372_v47 = vrot.slane %v21043_v36, 5  ;;  %v25244_v36 = vld [vmem:[#allocation46_spill] sm:$0xff]  ;;  %v15669_v25 = vrot.slane %v8236_v31, 9  ;;  %v21367_v31 = vld [vmem:[#allocation2 + $0x18] sm:$0xf] }
 0x2af   : > { %17002 = vmatprep.mubr.msk.bf16.mxu0 %vm1570_vm3, %v25238_v30  ;;  %v3518_v37 = vrot.slane %v3517_v45, 4  ;;  %v3532_v30 = vrot.slane %v3530_v53, 5  ;;  %v8380_v55 = vsel %vm20031_vm6, %v15668_v52, %v8379_v57  ;;  %v8237_v45 = vld [vmem:[#allocation2 + $0xcc] sm:$0xe]  ;;  %v21359_v57 = vrot.slane %v4107_v9, 5  ;;  %25281 = vst [vmem:[#allocation46_spill] sm:$0xff] %v21641_v6 }
 0x2b0   : > { %v3528_v22 = vrot.slane %v3527_v26, 4 }
 0x2b1   : > { %v3523_v62 = vsel %vm19659_vm2, %v3518_v37, %v3522_v46  ;;  %v8382_v46 = vrot.slane %v25248_v51, 5  ;;  %v25254_v37 = vld [vmem:[#allocation50_spill] sm:$0xff] }
 0x2b2   : > { %v3533_v43 = vsel %vm19659_vm2, %v3528_v22, %v3532_v30  ;;  %v25255_v22 = vld [vmem:[#allocation24_spill] sm:$0xff]  ;;  %v21373_v51 = vld [vmem:[#allocation2 + $0x28] sm:$0xf] }
 0x2b3   : > { %v15307_v63 = vcombine.low %v3523_v62, %v3533_v43  ;;  %v25257_v30 = vld [vmem:[#allocation28_spill] sm:$0xff]  ;;  %v3769_v62 = vrot.slane %v21119_v33, 5 }
 0x2b5   : > { %17359 = vmatmul.mubr.msk.bf16.gmra.mrb[28].mxu1 %vm4546_vm0, %v15676_v32  ;;  %v15667_v32 = vrot.slane %v8234_v42, 9  ;;  %v25253_v42 = vld [vmem:[#allocation22_spill] sm:$0xff]  ;;  %v3771_v33 = vrot.slane %v3769_v62, 4 }
 0x2b6   : > { %17003 = vmatmul.mubr.msk.bf16.gmra.mrb[16].mxu0 %vm1570_vm3, %v25239_v13  ;;  %17362 = vmatprep.mubr.msk.bf16.mxu1 %vm4546_vm0, %v15677_v59  ;;  %v8374_v59 = vrot.slane %v8372_v47, 4 }
 0x2b7   : > { %17006 = vmatprep.mubr.msk.bf16.mxu0 %vm1570_vm3, %v25209_v44  ;;  %v8353_v44 = vrot.slane %v8351_v48, 4  ;;  %v8373_v61 = vsel %vm20031_vm6, %v15667_v32, %v8372_v47  ;;  %v8386_v48 = vrot.slane %v25247_v7, 5  ;;  %v4111_v32 = vshrl.u32 %v21342_v54, 16  ;;  %v21364_v7 = vld [vmem:[#allocation2 + $0x8] sm:$0x1] }
 0x2b8   : > { %v8376_v13 = vsel %vm20031_vm6, %v8374_v59, %v8375_v20  ;;  %v21348_v59 = vld [vmem:[#allocation2 + $0xc] sm:$0xf]  ;;  %v25259_v20 = vld [vmem:[#allocation32_spill] sm:$0xff]  ;;  %25261 = vst [vmem:[#allocation45_spill] sm:$0xff] %v21364_v7  ;;  %v4117_v17 = vshll.u32 %v21364_v7, 16 }
 0x2b9   : > { %v8355_v40 = vsel %vm20031_vm6, %v8353_v44, %v8354_v60  ;;  %v15683_v3 = vcombine.low %v8373_v61, %v8376_v13  ;;  %v8383_v44 = vsel %vm20031_vm6, %v8381_v15, %v8382_v46  ;;  %v25249_v60 = vld [vmem:[#allocation44_spill] sm:$0xff]  ;;  %v4122_v19 = vshrl.u32 %v21348_v59, 16  ;;  %v21371_v15 = vld [vmem:[#allocation2 + $0x24] sm:$0xf] }
 0x2ba   : > { %v15680_v41 = vcombine.low %v8352_v12, %v8355_v40  ;;  %v8393_v10 = vrot.slane %v25249_v60, 5  ;;  %v15684_v26 = vcombine.low %v8380_v55, %v8383_v44  ;;  %v8396_v40 = vrot.slane %v21137_v4, 5  ;;  %v21324_v4 = vld [vmem:[#allocation9] sm:$0xff]  }
 0x2bb   : > { %v4125_v24 = vshll.u32 %v21348_v59, 16  ;;  %v4131_v61 = vshll.u32 %v21350_v16, 16  ;;  %v4135_v13 = vshrl.u32 %v21350_v16, 16  ;;  %v4149_v55 = vshll.u32 %v21367_v31, 16 }
 0x2bc   : > { %v8395_v12 = vrot.slane %v8393_v10, 4 }
 0x2bd   : > { %17363 = vmatmul.mubr.msk.bf16.gmra.mrb[0].mxu1 %vm4546_vm0, %v15678_v35  ;;  %v8388_v35 = vrot.slane %v8386_v48, 4  ;;  %v4127_v52 = vrot.slane %v4125_v24, 5 }
 0x2be   : > { %17007 = vmatmul.mubr.msk.bf16.gmra.mrb[20].mxu0 %vm1570_vm3, %v25240_v49  ;;  %17366 = vmatprep.mubr.msk.bf16.mxu1 %vm4546_vm0, %v15679_v21  ;;  %v8389_v21 = vrot.slane %v21113_v58, 5  ;;  %v8387_v58 = vsel %vm20031_vm6, %v15669_v25, %v8386_v48  ;;  %v15670_v49 = vrot.slane %v8237_v45, 9  ;;  %v8397_v23 = vsel %vm20031_vm6, %v8395_v12, %v8396_v40 }
 0x2bf   : > { %17010 = vmatprep.mubr.msk.bf16.mxu0 %vm1570_vm3, %v25241_v1  ;;  %v25251_v1 = vld [vmem:[#allocation48_spill] sm:$0xff]  ;;  %v3772_v48 = vrot.slane %v21253_v38, 5  ;;  %v21377_v25 = vrot.slane %v4131_v61, 5  ;;  %v4146_v38 = vshrl.u32 %v21367_v31, 16  ;;  %v4183_v45 = vshrl.u32 %v21373_v51, 16 }
 0x2c0   : > { %v8390_v56 = vsel %vm20031_vm6, %v8388_v35, %v8389_v21  ;;  %v8394_v27 = vsel %vm20031_vm6, %v15670_v49, %v8393_v10  ;;  %v4137_v35 = vrot.slane %v4135_v13, 4  ;;  %v21379_v21 = vld [vmem:[#allocation2 + $0x14] sm:$0x1] }
 0x2c1   : > { %v15685_v53 = vcombine.low %v8387_v58, %v8390_v56  ;;  %v15686_v47 = vcombine.low %v8394_v27, %v8397_v23  ;;  %25262 = vst [vmem:[#allocation57_spill] sm:$0xff] %v21379_v21  ;;  %v25263_v10 = vld [vmem:[#allocation35_spill] sm:$0xff]  ;;  %v4173_v58 = vshll.u32 %v21371_v15, 16  ;;  %v4179_v56 = vshll.u32 %v21373_v51, 16 }
 0x2c2   : > { %v21399_v49 = vsel %vm20031_vm6, %v3771_v33, %v3772_v48  ;;  %v4138_v27 = vor.u32 %v4137_v35, %v21377_v25  ;;  %v4141_v23 = vshll.u32 %v21379_v21, 16  ;;  %v4185_v9 = vrot.slane %v4183_v45, 4  ;;  %v21426_v33 = vld [vmem:[#allocation2 + $0x3c] sm:$0xf] }
 0x2c3   : > { %v25267_v48 = vld [vmem:[#allocation52_spill] sm:$0xff]  ;;  %v4221_v45 = vshll.u32 %v21426_v33, 16 }
 0x2c4   : > { %v4139_v61 = vrot.slane %v4138_v27, 4 }
 0x2c5   : > { %17367 = vmatmul.mubr.msk.bf16.gmra.mrb[4].mxu1 %vm4546_vm0, %v15680_v41  ;;  %v25258_v41 = vld [vmem:[#allocation29_spill] sm:$0xff] }
 0x2c6   : > { %17011 = vmatmul.mubr.msk.bf16.gmra.mrb[24].mxu0 %vm1570_vm3, %v25244_v36  ;;  %17370 = vmatprep.mubr.msk.bf16.mxu1 %vm4546_vm0, %v15681_v39  ;;  %v21340_v39 = vld [vmem:[#allocation2] sm:$0xf]  ;;  %v25260_v36 = vld [vmem:[#allocation34_spill] sm:$0xff] }
 0x2c7   : > { %17014 = vmatprep.mubr.msk.bf16.mxu0 %vm1570_vm3, %v25246_v0  ;;  %v4098_v29 = vshrl.u32 %v21340_v39, 16  ;;  %v4101_v11 = vshll.u32 %v21340_v39, 16  ;;  %v4113_v0 = vrot.slane %v4111_v32, 4 }
 0x2c9   : > { %v4100_v43 = vrot.slane %v4098_v29, 4  ;;  %v4103_v34 = vrot.slane %v4101_v11, 5  ;;  %v4114_v46 = vor.u32 %v4113_v0, %v21359_v57  ;;  %v4175_v29 = vrot.slane %v4173_v58, 5 }
 0x2ca   : > { %v21411_v11 = vrot.slane %v4179_v56, 5  ;;  %v4218_v56 = vshrl.u32 %v21426_v33, 16 }
 0x2cd   : > { %17371 = vmatmul.mubr.msk.bf16.gmra.mrb[8].mxu1 %vm4546_vm0, %v15682_v18  ;;  %v4104_v18 = vor.u32 %v4103_v34, %v4100_v43 }
 0x2ce   : > { %17015 = vmatmul.mubr.msk.bf16.gmra.mrb[28].mxu0 %vm1570_vm3, %v15307_v63  ;;  %17374 = vmatprep.mubr.msk.bf16.mxu1 %vm4546_vm0, %v15683_v3  ;;  %v21369_v63 = vld [vmem:[#allocation2 + $0x1c] sm:$0xf]  ;;  %v4124_v3 = vrot.slane %v4122_v19, 4  ;;  %v4143_v19 = vrot.slane %v4141_v23, 5  ;;  %v21452_v23 = vld [vmem:[#allocation2 + $0x4c] sm:$0xf] }
 0x2cf   : > { %17026 = vmatprep.mubr.msk.bf16.mxu0 %vm1570_vm3, %v25250_v8  ;;  %v4155_v44 = vshll.u32 %v21369_v63, 16  ;;  %v4159_v60 = vshrl.u32 %v21369_v63, 16  ;;  %v4170_v8 = vshrl.u32 %v21371_v15, 16  ;;  %v4105_v12 = vrot.slane %v4104_v18, 4 }
 0x2d0   : > { %v4128_v40 = vor.u32 %v4127_v52, %v4124_v3  ;;  %v4186_v52 = vor.u32 %v4185_v9, %v21411_v11 }
 0x2d1   : > { %v4110_v32 = vsel %vm19659_vm2, %v4105_v12, %v21359_v57 }
 0x2d5   : > { %17375 = vmatmul.mubr.msk.bf16.gmra.mrb[12].mxu1 %vm4546_vm0, %v15684_v26  ;;  %v25264_v26 = vld [vmem:[#allocation51_spill] sm:$0xff] }
 0x2d6   : > { %17027 = vmatmul.mubr.msk.bf16.vlgmr.msra.gmra.mrb[0].mxu0 %vm1570_vm3, %v25251_v1  ;;  %17378 = vmatprep.mubr.msk.bf16.mxu1 %vm4546_vm0, %v15685_v53  ;;  %v21395_v53 = vsel %vm20031_vm6, %v15328_v50, %v3769_v62  ;;  %v4119_v1 = vrot.slane %v4117_v17, 5  ;;  %v21416_v62 = vld [vmem:[#allocation2 + $0x2c] sm:$0x1]  ;;  %v25268_v17 = vld [vmem:[#allocation37_spill] sm:$0xff] }
 0x2d7   : > { %17059 = vmatpush3.bf16.msra.mxu0 %v21191_v2  ;;  %17030 = vmatprep.mubr.msk.bf16.mxu0 %vm1570_vm3, %v25252_v5  ;;  %v25256_v2 = vld [vmem:[#allocation26_spill] sm:$0xff]  ;;  %v21403_v5 = vld [vmem:[#allocation2 + $0x30] sm:$0xf]  ;;  %25266 = vst [vmem:[#allocation20_spill] sm:$0xff] %v21416_v62  ;;  %v15329_v18 = vcombine.low %v21395_v53, %v21399_v49  ;;  %v4144_v53 = vsel %vm19659_vm2, %v4139_v61, %v4143_v19  ;;  %v4251_v19 = vshll.u32 %v21452_v23, 16 }
 0x2d8   : > { %17060 = vmatprep.subr.bf16.mxu0 %v18654_v14  ;;  %v4197_v43 = vshll.u32 %v21403_v5, 16 }
 0x2db   : > { %17061 = vmatpush3.bf16.msra.mxu0 %v18654_v14  ;;  %v4115_v14 = vrot.slane %v4114_v46, 4  ;;  %v4189_v46 = vshll.u32 %v21416_v62, 16 }
 0x2dc   : > { %17094 = vmatprep.subr.bf16.mxu0 %v21324_v4 }
 0x2dd   : > { %17379 = vmatmul.mubr.msk.bf16.gmra.mrb[16].mxu1 %vm4546_vm0, %v15686_v47  ;;  %v4148_v47 = vrot.slane %v4146_v38, 4  ;;  %v4120_v34 = vsel %vm19659_vm2, %v4115_v14, %v4119_v1  ;;  %v4187_v14 = vrot.slane %v4186_v52, 4  ;;  %v4191_v1 = vrot.slane %v4189_v46, 5  ;;  %v21479_v52 = vld [vmem:[#allocation2 + $0x58] sm:$0xf] }
 0x2de   : > { %17031 = vmatmul.mubr.msk.bf16.gmra.mrb[4].mxu0 %vm1570_vm3, %v25253_v42  ;;  %v4151_v42 = vrot.slane %v4149_v55, 5  ;;  %v15351_v35 = vcombine.low %v4110_v32, %v4120_v34  ;;  %v21439_v55 = vld [vmem:[#allocation2 + $0x38] sm:$0x1]  ;;  %v4220_v32 = vrot.slane %v4218_v56, 4  ;;  %v21462_v34 = vld [vmem:[#allocation2 + $0x44] sm:$0x1] }
 0x2df   : > { %17034 = vmatprep.mubr.msk.bf16.mxu0 %vm1570_vm3, %v25254_v37  ;;  %v21405_v37 = vrot.slane %v4155_v44, 5  ;;  %25269 = vst [vmem:[#allocation21_spill] sm:$0xff] %v21439_v55  ;;  %v4213_v27 = vshll.u32 %v21439_v55, 16  ;;  %25270 = vst [vmem:[#allocation23_spill] sm:$0xff] %v21462_v34 }
 0x2e0   : > { %v4152_v13 = vor.u32 %v4151_v42, %v4148_v47 }
 0x2e2   : > { %v4153_v49 = vrot.slane %v4152_v13, 4  ;;  %v4192_v13 = vsel %vm19659_vm2, %v4187_v14, %v4191_v1  ;;  %v21495_v1 = vld [vmem:[#allocation2 + $0x64] sm:$0xf] }
 0x2e6   : > { %17035 = vmatmul.mubr.msk.bf16.gmra.mrb[8].mxu0 %vm1570_vm3, %v25255_v22  ;;  %v4161_v22 = vrot.slane %v4159_v60, 4  ;;  %v4199_v60 = vrot.slane %v4197_v43, 5  ;;  %v4158_v43 = vsel %vm19659_vm2, %v4153_v49, %v21405_v37  ;;  %v21490_v49 = vld [vmem:[#allocation2 + $0x50] sm:$0x1] }
 0x2e7   : > { %17038 = vmatprep.mubr.msk.bf16.mxu0 %vm1570_vm3, %v25256_v2  ;;  %v21407_v2 = vld [vmem:[#allocation2 + $0x34] sm:$0xf]  ;;  %25271 = vst [vmem:[#allocation25_spill] sm:$0xff] %v21490_v49 }
 0x2e8   : > { %v4203_v24 = vshll.u32 %v21407_v2, 16  ;;  %v4207_v0 = vshrl.u32 %v21407_v2, 16  ;;  %v4162_v50 = vor.u32 %v4161_v22, %v21405_v37  ;;  %v21474_v37 = vld [vmem:[#allocation2 + $0x54] sm:$0xf] }
 0x2e9   : > { %v4266_v56 = vshrl.u32 %v21474_v37, 16 }
 0x2ea   : > { %v4209_v58 = vrot.slane %v4207_v0, 4 }
 0x2ee   : > { %17039 = vmatmul.mubr.msk.bf16.gmra.mrb[12].mxu0 %vm1570_vm3, %v25257_v30  ;;  %v21409_v30 = vld [vmem:[#allocation2 + $0x20] sm:$0x1] }
 0x2ef   : > { %17042 = vmatprep.mubr.msk.bf16.mxu0 %vm1570_vm3, %v25258_v41  ;;  %25265 = vst [vmem:[#allocation19_spill] sm:$0xff] %v21409_v30  ;;  %v4172_v41 = vrot.slane %v4170_v8, 4  ;;  %v4165_v57 = vshll.u32 %v21409_v30, 16  ;;  %v21443_v8 = vrot.slane %v4203_v24, 5  ;;  %v4255_v24 = vshrl.u32 %v21452_v23, 16 }
 0x2f1   : > { %v4176_v3 = vor.u32 %v4175_v29, %v4172_v41  ;;  %v4167_v12 = vrot.slane %v4165_v57, 5  ;;  %v4210_v9 = vor.u32 %v4209_v58, %v21443_v8  ;;  %v4257_v58 = vrot.slane %v4255_v24, 4 }
 0x2f6   : > { %17043 = vmatmul.mubr.msk.bf16.gmra.mrb[16].mxu0 %vm1570_vm3, %v25259_v20  ;;  %v4129_v20 = vrot.slane %v4128_v40, 4  ;;  %v4177_v40 = vrot.slane %v4176_v3, 4 }
 0x2f7   : > { %17046 = vmatprep.mubr.msk.bf16.mxu0 %vm1570_vm3, %v25260_v36  ;;  %v4194_v36 = vshrl.u32 %v21403_v5, 16 }
 0x2f8   : > { %v4134_v38 = vsel %vm19659_vm2, %v4129_v20, %v21377_v25  ;;  %v4163_v25 = vrot.slane %v4162_v50, 4  ;;  %v4223_v20 = vrot.slane %v4221_v45, 5  ;;  %v4182_v61 = vsel %vm19659_vm2, %v4177_v40, %v21411_v11 }
 0x2f9   : > { %v4196_v44 = vrot.slane %v4194_v36, 4  ;;  %v15352_v36 = vcombine.low %v4134_v38, %v4144_v53  ;;  %v4215_v50 = vrot.slane %v4213_v27, 5  ;;  %v4237_v11 = vshll.u32 %v21462_v34, 16 }
 0x2fa   : > { %v4168_v0 = vsel %vm19659_vm2, %v4163_v25, %v4167_v12  ;;  %v4224_v38 = vor.u32 %v4223_v20, %v4220_v32  ;;  %v21488_v53 = vcombine.low %v4182_v61, %v4192_v13  ;;  %v4275_v25 = vshll.u32 %v21479_v52, 16  ;;  %v18656_v32 = vld [vmem:[#allocation9 + $0x8] sm:$0xff]  }
 0x2fb   : > { %v4200_v29 = vor.u32 %v4199_v60, %v4196_v44  ;;  %v21482_v44 = vld [vmem:[#allocation2 + $0x60] sm:$0xf]  ;;  %v21484_v60 = vrot.slane %v4251_v19, 5  ;;  %v15353_v45 = vcombine.low %v4158_v43, %v4168_v0  ;;  %v4279_v12 = vshrl.u32 %v21479_v52, 16  ;;  %v21512_v0 = vld [vmem:[#allocation2 + $0x70] sm:$0xf] }
 0x2fc   : > { %v4290_v27 = vshrl.u32 %v21482_v44, 16  ;;  %v4261_v43 = vshll.u32 %v21490_v49, 16  ;;  %v4268_v19 = vrot.slane %v4266_v56, 4  ;;  %v21517_v61 = vrot.slane %v4275_v25, 5  ;;  %v21527_v56 = vld [vmem:[#allocation9 + $0x20] sm:$0xff]  }
 0x2fd   : > { %v4201_v46 = vrot.slane %v4200_v29, 4  ;;  %v21506_v29 = vrot.slane %v4237_v11, 5  ;;  %v4258_v20 = vor.u32 %v4257_v58, %v21484_v60  ;;  %v4281_v13 = vrot.slane %v4279_v12, 4 }
 0x2fe   : > { %17047 = vmatmul.mubr.msk.bf16.gmra.mrb[20].mxu0 %vm1570_vm3, %v25263_v10  ;;  %v21441_v10 = vld [vmem:[#allocation2 + $0x40] sm:$0xf]  ;;  %v4323_v11 = vshll.u32 %v21512_v0, 16  ;;  %v4327_v58 = vshrl.u32 %v21512_v0, 16  ;;  %v4263_v25 = vrot.slane %v4261_v43, 5 }
 0x2ff   : > { %17050 = vmatprep.mubr.msk.bf16.mxu0 %vm1570_vm3, %v25264_v26  ;;  %v21447_v26 = vld [vmem:[#allocation2 + $0x48] sm:$0xf]  ;;  %v4227_v47 = vshll.u32 %v21441_v10, 16  ;;  %v4231_v42 = vshrl.u32 %v21441_v10, 16  ;;  %v21545_v43 = vld [vmem:[#allocation2 + $0x78] sm:$0xf] }
 0x300   : > { %v4242_v22 = vshrl.u32 %v21447_v26, 16  ;;  %v4245_v41 = vshll.u32 %v21447_v26, 16 }
 0x301   : > { %v21477_v57 = vrot.slane %v4227_v47, 5  ;;  %v4293_v47 = vshll.u32 %v21482_v44, 16 }
 0x302   : > { %v4244_v3 = vrot.slane %v4242_v22, 4 }
 0x306   : > { %17051 = vmatmul.mubr.msk.bf16.gmra.mrb[24].mxu0 %vm1570_vm3, %v25267_v48  ;;  %v4233_v48 = vrot.slane %v4231_v42, 4  ;;  %v4206_v42 = vsel %vm19659_vm2, %v4201_v46, %v21443_v8  ;;  %v21515_v8 = vld [vmem:[#allocation2 + $0x5c] sm:$0x1]  ;;  %v4292_v46 = vrot.slane %v4290_v27, 4 }
 0x307   : > { %17054 = vmatprep.mubr.msk.bf16.mxu0 %vm1570_vm3, %v25268_v17  ;;  %v4211_v17 = vrot.slane %v4210_v9, 4  ;;  %v21508_v9 = vld [vmem:[#allocation2 + $0x6c] sm:$0xf]  ;;  %25272 = vst [vmem:[#allocation27_spill] sm:$0xff] %v21515_v8 }
 0x308   : > { %v4234_v40 = vor.u32 %v4233_v48, %v21477_v57  ;;  %v4303_v48 = vshrl.u32 %v21495_v1, 16 }
 0x309   : > { %v4216_v22 = vsel %vm19659_vm2, %v4211_v17, %v4215_v50  ;;  %v4299_v50 = vshll.u32 %v21495_v1, 16  ;;  %v4295_v17 = vrot.slane %v4293_v47, 5 }
 0x30a   : > { %v15355_v12 = vcombine.low %v4206_v42, %v4216_v22  ;;  %v4305_v47 = vrot.slane %v4303_v48, 4  ;;  %v21549_v48 = vld [vmem:[#allocation2 + $0x7c] sm:$0xf] }
 0x30b   : > { %v21533_v27 = vrot.slane %v4299_v50, 5  ;;  %v4296_v22 = vor.u32 %v4295_v17, %v4292_v46  ;;  %v4329_v50 = vrot.slane %v4327_v58, 4  ;;  %v4338_v46 = vshrl.u32 %v21545_v43, 16 }
 0x30c   : > { %v4341_v17 = vshll.u32 %v21545_v43, 16 }
 0x30e   : > { %17055 = vmatmul.mubr.msk.bf16.gmra.mrb[28].mxu0 %vm1570_vm3, %v15329_v18  ;;  %v4247_v18 = vrot.slane %v4245_v41, 5  ;;  %v21504_v41 = vrot.slane %v4224_v38, 4  ;;  %v4314_v38 = vshrl.u32 %v21508_v9, 16 }
 0x30f   : > { %17062 = vmatprep.mubr.msk.bf16.mxu0 %vm4546_vm0, %v15351_v35  ;;  %v4269_v35 = vshll.u32 %v21474_v37, 16 }
 0x310   : > { %v4248_v14 = vor.u32 %v4247_v18, %v4244_v3  ;;  %v4235_v3 = vrot.slane %v4234_v40, 4  ;;  %v4282_v40 = vor.u32 %v4281_v13, %v21517_v61  ;;  %v4230_v49 = vsel %vm19659_vm2, %v21504_v41, %v21477_v57 }
 0x311   : > { %v4271_v24 = vrot.slane %v4269_v35, 5  ;;  %v4259_v35 = vrot.slane %v4258_v20, 4  ;;  %v21547_v13 = vrot.slane %v4323_v11, 5  ;;  %v4297_v11 = vrot.slane %v4296_v22, 4 }
 0x312   : > { %v4249_v18 = vrot.slane %v4248_v14, 4  ;;  %v21531_v14 = vld [vmem:[#allocation2 + $0x68] sm:$0x1]  ;;  %v4240_v20 = vsel %vm19659_vm2, %v4235_v3, %v21506_v29  ;;  %v21555_v3 = vld [vmem:[#allocation2 + $0x74] sm:$0x1] }
 0x313   : > { %25273 = vst [vmem:[#allocation30_spill] sm:$0xff] %v21531_v14  ;;  %v4264_v57 = vsel %vm19659_vm2, %v4259_v35, %v4263_v25  ;;  %25274 = vst [vmem:[#allocation31_spill] sm:$0xff] %v21555_v3  ;;  %v4330_v35 = vor.u32 %v4329_v50, %v21547_v13  ;;  %v4333_v25 = vshll.u32 %v21555_v3, 16  ;;  %v4343_v50 = vrot.slane %v4341_v17, 5  ;;  %v21578_v3 = vld [vmem:[#allocation2 + $0x90] sm:$0xf] }
 0x314   : > { %v4254_v42 = vsel %vm19659_vm2, %v4249_v18, %v21484_v60  ;;  %v4309_v60 = vshll.u32 %v21531_v14, 16  ;;  %v4306_v18 = vor.u32 %v4305_v47, %v21533_v27  ;;  %v21574_v14 = vld [vmem:[#allocation2 + $0x88] sm:$0xf]  ;;  %v4389_v17 = vshll.u32 %v21578_v3, 16 }
 0x316   : > { %17063 = vmatmul.mubr.msk.bf16.vlgmr.msra.gmra.mrb[32].mxu0 %vm4546_vm0, %v15352_v36  ;;  %v4317_v36 = vshll.u32 %v21508_v9, 16  ;;  %v4311_v47 = vrot.slane %v4309_v60, 5  ;;  %v4335_v60 = vrot.slane %v4333_v25, 5 }
 0x317   : > { %17095 = vmatpush3.bf16.msra.mxu0 %v21324_v4  ;;  %17066 = vmatprep.mubr.msk.bf16.mxu0 %vm4546_vm0, %v15353_v45  ;;  %v4272_v4 = vor.u32 %v4271_v24, %v4268_v19  ;;  %v4285_v45 = vshll.u32 %v21515_v8, 16  ;;  %v4316_v19 = vrot.slane %v4314_v38, 4  ;;  %v4347_v38 = vshll.u32 %v21549_v48, 16 }
 0x318   : > { %17096 = vmatprep.subr.bf16.mxu0 %v18656_v32  ;;  %v4319_v24 = vrot.slane %v4317_v36, 5  ;;  %v4351_v36 = vshrl.u32 %v21549_v48, 16 }
 0x319   : > { %v4273_v41 = vrot.slane %v4272_v4, 4  ;;  %v4287_v29 = vrot.slane %v4285_v45, 5  ;;  %v15356_v4 = vcombine.low %v4230_v49, %v4240_v20  ;;  %v15357_v45 = vcombine.low %v4254_v42, %v4264_v57  ;;  %v21584_v42 = vld [vmem:[#allocation2 + $0x94] sm:$0xf] }
 0x31a   : > { %v4320_v58 = vor.u32 %v4319_v24, %v4316_v19  ;;  %v4307_v19 = vrot.slane %v4306_v18, 4  ;;  %v4340_v24 = vrot.slane %v4338_v46, 4  ;;  %v21580_v8 = vrot.slane %v4347_v38, 5 }
 0x31b   : > { %17097 = vmatpush3.bf16.msra.mxu0 %v18656_v32  ;;  %v4283_v32 = vrot.slane %v4282_v40, 4  ;;  %v4278_v40 = vsel %vm19659_vm2, %v4273_v41, %v21517_v61  ;;  %v4353_v49 = vrot.slane %v4351_v36, 4  ;;  %v4302_v57 = vsel %vm19659_vm2, %v4297_v11, %v21533_v27 }
 0x31c   : > { %17130 = vmatprep.subr.bf16.mxu0 %v21527_v56  ;;  %v4321_v41 = vrot.slane %v4320_v58, 4  ;;  %v4375_v18 = vshrl.u32 %v21574_v14, 16  ;;  %v4386_v46 = vshrl.u32 %v21578_v3, 16  ;;  %v4312_v38 = vsel %vm19659_vm2, %v4307_v19, %v4311_v47  ;;  %v21606_v19 = vld [vmem:[#allocation2 + $0x8c] sm:$0x1] }
 0x31d   : > { %v4288_v22 = vsel %vm19659_vm2, %v4283_v32, %v4287_v29  ;;  %v4331_v29 = vrot.slane %v4330_v35, 4  ;;  %v4371_v32 = vshll.u32 %v21574_v14, 16  ;;  %v4395_v27 = vshll.u32 %v21584_v42, 16  ;;  %25276 = vst [vmem:[#allocation36_spill] sm:$0xff] %v21606_v19 }
 0x31e   : > { %17067 = vmatmul.mubr.msk.bf16.gmra.mrb[36].mxu0 %vm4546_vm0, %v21488_v53  ;;  %v21567_v53 = vld [vmem:[#allocation2 + $0x84] sm:$0xf]  ;;  %v4399_v11 = vshrl.u32 %v21584_v42, 16  ;;  %v4344_v58 = vor.u32 %v4343_v50, %v4340_v24  ;;  %v4354_v35 = vor.u32 %v4353_v49, %v21580_v8  ;;  %v15358_v55 = vcombine.low %v4278_v40, %v4288_v22  ;;  %v21610_v24 = vld [vmem:[#allocation2 + $0x9c] sm:$0xf] }
 0x31f   : > { %17070 = vmatprep.mubr.msk.bf16.mxu0 %vm4546_vm0, %v15355_v12  ;;  %v21572_v12 = vld [vmem:[#allocation2 + $0x80] sm:$0x1]  ;;  %v4362_v20 = vshrl.u32 %v21567_v53, 16  ;;  %v4365_v61 = vshll.u32 %v21567_v53, 16  ;;  %v4336_v47 = vsel %vm19659_vm2, %v4331_v29, %v4335_v60  ;;  %v4377_v62 = vrot.slane %v4375_v18, 4  ;;  %25277 = vst [vmem:[#allocation38_spill] sm:$0xff] %v21610_v24 }
 0x320   : > { %25275 = vst [vmem:[#allocation33_spill] sm:$0xff] %v21572_v12  ;;  %v4357_v36 = vshll.u32 %v21572_v12, 16  ;;  %v21608_v12 = vrot.slane %v4371_v32, 5  ;;  %v4388_v30 = vrot.slane %v4386_v46, 4  ;;  %v15359_v50 = vcombine.low %v4302_v57, %v4312_v38  ;;  %v21617_v60 = vld [vmem:[#allocation2 + $0xa0] sm:$0xf] }
 0x321   : > { %v4364_v25 = vrot.slane %v4362_v20, 4  ;;  %v4367_v34 = vrot.slane %v4365_v61, 5  ;;  %v21612_v20 = vld [vmem:[#allocation2 + $0x98] sm:$0x1]  ;;  %v21614_v40 = vrot.slane %v4395_v27, 5  ;;  %v4401_v22 = vrot.slane %v4399_v11, 4 }
 0x322   : > { %v4359_v49 = vrot.slane %v4357_v36, 5  ;;  %25278 = vst [vmem:[#allocation39_spill] sm:$0xff] %v21612_v20  ;;  %v4355_v61 = vrot.slane %v4354_v35, 4  ;;  %v4381_v29 = vshll.u32 %v21606_v19, 16  ;;  %25279 = vst [vmem:[#allocation40_spill] sm:$0xff] %v21617_v60  ;;  %v4378_v18 = vor.u32 %v4377_v62, %v21608_v12 }
 0x323   : > { %v4410_v57 = vshrl.u32 %v21610_v24, 16  ;;  %v21622_v38 = vld [vmem:[#allocation2 + $0xa8] sm:$0xf]  ;;  %v21624_v36 = vld [vmem:[#allocation2 + $0xac] sm:$0xf]  ;;  %v4413_v27 = vshll.u32 %v21610_v24, 16 }
 0x324   : > { %25280 = vst [vmem:[#allocation41_spill] sm:$0xff] %v21622_v38  ;;  %v4419_v11 = vshll.u32 %v21617_v60, 16  ;;  %v4360_v62 = vsel %vm19659_vm2, %v4355_v61, %v4359_v49 }
 0x325   : > { %v4412_v19 = vrot.slane %v4410_v57, 4  ;;  %v21653_v57 = vld [vmem:[#allocation2 + $0xb0] sm:$0x1] }
 0x326   : > { %17071 = vmatmul.mubr.msk.bf16.gmra.mrb[40].mxu0 %vm4546_vm0, %v15356_v4  ;;  %v4326_v4 = vsel %vm19659_vm2, %v4321_v41, %v21547_v13  ;;  %v4345_v13 = vrot.slane %v4344_v58, 4  ;;  %v4368_v41 = vor.u32 %v4367_v34, %v4364_v25  ;;  %v4402_v34 = vor.u32 %v4401_v22, %v21614_v40 }
 0x327   : > { %17074 = vmatprep.mubr.msk.bf16.mxu0 %vm4546_vm0, %v15357_v45  ;;  %v4391_v45 = vrot.slane %v4389_v17, 5  ;;  %v15360_v32 = vcombine.low %v4326_v4, %v4336_v47  ;;  %v4405_v17 = vshll.u32 %v21612_v20, 16  ;;  %v4423_v58 = vshrl.u32 %v21617_v60, 16  ;;  %v21645_v60 = vld [vmem:[#allocation2 + $0xb8] sm:$0xf] }
 0x328   : > { %v4369_v35 = vrot.slane %v4368_v41, 4  ;;  %v4383_v25 = vrot.slane %v4381_v29, 5  ;;  %v4437_v4 = vshll.u32 %v21622_v38, 16  ;;  %v4443_v47 = vshll.u32 %v21624_v36, 16  ;;  %v21643_v41 = vld [vmem:[#allocation2 + $0xb4] sm:$0xf] }
 0x329   : > { %v4392_v46 = vor.u32 %v4391_v45, %v4388_v30  ;;  %v4350_v30 = vsel %vm19659_vm2, %v4345_v13, %v21580_v8  ;;  %v4447_v45 = vshrl.u32 %v21624_v36, 16  ;;  %v4379_v22 = vrot.slane %v4378_v18, 4 }
 0x32a   : > { %v4403_v21 = vrot.slane %v4402_v34, 4  ;;  %v4415_v8 = vrot.slane %v4413_v27, 5  ;;  %v4421_v13 = vrot.slane %v4419_v11, 5  ;;  %v4425_v49 = vrot.slane %v4423_v58, 4 }
 0x32b   : > { %v4393_v20 = vrot.slane %v4392_v46, 4  ;;  %v15361_v61 = vcombine.low %v4350_v30, %v4360_v62  ;;  %v4439_v7 = vrot.slane %v4437_v4, 5  ;;  %v4449_v24 = vrot.slane %v4447_v45, 4 }
 0x32c   : > { %v4374_v18 = vsel %vm19659_vm2, %v4369_v35, %v21608_v12  ;;  %v4384_v46 = vsel %vm19659_vm2, %v4379_v22, %v4383_v25  ;;  %v4416_v11 = vor.u32 %v4415_v8, %v4412_v19  ;;  %v4426_v58 = vor.u32 %v4425_v49, %v4421_v13 }
 0x32d   : > { %v4398_v34 = vsel %vm19659_vm2, %v4393_v20, %v21614_v40  ;;  %v4458_v12 = vshrl.u32 %v21643_v41, 16  ;;  %v4461_v30 = vshll.u32 %v21643_v41, 16  ;;  %v4467_v62 = vshll.u32 %v21645_v60, 16 }
 0x32e   : > { %17075 = vmatmul.mubr.msk.bf16.gmra.mrb[44].mxu0 %vm4546_vm0, %v15358_v55  ;;  %v4434_v55 = vshrl.u32 %v21622_v38, 16  ;;  %v4445_v38 = vrot.slane %v4443_v47, 5  ;;  %v4471_v35 = vshrl.u32 %v21645_v60, 16  ;;  %v15362_v20 = vcombine.low %v4374_v18, %v4384_v46 }
 0x32f   : > { %17078 = vmatprep.mubr.msk.bf16.mxu0 %vm4546_vm0, %v15359_v50  ;;  %v4407_v50 = vrot.slane %v4405_v17, 5  ;;  %v4429_v17 = vshll.u32 %v21641_v6, 16  ;;  %v4417_v4 = vrot.slane %v4416_v11, 4  ;;  %v4460_v47 = vrot.slane %v4458_v12, 4  ;;  %v21667_v6 = vld [vmem:[#allocation2 + $0xbc] sm:$0x1] }
 0x330   : > { %v4436_v29 = vrot.slane %v4434_v55, 4  ;;  %v4450_v25 = vor.u32 %v4449_v24, %v4445_v38  ;;  %v4453_v55 = vshll.u32 %v21653_v57, 16  ;;  %v4463_v45 = vrot.slane %v4461_v30, 5 }
 0x331   : > { %v4408_v27 = vsel %vm19659_vm2, %v4403_v21, %v4407_v50  ;;  %v4427_v21 = vrot.slane %v4426_v58, 4  ;;  %v4431_v19 = vrot.slane %v4429_v17, 5  ;;  %v4469_v22 = vrot.slane %v4467_v62, 5 }
 0x332   : > { %v15363_v40 = vcombine.low %v4398_v34, %v4408_v27  ;;  %v4473_v50 = vrot.slane %v4471_v35, 4  ;;  %v4451_v49 = vrot.slane %v4450_v25, 4  ;;  %v4477_v46 = vshll.u32 %v21667_v6, 16 }
 0x333   : > { %v4432_v24 = vsel %vm19659_vm2, %v4427_v21, %v4431_v19  ;;  %v15387_v25 = vcombine.low %v21367_v31, %v21369_v63  ;;  %v15391_v31 = vcombine.low %v21447_v26, %v21452_v23  ;;  %v15395_v26 = vcombine.low %v21545_v43, %v21549_v48 }
 0x334   : > { %v4474_v18 = vor.u32 %v4473_v50, %v4469_v22  ;;  %v15397_v21 = vcombine.low %v21578_v3, %v21584_v42  ;;  %v5107_v43 = vrot.slane %v21342_v54, 5  ;;  %v25291_v3 = vld [vmem:[#allocation41_spill] sm:$0xff] }
 0x336   : > { %17079 = vmatmul.mubr.msk.bf16.gmra.mrb[48].mxu0 %vm4546_vm0, %v15360_v32  ;;  %v4440_v32 = vor.u32 %v4439_v7, %v4436_v29  ;;  %v4422_v7 = vsel %vm19659_vm2, %v4417_v4, %v4421_v13  ;;  %v4464_v29 = vor.u32 %v4463_v45, %v4460_v47  ;;  %v4475_v12 = vrot.slane %v4474_v18, 4  ;;  %v5057_v47 = vld [vmem:[#allocation2] sm:$0xe] }
 0x337   : > { %17082 = vmatprep.mubr.msk.bf16.mxu0 %vm4546_vm0, %v15361_v61  ;;  %v4455_v61 = vrot.slane %v4453_v55, 5  ;;  %v15364_v27 = vcombine.low %v4422_v7, %v4432_v24  ;;  %v4479_v13 = vrot.slane %v4477_v46, 5  ;;  %v18668_v55 = vld [vmem:[#allocation9 + $0x28] sm:$0xff]   ;;  %v15419_v7 = vrot.slane %v5057_v47, 9 }
 0x338   : > { %v4441_v8 = vrot.slane %v4440_v32, 4  ;;  %v4465_v58 = vrot.slane %v4464_v29, 4  ;;  %v15386_v32 = vcombine.low %v21348_v59, %v21350_v16  ;;  %v15390_v59 = vcombine.low %v21426_v33, %v21441_v10  ;;  %v25293_v29 = vld [vmem:[#allocation45_spill] sm:$0xff] }
 0x339   : > { %v4456_v34 = vsel %vm19659_vm2, %v4451_v49, %v4455_v61  ;;  %v4480_v62 = vsel %vm19659_vm2, %v4475_v12, %v4479_v13  ;;  %v15394_v33 = vcombine.low %v21508_v9, %v21512_v0  ;;  %v15399_v49 = vcombine.low %v25291_v3, %v21624_v36  ;;  %v5059_v12 = vld [vmem:[#allocation2 + $0x18] sm:$0xe] }
 0x33a   : > { %v4446_v17 = vsel %vm19659_vm2, %v4441_v8, %v4445_v38  ;;  %v4470_v30 = vsel %vm19659_vm2, %v4465_v58, %v4469_v22  ;;  %v15385_v38 = vcombine.low %v21340_v39, %v21342_v54  ;;  %v15388_v39 = vcombine.low %v21371_v15, %v21373_v51  ;;  %v25288_v22 = vld [vmem:[#allocation40_spill] sm:$0xff] }
 0x33b   : > { %v15365_v11 = vcombine.low %v4446_v17, %v4456_v34  ;;  %v15366_v35 = vcombine.low %v4470_v30, %v4480_v62  ;;  %v15392_v15 = vcombine.low %v21474_v37, %v21479_v52  ;;  %v5109_v24 = vrot.slane %v5107_v43, 4 }
 0x33c   : > { %v5110_v18 = vrot.slane %v25293_v29, 5  ;;  %v5114_v54 = vrot.slane %v21350_v16, 5  ;;  %v5108_v17 = vsel %vm20031_vm6, %v15419_v7, %v5107_v43  ;;  %v15400_v30 = vcombine.low %v21643_v41, %v21645_v60  ;;  %v5061_v43 = vld [vmem:[#allocation2 + $0x30] sm:$0xe]  ;;  %v25301_v7 = vld [vmem:[#allocation20_spill] sm:$0xff] }
 0x33e   : > { %17083 = vmatmul.mubr.msk.bf16.gmra.mrb[52].mxu0 %vm4546_vm0, %v15362_v20  ;;  %v21697_v20 = vld [vmem:[#allocation9 + $0x30] sm:$0xff]   ;;  %v5111_v34 = vsel %vm20031_vm6, %v5109_v24, %v5110_v18  ;;  %v5131_v24 = vrot.slane %v25301_v7, 5  ;;  %v15423_v18 = vrot.slane %v5061_v43, 9  ;;  %v5064_v7 = vld [vmem:[#allocation2 + $0x54] sm:$0xe] }
 0x33f   : > { %17086 = vmatprep.mubr.msk.bf16.mxu0 %vm4546_vm0, %v15363_v40  ;;  %v15389_v40 = vcombine.low %v21403_v5, %v21407_v2  ;;  %v15393_v5 = vcombine.low %v21482_v44, %v21495_v1  ;;  %v15396_v44 = vcombine.low %v21567_v53, %v21574_v14  ;;  %v25289_v53 = vld [vmem:[#allocation38_spill] sm:$0xff]  ;;  %v15435_v16 = vcombine.low %v5108_v17, %v5111_v34  ;;  %v25302_v17 = vld [vmem:[#allocation21_spill] sm:$0xff] }
 0x340   : > { %v15398_v50 = vcombine.low %v25289_v53, %v25288_v22  ;;  %v5138_v34 = vrot.slane %v25302_v17, 5 }
 0x346   : > { %17087 = vmatmul.mubr.msk.bf16.gmra.mrb[56].mxu0 %vm4546_vm0, %v15364_v27  ;;  %v5058_v27 = vld [vmem:[#allocation2 + $0xc] sm:$0xe] }
 0x347   : > { %17090 = vmatprep.mubr.msk.bf16.mxu0 %vm4546_vm0, %v15365_v11  ;;  %v5121_v11 = vrot.slane %v21369_v63, 5  ;;  %v25300_v63 = vld [vmem:[#allocation19_spill] sm:$0xff] }
 0x34e   : > { %17091 = vmatmul.mubr.msk.bf16.gmra.mrb[60].mxu0 %vm4546_vm0, %v15366_v35  ;;  %v15420_v35 = vrot.slane %v5058_v27, 9 }
 0x34f   : > { %17098 = vmatprep.mubr.msk.bf16.mxu0 %vm4546_vm0, %v15385_v38  ;;  %v5116_v38 = vrot.slane %v5114_v54, 4 }
 0x350   : > { %v5115_v41 = vsel %vm20031_vm6, %v15420_v35, %v5114_v54  ;;  %v5062_v35 = vld [vmem:[#allocation2 + $0x3c] sm:$0xe] }
 0x356   : > { %17099 = vmatmul.mubr.msk.bf16.vlgmr.msra.gmra.mrb[32].mxu0 %vm4546_vm0, %v15386_v32  ;;  %v25298_v32 = vld [vmem:[#allocation57_spill] sm:$0xff] }
 0x357   : > { %17131 = vmatpush3.bf16.msra.mxu0 %v21527_v56  ;;  %17102 = vmatprep.mubr.msk.bf16.mxu0 %vm4546_vm0, %v15387_v25  ;;  %v5117_v25 = vrot.slane %v25298_v32, 5  ;;  %v5063_v32 = vld [vmem:[#allocation2 + $0x48] sm:$0xe] }
 0x358   : > { %17132 = vmatprep.subr.bf16.mxu0 %v18668_v55 }
 0x35b   : > { %17133 = vmatpush3.bf16.msra.mxu0 %v18668_v55 }
 0x35c   : > { %17166 = vmatprep.subr.bf16.mxu0 %v21697_v20 }
 0x35e   : > { %17103 = vmatmul.mubr.msk.bf16.gmra.mrb[36].mxu0 %vm4546_vm0, %v15388_v39  ;;  %v15421_v39 = vrot.slane %v5059_v12, 9  ;;  %v5142_v12 = vrot.slane %v21441_v10, 5  ;;  %v15424_v10 = vrot.slane %v5062_v35, 9 }
 0x35f   : > { %17106 = vmatprep.mubr.msk.bf16.mxu0 %vm4546_vm0, %v15389_v40  ;;  %v5123_v40 = vrot.slane %v5121_v11, 4 }
 0x360   : > { %v5143_v43 = vsel %vm20031_vm6, %v15424_v10, %v5142_v12  ;;  %v5170_v10 = vrot.slane %v21512_v0, 5 }
 0x366   : > { %17107 = vmatmul.mubr.msk.bf16.gmra.mrb[40].mxu0 %vm4546_vm0, %v15390_v59  ;;  %v5124_v59 = vrot.slane %v25300_v63, 5 }
 0x367   : > { %17110 = vmatprep.mubr.msk.bf16.mxu0 %vm4546_vm0, %v15391_v31  ;;  %v5118_v31 = vsel %vm20031_vm6, %v5116_v38, %v5117_v25  ;;  %v5149_v38 = vrot.slane %v21452_v23, 5  ;;  %v25304_v23 = vld [vmem:[#allocation25_spill] sm:$0xff] }
 0x368   : > { %v15436_v53 = vcombine.low %v5115_v41, %v5118_v31  ;;  %v25303_v41 = vld [vmem:[#allocation23_spill] sm:$0xff] }
 0x369   : > { %v5145_v31 = vrot.slane %v25303_v41, 5 }
 0x36e   : > { %17111 = vmatmul.mubr.msk.bf16.gmra.mrb[44].mxu0 %vm4546_vm0, %v15392_v15  ;;  %v5128_v15 = vrot.slane %v21373_v51, 5 }
 0x36f   : > { %17114 = vmatprep.mubr.msk.bf16.mxu0 %vm4546_vm0, %v15393_v5  ;;  %v5122_v5 = vsel %vm20031_vm6, %v15421_v39, %v5121_v11 }
 0x370   : > { %v5130_v51 = vrot.slane %v5128_v15, 4 }
 0x372   : > { %v5132_v11 = vsel %vm20031_vm6, %v5130_v51, %v5131_v24  ;;  %v5163_v24 = vrot.slane %v21495_v1, 5  ;;  %v25306_v1 = vld [vmem:[#allocation30_spill] sm:$0xff] }
 0x376   : > { %17115 = vmatmul.mubr.msk.bf16.gmra.mrb[48].mxu0 %vm4546_vm0, %v15394_v33  ;;  %v5125_v33 = vsel %vm20031_vm6, %v5123_v40, %v5124_v59  ;;  %v5144_v59 = vrot.slane %v5142_v12, 4  ;;  %v25305_v12 = vld [vmem:[#allocation27_spill] sm:$0xff] }
 0x377   : > { %17118 = vmatprep.mubr.msk.bf16.mxu0 %vm4546_vm0, %v15395_v26  ;;  %v5060_v26 = vld [vmem:[#allocation2 + $0x24] sm:$0xe]  ;;  %v15437_v3 = vcombine.low %v5122_v5, %v5125_v33  ;;  %v15425_v5 = vrot.slane %v5063_v32, 9  ;;  %v5151_v33 = vrot.slane %v5149_v38, 4  ;;  %v5166_v32 = vrot.slane %v25306_v1, 5 }
 0x378   : > { %v21724_v56 = vpop.f32.mrb[20].mxu1 }
 0x379   : > { %25282 = vst [vmem:[#allocation42_spill] sm:$0xff] %v21724_v56  ;;  %v21726_v37 = vpop.f32.mrb[21].mxu1 }
 0x37a   : > { %25283 = vst [vmem:[#allocation18_spill] sm:$0xff] %v21726_v37  ;;  %v21730_v4 = vpop.f32.mrb[22].mxu1  ;;  %v18999_v37 = vld [vmem:[#allocation2 + $0x34] sm:$0xf] }
 0x37b   : > { %25284 = vst [vmem:[#allocation58_spill] sm:$0xff] %v21730_v4  ;;  %v21734_v9 = vpop.f32.mrb[23].mxu1 }
 0x37c   : > { %25285 = vst [vmem:[#allocation43_spill] sm:$0xff] %v21734_v9  ;;  %v18691_v9 = vld [vmem:[#allocation2 + $0xb4] sm:$0xff]  }
 0x37e   : > { %17119 = vmatmul.mubr.msk.bf16.gmra.mrb[52].mxu0 %vm4546_vm0, %v15396_v44  ;;  %v5135_v44 = vrot.slane %v21407_v2, 5  ;;  %v18676_v2 = vld [vmem:[#allocation9 + $0x38] sm:$0xff]  }
 0x37f   : > { %17122 = vmatprep.mubr.msk.bf16.mxu0 %vm4546_vm0, %v15397_v21 }
 0x380   : > { %v21739_v19 = vpop.f32.mrb[24].mxu1  ;;  %v5137_v54 = vrot.slane %v5135_v44, 4 }
 0x381   : > { %25286 = vst [vmem:[#allocation44_spill] sm:$0xff] %v21739_v19  ;;  %v21741_v45 = vpop.f32.mrb[25].mxu1 }
 0x382   : > { %25287 = vst [vmem:[#allocation53_spill] sm:$0xff] %v21741_v45  ;;  %v21745_v8 = vpop.f32.mrb[26].mxu1 }
 0x383   : > { %25290 = vst [vmem:[#allocation48_spill] sm:$0xff] %v21745_v8  ;;  %v21749_v61 = vpop.f32.mrb[27].mxu1 }
 0x384   : > { %25292 = vst [vmem:[#allocation49_spill] sm:$0xff] %v21749_v61 }
 0x386   : > { %17123 = vmatmul.mubr.msk.bf16.gmra.mrb[56].mxu0 %vm4546_vm0, %v15398_v50 }
 0x387   : > { %17126 = vmatprep.mubr.msk.bf16.mxu0 %vm4546_vm0, %v15399_v49  ;;  %v15422_v49 = vrot.slane %v5060_v26, 9  ;;  %v5152_v26 = vrot.slane %v25304_v23, 5 }
 0x388   : > { %v21760_v58 = vpop.f32.mrb[28].mxu1 }
 0x389   : > { %25295 = vst [vmem:[#allocation22_spill] sm:$0xff] %v21760_v58  ;;  %v21762_v13 = vpop.f32.mrb[29].mxu1  ;;  %v5129_v27 = vsel %vm20031_vm6, %v15422_v49, %v5128_v15  ;;  %v5150_v49 = vsel %vm20031_vm6, %v15425_v5, %v5149_v38  ;;  %v5153_v51 = vsel %vm20031_vm6, %v5151_v33, %v5152_v26  ;;  %v5165_v38 = vrot.slane %v5163_v24, 4  ;;  %v5066_v5 = vld [vmem:[#allocation2 + $0x6c] sm:$0xe] }
 0x38a   : > { %25296 = vst [vmem:[#allocation50_spill] sm:$0xff] %v21762_v13  ;;  %v21766_v62 = vpop.f32.mrb[30].mxu1  ;;  %v15438_v39 = vcombine.low %v5129_v27, %v5132_v11  ;;  %v15441_v27 = vcombine.low %v5150_v49, %v5153_v51  ;;  %v5177_v33 = vrot.slane %v21549_v48, 5  ;;  %v18964_v26 = vld [vmem:[%s19607_s11 + $0x10] sm:$0xff] }
 0x38b   : > { %25297 = vst [vmem:[#allocation24_spill] sm:$0xff] %v21766_v62  ;;  %v21769_v55 = vpop.f32.mrb[31].mxu1  ;;  %8964 = vrot.lane.b32.xlu1 %v18964_v26, %s19316_s27  ;;  %v5068_v26 = vld [vmem:[#allocation2 + $0x84] sm:$0xe]  ;;  %v18970_v62 = vld [vmem:[%s19607_s11 + $0x38] sm:$0xff] }
 0x38c   : > { %25299 = vst [vmem:[#allocation26_spill] sm:$0xff] %v21769_v55 }
 0x38e   : > { %17127 = vmatmul.mubr.msk.bf16.gmra.mrb[60].mxu0 %vm4546_vm0, %v15400_v30  ;;  %v5136_v30 = vsel %vm20031_vm6, %v15423_v18, %v5135_v44  ;;  %v21817_v44 = vld [vmem:[#allocation9 + $0x40] sm:$0xff]  }
 0x38f   : > { %17134 = vmatprep.mubr.msk.bf16.mxu0 %vm4546_vm0, %v15435_v16  ;;  %v5139_v16 = vsel %vm20031_vm6, %v5137_v54, %v5138_v34  ;;  %v5065_v54 = vld [vmem:[#allocation2 + $0x60] sm:$0xe] }
 0x390   : > { %v21784_v21 = vpop.f32.mrb[0].mxu1  ;;  %v15439_v63 = vcombine.low %v5136_v30, %v5139_v16  ;;  %v5159_v30 = vrot.slane %v25305_v12, 5  ;;  %v15427_v35 = vrot.slane %v5065_v54, 9  ;;  %v5172_v54 = vrot.slane %v5170_v10, 4 }
 0x391   : > { %v21786_v47 = vpop.f32.mrb[1].mxu1 }
 0x392   : > { %v21788_v50 = vpop.f32.mrb[2].mxu1  ;;  %v5164_v41 = vsel %vm20031_vm6, %v15427_v35, %v5163_v24  ;;  %v15428_v24 = vrot.slane %v5066_v5, 9  ;;  %v5179_v35 = vrot.slane %v5177_v33, 4 }
 0x393   : > { %v21791_v29 = vpop.f32.mrb[3].mxu1 }
 0x396   : > { %17135 = vmatmul.mubr.msk.bf16.vlgmr.msra.gmra.mrb[32].mxu0 %vm4546_vm0, %v15436_v53  ;;  %v5146_v53 = vsel %vm20031_vm6, %v5144_v59, %v5145_v31  ;;  %v18963_v59 = vld [vmem:[%s19607_s11] sm:$0xff]  ;;  %v5167_v31 = vsel %vm20031_vm6, %v5165_v38, %v5166_v32  ;;  %v25312_v38 = vld [vmem:[#allocation33_spill] sm:$0xff]  ;;  %v18966_v32 = vld [vmem:[%s19607_s11 + $0x18] sm:$0xff] }
 0x397   : > { %17167 = vmatpush3.bf16.msra.mxu0 %v21697_v20  ;;  %17138 = vmatprep.mubr.msk.bf16.mxu0 %vm4546_vm0, %v15437_v3  ;;  %v5156_v3 = vrot.slane %v21479_v52, 5  ;;  %v15440_v34 = vcombine.low %v5143_v43, %v5146_v53  ;;  %v15426_v52 = vrot.slane %v5064_v7, 9  ;;  %v5067_v43 = vld [vmem:[#allocation2 + $0x78] sm:$0xe]  ;;  %v15443_v48 = vcombine.low %v5164_v41, %v5167_v31 }
 0x398   : > { %17168 = vmatprep.subr.bf16.mxu0 %v18676_v2  ;;  %v21807_v20 = vpop.f32.mrb[4].mxu1  ;;  %8960 = vrot.lane.b32.xlu0 %v18963_v59, %s19316_s27  ;;  %v5180_v1 = vrot.slane %v25312_v38, 5  ;;  %v5184_v59 = vrot.slane %v21574_v14, 5  ;;  %v18967_v41 = vld [vmem:[%s19607_s11 + $0x20] sm:$0xff]  ;;  %v5069_v14 = vld [vmem:[#allocation2 + $0x90] sm:$0xe] }
 0x399   : > { %v21809_v25 = vpop.f32.mrb[5].mxu1  ;;  %v5158_v11 = vrot.slane %v5156_v3, 4  ;;  %8966 = vrot.lane.b32.xlu1 %v18966_v32, %s19316_s27  ;;  %v18969_v32 = vld [vmem:[%s19607_s11 + $0x30] sm:$0xff] }
 0x39a   : > { %v21811_v40 = vpop.f32.mrb[6].mxu1  ;;  %v5181_v5 = vsel %vm20031_vm6, %v5179_v35, %v5180_v1  ;;  %v25316_v35 = vld [vmem:[#allocation36_spill] sm:$0xff] }
 0x39b   : > { %17169 = vmatpush3.bf16.msra.mxu0 %v18676_v2  ;;  %v21814_v15 = vpop.f32.mrb[7].mxu1  ;;  %v5187_v38 = vrot.slane %v25316_v35, 5  ;;  %v18971_v35 = vld [vmem:[%s19607_s11 + $0x40] sm:$0xff] }
 0x39c   : > { %17202 = vmatprep.subr.bf16.mxu0 %v21817_v44 }
 0x39e   : > { %17139 = vmatmul.mubr.msk.bf16.gmra.mrb[36].mxu0 %vm4546_vm0, %v15438_v39  ;;  %v5157_v39 = vsel %vm20031_vm6, %v15426_v52, %v5156_v3 }
 0x39f   : > { %17142 = vmatprep.mubr.msk.bf16.mxu0 %vm4546_vm0, %v15439_v63  ;;  %v5160_v63 = vsel %vm20031_vm6, %v5158_v11, %v5159_v30  ;;  %v18965_v11 = vld [vmem:[%s19607_s11 + $0x8] sm:$0xff]  ;;  %v15429_v30 = vrot.slane %v5067_v43, 9  ;;  %v5191_v43 = vrot.slane %v21584_v42, 5 }
 0x3a0   : > { %v21832_v18 = vpop.f32.mrb[8].mxu1  ;;  %v15442_v49 = vcombine.low %v5157_v39, %v5160_v63  ;;  %8962 = vrot.lane.b32.xlu0 %v18965_v11, %s19316_s27  ;;  %v5171_v39 = vsel %vm20031_vm6, %v15428_v24, %v5170_v10  ;;  %v18968_v10 = vld [vmem:[%s19607_s11 + $0x28] sm:$0xff]  ;;  %v15430_v11 = vrot.slane %v5068_v26, 9  ;;  %v5070_v26 = vld [vmem:[#allocation2 + $0x9c] sm:$0xe] }
 0x3a1   : > { %v21834_v17 = vpop.f32.mrb[9].mxu1  ;;  %v5178_v31 = vsel %vm20031_vm6, %v15429_v30, %v5177_v33  ;;  %8970 = vrot.lane.b32.xlu1 %v18968_v10, %s19316_s27  ;;  %v5186_v30 = vrot.slane %v5184_v59, 4  ;;  %v15431_v10 = vrot.slane %v5069_v14, 9  ;;  %v5198_v14 = vrot.slane %v25288_v22, 5  ;;  %v21939_v22 = vld [vmem:[%s24855_s5] ss:$0 sm:$0xff] }
 0x3a2   : > { %v21836_v2 = vpop.f32.mrb[10].mxu1  ;;  %v15445_v42 = vcombine.low %v5178_v31, %v5181_v5  ;;  %v5185_v31 = vsel %vm20031_vm6, %v15430_v11, %v5184_v59  ;;  %v5071_v11 = vld [vmem:[#allocation2 + $0xa8] sm:$0xe] }
 0x3a3   : > { %v21839_v16 = vpop.f32.mrb[11].mxu1  ;;  %v5188_v5 = vsel %vm20031_vm6, %v5186_v30, %v5187_v38  ;;  %v15432_v38 = vrot.slane %v5070_v26, 9  ;;  %v18974_v26 = vld [vmem:[%s19607_s11 + $0x58] sm:$0xff] }
 0x3a4   : > { %8968 = vrot.lane.b32.xlu0 %v18967_v41, %s19316_s27 }
 0x3a5   : > { %8974 = vrot.lane.b32.xlu1 %v18970_v62, %s19316_s27 }
 0x3a6   : > { %17143 = vmatmul.mubr.msk.bf16.gmra.mrb[40].mxu0 %vm4546_vm0, %v15440_v34  ;;  %v25310_v34 = vld [vmem:[#allocation31_spill] sm:$0xff] }
 0x3a7   : > { %17146 = vmatprep.mubr.msk.bf16.mxu0 %vm4546_vm0, %v15441_v27  ;;  %v5173_v27 = vrot.slane %v25310_v34, 5 }
 0x3a8   : > { %v21856_v23 = vpop.f32.mrb[12].mxu1  ;;  %8972 = vrot.lane.b32.xlu0 %v18969_v32, %s19316_s27  ;;  %v5192_v32 = vsel %vm20031_vm6, %v15431_v10, %v5191_v43 }
 0x3a9   : > { %v21860_v0 = vpop.f32.mrb[0].mxu0  ;;  %v21862_v53 = vpop.f32.mrb[13].mxu1  ;;  %v5174_v63 = vsel %vm20031_vm6, %v5172_v54, %v5173_v27 }
 0x3aa   : > { %25307 = vst [vmem:[#allocation28_spill] sm:$0xff] %v21860_v0  ;;  %v21864_v3 = vpop.f32.mrb[1].mxu0  ;;  %v21866_v51 = vpop.f32.mrb[14].mxu1  ;;  %v15444_v33 = vcombine.low %v5171_v39, %v5174_v63  ;;  %v5193_v39 = vrot.slane %v5191_v43, 4  ;;  %v25318_v63 = vld [vmem:[#allocation39_spill] sm:$0xff]  ;;  %v15446_v43 = vcombine.low %v5185_v31, %v5188_v5  ;;  %v5208_v5 = vrot.slane %v21653_v57, 5 }
 0x3ab   : > { %25308 = vst [vmem:[#allocation29_spill] sm:$0xff] %v21864_v3  ;;  %v21868_v7 = vpop.f32.mrb[2].mxu0  ;;  %v21871_v52 = vpop.f32.mrb[15].mxu1  ;;  %v5194_v55 = vrot.slane %v25318_v63, 5  ;;  %v25321_v63 = vld [vmem:[#allocation46_spill] sm:$0xff]  ;;  %v18975_v57 = vld [vmem:[%s19607_s11 + $0x60] sm:$0xff] }
 0x3ac   : > { %25309 = vst [vmem:[#allocation32_spill] sm:$0xff] %v21868_v7  ;;  %v21875_v12 = vpop.f32.mrb[3].mxu0  ;;  %8976 = vrot.lane.b32.xlu0 %v18971_v35, %s19316_s27  ;;  %v5201_v35 = vrot.slane %v25321_v63, 5 }
 0x3ad   : > { %25311 = vst [vmem:[#allocation34_spill] sm:$0xff] %v21875_v12  ;;  %v5195_v62 = vsel %vm20031_vm6, %v5193_v39, %v5194_v55  ;;  %v5200_v39 = vrot.slane %v5198_v14, 4  ;;  %v18692_v12 = vld [vmem:[#allocation2 + $0xc0] sm:$0xff]  }
 0x3ae   : > { %17147 = vmatmul.mubr.msk.bf16.gmra.mrb[44].mxu0 %vm4546_vm0, %v15442_v49 }
 0x3af   : > { %17150 = vmatprep.mubr.msk.bf16.mxu0 %vm4546_vm0, %v15443_v48 }
 0x3b0   : > { %v21894_v49 = vpop.f32.mrb[16].mxu1 }
 0x3b1   : > { %v21898_v48 = vpop.f32.mrb[4].mxu0  ;;  %v21900_v24 = vpop.f32.mrb[17].mxu1 }
 0x3b2   : > { %25313 = vst [vmem:[#allocation35_spill] sm:$0xff] %v21898_v48  ;;  %v21902_v54 = vpop.f32.mrb[5].mxu0  ;;  %v21904_v34 = vpop.f32.mrb[18].mxu1  ;;  %v18996_v48 = vld [vmem:[#allocation2 + $0x28] sm:$0xf] }
 0x3b3   : > { %25314 = vst [vmem:[#allocation51_spill] sm:$0xff] %v21902_v54  ;;  %v21906_v27 = vpop.f32.mrb[6].mxu0  ;;  %v21909_v1 = vpop.f32.mrb[19].mxu1  ;;  %v6003_v19 = vshrl.u32 %v18996_v48, 16 }
 0x3b4   : > { %25315 = vst [vmem:[#allocation52_spill] sm:$0xff] %v21906_v27  ;;  %v21913_v41 = vpop.f32.mrb[7].mxu0  ;;  %v5899_v27 = vld [vmem:[#allocation2 + $0x24] sm:$0xf] }
 0x3b5   : > { %25317 = vst [vmem:[#allocation37_spill] sm:$0xff] %v21913_v41  ;;  %v5993_v54 = vshll.u32 %v5899_v27, 16 }
 0x3b6   : > { %17151 = vmatmul.mubr.msk.bf16.gmra.mrb[48].mxu0 %vm4546_vm0, %v15444_v33  ;;  %v5205_v33 = vrot.slane %v21624_v36, 5  ;;  %v15447_v36 = vcombine.low %v5192_v32, %v5195_v62  ;;  %v5199_v62 = vsel %vm20031_vm6, %v15432_v38, %v5198_v14 }
 0x3b7   : > { %17154 = vmatprep.mubr.msk.bf16.mxu0 %vm4546_vm0, %v15445_v42  ;;  %v18972_v42 = vld [vmem:[%s19607_s11 + $0x48] sm:$0xff] }
 0x3b8   : > { %8978 = vrot.lane.b32.xlu1 %v18972_v42, %s19316_s27  ;;  %v18973_v42 = vld [vmem:[%s19607_s11 + $0x50] sm:$0xff]  ;;  %v5207_v31 = vrot.slane %v5205_v33, 4 }
 0x3b9   : > { %v21934_v59 = vpop.f32.mrb[8].mxu0  ;;  %8980 = vrot.lane.b32.xlu0 %v18973_v42, %s19316_s27  ;;  %v18977_v42 = vld [vmem:[%s19607_s11 + $0x70] sm:$0xff] }
 0x3ba   : > { %25319 = vst [vmem:[#allocation40_spill] sm:$0xff] %v21934_v59  ;;  %v3879_v30 = vpop.f32.mrb[9].mxu0  ;;  %v15433_v59 = vrot.slane %v5071_v11, 9  ;;  %v5202_v11 = vsel %vm20031_vm6, %v5200_v39, %v5201_v35 }
 0x3bb   : > { %v21942_v10 = vadd.f32 %v21939_v22, %v3879_v30  ;;  %v17037_v55 = vpop.f32.mrb[10].mxu0  ;;  %v5212_v30 = vrot.slane %v21645_v60, 5  ;;  %v15448_v60 = vcombine.low %v5199_v62, %v5202_v11  ;;  %v18979_v62 = vld [vmem:[%s19607_s11 + $0x80] sm:$0xff]  ;;  %v18980_v11 = vld [vmem:[%s19607_s11 + $0x88] sm:$0xff] }
 0x3bc   : > { %v21948_v13 = vadd.f32 %v17037_v55, %v21939_v22  ;;  %v3882_v58 = vpop.f32.mrb[11].mxu0  ;;  %8982 = vrot.lane.b32.xlu1 %v18974_v26, %s19316_s27  ;;  %v5072_v55 = vld [vmem:[#allocation2 + $0xb4] sm:$0xe] }
 0x3bd   : > { %25320 = vst [vmem:[#allocation38_spill] sm:$0xff] %v21942_v10  ;;  %v21954_v32 = vadd.f32 %v21939_v22, %v3882_v58  ;;  %8984 = vrot.lane.b32.xlu0 %v18975_v57, %s19316_s27  ;;  %v5206_v58 = vsel %vm20031_vm6, %v15433_v59, %v5205_v33  ;;  %v15434_v35 = vrot.slane %v5072_v55, 9  ;;  %v5214_v33 = vrot.slane %v5212_v30, 4  ;;  %v18688_v10 = vld [vmem:[#allocation2 + $0x90] sm:$0xff]  }
 0x3be   : > { %25322 = vst [vmem:[#allocation41_spill] sm:$0xff] %v21948_v13  ;;  %17155 = vmatmul.mubr.msk.bf16.gmra.mrb[52].mxu0 %vm4546_vm0, %v15446_v43  ;;  %v5209_v43 = vsel %vm20031_vm6, %v5207_v31, %v5208_v5  ;;  %v5215_v59 = vrot.slane %v21667_v6, 5  ;;  %v18978_v5 = vld [vmem:[%s19607_s11 + $0x78] sm:$0xff] }
 0x3bf   : > { %25323 = vst [vmem:[#allocation45_spill] sm:$0xff] %v21954_v32  ;;  %17158 = vmatprep.mubr.msk.bf16.mxu0 %vm4546_vm0, %v15447_v36  ;;  %v18976_v36 = vld [vmem:[%s19607_s11 + $0x68] sm:$0xff]  ;;  %v15449_v63 = vcombine.low %v5206_v58, %v5209_v43  ;;  %v5213_v26 = vsel %vm20031_vm6, %v15434_v35, %v5212_v30  ;;  %v18990_v32 = vld [vmem:[%s19607_s11 + $0xd0] sm:$0xff] }
 0x3c0   : > { %8986 = vrot.lane.b32.xlu1 %v18976_v36, %s19316_s27  ;;  %v5216_v6 = vsel %vm20031_vm6, %v5214_v33, %v5215_v59  ;;  %v18677_v36 = vld [vmem:[#allocation2 + $0xc] sm:$0xff]  }
 0x3c1   : > { %v21971_v14 = vpop.f32.mrb[12].mxu0  ;;  %8988 = vrot.lane.b32.xlu0 %v18977_v42, %s19316_s27  ;;  %v15450_v55 = vcombine.low %v5213_v26, %v5216_v6  ;;  %v18982_v33 = vld [vmem:[%s19607_s11 + $0x98] sm:$0xff]  ;;  %v18983_v42 = vld [vmem:[%s19607_s11 + $0xa0] sm:$0xff] }
 0x3c2   : > { %v21973_v38 = vpop.f32.mrb[13].mxu0 }
 0x3c3   : > { %v21975_v39 = vpop.f32.mrb[14].mxu0 }
 0x3c4   : > { %v21980_v31 = vpop.f32.mrb[15].mxu0  ;;  %8990 = vrot.lane.b32.xlu1 %v18978_v5, %s19316_s27  ;;  %v18984_v5 = vld [vmem:[%s19607_s11 + $0xa8] sm:$0xff] }
 0x3c5   : > { %8992 = vrot.lane.b32.xlu0 %v18979_v62, %s19316_s27 }
 0x3c6   : > { %17159 = vmatmul.mubr.msk.bf16.gmra.mrb[56].mxu0 %vm4546_vm0, %v15448_v60  ;;  %v18981_v60 = vld [vmem:[%s19607_s11 + $0x90] sm:$0xff] }
 0x3c7   : > { %17162 = vmatprep.mubr.msk.bf16.mxu0 %vm4546_vm0, %v15449_v63 }
 0x3c8   : > { %8994 = vrot.lane.b32.xlu1 %v18980_v11, %s19316_s27  ;;  %v18678_v11 = vld [vmem:[#allocation2 + $0x18] sm:$0xff]  }
 0x3c9   : > { %v17044_v57 = vpop.f32.mrb[16].mxu0  ;;  %8996 = vrot.lane.b32.xlu0 %v18981_v60, %s19316_s27 }
 0x3ca   : > { %v21995_v58 = vadd.f32 %v17044_v57, %v21939_v22  ;;  %v21997_v43 = vpop.f32.mrb[17].mxu0 }
 0x3cb   : > { %v17045_v30 = vpop.f32.mrb[18].mxu0 }
 0x3cc   : > { %25324 = vst [vmem:[#allocation57_spill] sm:$0xff] %v21995_v58  ;;  %v22002_v63 = vadd.f32 %v17045_v30, %v21939_v22  ;;  %v3914_v35 = vpop.f32.mrb[19].mxu0  ;;  %8998 = vrot.lane.b32.xlu1 %v18982_v33, %s19316_s27  ;;  %v18679_v30 = vld [vmem:[#allocation2 + $0x24] sm:$0xff]   ;;  %v18986_v33 = vld [vmem:[%s19607_s11 + $0xb8] sm:$0xff] }
 0x3cd   : > { %v22007_v59 = vadd.f32 %v21939_v22, %v3914_v35  ;;  %9000 = vrot.lane.b32.xlu0 %v18983_v42, %s19316_s27 }
 0x3ce   : > { %25325 = vst [vmem:[#allocation19_spill] sm:$0xff] %v22002_v63  ;;  %17163 = vmatmul.mubr.msk.bf16.gmra.mrb[60].mxu0 %vm4546_vm0, %v15450_v55 }
 0x3cf   : > { %25326 = vst [vmem:[#allocation20_spill] sm:$0xff] %v22007_v59  ;;  %17170 = vmatprep.mubr.msk.bf16.mxu0 %vm4546_vm0, %v18677_v36  ;;  %v18985_v36 = vld [vmem:[%s19607_s11 + $0xb0] sm:$0xff]  ;;  %v5902_v59 = vld [vmem:[#allocation2 + $0x30] sm:$0xf] }
 0x3d0   : > { %9002 = vrot.lane.b32.xlu1 %v18984_v5, %s19316_s27  ;;  %v18987_v5 = vld [vmem:[#allocation9 + $0x48] sm:$0xff]   ;;  %v6014_v4 = vshrl.u32 %v5902_v59, 16 }
 0x3d1   : > { %v17048_v26 = vpop.f32.mrb[20].mxu0  ;;  %9004 = vrot.lane.b32.xlu0 %v18985_v36, %s19316_s27 }
 0x3d2   : > { %v22016_v6 = vadd.f32 %v17048_v26, %v21939_v22  ;;  %v3927_v62 = vpop.f32.mrb[21].mxu0  ;;  %v18988_v26 = vld [vmem:[%s19607_s11 + $0xc0] sm:$0xff] }
 0x3d3   : > { %v22019_v57 = vadd.f32 %v21939_v22, %v3927_v62  ;;  %v17049_v55 = vpop.f32.mrb[22].mxu0 }
 0x3d4   : > { %25327 = vst [vmem:[#allocation21_spill] sm:$0xff] %v22016_v6  ;;  %v22024_v60 = vadd.f32 %v17049_v55, %v21939_v22  ;;  %v3930_v35 = vpop.f32.mrb[23].mxu0  ;;  %9006 = vrot.lane.b32.xlu1 %v18986_v33, %s19316_s27  ;;  %v18989_v55 = vld [vmem:[%s19607_s11 + $0xc8] sm:$0xff]  ;;  %v5995_v6 = vrot.slane %v5993_v54, 5 }
 0x3d5   : > { %25328 = vst [vmem:[#allocation23_spill] sm:$0xff] %v22019_v57  ;;  %v22029_v42 = vadd.f32 %v21939_v22, %v3930_v35  ;;  %9008 = vrot.lane.b32.xlu0 %v18988_v26, %s19316_s27  ;;  %v18680_v35 = vld [vmem:[#allocation2 + $0x30] sm:$0xff]   ;;  %v18681_v33 = vld [vmem:[#allocation2 + $0x3c] sm:$0xff]  }
 0x3d6   : > { %25329 = vst [vmem:[#allocation25_spill] sm:$0xff] %v22024_v60  ;;  %17171 = vmatmul.mubr.msk.bf16.vlgmr.msra.gmra.mrb[32].mxu0 %vm4546_vm0, %v18678_v11  ;;  %v18690_v60 = vld [vmem:[#allocation2 + $0xa8] sm:$0xff]  }
 0x3d7   : > { %25330 = vst [vmem:[#allocation27_spill] sm:$0xff] %v22029_v42  ;;  %17203 = vmatpush3.bf16.msra.mxu0 %v21817_v44  ;;  %17174 = vmatprep.mubr.msk.bf16.mxu0 %vm4546_vm0, %v18679_v30  ;;  %v18689_v42 = vld [vmem:[#allocation2 + $0x9c] sm:$0xff]  }
 0x3d8   : > { %17204 = vmatprep.subr.bf16.mxu0 %v18987_v5  ;;  %9010 = vrot.lane.b32.xlu1 %v18989_v55, %s19316_s27  ;;  %v18991_v55 = vld [vmem:[%s19607_s11 + $0xd8] sm:$0xff] }
 0x3d9   : > { %v17052_v62 = vpop.f32.mrb[24].mxu0  ;;  %9012 = vrot.lane.b32.xlu0 %v18990_v32, %s19316_s27 }
 0x3da   : > { %v22039_v36 = vadd.f32 %v17052_v62, %v21939_v22  ;;  %v3943_v11 = vpop.f32.mrb[25].mxu0 }
 0x3db   : > { %v22042_v44 = vadd.f32 %v21939_v22, %v3943_v11  ;;  %v17053_v30 = vpop.f32.mrb[26].mxu0  ;;  %17205 = vmatpush3.bf16.msra.mxu0 %v18987_v5  ;;  %v18992_v11 = vld [vmem:[%s19607_s11 + $0xe0] sm:$0xff] }
 0x3dc   : > { %25331 = vst [vmem:[#allocation30_spill] sm:$0xff] %v22039_v36  ;;  %v22045_v26 = vadd.f32 %v17053_v30, %v21939_v22  ;;  %v3946_v46 = vpop.f32.mrb[27].mxu0  ;;  %9014 = vrot.lane.b32.xlu1 %v18991_v55, %s19316_s27  ;;  %v18993_v30 = vld [vmem:[%s19607_s11 + $0xe8] sm:$0xff]  ;;  %v18995_v36 = vld [vmem:[#allocation2 + $0x1c] sm:$0xf] }
 0x3dd   : > { %25332 = vst [vmem:[#allocation31_spill] sm:$0xff] %v22042_v44  ;;  %v22050_v62 = vadd.f32 %v21939_v22, %v3946_v46  ;;  %9016 = vrot.lane.b32.xlu0 %v18992_v11, %s19316_s27  ;;  %v18682_v46 = vld [vmem:[#allocation2 + $0x48] sm:$0xff]   ;;  %v18683_v44 = vld [vmem:[#allocation2 + $0x54] sm:$0xff]   ;;  %v5979_v13 = vshrl.u32 %v18995_v36, 16 }
 0x3de   : > { %25333 = vst [vmem:[#allocation33_spill] sm:$0xff] %v22045_v26  ;;  %17175 = vmatmul.mubr.msk.bf16.gmra.mrb[36].mxu0 %vm4546_vm0, %v18680_v35 }
 0x3df   : > { %25334 = vst [vmem:[#allocation36_spill] sm:$0xff] %v22050_v62  ;;  %17178 = vmatprep.mubr.msk.bf16.mxu0 %vm4546_vm0, %v18681_v33 }
 0x3e0   : > { %9018 = vrot.lane.b32.xlu1 %v18993_v30, %s19316_s27  ;;  %v18685_v30 = vld [vmem:[#allocation2 + $0x6c] sm:$0xff]  }
 0x3e1   : > { %v17056_v5 = vpop.f32.mrb[28].mxu0 }
 0x3e2   : > { %v22061_v26 = vadd.f32 %v17056_v5, %v21939_v22  ;;  %v3959_v32 = vpop.f32.mrb[29].mxu0  ;;  %v18684_v5 = vld [vmem:[#allocation2 + $0x60] sm:$0xff]  }
 0x3e3   : > { %v22064_v62 = vadd.f32 %v21939_v22, %v3959_v32  ;;  %v17057_v55 = vpop.f32.mrb[30].mxu0  ;;  %v18686_v32 = vld [vmem:[#allocation2 + $0x78] sm:$0xff]  }
 0x3e4   : > { %25335 = vst [vmem:[#allocation39_spill] sm:$0xff] %v22061_v26  ;;  %v22067_v35 = vadd.f32 %v17057_v55, %v21939_v22  ;;  %v3962_v33 = vpop.f32.mrb[31].mxu0  ;;  %v18687_v26 = vld [vmem:[#allocation2 + $0x84] sm:$0xff]  }
 0x3e5   : > { %25336 = vst [vmem:[#allocation46_spill] sm:$0xff] %v22064_v62  ;;  %v22070_v11 = vadd.f32 %v21939_v22, %v3962_v33  ;;  %v5893_v62 = vld [vmem:[#allocation2 + $0xc] sm:$0xf] }
 0x3e6   : > { %25337 = vst [vmem:[#allocation59_spill] sm:$0xff] %v22067_v35  ;;  %17179 = vmatmul.mubr.msk.bf16.gmra.mrb[40].mxu0 %vm4546_vm0, %v18682_v46  ;;  %v5942_v55 = vshrl.u32 %v5893_v62, 16  ;;  %v5945_v33 = vshll.u32 %v5893_v62, 16  ;;  %v18994_v35 = vld [vmem:[#allocation2 + $0x10] sm:$0xf]  ;;  %v5981_v62 = vrot.slane %v5979_v13, 4 }
 0x3e7   : > { %25338 = vst [vmem:[#allocation60_spill] sm:$0xff] %v22070_v11  ;;  %17182 = vmatprep.mubr.msk.bf16.mxu0 %vm4546_vm0, %v18683_v44  ;;  %v5951_v11 = vshll.u32 %v18994_v35, 16  ;;  %v5955_v46 = vshrl.u32 %v18994_v35, 16  ;;  %v5975_v44 = vshll.u32 %v18995_v36, 16  ;;  %v5990_v35 = vshrl.u32 %v5899_v27, 16 }
 0x3e8   : > { %v5944_v41 = vrot.slane %v5942_v55, 4  ;;  %v5999_v36 = vshll.u32 %v18996_v48, 16  ;;  %v6005_v27 = vrot.slane %v6003_v19, 4 }
 0x3e9   : > { %v22078_v61 = vrot.slane %v5951_v11, 5  ;;  %v5957_v8 = vrot.slane %v5955_v46, 4  ;;  %v5992_v13 = vrot.slane %v5990_v35, 4  ;;  %v19000_v35 = vld [vmem:[#allocation2 + $0x2c] sm:$0x1] }
 0x3ea   : > { %v6009_v19 = vshll.u32 %v19000_v35, 16 }
 0x3eb   : > { %v5958_v11 = vor.u32 %v5957_v8, %v22078_v61 }
 0x3ec   : > { %v6011_v56 = vrot.slane %v6009_v19, 5 }
 0x3ed   : > { %v5959_v63 = vrot.slane %v5958_v11, 4 }
 0x3ee   : > { %17183 = vmatmul.mubr.msk.bf16.gmra.mrb[44].mxu0 %vm4546_vm0, %v18684_v5  ;;  %v5896_v5 = vld [vmem:[#allocation2 + $0x18] sm:$0xf] }
 0x3ef   : > { %17186 = vmatprep.mubr.msk.bf16.mxu0 %vm4546_vm0, %v18685_v30  ;;  %v5947_v30 = vrot.slane %v5945_v33, 5  ;;  %v5969_v45 = vshll.u32 %v5896_v5, 16  ;;  %v18997_v33 = vld [vmem:[#allocation2 + $0x14] sm:$0x1] }
 0x3f0   : > { %v5961_v46 = vshll.u32 %v18997_v33, 16  ;;  %v6017_v33 = vshll.u32 %v5902_v59, 16 }
 0x3f1   : > { %v5948_v55 = vor.u32 %v5947_v30, %v5944_v41  ;;  %v18998_v41 = vld [vmem:[#allocation2 + $0x20] sm:$0x1] }
 0x3f2   : > { %v5985_v30 = vshll.u32 %v18998_v41, 16  ;;  %v6016_v41 = vrot.slane %v6014_v4, 4  ;;  %v6019_v35 = vrot.slane %v6017_v33, 5 }
 0x3f3   : > { %v5949_v48 = vrot.slane %v5948_v55, 4 }
 0x3f4   : > { %v5987_v11 = vrot.slane %v5985_v30, 5 }
 0x3f5   : > { %v5954_v55 = vsel %vm19659_vm2, %v5949_v48, %v22078_v61 }
 0x3f6   : > { %17187 = vmatmul.mubr.msk.bf16.gmra.mrb[48].mxu0 %vm4546_vm0, %v18686_v32  ;;  %v5966_v32 = vshrl.u32 %v5896_v5, 16  ;;  %v5971_v5 = vrot.slane %v5969_v45, 5  ;;  %v5905_v45 = vld [vmem:[#allocation2 + $0x3c] sm:$0xf] }
 0x3f7   : > { %17190 = vmatprep.mubr.msk.bf16.mxu0 %vm4546_vm0, %v18687_v26  ;;  %v22080_v26 = vrot.slane %v5975_v44, 5 }
 0x3f8   : > { %v5968_v57 = vrot.slane %v5966_v32, 4  ;;  %v6023_v32 = vshll.u32 %v18999_v37, 16 }
 0x3f9   : > { %v5982_v44 = vor.u32 %v5981_v62, %v22080_v26  ;;  %v5996_v62 = vor.u32 %v5995_v6, %v5992_v13 }
 0x3fa   : > { %v5972_v8 = vor.u32 %v5971_v5, %v5968_v57  ;;  %v6041_v5 = vshll.u32 %v5905_v45, 16 }
 0x3fb   : > { %v5983_v57 = vrot.slane %v5982_v44, 4 }
 0x3fc   : > { %v6043_v0 = vrot.slane %v6041_v5, 5 }
 0x3fd   : > { %v5988_v4 = vsel %vm19659_vm2, %v5983_v57, %v5987_v11 }
 0x3fe   : > { %17191 = vmatmul.mubr.msk.bf16.gmra.mrb[52].mxu0 %vm4546_vm0, %v18688_v10  ;;  %v22086_v10 = vrot.slane %v5999_v36, 5  ;;  %v6027_v36 = vshrl.u32 %v18999_v37, 16  ;;  %v6025_v37 = vrot.slane %v6023_v32, 5 }
 0x3ff   : > { %17194 = vmatprep.mubr.msk.bf16.mxu0 %vm4546_vm0, %v18689_v42  ;;  %v5963_v42 = vrot.slane %v5961_v46, 5  ;;  %v6038_v46 = vshrl.u32 %v5905_v45, 16 }
 0x400   : > { %v6006_v54 = vor.u32 %v6005_v27, %v22086_v10  ;;  %v5973_v27 = vrot.slane %v5972_v8, 4  ;;  %v6029_v3 = vrot.slane %v6027_v36, 4  ;;  %v19002_v8 = vld [vmem:[#allocation2 + $0x38] sm:$0x1]  ;;  %v19003_v36 = vld [vmem:[#allocation2 + $0x4c] sm:$0xf] }
 0x401   : > { %v5964_v59 = vsel %vm19659_vm2, %v5959_v63, %v5963_v42  ;;  %v6040_v48 = vrot.slane %v6038_v46, 4  ;;  %v5908_v42 = vld [vmem:[#allocation2 + $0x48] sm:$0xf]  ;;  %v6033_v33 = vshll.u32 %v19002_v8, 16  ;;  %v19004_v46 = vld [vmem:[#allocation2 + $0x44] sm:$0x1] }
 0x402   : > { %v6007_v7 = vrot.slane %v6006_v54, 4  ;;  %v15503_v61 = vcombine.low %v5954_v55, %v5964_v59  ;;  %v5978_v30 = vsel %vm19659_vm2, %v5973_v27, %v22080_v26  ;;  %v6030_v54 = vor.u32 %v6029_v3, %v6025_v37 }
 0x403   : > { %v6062_v19 = vshrl.u32 %v5908_v42, 16  ;;  %v6065_v26 = vshll.u32 %v5908_v42, 16  ;;  %v6071_v55 = vshll.u32 %v19003_v36, 16  ;;  %v6075_v59 = vshrl.u32 %v19003_v36, 16  ;;  %v19005_v42 = vld [vmem:[#allocation2 + $0x50] sm:$0x1] }
 0x404   : > { %v6012_v45 = vsel %vm19659_vm2, %v6007_v7, %v6011_v56  ;;  %v6044_v57 = vor.u32 %v6043_v0, %v6040_v48  ;;  %v15504_v5 = vcombine.low %v5978_v30, %v5988_v4  ;;  %v6081_v30 = vshll.u32 %v19005_v42, 16 }
 0x405   : > { %v6064_v27 = vrot.slane %v6062_v19, 4  ;;  %v6067_v56 = vrot.slane %v6065_v26, 5  ;;  %v6073_v7 = vrot.slane %v6071_v55, 5  ;;  %v6077_v3 = vrot.slane %v6075_v59, 4  ;;  %v22129_v55 = vpop.permute.xlu1 %8964 }
 0x406   : > { %17195 = vmatmul.mubr.msk.bf16.gmra.mrb[56].mxu0 %vm4546_vm0, %v18690_v60  ;;  %v19001_v60 = vld [vmem:[#allocation2 + $0x40] sm:$0xf] }
 0x407   : > { %17198 = vmatprep.mubr.msk.bf16.mxu0 %vm4546_vm0, %v18691_v9  ;;  %v6047_v6 = vshll.u32 %v19001_v60, 16  ;;  %v6051_v13 = vshrl.u32 %v19001_v60, 16  ;;  %v5997_v9 = vrot.slane %v5996_v62, 4  ;;  %v6020_v62 = vor.u32 %v6019_v35, %v6016_v41 }
 0x408   : > { %v6045_v41 = vrot.slane %v6044_v57, 4  ;;  %v6068_v48 = vor.u32 %v6067_v56, %v6064_v27 }
 0x409   : > { %v6049_v63 = vrot.slane %v6047_v6, 5  ;;  %v6053_v44 = vrot.slane %v6051_v13, 4  ;;  %v6002_v32 = vsel %vm19659_vm2, %v5997_v9, %v22086_v10  ;;  %v6021_v6 = vrot.slane %v6020_v62, 4 }
 0x40a   : > { %v15505_v60 = vcombine.low %v6002_v32, %v6012_v45  ;;  %v6031_v10 = vrot.slane %v6030_v54, 4  ;;  %v6035_v13 = vrot.slane %v6033_v33, 5  ;;  %v6069_v45 = vrot.slane %v6068_v48, 4 }
 0x40b   : > { %v6054_v11 = vor.u32 %v6053_v44, %v6049_v63  ;;  %v6026_v0 = vsel %vm19659_vm2, %v6021_v6, %v6025_v37  ;;  %v6078_v44 = vor.u32 %v6077_v3, %v6073_v7  ;;  %v6050_v4 = vsel %vm19659_vm2, %v6045_v41, %v6049_v63  ;;  %v22125_v63 = vpop.permute.xlu0 %8960 }
 0x40c   : > { %v6083_v37 = vrot.slane %v6081_v30, 5  ;;  %v6074_v54 = vsel %vm19659_vm2, %v6069_v45, %v6073_v7  ;;  %v22155_v7 = vpop.permute.xlu1 %8966 }
 0x40d   : > { %v6055_v35 = vrot.slane %v6054_v11, 4  ;;  %v6079_v62 = vrot.slane %v6078_v44, 4  ;;  %v22135_v11 = vadd.f32 %v21971_v14, %v21939_v22 }
 0x40e   : > { %17199 = vmatmul.mubr.msk.bf16.gmra.mrb[60].mxu0 %vm4546_vm0, %v18692_v12  ;;  %v6057_v12 = vshll.u32 %v19004_v46, 16 }
 0x40f   : > { %17206 = vmatprep.mubr.msk.bf16.mxu0 %vm4546_vm0, %v15503_v61  ;;  %v6036_v61 = vsel %vm19659_vm2, %v6031_v10, %v6035_v13  ;;  %v6084_v19 = vsel %vm19659_vm2, %v6079_v62, %v6083_v37  ;;  %25339 = vst [vmem:[#allocation61_spill] sm:$0xff] %v22135_v11  ;;  %v22145_v10 = vadd.f32 %v21975_v39, %v21939_v22 }
 0x410   : > { %v6059_v9 = vrot.slane %v6057_v12, 5  ;;  %v15506_v33 = vcombine.low %v6026_v0, %v6036_v61  ;;  %v15508_v26 = vcombine.low %v6074_v54, %v6084_v19 }
 0x411   : > { %25341 = vst [vmem:[#allocation63_spill] sm:$0xff] %v22145_v10 }
 0x412   : > { %v6060_v8 = vsel %vm19659_vm2, %v6055_v35, %v6059_v9  ;;  %v22127_v36 = vpop.permute.xlu0 %8962 }
 0x413   : > { %v15507_v32 = vcombine.low %v6050_v4, %v6060_v8  ;;  %v22169_v42 = vpop.permute.xlu1 %8970 }
 0x416   : > { %17207 = vmatmul.mubr.msk.bf16.vlgmr.msra.gmra.mrb[32].mxu0 %vm4546_vm0, %v15504_v5  ;;  %v22131_v57 = vpop.permute.xlu0 %8968  ;;  %v22140_v5 = vadd.f32 %v21939_v22, %v21973_v38 }
 0x417   : > { %17210 = vmatprep.mubr.msk.bf16.mxu0 %vm4546_vm0, %v15505_v60 }
 0x418   : > { %25340 = vst [vmem:[#allocation62_spill] sm:$0xff] %v22140_v5 }
 0x41a   : > { %v22159_v41 = vpop.permute.xlu0 %8972 }
 0x41e   : > { %17211 = vmatmul.mubr.msk.bf16.gmra.mrb[36].mxu0 %vm4546_vm0, %v15506_v33  ;;  %v22178_v33 = vpop.permute.xlu0 %8976 }
 0x41f   : > { %17214 = vmatprep.mubr.msk.bf16.mxu0 %vm4546_vm0, %v15507_v32  ;;  %v22180_v32 = vpop.permute.xlu1 %8974 }
 0x426   : > { %17215 = vmatmul.mubr.msk.bf16.gmra.mrb[40].mxu0 %vm4546_vm0, %v15508_v26 }
 0x4c1   : > { %v17184_v59 = vpop.f32.mrb[44].mxu0 }
 0x4c2   : > { %v17722_v46 = vadd.f32 %v21784_v21, %v17184_v59  ;;  %v5782_v12 = vpop.f32.mrb[45].mxu0  ;;  %v22151_v21 = vadd.f32 %v21939_v22, %v21980_v31 }
 0x4c3   : > { %v17723_v60 = vadd.f32 %v21786_v47, %v5782_v12  ;;  %v17185_v6 = vpop.f32.mrb[46].mxu0 }
 0x4c4   : > { %v8718_v13 = vadd.f32 %v17722_v46, %v22135_v11  ;;  %v17724_v27 = vadd.f32 %v21788_v50, %v17185_v6  ;;  %v5785_v14 = vpop.f32.mrb[47].mxu0  ;;  %25342 = vst [vmem:[#allocation64_spill] sm:$0xff] %v22151_v21  ;;  %v22196_v6 = vpop.permute.xlu1 %8978 }
 0x4c5   : > { %v8716_v56 = vadd.f32 %v17723_v60, %v22140_v5  ;;  %v17725_v38 = vadd.f32 %v21791_v29, %v5785_v14  ;;  %v22166_v29 = vadd.f32 %v21939_v22, %v21997_v43 }
 0x4c6   : > { %v15719_v47 = vmul.f32 -1.442695, %v8718_v13  ;;  %v8719_v3 = vadd.f32 %v17724_v27, %v22145_v10 }
 0x4c7   : > { %v8717_v39 = vadd.f32 %v17725_v38, %v22151_v21  ;;  %v15717_v50 = vmul.f32 -1.442695, %v8716_v56  ;;  %25343 = vst [vmem:[#allocation65_spill] sm:$0xff] %v22166_v29  ;;  %v25361_v21 = vld [vmem:[#allocation43_spill] sm:$0xff] }
 0x4c8   : > { %18748 = vpow2.f32 %v15719_v47  ;;  %v15720_v0 = vmul.f32 -1.442695, %v8719_v3 }
 0x4c9   : > { %v15718_v35 = vmul.f32 -1.442695, %v8717_v39  ;;  %v17188_v9 = vpop.f32.mrb[48].mxu0 }
 0x4ca   : > { %v22162_v31 = vadd.f32 %v21807_v20, %v17188_v9  ;;  %v5798_v61 = vpop.f32.mrb[49].mxu0 }
 0x4cb   : > { %18750 = vpow2.f32 %v15718_v35  ;;  %v17727_v48 = vadd.f32 %v21809_v25, %v5798_v61  ;;  %v17189_v44 = vpop.f32.mrb[50].mxu0  ;;  %v22207_v35 = vpop.permute.xlu1 %8982 }
 0x4cc   : > { %18752 = vpow2.f32 %v15717_v50  ;;  %v22172_v30 = vadd.f32 %v21811_v40, %v17189_v44  ;;  %v5801_v4 = vpop.f32.mrb[51].mxu0 }
 0x4cd   : > { %v8720_v8 = vadd.f32 %v17727_v48, %v22166_v29  ;;  %v22176_v20 = vadd.f32 %v21814_v15, %v5801_v4  ;;  %18754 = vpow2.f32 %v15720_v0  ;;  %v22188_v15 = vpop.permute.xlu0 %8980  ;;  %v25360_v29 = vld [vmem:[#allocation19_spill] sm:$0xff] }
 0x4cf   : > { %v15721_v43 = vmul.f32 -1.442695, %v8720_v8  ;;  %v8987_v4 = vpop.permute.xlu1 %8986 }
 0x4d1   : > { %v17192_v25 = vpop.f32.mrb[52].mxu0  ;;  %18756 = vpow2.f32 %v15721_v43  ;;  %v8985_v14 = vpop.permute.xlu0 %8984 }
 0x4d2   : > { %v18749_v45 = vpop.eup %18748  ;;  %v22183_v62 = vadd.f32 %v21832_v18, %v17192_v25  ;;  %v5814_v37 = vpop.f32.mrb[53].mxu0 }
 0x4d3   : > { %v8846_v40 = vadd.f32 1.0, %v18749_v45  ;;  %v22186_v54 = vadd.f32 %v21834_v17, %v5814_v37  ;;  %v17193_v19 = vpop.f32.mrb[54].mxu0 }
 0x4d4   : > { %v22191_v26 = vadd.f32 %v21836_v2, %v17193_v19  ;;  %v5817_v59 = vpop.f32.mrb[55].mxu0 }
 0x4d5   : > { %v18751_v46 = vpop.eup %18750  ;;  %18758 = vrcp.f32 %v8846_v40  ;;  %v22194_v12 = vadd.f32 %v21839_v16, %v5817_v59  ;;  %v8991_v59 = vpop.permute.xlu1 %8990 }
 0x4d6   : > { %v18753_v18 = vpop.eup %18752  ;;  %v8845_v60 = vadd.f32 1.0, %v18751_v46 }
 0x4d7   : > { %v18755_v13 = vpop.eup %18754  ;;  %v8844_v27 = vadd.f32 1.0, %v18753_v18 }
 0x4d8   : > { %18760 = vrcp.f32 %v8845_v60  ;;  %v8847_v38 = vadd.f32 1.0, %v18755_v13 }
 0x4d9   : > { %v17196_v17 = vpop.f32.mrb[56].mxu0  ;;  %18762 = vrcp.f32 %v8844_v27 }
 0x4da   : > { %v22199_v56 = vadd.f32 %v21856_v23, %v17196_v17  ;;  %v5830_v2 = vpop.f32.mrb[57].mxu0  ;;  %18764 = vrcp.f32 %v8847_v38  ;;  %v8989_v23 = vpop.permute.xlu0 %8988 }
 0x4db   : > { %v22202_v47 = vadd.f32 %v21862_v53, %v5830_v2  ;;  %v17197_v3 = vpop.f32.mrb[58].mxu0  ;;  %v18757_v50 = vpop.eup %18756 }
 0x4dc   : > { %v22205_v16 = vadd.f32 %v21866_v51, %v17197_v3  ;;  %v5833_v39 = vpop.f32.mrb[59].mxu0  ;;  %v8848_v61 = vadd.f32 1.0, %v18757_v50 }
 0x4dd   : > { %v22210_v9 = vadd.f32 %v21871_v52, %v5833_v39 }
 0x4de   : > { %18766 = vrcp.f32 %v8848_v61  ;;  %v8993_v61 = vpop.permute.xlu0 %8992 }
 0x4df   : > { %v22212_v0 = vpop.eup %18758 }
 0x4e0   : > { %25344 = vst [vmem:[#allocation66_spill] sm:$0xff] %v22212_v0  ;;  %v9070_v53 = vmul.f32 %v22212_v0, %v8989_v23 }
 0x4e1   : > { %v17200_v48 = vpop.f32.mrb[60].mxu0 }
 0x4e2   : > { %v22216_v44 = vadd.f32 %v21894_v49, %v17200_v48  ;;  %v5846_v51 = vpop.f32.mrb[61].mxu0  ;;  %v22221_v25 = vpop.eup %18760  ;;  %v16175_v45 = vpack.c.bf16 %v9070_v53, %v9070_v53  ;;  %v25349_v48 = vld [vmem:[#allocation28_spill] sm:$0xff] }
 0x4e3   : > { %v22219_v8 = vadd.f32 %v21900_v24, %v5846_v51  ;;  %v17201_v43 = vpop.f32.mrb[62].mxu0  ;;  %25345 = vst [vmem:[#allocation67_spill] sm:$0xff] %v22221_v25  ;;  %v22223_v37 = vpop.eup %18762  ;;  %v9069_v40 = vmul.f32 %v22221_v25, %v8987_v4  ;;  %v22247_v53 = vadd.f32 %v25349_v48, %v21939_v22  ;;  %v25356_v48 = vld [vmem:[#allocation34_spill] sm:$0xff] }
 0x4e4   : > { %v5849_v52 = vpop.f32.mrb[63].mxu0  ;;  %25346 = vst [vmem:[#allocation68_spill] sm:$0xff] %v22223_v37  ;;  %v22226_v19 = vpop.eup %18764  ;;  %v9068_v46 = vmul.f32 %v22223_v37, %v8985_v14  ;;  %v9304_v18 = vshrl.u32 %v16175_v45, 16  ;;  %v22230_v24 = vadd.f32 %v21904_v34, %v17201_v43  ;;  %v8722_v34 = vadd.f32 %v22162_v31, %v21995_v58  ;;  %v25351_v43 = vld [vmem:[#allocation29_spill] sm:$0xff] }
 0x4e5   : > { %25347 = vst [vmem:[#allocation69_spill] sm:$0xff] %v22226_v19  ;;  %v22233_v60 = vadd.f32 %v21909_v1, %v5849_v52  ;;  %v22235_v27 = vpack.c.bf16 %v9069_v40, %v9069_v40  ;;  %v9071_v2 = vmul.f32 %v22226_v19, %v8991_v59  ;;  %v9307_v23 = vshll.u32 %v16175_v45, 16  ;;  %25350 = vst [vmem:[#allocation28_spill] sm:$0xff] %v22247_v53  ;;  %v25353_v59 = vld [vmem:[#allocation42_spill] sm:$0xff]  ;;  %v25354_v45 = vld [vmem:[#allocation32_spill] sm:$0xff] }
 0x4e6   : > { %v16173_v39 = vpack.c.bf16 %v9068_v46, %v9068_v46  ;;  %v22240_v50 = vrot.slane %v9304_v18, 7  ;;  %v22252_v52 = vadd.f32 %v21939_v22, %v25351_v43  ;;  %v22264_v25 = vadd.f32 %v21939_v22, %v25356_v48 }
 0x4e7   : > { %v9295_v14 = vshrl.u32 %v22235_v27, 16  ;;  %v16176_v1 = vpack.c.bf16 %v9071_v2, %v9071_v2  ;;  %v22260_v2 = vadd.f32 %v25354_v45, %v21939_v22  ;;  %v15723_v19 = vmul.f32 -1.442695, %v8722_v34 }
 0x4e8   : > { %v22238_v3 = vpop.eup %18766  ;;  %25352 = vst [vmem:[#allocation29_spill] sm:$0xff] %v22252_v52  ;;  %v9287_v40 = vshrl.u32 %v16173_v39, 16  ;;  %v9309_v18 = vor.u32 %v9307_v23, %v22240_v50  ;;  %25357 = vst [vmem:[#allocation32_spill] sm:$0xff] %v22264_v25  ;;  %v8723_v48 = vadd.f32 %v22172_v30, %v25360_v29 }
 0x4e9   : > { %v17208_v49 = vpop.f32.mrb[32].mxu0  ;;  %25348 = vst [vmem:[#allocation70_spill] sm:$0xff] %v22238_v3  ;;  %v9072_v51 = vmul.f32 %v22238_v3, %v8993_v61  ;;  %25355 = vst [vmem:[#allocation42_spill] sm:$0xff] %v22260_v2  ;;  %v22266_v61 = vrot.slane %v9295_v14, 7  ;;  %v25358_v3 = vld [vmem:[#allocation18_spill] sm:$0xff] }
 0x4ea   : > { %v6472_v13 = vpop.f32.mrb[33].mxu0  ;;  %v17710_v46 = vadd.f32 %v25353_v59, %v17208_v49  ;;  %v9312_v49 = vshrl.u32 %v16176_v1, 16  ;;  %9498 = vrot.lane.b32.xlu1 %v9309_v18, %s19317_s8  ;;  %v25359_v59 = vld [vmem:[#allocation58_spill] sm:$0xff]  ;;  %v22280_v5 = vrot.slane %v9287_v40, 7  ;;  %v25363_v18 = vld [vmem:[#allocation21_spill] sm:$0xff] }
 0x4eb   : > { %v17209_v17 = vpop.f32.mrb[34].mxu0  ;;  %v17711_v43 = vadd.f32 %v25358_v3, %v6472_v13  ;;  %v16177_v58 = vpack.c.bf16 %v9072_v51, %v9072_v51  ;;  %v25362_v3 = vld [vmem:[#allocation20_spill] sm:$0xff]  ;;  %v9302_v30 = vrot.slane %v22266_v61, 4  ;;  %v25364_v51 = vld [vmem:[#allocation23_spill] sm:$0xff] }
 0x4ec   : > { %v6475_v38 = vpop.f32.mrb[35].mxu0  ;;  %v8706_v23 = vadd.f32 %v17710_v46, %v22247_v53  ;;  %v17712_v45 = vadd.f32 %v25359_v59, %v17209_v17  ;;  %v8721_v34 = vadd.f32 %v22176_v20, %v25362_v3  ;;  %v8726_v17 = vadd.f32 %v22183_v62, %v25363_v18 }
 0x4ed   : > { %v8704_v14 = vadd.f32 %v17711_v43, %v22252_v52  ;;  %v17713_v13 = vadd.f32 %v25361_v21, %v6475_v38  ;;  %v8724_v43 = vadd.f32 %v22186_v54, %v25364_v51  ;;  %v9290_v21 = vshll.u32 %v16173_v39, 16  ;;  %9496 = vrot.lane.b32.xlu0 %v9302_v30, %s19317_s8  ;;  %v25365_v39 = vld [vmem:[#allocation25_spill] sm:$0xff] }
 0x4ee   : > { %v15707_v46 = vmul.f32 -1.442695, %v8706_v23  ;;  %v8707_v10 = vadd.f32 %v17712_v45, %v22260_v2  ;;  %v22289_v38 = vrot.slane %v9312_v49, 7  ;;  %v9321_v20 = vshrl.u32 %v16177_v58, 16 }
 0x4ef   : > { %v15705_v59 = vmul.f32 -1.442695, %v8704_v14  ;;  %v8705_v11 = vadd.f32 %v17713_v13, %v22264_v25  ;;  %v15724_v62 = vmul.f32 -1.442695, %v8723_v48  ;;  %v9315_v14 = vshll.u32 %v16176_v1, 16 }
 0x4f0   : > { %18768 = vpow2.f32 %v15707_v46  ;;  %v15708_v40 = vmul.f32 -1.442695, %v8707_v10  ;;  %v9292_v13 = vor.u32 %v9290_v21, %v22280_v5  ;;  %v15722_v54 = vmul.f32 -1.442695, %v8721_v34  ;;  %v25366_v34 = vld [vmem:[#allocation44_spill] sm:$0xff] }
 0x4f1   : > { %v17212_v4 = vpop.f32.mrb[36].mxu0  ;;  %18770 = vpow2.f32 %v15705_v59  ;;  %v15706_v23 = vmul.f32 -1.442695, %v8705_v11  ;;  %v8727_v49 = vadd.f32 %v22191_v26, %v25365_v39  ;;  %v15727_v10 = vmul.f32 -1.442695, %v8726_v17  ;;  %v25367_v26 = vld [vmem:[#allocation35_spill] sm:$0xff] }
 0x4f2   : > { %v22256_v31 = vpop.f32.mrb[37].mxu0  ;;  %18772 = vpow2.f32 %v15723_v19  ;;  %9492 = vrot.lane.b32.xlu1 %v9292_v13, %s19317_s8  ;;  %v9310_v11 = vrot.slane %v22240_v50, 4  ;;  %v9317_v19 = vor.u32 %v9315_v14, %v22289_v38  ;;  %v15725_v48 = vmul.f32 -1.442695, %v8724_v43  ;;  %v25370_v14 = vld [vmem:[#allocation51_spill] sm:$0xff] }
 0x4f3   : > { %v22269_v37 = vpop.f32.mrb[38].mxu0  ;;  %18774 = vpow2.f32 %v15708_v40  ;;  %v22306_v59 = vrot.slane %v9321_v20, 7  ;;  %v17714_v30 = vadd.f32 %v25366_v34, %v17212_v4  ;;  %v22311_v21 = vadd.f32 %v25367_v26, %v21939_v22  ;;  %v25372_v20 = vld [vmem:[#allocation53_spill] sm:$0xff] }
 0x4f4   : > { %v6491_v0 = vpop.f32.mrb[39].mxu0  ;;  %18776 = vpow2.f32 %v15706_v23  ;;  %v9318_v40 = vsel %vm20270_vm14, %v9310_v11, %v9317_v19  ;;  %v18693_v23 = vld [vmem:[#allocation11 + $0x10] sm:$0xff]   ;;  %v15728_v50 = vmul.f32 -1.442695, %v8727_v49  ;;  %v9324_v13 = vshll.u32 %v16177_v58, 16 }
 0x4f5   : > { %25368 = vst [vmem:[#allocation34_spill] sm:$0xff] %v22311_v21  ;;  %18778 = vpow2.f32 %v15724_v62  ;;  %9500 = vrot.lane.b32.xlu0 %v9318_v40, %s19317_s8  ;;  %v22318_v43 = vadd.f32 %v21939_v22, %v25370_v14  ;;  %v8710_v4 = vadd.f32 %v17714_v30, %v22311_v21  ;;  %v17715_v34 = vadd.f32 %v25372_v20, %v22256_v31  ;;  %v25373_v62 = vld [vmem:[#allocation52_spill] sm:$0xff]  ;;  %v25376_v30 = vld [vmem:[#allocation49_spill] sm:$0xff] }
 0x4f6   : > { %18780 = vpow2.f32 %v15722_v54  ;;  %17382 = vmatprep.subr.bf16.mxu1 %v18693_v23  ;;  %v22325_v11 = vadd.f32 %v25373_v62, %v21939_v22  ;;  %v9326_v58 = vor.u32 %v9324_v13, %v22306_v59  ;;  %v17717_v40 = vadd.f32 %v25376_v30, %v6491_v0  ;;  %v25377_v31 = vld [vmem:[#allocation37_spill] sm:$0xff]  ;;  %v25379_v62 = vld [vmem:[#allocation27_spill] sm:$0xff] }
 0x4f7   : > { %25371 = vst [vmem:[#allocation18_spill] sm:$0xff] %v22318_v43  ;;  %18782 = vpow2.f32 %v15727_v10  ;;  %17383 = vmatpush3.bf16.msra.mxu1 %v18693_v23  ;;  %v15711_v49 = vmul.f32 -1.442695, %v8710_v4  ;;  %v8708_v19 = vadd.f32 %v17715_v34, %v22318_v43  ;;  %v25375_v10 = vld [vmem:[#allocation48_spill] sm:$0xff]  ;;  %v22334_v20 = vadd.f32 %v21939_v22, %v25377_v31  ;;  %v9634_v43 = vld [vmem:[#allocation2 + $0x48] sm:$0xf] }
 0x4f8   : > { %25374 = vst [vmem:[#allocation58_spill] sm:$0xff] %v22325_v11  ;;  %18784 = vpow2.f32 %v15725_v48  ;;  %v17716_v26 = vadd.f32 %v25375_v10, %v22269_v37  ;;  %v8725_v48 = vadd.f32 %v22194_v12, %v25379_v62  ;;  %9504 = vrot.lane.b32.xlu1 %v9326_v58, %s19317_s8  ;;  %v9298_v31 = vshll.u32 %v22235_v27, 16  ;;  %v25382_v27 = vld [vmem:[#allocation22_spill] sm:$0xff] }
 0x4f9   : > { %v22292_v45 = vpop.f32.mrb[40].mxu0  ;;  %25378 = vst [vmem:[#allocation43_spill] sm:$0xff] %v22334_v20  ;;  %18786 = vpow2.f32 %v15728_v50  ;;  %v15709_v34 = vmul.f32 -1.442695, %v8708_v19  ;;  %v8709_v0 = vadd.f32 %v17717_v40, %v22334_v20 }
 0x4fa   : > { %v22295_v18 = vpop.f32.mrb[41].mxu0  ;;  %v18769_v54 = vpop.eup %18768  ;;  %18788 = vpow2.f32 %v15711_v49  ;;  %v8711_v37 = vadd.f32 %v17716_v26, %v22325_v11  ;;  %v15726_v62 = vmul.f32 -1.442695, %v8725_v48  ;;  %v9293_v49 = vrot.slane %v22280_v5, 4  ;;  %v25383_v5 = vld [vmem:[#allocation50_spill] sm:$0xff] }
 0x4fb   : > { %v22299_v46 = vpop.f32.mrb[42].mxu0  ;;  %v18771_v14 = vpop.eup %18770  ;;  %v8834_v13 = vadd.f32 1.0, %v18769_v54  ;;  %v15710_v54 = vmul.f32 -1.442695, %v8709_v0  ;;  %v9300_v19 = vor.u32 %v9298_v31, %v22266_v61  ;;  %v25385_v0 = vld [vmem:[#allocation24_spill] sm:$0xff] }
 0x4fc   : > { %v22304_v1 = vpop.f32.mrb[43].mxu0  ;;  %v18773_v23 = vpop.eup %18772  ;;  %v8832_v4 = vadd.f32 1.0, %v18771_v14  ;;  %v15712_v51 = vmul.f32 -1.442695, %v8711_v37  ;;  %v25380_v14 = vld [vmem:[#allocation40_spill] sm:$0xff] }
 0x4fd   : > { %v18775_v10 = vpop.eup %18774  ;;  %18790 = vrcp.f32 %v8834_v13  ;;  %v22346_v40 = vadd.f32 %v25380_v14, %v21939_v22  ;;  %v8850_v13 = vadd.f32 1.0, %v18773_v23  ;;  %v9301_v48 = vsel %vm20270_vm14, %v9293_v49, %v9300_v19  ;;  %v25384_v23 = vld [vmem:[#allocation38_spill] sm:$0xff]  ;;  %v25388_v19 = vld [vmem:[#allocation45_spill] sm:$0xff] }
 0x4fe   : > { %v18777_v30 = vpop.eup %18776  ;;  %18792 = vrcp.f32 %v8832_v4  ;;  %v8835_v50 = vadd.f32 1.0, %v18775_v10  ;;  %v17718_v4 = vadd.f32 %v25382_v27, %v22292_v45  ;;  %9494 = vrot.lane.b32.xlu0 %v9301_v48, %s19317_s8 }
 0x4ff   : > { %v8833_v12 = vadd.f32 1.0, %v18777_v30  ;;  %18794 = vpow2.f32 %v15709_v34  ;;  %v18779_v58 = vpop.eup %18778  ;;  %25381 = vst [vmem:[#allocation44_spill] sm:$0xff] %v22346_v40  ;;  %v17719_v34 = vadd.f32 %v25383_v5, %v22295_v18  ;;  %v25386_v30 = vld [vmem:[#allocation26_spill] sm:$0xff] }
 0x500   : > { %18796 = vrcp.f32 %v8835_v50  ;;  %v18781_v26 = vpop.eup %18780  ;;  %v8851_v10 = vadd.f32 1.0, %v18779_v58  ;;  %v8714_v22 = vadd.f32 %v17718_v4, %v22346_v40  ;;  %v17721_v31 = vadd.f32 %v25386_v30, %v22304_v1 }
 0x501   : > { %18798 = vrcp.f32 %v8833_v12  ;;  %v22350_v37 = vpop.eup %18782  ;;  %v8712_v45 = vadd.f32 %v17719_v34, %v25384_v23 }
 0x502   : > { %18800 = vpow2.f32 %v15712_v51  ;;  %v22356_v61 = vpop.eup %18784  ;;  %v17720_v51 = vadd.f32 %v25385_v0, %v22299_v46  ;;  %v15715_v12 = vmul.f32 -1.442695, %v8714_v22  ;;  %v8713_v14 = vadd.f32 %v17721_v31, %v25388_v19  ;;  %v25391_v46 = vld [vmem:[#allocation30_spill] sm:$0xff] }
 0x503   : > { %18802 = vpow2.f32 %v15710_v54  ;;  %v22365_v50 = vpop.eup %18786  ;;  %v15713_v58 = vmul.f32 -1.442695, %v8712_v45  ;;  %v25387_v54 = vld [vmem:[#allocation41_spill] sm:$0xff]  ;;  %v8730_v48 = vadd.f32 %v22199_v56, %v25391_v46  ;;  %v8849_v56 = vadd.f32 1.0, %v18781_v26  ;;  %v25396_v26 = vld [vmem:[#allocation36_spill] sm:$0xff] }
 0x504   : > { %18804 = vpow2.f32 %v15726_v62  ;;  %v18789_v18 = vpop.eup %18788  ;;  %v8715_v49 = vadd.f32 %v17720_v51, %v25387_v54  ;;  %v15714_v22 = vmul.f32 -1.442695, %v8713_v14 }
 0x505   : > { %18806 = vrcp.f32 %v8850_v13  ;;  %v8838_v62 = vadd.f32 1.0, %v18789_v18  ;;  %v25392_v13 = vld [vmem:[#allocation31_spill] sm:$0xff] }
 0x506   : > { %18808 = vrcp.f32 %v8851_v10  ;;  %v15716_v1 = vmul.f32 -1.442695, %v8715_v49  ;;  %v8728_v34 = vadd.f32 %v22202_v47, %v25392_v13  ;;  %v25395_v49 = vld [vmem:[#allocation33_spill] sm:$0xff] }
 0x507   : > { %v22369_v27 = vpop.eup %18790  ;;  %18810 = vpow2.f32 %v15715_v12  ;;  %v15731_v12 = vmul.f32 -1.442695, %v8730_v48 }
 0x508   : > { %25389 = vst [vmem:[#allocation35_spill] sm:$0xff] %v22369_v27  ;;  %v22371_v4 = vpop.eup %18792  ;;  %18812 = vrcp.f32 %v8838_v62  ;;  %v9058_v45 = vmul.f32 %v22369_v27, %v22129_v55  ;;  %v8731_v55 = vadd.f32 %v22205_v16, %v25395_v49 }
 0x509   : > { %25390 = vst [vmem:[#allocation55_spill] sm:$0xff] %v22371_v4  ;;  %v18795_v5 = vpop.eup %18794  ;;  %18814 = vpow2.f32 %v15713_v58  ;;  %v9056_v51 = vmul.f32 %v22371_v4, %v22125_v63  ;;  %v15729_v58 = vmul.f32 -1.442695, %v8728_v34  ;;  %v18694_v4 = vld [vmem:[#allocation11 + $0x18] sm:$0xff]  }
 0x50a   : > { %v22379_v0 = vpop.eup %18796  ;;  %v8836_v10 = vadd.f32 1.0, %v18795_v5  ;;  %18816 = vpow2.f32 %v15716_v1  ;;  %v16163_v31 = vpack.c.bf16 %v9058_v45, %v9058_v45  ;;  %v8729_v1 = vadd.f32 %v22210_v9, %v25396_v26  ;;  %17384 = vmatprep.subr.bf16.mxu1 %v18694_v4 }
 0x50b   : > { %25393 = vst [vmem:[#allocation51_spill] sm:$0xff] %v22379_v0  ;;  %v22383_v30 = vpop.eup %18798  ;;  %v9059_v47 = vmul.f32 %v22379_v0, %v22155_v7  ;;  %v16161_v14 = vpack.c.bf16 %v9056_v51, %v9056_v51  ;;  %17385 = vmatpush3.bf16.msra.mxu1 %v18694_v4 }
 0x50c   : > { %25394 = vst [vmem:[#allocation53_spill] sm:$0xff] %v22383_v30  ;;  %v18801_v18 = vpop.eup %18800  ;;  %18818 = vrcp.f32 %v8836_v10  ;;  %v9202_v63 = vshrl.u32 %v16163_v31, 16  ;;  %v9205_v7 = vshll.u32 %v16163_v31, 16  ;;  %v9057_v34 = vmul.f32 %v22383_v30, %v22127_v36 }
 0x50d   : > { %v18803_v62 = vpop.eup %18802  ;;  %v8839_v5 = vadd.f32 1.0, %v18801_v18  ;;  %18820 = vpow2.f32 %v15714_v22  ;;  %v9185_v0 = vshrl.u32 %v16161_v14, 16  ;;  %v16164_v10 = vpack.c.bf16 %v9059_v47, %v9059_v47 }
 0x50e   : > { %v22389_v27 = vpop.eup %18804  ;;  %v8837_v45 = vadd.f32 1.0, %v18803_v62  ;;  %v22395_v16 = vrot.slane %v9202_v63, 7  ;;  %v15732_v22 = vmul.f32 -1.442695, %v8731_v55  ;;  %v9188_v18 = vshll.u32 %v16161_v14, 16 }
 0x50f   : > { %v22393_v48 = vpop.eup %18806  ;;  %18822 = vrcp.f32 %v8839_v5  ;;  %v9187_v51 = vrot.slane %v9185_v0, 7  ;;  %v9210_v31 = vshrl.u32 %v16164_v10, 16  ;;  %v16162_v62 = vpack.c.bf16 %v9057_v34, %v9057_v34 }
 0x510   : > { %25397 = vst [vmem:[#allocation52_spill] sm:$0xff] %v22393_v48  ;;  %18824 = vrcp.f32 %v8837_v45  ;;  %v22399_v13 = vpop.eup %18808  ;;  %v9207_v9 = vor.u32 %v9205_v7, %v22395_v16  ;;  %v15730_v63 = vmul.f32 -1.442695, %v8729_v1  ;;  %v8854_v14 = vadd.f32 1.0, %v22350_v37 }
 0x511   : > { %25398 = vst [vmem:[#allocation48_spill] sm:$0xff] %v22399_v13  ;;  %18826 = vrcp.f32 %v8849_v56  ;;  %v18811_v5 = vpop.eup %18810  ;;  %v9190_v47 = vor.u32 %v9188_v18, %v9187_v51  ;;  %v9212_v0 = vrot.slane %v9210_v31, 7  ;;  %v9193_v55 = vshrl.u32 %v16162_v62, 16 }
 0x512   : > { %18828 = vpow2.f32 %v15731_v12  ;;  %v22402_v26 = vpop.eup %18812  ;;  %v8842_v36 = vadd.f32 1.0, %v18811_v5  ;;  %9462 = vrot.lane.b32.xlu1 %v9207_v9, %s19317_s8  ;;  %v9196_v56 = vshll.u32 %v16162_v62, 16  ;;  %v9191_v9 = vrot.slane %v9187_v51, 4 }
 0x513   : > { %25399 = vst [vmem:[#allocation49_spill] sm:$0xff] %v22402_v26  ;;  %18830 = vpow2.f32 %v15729_v58  ;;  %v18815_v4 = vpop.eup %18814  ;;  %9456 = vrot.lane.b32.xlu0 %v9190_v47, %s19317_s8  ;;  %v9062_v12 = vmul.f32 %v22402_v26, %v22159_v41  ;;  %v9217_v7 = vrot.slane %v9212_v0, 4  ;;  %v9195_v58 = vrot.slane %v9193_v55, 7 }
 0x514   : > { %18832 = vpow2.f32 %v15732_v22  ;;  %v18817_v1 = vpop.eup %18816  ;;  %v8840_v45 = vadd.f32 1.0, %v18815_v4  ;;  %v9213_v31 = vshll.u32 %v16164_v10, 16  ;;  %v8852_v4 = vadd.f32 1.0, %v22356_v61 }
 0x515   : > { %18834 = vrcp.f32 %v8842_v36  ;;  %v8843_v18 = vadd.f32 1.0, %v18817_v1  ;;  %v16167_v5 = vpack.c.bf16 %v9062_v12, %v9062_v12  ;;  %v9200_v37 = vrot.slane %v9195_v58, 4 }
 0x516   : > { %v22409_v34 = vpop.eup %18818  ;;  %18836 = vrcp.f32 %v8840_v45  ;;  %9466 = vrot.lane.b32.xlu1 %v9217_v7, %s19317_s8  ;;  %v9198_v22 = vor.u32 %v9196_v56, %v9195_v58  ;;  %v9215_v47 = vor.u32 %v9213_v31, %v9212_v0  ;;  %v9208_v10 = vrot.slane %v22395_v16, 4 }
 0x517   : > { %25400 = vst [vmem:[#allocation37_spill] sm:$0xff] %v22409_v34  ;;  %v18821_v30 = vpop.eup %18820  ;;  %v9060_v41 = vmul.f32 %v22409_v34, %v22131_v57  ;;  %18838 = vrcp.f32 %v8843_v18  ;;  %v9236_v36 = vshrl.u32 %v16167_v5, 16  ;;  %9460 = vrot.lane.b32.xlu0 %v9200_v37, %s19317_s8  ;;  %v8855_v61 = vadd.f32 1.0, %v22365_v50 }
 0x518   : > { %v8841_v62 = vadd.f32 1.0, %v18821_v30  ;;  %18840 = vpow2.f32 %v15730_v63  ;;  %v9199_v57 = vsel %vm20270_vm14, %v9191_v9, %v9198_v22  ;;  %v9239_v63 = vshll.u32 %v16167_v5, 16  ;;  %v25404_v9 = vld [vmem:[#allocation46_spill] sm:$0xff]  ;;  %v8997_v22 = vpop.permute.xlu0 %8996 }
 0x519   : > { %v22414_v55 = vpop.eup %18822  ;;  %v16165_v51 = vpack.c.bf16 %v9060_v41, %v9060_v41  ;;  %v22423_v56 = vrot.slane %v9236_v36, 7  ;;  %v8853_v7 = vadd.f32 1.0, %v22389_v27  ;;  %v9216_v58 = vsel %vm20270_vm14, %v9208_v10, %v9215_v47 }
 0x51a   : > { %25401 = vst [vmem:[#allocation40_spill] sm:$0xff] %v22414_v55  ;;  %v22419_v12 = vpop.eup %18824  ;;  %18842 = vrcp.f32 %v8841_v62  ;;  %v9063_v30 = vmul.f32 %v22414_v55, %v22180_v32  ;;  %9458 = vrot.lane.b32.xlu1 %v9199_v57, %s19317_s8  ;;  %v8732_v31 = vadd.f32 %v22219_v8, %v25404_v9  ;;  %v8995_v8 = vpop.permute.xlu1 %8994 }
 0x51b   : > { %25402 = vst [vmem:[#allocation22_spill] sm:$0xff] %v22419_v12  ;;  %v22427_v0 = vpop.eup %18826  ;;  %v9061_v16 = vmul.f32 %v22419_v12, %v22169_v42  ;;  %v9219_v1 = vshrl.u32 %v16165_v51, 16  ;;  %18844 = vrcp.f32 %v8854_v14  ;;  %9464 = vrot.lane.b32.xlu0 %v9216_v58, %s19317_s8  ;;  %v9241_v50 = vor.u32 %v9239_v63, %v22423_v56 }
 0x51c   : > { %25403 = vst [vmem:[#allocation50_spill] sm:$0xff] %v22427_v0  ;;  %v18829_v45 = vpop.eup %18828  ;;  %v16168_v18 = vpack.c.bf16 %v9063_v30, %v9063_v30  ;;  %18846 = vrcp.f32 %v8852_v4  ;;  %v9222_v62 = vshll.u32 %v16165_v51, 16  ;;  %v15733_v57 = vmul.f32 -1.442695, %v8732_v31 }
 0x51d   : > { %v18831_v32 = vpop.eup %18830  ;;  %v16166_v5 = vpack.c.bf16 %v9061_v16, %v9061_v16  ;;  %v22440_v37 = vrot.slane %v9219_v1, 7  ;;  %18848 = vrcp.f32 %v8855_v61  ;;  %v9073_v4 = vmul.f32 %v22427_v0, %v8995_v8 }
 0x51e   : > { %v22442_v42 = vpop.eup %18832  ;;  %v9244_v14 = vshrl.u32 %v16168_v18, 16  ;;  %9474 = vrot.lane.b32.xlu1 %v9241_v50, %s19317_s8  ;;  %18850 = vrcp.f32 %v8853_v7  ;;  %v9074_v16 = vmul.f32 %v22393_v48, %v8997_v22  ;;  %v9247_v1 = vshll.u32 %v16168_v18, 16 }
 0x51f   : > { %v22444_v27 = vpop.eup %18834  ;;  %v9227_v41 = vshrl.u32 %v16166_v5, 16  ;;  %v9224_v63 = vor.u32 %v9222_v62, %v22440_v37  ;;  %v8858_v50 = vadd.f32 1.0, %v18829_v45  ;;  %v8856_v8 = vadd.f32 1.0, %v18831_v32 }
 0x520   : > { %25405 = vst [vmem:[#allocation24_spill] sm:$0xff] %v22444_v27  ;;  %v9246_v47 = vrot.slane %v9244_v14, 7  ;;  %v9066_v36 = vmul.f32 %v22444_v27, %v22188_v15  ;;  %v22449_v10 = vpop.eup %18836  ;;  %v25408_v15 = vld [vmem:[#allocation60_spill] sm:$0xff]  ;;  %v22465_v0 = vpack.c.bf16 %v9073_v4, %v9073_v4  ;;  %18852 = vpow2.f32 %v15733_v57 }
 0x521   : > { %25406 = vst [vmem:[#allocation26_spill] sm:$0xff] %v22449_v10  ;;  %v9229_v30 = vrot.slane %v9227_v41, 7  ;;  %v22453_v61 = vpop.eup %18838  ;;  %v9064_v7 = vmul.f32 %v22449_v10, %v22178_v33  ;;  %v8733_v14 = vadd.f32 %v22233_v60, %v25408_v15  ;;  %18854 = vrcp.f32 %v8858_v50 }
 0x522   : > { %25407 = vst [vmem:[#allocation71_spill] sm:$0xff] %v22453_v61  ;;  %v16171_v51 = vpack.c.bf16 %v9066_v36, %v9066_v36  ;;  %v18841_v58 = vpop.eup %18840  ;;  %9468 = vrot.lane.b32.xlu1 %v9224_v63, %s19317_s8  ;;  %v9067_v41 = vmul.f32 %v22453_v61, %v22207_v35  ;;  %v9249_v22 = vor.u32 %v9247_v1, %v9246_v47  ;;  %v9251_v33 = vrot.slane %v9246_v47, 4 }
 0x523   : > { %v9234_v31 = vrot.slane %v9229_v30, 4  ;;  %v16169_v36 = vpack.c.bf16 %v9064_v7, %v9064_v7  ;;  %v9242_v63 = vrot.slane %v22423_v56, 4  ;;  %v9230_v35 = vshll.u32 %v16166_v5, 16 }
 0x524   : > { %v22463_v62 = vpop.eup %18842  ;;  %v9270_v18 = vshrl.u32 %v16171_v51, 16  ;;  %v16172_v45 = vpack.c.bf16 %v9067_v41, %v9067_v41  ;;  %v22475_v1 = vpack.c.bf16 %v9074_v16, %v9074_v16  ;;  %v9273_v4 = vshll.u32 %v16171_v51, 16 }
 0x525   : > { %25409 = vst [vmem:[#allocation72_spill] sm:$0xff] %v22463_v62  ;;  %9472 = vrot.lane.b32.xlu0 %v9234_v31, %s19317_s8  ;;  %v9065_v60 = vmul.f32 %v22463_v62, %v22196_v6  ;;  %v22470_v48 = vpop.eup %18844  ;;  %v9253_v32 = vshrl.u32 %v16169_v36, 16  ;;  %v8857_v6 = vadd.f32 1.0, %v18841_v58  ;;  %v9250_v31 = vsel %vm20270_vm14, %v9242_v63, %v9249_v22 }
 0x526   : > { %25410 = vst [vmem:[#allocation73_spill] sm:$0xff] %v22470_v48  ;;  %v22473_v10 = vrot.slane %v9270_v18, 7  ;;  %9478 = vrot.lane.b32.xlu1 %v9251_v33, %s19317_s8  ;;  %v22480_v47 = vpop.eup %18846  ;;  %v9232_v41 = vor.u32 %v9230_v35, %v9229_v30  ;;  %v9278_v56 = vshrl.u32 %v16172_v45, 16  ;;  %v15734_v18 = vmul.f32 -1.442695, %v8733_v14  ;;  %v8999_v35 = vpop.permute.xlu1 %8998 }
 0x527   : > { %v22478_v7 = vpack.c.bf16 %v9065_v60, %v9065_v60  ;;  %25411 = vst [vmem:[#allocation74_spill] sm:$0xff] %v22480_v47  ;;  %v22484_v5 = vpop.eup %18848  ;;  %v22489_v51 = vrot.slane %v9253_v32, 7  ;;  %v9225_v58 = vrot.slane %v22440_v37, 4  ;;  %18856 = vrcp.f32 %v8856_v8  ;;  %v22495_v60 = vld [vmem:[#allocation2] sm:$0xf]  ;;  %v9001_v32 = vpop.permute.xlu0 %9000 }
 0x528   : > { %25412 = vst [vmem:[#allocation75_spill] sm:$0xff] %v22484_v5  ;;  %v9275_v57 = vor.u32 %v9273_v4, %v22473_v10  ;;  %v22491_v33 = vpop.eup %18850  ;;  %v9256_v22 = vshll.u32 %v16169_v36, 16  ;;  %v22497_v14 = vld [vmem:[#allocation2 + $0x4] sm:$0xf]  ;;  %18858 = vrcp.f32 %v8857_v6  ;;  %v9329_v63 = vshrl.u32 %v22465_v0, 16 }
 0x529   : > { %9476 = vrot.lane.b32.xlu0 %v9250_v31, %s19317_s8  ;;  %v9261_v16 = vshrl.u32 %v22478_v7, 16  ;;  %25413 = vst [vmem:[#allocation76_spill] sm:$0xff] %v22491_v33  ;;  %v9233_v4 = vsel %vm20270_vm14, %v9225_v58, %v9232_v41  ;;  %v9280_v50 = vrot.slane %v9278_v56, 7  ;;  %v9747_v31 = vld [vmem:[#allocation2 + $0x8] sm:$0x1]  ;;  %18860 = vpow2.f32 %v15734_v18 }
 0x52a   : > { %9486 = vrot.lane.b32.xlu1 %v9275_v57, %s19317_s8  ;;  %v9338_v37 = vshrl.u32 %v22475_v1, 16  ;;  %v9076_v8 = vmul.f32 %v22480_v47, %v9001_v32  ;;  %v9258_v36 = vor.u32 %v9256_v22, %v22489_v51  ;;  %v9281_v57 = vshll.u32 %v16172_v45, 16  ;;  %v22512_v22 = vld [vmem:[#allocation11] sm:$0xff]   ;;  %v18853_v45 = vpop.eup %18852 }
 0x52b   : > { %v9263_v30 = vrot.slane %v9261_v16, 7  ;;  %v9764_v6 = vshrl.u32 %v22495_v60, 16  ;;  %v9767_v16 = vshll.u32 %v22495_v60, 16  ;;  %v9773_v62 = vshll.u32 %v22497_v14, 16  ;;  %v9005_v55 = vpop.permute.xlu0 %9004  ;;  %17418 = vmatprep.subr.bf16.mxu1 %v22512_v22 }
 0x52c   : > { %v9075_v41 = vmul.f32 %v22399_v13, %v8999_v35  ;;  %v9777_v18 = vshrl.u32 %v22497_v14, 16  ;;  %v9783_v58 = vshll.u32 %v9747_v31, 16  ;;  %v9283_v32 = vor.u32 %v9281_v57, %v9280_v50 }
 0x52d   : > { %9470 = vrot.lane.b32.xlu0 %v9233_v4, %s19317_s8  ;;  %v9268_v56 = vrot.slane %v9263_v30, 4  ;;  %v9766_v47 = vrot.slane %v9764_v6, 4  ;;  %v9769_v4 = vrot.slane %v9767_v16, 5  ;;  %v9775_v61 = vrot.slane %v9773_v62, 5 }
 0x52e   : > { %9480 = vrot.lane.b32.xlu1 %v9258_v36, %s19317_s8  ;;  %v22514_v27 = vrot.slane %v9329_v63, 7  ;;  %v22516_v12 = vpack.c.bf16 %v9076_v8, %v9076_v8  ;;  %v9285_v35 = vrot.slane %v9280_v50, 4  ;;  %v9779_v13 = vrot.slane %v9777_v18, 4  ;;  %v9003_v36 = vpop.permute.xlu1 %9002  ;;  %v22526_v50 = vpop.eup %18854 }
 0x52f   : > { %v22519_v34 = vrot.slane %v9338_v37, 7  ;;  %v9276_v31 = vrot.slane %v22473_v10, 4  ;;  %v9264_v57 = vshll.u32 %v22478_v7, 16  ;;  %v9770_v62 = vor.u32 %v9769_v4, %v9766_v47  ;;  %25414 = vst [vmem:[#allocation77_spill] sm:$0xff] %v22526_v50 }
 0x530   : > { %v16180_v6 = vpack.c.bf16 %v9075_v41, %v9075_v41  ;;  %v9077_v63 = vmul.f32 %v22491_v33, %v9003_v36  ;;  %v9780_v8 = vor.u32 %v9779_v13, %v9775_v61  ;;  %v9785_v16 = vrot.slane %v9783_v58, 5 }
 0x531   : > { %9484 = vrot.lane.b32.xlu0 %v9268_v56, %s19317_s8  ;;  %v8860_v37 = vadd.f32 1.0, %v18853_v45  ;;  %v9284_v56 = vsel %vm20270_vm14, %v9276_v31, %v9283_v32  ;;  %v9266_v18 = vor.u32 %v9264_v57, %v9263_v30  ;;  %v9771_v10 = vrot.slane %v9770_v62, 4  ;;  %v22530_v26 = vpop.eup %18856  ;;  %v9009_v57 = vpop.permute.xlu0 %9008 }
 0x532   : > { %9490 = vrot.lane.b32.xlu1 %v9285_v35, %s19317_s8  ;;  %25415 = vst [vmem:[#allocation78_spill] sm:$0xff] %v22530_v26  ;;  %v9355_v7 = vshrl.u32 %v22516_v12, 16  ;;  %v9078_v47 = vmul.f32 %v22470_v48, %v9005_v55  ;;  %v9319_v41 = vrot.slane %v22289_v38, 4  ;;  %v9781_v13 = vrot.slane %v9780_v8, 4  ;;  %v22536_v58 = vpop.eup %18858  ;;  %v9007_v8 = vpop.permute.xlu1 %9006 }
 0x533   : > { %25416 = vst [vmem:[#allocation79_spill] sm:$0xff] %v22536_v58  ;;  %v8859_v4 = vadd.f32 1.0, %v22442_v42  ;;  %v9332_v45 = vshll.u32 %v22465_v0, 16  ;;  %v9259_v30 = vrot.slane %v22489_v51, 4  ;;  %v9776_v32 = vsel %vm19659_vm2, %v9771_v10, %v9775_v61  ;;  %v18861_v35 = vpop.eup %18860 }
 0x534   : > { %v9341_v36 = vshll.u32 %v22475_v1, 16  ;;  %v9346_v55 = vshrl.u32 %v16180_v6, 16  ;;  %v16182_v31 = vpack.c.bf16 %v9077_v63, %v9077_v63  ;;  %v9786_v38 = vsel %vm19659_vm2, %v9781_v13, %v9785_v16 }
 0x535   : > { %9488 = vrot.lane.b32.xlu0 %v9284_v56, %s19317_s8  ;;  %18862 = vrcp.f32 %v8860_v37  ;;  %v9267_v0 = vsel %vm20270_vm14, %v9259_v30, %v9266_v18  ;;  %v9334_v42 = vor.u32 %v9332_v45, %v22514_v27  ;;  %v15769_v51 = vcombine.low %v9776_v32, %v9786_v38  ;;  %v9013_v30 = vpop.permute.xlu0 %9012 }
 0x536   : > { %9502 = vrot.lane.b32.xlu1 %v9319_v41, %s19317_s8  ;;  %v9357_v62 = vrot.slane %v9355_v7, 7  ;;  %v16183_v61 = vpack.c.bf16 %v9078_v47, %v9078_v47  ;;  %v9080_v1 = vmul.f32 %v22530_v26, %v9009_v57  ;;  %v9343_v63 = vor.u32 %v9341_v36, %v22519_v34 }
 0x537   : > { %v9327_v56 = vrot.slane %v22306_v59, 4  ;;  %17386 = vmatprep.mubr.msk.bf16.mxu1 %vm4546_vm0, %v15769_v51  ;;  %18864 = vrcp.f32 %v8859_v4  ;;  %v8861_v16 = vadd.f32 1.0, %v18861_v35  ;;  %v9358_v37 = vshll.u32 %v22516_v12, 16  ;;  %v9011_v4 = vpop.permute.xlu1 %9010 }
 0x538   : > { %v9348_v18 = vrot.slane %v9346_v55, 7  ;;  %v9363_v10 = vshrl.u32 %v16182_v31, 16  ;;  %v9079_v7 = vmul.f32 %v22484_v5, %v9007_v8  ;;  %v9372_v41 = vshrl.u32 %v16183_v61, 16 }
 0x539   : > { %9482 = vrot.lane.b32.xlu0 %v9267_v0, %s19317_s8  ;;  %v9335_v47 = vsel %vm20270_vm14, %v9327_v56, %v9334_v42  ;;  %v16185_v13 = vpack.c.bf16 %v9080_v1, %v9080_v1  ;;  %v9360_v59 = vor.u32 %v9358_v37, %v9357_v62  ;;  %v9349_v45 = vshll.u32 %v16180_v6, 16  ;;  %v9017_v8 = vpop.permute.xlu0 %9016 }
 0x53a   : > { %9510 = vrot.lane.b32.xlu1 %v9343_v63, %s19317_s8  ;;  %18866 = vrcp.f32 %v8861_v16  ;;  %v9336_v12 = vrot.slane %v22514_v27, 4  ;;  %v9365_v32 = vrot.slane %v9363_v10, 7  ;;  %v16184_v35 = vpack.c.bf16 %v9079_v7, %v9079_v7 }
 0x53b   : > { %v9081_v36 = vmul.f32 %v22536_v58, %v9011_v4  ;;  %v9351_v55 = vor.u32 %v9349_v45, %v9348_v18  ;;  %v9374_v38 = vrot.slane %v9372_v41, 7  ;;  %v9389_v57 = vshrl.u32 %v16185_v13, 16 }
 0x53c   : > { %v9082_v0 = vmul.f32 %v22526_v50, %v9013_v30  ;;  %v9353_v42 = vrot.slane %v9348_v18, 4  ;;  %v9366_v51 = vshll.u32 %v16182_v31, 16  ;;  %v9344_v27 = vrot.slane %v22519_v34, 4  ;;  %v9015_v18 = vpop.permute.xlu1 %9014 }
 0x53d   : > { %9506 = vrot.lane.b32.xlu0 %v9335_v47, %s19317_s8  ;;  %v9375_v1 = vshll.u32 %v16183_v61, 16  ;;  %v9380_v63 = vshrl.u32 %v16184_v35, 16  ;;  %v16186_v56 = vpack.c.bf16 %v9081_v36, %v9081_v36  ;;  %v9391_v7 = vrot.slane %v9389_v57, 7 }
 0x53e   : > { %9516 = vrot.lane.b32.xlu1 %v9360_v59, %s19317_s8  ;;  %v9352_v16 = vsel %vm20270_vm14, %v9344_v27, %v9351_v55  ;;  %v9368_v37 = vor.u32 %v9366_v51, %v9365_v32  ;;  %v16187_v47 = vpack.c.bf16 %v9082_v0, %v9082_v0  ;;  %v9361_v34 = vrot.slane %v9357_v62, 4 }
 0x53f   : > { %v22566_v6 = vpop.eup %18862  ;;  %v9377_v31 = vor.u32 %v9375_v1, %v9374_v38  ;;  %v9392_v61 = vshll.u32 %v16185_v13, 16  ;;  %v9382_v59 = vrot.slane %v9380_v63, 7  ;;  %v9397_v45 = vshrl.u32 %v16186_v56, 16 }
 0x540   : > { %25417 = vst [vmem:[#allocation80_spill] sm:$0xff] %v22566_v6  ;;  %v9084_v41 = vmul.f32 %v22566_v6, %v9017_v8  ;;  %v9369_v4 = vsel %vm20270_vm14, %v9361_v34, %v9368_v37  ;;  %v9406_v36 = vshrl.u32 %v16187_v47, 16  ;;  %v9019_v57 = vpop.permute.xlu1 %9018  ;;  %v9370_v62 = vrot.slane %v9365_v32, 4 }
 0x541   : > { %9508 = vrot.lane.b32.xlu0 %v9336_v12, %s19317_s8  ;;  %v22572_v10 = vpop.eup %18864  ;;  %v9394_v0 = vor.u32 %v9392_v61, %v9391_v7  ;;  %v9399_v13 = vrot.slane %v9397_v45, 7  ;;  %v9400_v37 = vshll.u32 %v16186_v56, 16 }
 0x542   : > { %9514 = vrot.lane.b32.xlu1 %v9353_v42, %s19317_s8  ;;  %25418 = vst [vmem:[#allocation81_spill] sm:$0xff] %v22572_v10  ;;  %v9083_v30 = vmul.f32 %v22572_v10, %v9015_v18  ;;  %v16189_v55 = vpack.c.bf16 %v9084_v41, %v9084_v41  ;;  %v9383_v42 = vshll.u32 %v16184_v35, 16  ;;  %v9408_v1 = vrot.slane %v9406_v36, 7 }
 0x543   : > { %v9378_v18 = vrot.slane %v9374_v38, 4  ;;  %v9409_v41 = vshll.u32 %v16187_v47, 16  ;;  %v9402_v34 = vor.u32 %v9400_v37, %v9399_v13 }
 0x544   : > { %v22580_v12 = vpop.eup %18866  ;;  %v16188_v51 = vpack.c.bf16 %v9083_v30, %v9083_v30  ;;  %v9385_v27 = vor.u32 %v9383_v42, %v9382_v59  ;;  %v9423_v63 = vshrl.u32 %v16189_v55, 16  ;;  %v9395_v30 = vrot.slane %v9391_v7, 4 }
 0x545   : > { %9512 = vrot.lane.b32.xlu0 %v9352_v16, %s19317_s8  ;;  %25419 = vst [vmem:[#allocation82_spill] sm:$0xff] %v22580_v12  ;;  %v9085_v8 = vmul.f32 %v22580_v12, %v9019_v57  ;;  %v9387_v16 = vrot.slane %v9382_v59, 4  ;;  %v9411_v45 = vor.u32 %v9409_v41, %v9408_v1  ;;  %v9404_v57 = vrot.slane %v9399_v13, 4  ;;  %v9645_v41 = vld [vmem:[#allocation2 + $0x5c] sm:$0x1] }
 0x546   : > { %9522 = vrot.lane.b32.xlu1 %v9377_v31, %s19317_s8  ;;  %v9414_v31 = vshrl.u32 %v16188_v51, 16  ;;  %v9386_v32 = vsel %vm20270_vm14, %v9378_v18, %v9385_v27  ;;  %v9425_v61 = vrot.slane %v9423_v63, 7  ;;  %v9403_v38 = vsel %vm20270_vm14, %v9395_v30, %v9402_v34  ;;  %v9648_v63 = vld [vmem:[#allocation2 + $0x60] sm:$0xf]  ;;  %v19006_v18 = vld [vmem:[%s19607_s11 + $0xf0] sm:$0xff] }
 0x547   : > { %v16190_v35 = vpack.c.bf16 %v9085_v8, %v9085_v8  ;;  %v9417_v36 = vshll.u32 %v16188_v51, 16  ;;  %v19008_v12 = vld [vmem:[#allocation2 + $0xc] sm:$0xf] }
 0x548   : > { %v9416_v59 = vrot.slane %v9414_v31, 7  ;;  %v9429_v13 = vrot.slane %v9425_v61, 4 }
 0x549   : > { %9518 = vrot.lane.b32.xlu0 %v9369_v4, %s19317_s8  ;;  %v9426_v4 = vshll.u32 %v16189_v55, 16  ;;  %v9431_v56 = vshrl.u32 %v16190_v35, 16  ;;  %v9434_v55 = vshll.u32 %v16190_v35, 16 }
 0x54a   : > { %9528 = vrot.lane.b32.xlu1 %v9394_v0, %s19317_s8  ;;  %v9419_v42 = vor.u32 %v9417_v36, %v9416_v59  ;;  %v9421_v7 = vrot.slane %v9416_v59, 4  ;;  %v19007_v59 = vld [vmem:[%s19607_s11 + $0xf8] sm:$0xff] }
 0x54b   : > { %v9428_v47 = vor.u32 %v9426_v4, %v9425_v61  ;;  %v9433_v0 = vrot.slane %v9431_v56, 7  ;;  %v9641_v61 = vld [vmem:[#allocation2 + $0x54] sm:$0xf]  ;;  %v9655_v56 = vld [vmem:[#allocation2 + $0x6c] sm:$0xf] }
 0x54c   : > { %v25422_v36 = vld [vmem:[#allocation39_spill] sm:$0xff] }
 0x54d   : > { %9520 = vrot.lane.b32.xlu0 %v9370_v62, %s19317_s8  ;;  %v9412_v62 = vrot.slane %v9408_v1, 4  ;;  %v9436_v27 = vor.u32 %v9434_v55, %v9433_v0  ;;  %v9438_v35 = vrot.slane %v9433_v0, 4 }
 0x54e   : > { %9526 = vrot.lane.b32.xlu1 %v9387_v16, %s19317_s8 }
 0x54f   : > { %v9420_v8 = vsel %vm20270_vm14, %v9412_v62, %v9419_v42  ;;  %v9437_v1 = vsel %vm20270_vm14, %v9429_v13, %v9436_v27  ;;  %v25424_v42 = vld [vmem:[#allocation59_spill] sm:$0xff] }
 0x551   : > { %9524 = vrot.lane.b32.xlu0 %v9386_v32, %s19317_s8 }
 0x552   : > { %9534 = vrot.lane.b32.xlu1 %v9411_v45, %s19317_s8 }
 0x555   : > { %9530 = vrot.lane.b32.xlu0 %v9403_v38, %s19317_s8 }
 0x556   : > { %9540 = vrot.lane.b32.xlu1 %v9428_v47, %s19317_s8 }
 0x559   : > { %9532 = vrot.lane.b32.xlu0 %v9404_v57, %s19317_s8  ;;  %v8734_v57 = vadd.f32 %v22216_v44, %v25422_v36 }
 0x55a   : > { %9538 = vrot.lane.b32.xlu1 %v9421_v7, %s19317_s8  ;;  %v8735_v7 = vadd.f32 %v22230_v24, %v25424_v42 }
 0x55c   : > { %v9499_v51 = vpop.permute.xlu1 %9498 }
 0x55d   : > { %9536 = vrot.lane.b32.xlu0 %v9420_v8, %s19317_s8  ;;  %v9649_v37 = vsel %vm20277_vm15, %v9499_v51, %v9648_v63  ;;  %v15735_v8 = vmul.f32 -1.442695, %v8734_v57  ;;  %v15736_v63 = vmul.f32 -1.442695, %v8735_v7 }
 0x55e   : > { %9020 = vrot.lane.b32.xlu1 %v19006_v18, %s19316_s27  ;;  %9650 = vst [vmem:[#allocation2 + $0x60] sm:$0xf] %v9649_v37 }
 0x55f   : > { %v9497_v31 = vpop.permute.xlu0 %9496  ;;  %18868 = vpow2.f32 %v15735_v8 }
 0x560   : > { %v9646_v34 = vsel %vm20241_vm9, %v9497_v31, %v9645_v41  ;;  %18870 = vpow2.f32 %v15736_v63 }
 0x561   : > { %9542 = vrot.lane.b32.xlu0 %v9437_v1, %s19317_s8  ;;  %9647 = vst [vmem:[#allocation2 + $0x5c] sm:$0x1] %v9646_v34 }
 0x564   : > { %v9493_v45 = vpop.permute.xlu1 %9492 }
 0x565   : > { %9544 = vrot.lane.b32.xlu0 %v9438_v35, %s19317_s8  ;;  %v9642_v30 = vsel %vm20277_vm15, %v9493_v45, %v9641_v61  ;;  %v22623_v55 = vld [vmem:[#allocation2 + $0x60] sm:$0xf] }
 0x566   : > { %9643 = vst [vmem:[#allocation2 + $0x54] sm:$0xf] %v9642_v30  ;;  %25425 = vst [vmem:[#allocation84_spill] sm:$0xff] %v22623_v55  ;;  %v9956_v1 = vshrl.u32 %v22623_v55, 16  ;;  %v9959_v41 = vshll.u32 %v22623_v55, 16 }
 0x567   : > { %v9501_v4 = vpop.permute.xlu0 %9500 }
 0x568   : > { %9651 = vst.msk [vmem:[#allocation2 + $0x64] sm:$0xf] %vm354_vm12, %v9501_v4  ;;  %v9754_v44 = vld [vmem:[#allocation2 + $0x5c] sm:$0x1]  ;;  %v9958_v57 = vrot.slane %v9956_v1, 4  ;;  %v9961_v7 = vrot.slane %v9959_v41, 5 }
 0x569   : > { %9022 = vrot.lane.b32.xlu0 %v19007_v59, %s19316_s27  ;;  %v10824_v34 = vrot.slane %v9754_v44, 5  ;;  %v18869_v59 = vpop.eup %18868  ;;  %v11578_v8 = vld [vmem:[#allocation2 + $0x5c] sm:$0x1]  ;;  %v9610_v41 = vld [vmem:[#allocation2 + $0x20] sm:$0x1]  ;;  %v9951_v5 = vshll.u32 %v9754_v44, 16 }
 0x56a   : > { %v9505_v38 = vpop.permute.xlu1 %9504  ;;  %v8862_v62 = vadd.f32 1.0, %v18869_v59  ;;  %v9962_v6 = vor.u32 %v9961_v7, %v9958_v57  ;;  %v12407_v10 = vrot.slane %v11578_v8, 5 }
 0x56b   : > { %v9656_v47 = vsel %vm20277_vm15, %v9505_v38, %v9655_v56  ;;  %v9606_v56 = vld [vmem:[#allocation2 + $0x18] sm:$0xf]  ;;  %v9603_v38 = vld [vmem:[#allocation2 + $0x14] sm:$0x1] }
 0x56c   : > { %9657 = vst [vmem:[#allocation2 + $0x6c] sm:$0xf] %v9656_v47  ;;  %v18871_v47 = vpop.eup %18870  ;;  %18872 = vrcp.f32 %v8862_v62 }
 0x56d   : > { %v22628_v13 = vld [vmem:[#allocation2 + $0x54] sm:$0xf]  ;;  %v8863_v24 = vadd.f32 1.0, %v18871_v47 }
 0x56e   : > { %25426 = vst [vmem:[#allocation85_spill] sm:$0xff] %v22628_v13  ;;  %v10729_v37 = vld [vmem:[#allocation2 + $0x54] sm:$0xe]  ;;  %v9932_v63 = vshrl.u32 %v22628_v13, 16 }
 0x56f   : > { %v22619_v0 = vld [vmem:[#allocation2 + $0x64] sm:$0xf]  ;;  %v15844_v31 = vrot.slane %v10729_v37, 9  ;;  %v9935_v37 = vshll.u32 %v22628_v13, 16  ;;  %18874 = vrcp.f32 %v8863_v24  ;;  %v9683_v13 = vld [vmem:[#allocation2 + $0x9c] sm:$0xf] }
 0x570   : > { %25423 = vst [vmem:[#allocation83_spill] sm:$0xff] %v22619_v0  ;;  %v9495_v27 = vpop.permute.xlu0 %9494 }
 0x571   : > { %9644 = vst.msk [vmem:[#allocation2 + $0x58] sm:$0xf] %vm354_vm12, %v9495_v27  ;;  %v9937_v33 = vrot.slane %v9935_v37, 5 }
 0x573   : > { %v9729_v59 = vld [vmem:[#allocation2 + $0x6c] sm:$0xf] }
 0x574   : > { %v9980_v8 = vshrl.u32 %v9729_v59, 16  ;;  %v22768_v52 = vld [vmem:[#allocation2 + $0x6c] sm:$0xe] }
 0x576   : > { %v22723_v39 = vpop.eup %18872 }
 0x577   : > { %25433 = vst [vmem:[#allocation90_spill] sm:$0xff] %v22723_v39 }
 0x578   : > { %v22630_v51 = vld [vmem:[#allocation2 + $0x58] sm:$0xf] }
 0x579   : > { %25427 = vst [vmem:[#allocation86_spill] sm:$0xff] %v22630_v51  ;;  %v10821_v18 = vrot.slane %v22630_v51, 5  ;;  %v11577_v4 = vld [vmem:[#allocation2 + $0x58] sm:$0xf]  ;;  %v9945_v24 = vshrl.u32 %v22630_v51, 16 }
 0x57b   : > { %v10823_v35 = vrot.slane %v10821_v18, 4  ;;  %v22639_v45 = vsel %vm20031_vm6, %v15844_v31, %v10821_v18  ;;  %v12302_v18 = vld [vmem:[#allocation2 + $0x54] sm:$0xe]  ;;  %v12404_v31 = vrot.slane %v11577_v4, 5  ;;  %v9934_v4 = vrot.slane %v9932_v63, 4 }
 0x57c   : > { %25429 = vst [vmem:[#allocation47_spill] sm:$0xff] %v22639_v45  ;;  %v15961_v58 = vrot.slane %v12302_v18, 9  ;;  %v9983_v63 = vshll.u32 %v9729_v59, 16  ;;  %v9620_v18 = vld [vmem:[#allocation2 + $0x30] sm:$0xf]  ;;  %v22712_v49 = vrot.slane %v9945_v24, 4 }
 0x57d   : > { %v22643_v30 = vsel %vm20031_vm6, %v10823_v35, %v10824_v34  ;;  %v12406_v26 = vrot.slane %v12404_v31, 4  ;;  %v9938_v62 = vor.u32 %v9937_v33, %v9934_v4  ;;  %v22690_v4 = vrot.slane %v9980_v8, 4 }
 0x57e   : > { %25430 = vst [vmem:[#allocation87_spill] sm:$0xff] %v22643_v30 }
 0x57f   : > { %v22663_v57 = vsel %vm20031_vm6, %v12406_v26, %v12407_v10  ;;  %v10828_v10 = vrot.slane %v22619_v0, 5  ;;  %v22708_v9 = vrot.slane %v9938_v62, 4 }
 0x580   : > { %25432 = vst [vmem:[#allocation89_spill] sm:$0xff] %v22663_v57 }
 0x581   : > { %v22706_v36 = vrot.slane %v10828_v10, 4 }
 0x584   : > { %v9463_v27 = vpop.permute.xlu1 %9462 }
 0x585   : > { %v9607_v35 = vsel %vm20277_vm15, %v9463_v27, %v9606_v56  ;;  %v9457_v34 = vpop.permute.xlu0 %9456  ;;  %v9965_v56 = vshll.u32 %v22619_v0, 16  ;;  %v9969_v27 = vshrl.u32 %v22619_v0, 16 }
 0x586   : > { %9608 = vst [vmem:[#allocation2 + $0x18] sm:$0xf] %v9607_v35  ;;  %v9600_v1 = vsel %vm20277_vm15, %v9457_v34, %v19008_v12  ;;  %v10730_v12 = vld [vmem:[#allocation2 + $0x60] sm:$0xe]  ;;  %v22659_v35 = vsel %vm20031_vm6, %v15961_v58, %v12404_v31  ;;  %v22669_v58 = vrot.slane %v9951_v5, 5  ;;  %v22671_v31 = vrot.slane %v9962_v6, 4 }
 0x587   : > { %9601 = vst [vmem:[#allocation2 + $0xc] sm:$0xf] %v9600_v1  ;;  %25431 = vst [vmem:[#allocation88_spill] sm:$0xff] %v22659_v35  ;;  %v15845_v26 = vrot.slane %v10730_v12, 9  ;;  %v22677_v1 = vrot.slane %v9965_v56, 5  ;;  %v22692_v56 = vrot.slane %v9983_v63, 5 }
 0x588   : > { %v9467_v50 = vpop.permute.xlu1 %9466 }
 0x589   : > { %v9611_v47 = vsel %vm20241_vm9, %v9467_v50, %v9610_v41  ;;  %v9461_v7 = vpop.permute.xlu0 %9460 }
 0x58a   : > { %9612 = vst [vmem:[#allocation2 + $0x20] sm:$0x1] %v9611_v47  ;;  %v9604_v50 = vsel %vm20241_vm9, %v9461_v7, %v9603_v38  ;;  %v22679_v38 = vrot.slane %v9969_v27, 4  ;;  %v9941_v47 = vshll.u32 %v22630_v51, 16 }
 0x58b   : > { %9605 = vst [vmem:[#allocation2 + $0x14] sm:$0x1] %v9604_v50 }
 0x58c   : > { %v9459_v37 = vpop.permute.xlu1 %9458  ;;  %v22710_v44 = vrot.slane %v9941_v47, 5 }
 0x58d   : > { %9602 = vst.msk [vmem:[#allocation2 + $0x10] sm:$0xf] %vm354_vm12, %v9459_v37  ;;  %v22675_v34 = vld [vmem:[#allocation2 + $0x18] sm:$0xf]  ;;  %v9465_v41 = vpop.permute.xlu0 %9464 }
 0x58e   : > { %v22681_v59 = vld [vmem:[#allocation2 + $0xc] sm:$0xf]  ;;  %v9812_v5 = vshrl.u32 %v22675_v34, 16  ;;  %v9815_v6 = vshll.u32 %v22675_v34, 16  ;;  %9609 = vst.msk [vmem:[#allocation2 + $0x1c] sm:$0xf] %vm354_vm12, %v9465_v41  ;;  %v22700_v41 = vsel %vm20031_vm6, %v15845_v26, %v10828_v10 }
 0x58f   : > { %v9788_v12 = vshrl.u32 %v22681_v59, 16  ;;  %v9791_v33 = vshll.u32 %v22681_v59, 16  ;;  %v22694_v27 = vld [vmem:[#allocation2 + $0x18] sm:$0xe]  ;;  %v10723_v48 = vld [vmem:[#allocation2 + $0xc] sm:$0xe] }
 0x590   : > { %v9475_v7 = vpop.permute.xlu1 %9474  ;;  %v9814_v50 = vrot.slane %v9812_v5, 4  ;;  %v9817_v37 = vrot.slane %v9815_v6, 5  ;;  %v9613_v5 = vld [vmem:[#allocation2 + $0x24] sm:$0xf]  ;;  %v9617_v26 = vld [vmem:[#allocation2 + $0x2c] sm:$0x1] }
 0x591   : > { %v9621_v42 = vsel %vm20277_vm15, %v9475_v7, %v9620_v18  ;;  %v9790_v8 = vrot.slane %v9788_v12, 4  ;;  %v9793_v15 = vrot.slane %v9791_v33, 5  ;;  %v22704_v63 = vld [vmem:[#allocation2 + $0x20] sm:$0x1]  ;;  %v15838_v33 = vrot.slane %v10723_v48, 9 }
 0x592   : > { %9622 = vst [vmem:[#allocation2 + $0x30] sm:$0xf] %v9621_v42  ;;  %v9818_v6 = vor.u32 %v9817_v37, %v9814_v50  ;;  %v9748_v46 = vld [vmem:[#allocation2 + $0x14] sm:$0x1]  ;;  %v9624_v7 = vld [vmem:[#allocation2 + $0x38] sm:$0x1] }
 0x593   : > { %v9794_v62 = vor.u32 %v9793_v15, %v9790_v8  ;;  %v9807_v47 = vshll.u32 %v9748_v46, 16  ;;  %v9831_v24 = vshll.u32 %v22704_v63, 16  ;;  %v9948_v15 = vor.u32 %v22712_v49, %v22710_v44 }
 0x594   : > { %v9469_v42 = vpop.permute.xlu1 %9468  ;;  %v22719_v50 = vld [vmem:[#allocation2 + $0x10] sm:$0xf]  ;;  %v22729_v10 = vrot.slane %v9818_v6, 4  ;;  %v10782_v19 = vrot.slane %v9748_v46, 5 }
 0x595   : > { %v9614_v18 = vsel %vm20277_vm15, %v9469_v42, %v9613_v5  ;;  %v9797_v12 = vshll.u32 %v22719_v50, 16  ;;  %v9801_v48 = vshrl.u32 %v22719_v50, 16  ;;  %v22731_v29 = vld [vmem:[#allocation2 + $0x1c] sm:$0xf]  ;;  %v10779_v37 = vrot.slane %v22719_v50, 5  ;;  %v22738_v5 = vpop.eup %18874 }
 0x596   : > { %9615 = vst [vmem:[#allocation2 + $0x24] sm:$0xf] %v9614_v18  ;;  %25434 = vst [vmem:[#allocation91_spill] sm:$0xff] %v22738_v5  ;;  %v9821_v18 = vshll.u32 %v22731_v29, 16  ;;  %v9795_v40 = vrot.slane %v9794_v62, 4  ;;  %v9825_v49 = vshrl.u32 %v22731_v29, 16 }
 0x597   : > { %v9473_v3 = vpop.permute.xlu0 %9472  ;;  %v9799_v6 = vrot.slane %v9797_v12, 5  ;;  %v9803_v23 = vrot.slane %v9801_v48, 4  ;;  %v10781_v20 = vrot.slane %v10779_v37, 4 }
 0x598   : > { %v9618_v42 = vsel %vm20241_vm9, %v9473_v3, %v9617_v26  ;;  %v9479_v54 = vpop.permute.xlu1 %9478  ;;  %v9823_v21 = vrot.slane %v9821_v18, 5  ;;  %v22752_v26 = vsel %vm20031_vm6, %v15838_v33, %v10779_v37  ;;  %v9827_v62 = vrot.slane %v9825_v49, 4 }
 0x599   : > { %9619 = vst [vmem:[#allocation2 + $0x2c] sm:$0x1] %v9618_v42  ;;  %v9625_v46 = vsel %vm20241_vm9, %v9479_v54, %v9624_v7  ;;  %v9804_v11 = vor.u32 %v9803_v23, %v9799_v6  ;;  %v22748_v3 = vld [vmem:[#allocation2 + $0x30] sm:$0xf]  ;;  %25435 = vst [vmem:[#allocation92_spill] sm:$0xff] %v22752_v26  ;;  %v22758_v8 = vsel %vm20031_vm6, %v10781_v20, %v10782_v19  ;;  %v9809_v54 = vrot.slane %v9807_v47, 5 }
 0x59a   : > { %9626 = vst [vmem:[#allocation2 + $0x38] sm:$0x1] %v9625_v46  ;;  %v9860_v48 = vshrl.u32 %v22748_v3, 16  ;;  %v9863_v42 = vshll.u32 %v22748_v3, 16  ;;  %25436 = vst [vmem:[#allocation93_spill] sm:$0xff] %v22758_v8  ;;  %v10786_v33 = vrot.slane %v22731_v29, 5  ;;  %v9800_v18 = vsel %vm19659_vm2, %v9795_v40, %v9799_v6 }
 0x59b   : > { %v9477_v12 = vpop.permute.xlu0 %9476  ;;  %v9805_v23 = vrot.slane %v9804_v11, 4  ;;  %v9828_v49 = vor.u32 %v9827_v62, %v9823_v21  ;;  %v9833_v46 = vrot.slane %v9831_v24, 5  ;;  %v9627_v19 = vld [vmem:[#allocation2 + $0x3c] sm:$0xf] }
 0x59c   : > { %9623 = vst.msk [vmem:[#allocation2 + $0x34] sm:$0xf] %vm354_vm12, %v9477_v12  ;;  %v9487_v37 = vpop.permute.xlu1 %9486  ;;  %v22766_v25 = vrot.slane %v9860_v48, 4  ;;  %v9865_v12 = vrot.slane %v9863_v42, 5  ;;  %v10788_v7 = vrot.slane %v10786_v33, 4  ;;  %v18696_v48 = vld [vmem:[#allocation11 + $0x8] sm:$0xff]   ;;  %v25438_v42 = vor.u32 %v22692_v56, %v22690_v4 }
 0x59d   : > { %v9635_v20 = vsel %vm20277_vm15, %v9487_v37, %v9634_v43  ;;  %v9810_v11 = vsel %vm19659_vm2, %v9805_v23, %v9809_v54  ;;  %v22774_v47 = vld [vmem:[#allocation2 + $0x24] sm:$0xf]  ;;  %v9829_v6 = vrot.slane %v9828_v49, 4  ;;  %v25437_v23 = vor.u32 %v22679_v38, %v22677_v1  ;;  %v9638_v56 = vld [vmem:[#allocation2 + $0x50] sm:$0x1] }
 0x59e   : > { %9636 = vst [vmem:[#allocation2 + $0x48] sm:$0xf] %v9635_v20  ;;  %v15770_v40 = vcombine.low %v9800_v18, %v9810_v11  ;;  %v9836_v24 = vshrl.u32 %v22774_v47, 16  ;;  %v9839_v62 = vshll.u32 %v22774_v47, 16  ;;  %v9631_v43 = vld [vmem:[#allocation2 + $0x44] sm:$0x1]  ;;  %v9824_v38 = vsel %vm19659_vm2, %v22729_v10, %v9823_v21 }
 0x59f   : > { %v9471_v2 = vpop.permute.xlu0 %9470  ;;  %v22782_v54 = vrot.slane %v25437_v23, 4  ;;  %v22787_v37 = vrot.slane %v25438_v42, 4  ;;  %v25439_v18 = vrot.slane %v22704_v63, 5  ;;  %v9834_v4 = vsel %vm19659_vm2, %v9829_v6, %v9833_v46  ;;  %v22810_v23 = vld [vmem:[#allocation2 + $0x30] sm:$0xe] }
 0x5a0   : > { %9616 = vst.msk [vmem:[#allocation2 + $0x28] sm:$0xf] %vm354_vm12, %v9471_v2  ;;  %17387 = vmatmul.mubr.msk.bf16.vlgmr.msra.gmra.mrb[32].mxu1 %vm4546_vm0, %v15770_v40  ;;  %v9481_v2 = vpop.permute.xlu1 %9480  ;;  %v22802_v11 = vrot.slane %v9948_v15, 4  ;;  %v25441_v63 = vrot.slane %v22694_v27, 9  ;;  %v15771_v42 = vcombine.low %v9824_v38, %v9834_v4  ;;  %v22815_v21 = vld [vmem:[#allocation2 + $0x2c] sm:$0x1] }
 0x5a1   : > { %v22793_v49 = vsel %vm20031_vm6, %v10788_v7, %v25439_v18  ;;  %v9628_v40 = vsel %vm20277_vm15, %v9481_v2, %v9627_v19  ;;  %17419 = vmatpush3.bf16.msra.mxu1 %v22512_v22  ;;  %v22817_v10 = vld [vmem:[#allocation2 + $0x38] sm:$0x1]  ;;  %v9838_v19 = vrot.slane %v9836_v24, 4  ;;  %v9841_v6 = vrot.slane %v9839_v62, 5 }
 0x5a2   : > { %25440 = vst [vmem:[#allocation94_spill] sm:$0xff] %v22793_v49  ;;  %v22808_v7 = vsel %vm20031_vm6, %v25441_v63, %v10786_v33  ;;  %v22825_v33 = vld [vmem:[#allocation2 + $0x24] sm:$0xe]  ;;  %9629 = vst [vmem:[#allocation2 + $0x3c] sm:$0xf] %v9628_v40  ;;  %v9866_v22 = vor.u32 %v9865_v12, %v22766_v25  ;;  %v9879_v2 = vshll.u32 %v22817_v10, 16  ;;  %17420 = vmatprep.subr.bf16.mxu1 %v18696_v48  ;;  %17390 = vmatprep.mubr.msk.bf16.mxu1 %vm4546_vm0, %v15771_v42 }
 0x5a3   : > { %25442 = vst [vmem:[#allocation95_spill] sm:$0xff] %v22808_v7  ;;  %v9485_v46 = vpop.permute.xlu0 %9484  ;;  %v22827_v18 = vld [vmem:[#allocation2 + $0x34] sm:$0xf]  ;;  %v22831_v38 = vld [vmem:[#allocation11 + $0x20] sm:$0xff]   ;;  %v9652_v25 = vld [vmem:[#allocation2 + $0x68] sm:$0x1]  ;;  %v9944_v12 = vsel %vm19659_vm2, %v22708_v9, %v22710_v44 }
 0x5a4   : > { %v9632_v4 = vsel %vm20241_vm9, %v9485_v46, %v9631_v43  ;;  %v9869_v63 = vshll.u32 %v22827_v18, 16  ;;  %v9873_v40 = vshrl.u32 %v22827_v18, 16  ;;  %v9491_v62 = vpop.permute.xlu1 %9490  ;;  %v9954_v43 = vsel %vm19659_vm2, %v22802_v11, %v22669_v58 }
 0x5a5   : > { %9633 = vst [vmem:[#allocation2 + $0x44] sm:$0x1] %v9632_v4  ;;  %v15841_v46 = vrot.slane %v22810_v23, 9  ;;  %v9639_v15 = vsel %vm20241_vm9, %v9491_v62, %v9638_v56  ;;  %v9855_v4 = vshll.u32 %v22815_v21, 16  ;;  %v22855_v27 = vld [vmem:[#allocation2 + $0x48] sm:$0xf]  ;;  %17421 = vmatpush3.bf16.msra.mxu1 %v18696_v48  ;;  %v9842_v58 = vor.u32 %v9841_v6, %v9838_v19 }
 0x5a6   : > { %v22853_v24 = vrot.slane %v9869_v63, 5  ;;  %v9875_v20 = vrot.slane %v9873_v40, 4  ;;  %9640 = vst [vmem:[#allocation2 + $0x50] sm:$0x1] %v9639_v15  ;;  %v9867_v11 = vrot.slane %v9866_v22, 4  ;;  %v9908_v42 = vshrl.u32 %v22855_v27, 16  ;;  %17454 = vmatprep.subr.bf16.mxu1 %v22831_v38 }
 0x5a7   : > { %v9489_v9 = vpop.permute.xlu0 %9488  ;;  %v22857_v44 = vld [vmem:[#allocation2 + $0x28] sm:$0xf]  ;;  %v9911_v23 = vshll.u32 %v22855_v27, 16  ;;  %v9881_v40 = vrot.slane %v9879_v2, 5  ;;  %v10800_v6 = vrot.slane %v22827_v18, 5  ;;  %v9843_v2 = vrot.slane %v9842_v58, 4 }
 0x5a8   : > { %9637 = vst.msk [vmem:[#allocation2 + $0x4c] sm:$0xf] %vm354_vm12, %v9489_v9  ;;  %v9845_v56 = vshll.u32 %v22857_v44, 16  ;;  %v9849_v63 = vshrl.u32 %v22857_v44, 16  ;;  %v9876_v48 = vor.u32 %v9875_v20, %v22853_v24  ;;  %v9503_v15 = vpop.permute.xlu1 %9502  ;;  %v9910_v62 = vrot.slane %v9908_v42, 4 }
 0x5a9   : > { %v9913_v53 = vrot.slane %v9911_v23, 5  ;;  %v9653_v22 = vsel %vm20241_vm9, %v9503_v15, %v9652_v25  ;;  %v22871_v30 = vld [vmem:[#allocation2 + $0x3c] sm:$0xf]  ;;  %v9662_v20 = vld [vmem:[#allocation2 + $0x78] sm:$0xf]  ;;  %v9857_v49 = vrot.slane %v9855_v4, 5  ;;  %v22878_v25 = vcombine.low %v9944_v12, %v9954_v43 }
 0x5aa   : > { %v9847_v57 = vrot.slane %v9845_v56, 5  ;;  %v9851_v9 = vrot.slane %v9849_v63, 4  ;;  %v9877_v35 = vrot.slane %v9876_v48, 4  ;;  %9654 = vst [vmem:[#allocation2 + $0x68] sm:$0x1] %v9653_v22  ;;  %v9884_v42 = vshrl.u32 %v22871_v30, 16 }
 0x5ab   : > { %v9483_v45 = vpop.permute.xlu0 %9482  ;;  %v9887_v23 = vshll.u32 %v22871_v30, 16  ;;  %v10803_v63 = vrot.slane %v22817_v10, 5  ;;  %v9914_v58 = vor.u32 %v9913_v53, %v9910_v62  ;;  %v22884_v4 = vsel %vm20031_vm6, %v15841_v46, %v10800_v6  ;;  %v9669_v62 = vld [vmem:[#allocation2 + $0x84] sm:$0xf]  ;;  %v22910_v8 = vld [vmem:[#allocation2 + $0x3c] sm:$0xe] }
 0x5ac   : > { %9630 = vst.msk [vmem:[#allocation2 + $0x40] sm:$0xf] %vm354_vm12, %v9483_v45  ;;  %v9852_v19 = vor.u32 %v9851_v9, %v9847_v57  ;;  %v22876_v7 = vld [vmem:[#allocation2 + $0x44] sm:$0x1]  ;;  %v9511_v48 = vpop.permute.xlu1 %9510  ;;  %v9886_v15 = vrot.slane %v9884_v42, 4  ;;  %25443 = vst [vmem:[#allocation96_spill] sm:$0xff] %v22884_v4  ;;  %v9882_v12 = vsel %vm19659_vm2, %v9877_v35, %v9881_v40  ;;  %v9848_v53 = vsel %vm19659_vm2, %v9843_v2, %v9847_v57 }
 0x5ad   : > { %v9889_v22 = vrot.slane %v9887_v23, 5  ;;  %v9663_v45 = vsel %vm20277_vm15, %v9511_v48, %v9662_v20  ;;  %v9903_v43 = vshll.u32 %v22876_v7, 16  ;;  %v22891_v56 = vld [vmem:[#allocation2 + $0x50] sm:$0x1]  ;;  %v9872_v46 = vsel %vm19659_vm2, %v9867_v11, %v22853_v24  ;;  %v9659_v40 = vld [vmem:[#allocation2 + $0x74] sm:$0x1] }
 0x5ae   : > { %v9853_v9 = vrot.slane %v9852_v19, 4  ;;  %9664 = vst [vmem:[#allocation2 + $0x78] sm:$0xf] %v9663_v45  ;;  %v9927_v19 = vshll.u32 %v22891_v56, 16  ;;  %v15773_v11 = vcombine.low %v9872_v46, %v9882_v12  ;;  %v10802_v45 = vrot.slane %v10800_v6, 4 }
 0x5af   : > { %v9507_v10 = vpop.permute.xlu0 %9506  ;;  %v9890_v42 = vor.u32 %v9889_v22, %v9886_v15  ;;  %v22898_v20 = vld [vmem:[#allocation2 + $0x4c] sm:$0xf]  ;;  %v9666_v15 = vld [vmem:[#allocation2 + $0x80] sm:$0x1]  ;;  %v22908_v22 = vrot.slane %v9914_v58, 4  ;;  %v10793_v46 = vrot.slane %v22857_v44, 5 }
 0x5b0   : > { %9658 = vst.msk [vmem:[#allocation2 + $0x70] sm:$0xf] %vm354_vm12, %v9507_v10  ;;  %v9858_v35 = vsel %vm19659_vm2, %v9853_v9, %v9857_v49  ;;  %v9917_v23 = vshll.u32 %v22898_v20, 16  ;;  %v9921_v57 = vshrl.u32 %v22898_v20, 16  ;;  %v9517_v48 = vpop.permute.xlu1 %9516  ;;  %v22914_v9 = vrot.slane %v9903_v43, 5 }
 0x5b1   : > { %v15772_v24 = vcombine.low %v9848_v53, %v9858_v35  ;;  %v9670_v49 = vsel %vm20277_vm15, %v9517_v48, %v9669_v62  ;;  %v22916_v0 = vld [vmem:[#allocation2 + $0x68] sm:$0x1]  ;;  %v9891_v58 = vrot.slane %v9890_v42, 4  ;;  %v22925_v62 = vsel %vm20031_vm6, %v10802_v45, %v10803_v63 }
 0x5b2   : > { %v9919_v10 = vrot.slane %v9917_v23, 5  ;;  %v9923_v26 = vrot.slane %v9921_v57, 4  ;;  %9671 = vst [vmem:[#allocation2 + $0x84] sm:$0xf] %v9670_v49  ;;  %v9975_v6 = vshll.u32 %v22916_v0, 16  ;;  %25444 = vst [vmem:[#allocation97_spill] sm:$0xff] %v22925_v62 }
 0x5b3   : > { %17391 = vmatmul.mubr.msk.bf16.gmra.mrb[36].mxu1 %vm4546_vm0, %v15772_v24  ;;  %v9509_v53 = vpop.permute.xlu0 %9508  ;;  %v22919_v12 = vld [vmem:[#allocation2 + $0x40] sm:$0xf]  ;;  %v9929_v57 = vrot.slane %v9927_v19, 5  ;;  %v10728_v62 = vld [vmem:[#allocation2 + $0x48] sm:$0xe] }
 0x5b4   : > { %v9660_v43 = vsel %vm20241_vm9, %v9509_v53, %v9659_v40  ;;  %17394 = vmatprep.mubr.msk.bf16.mxu1 %vm4546_vm0, %v15773_v11  ;;  %v9893_v35 = vshll.u32 %v22919_v12, 16  ;;  %v9897_v23 = vshrl.u32 %v22919_v12, 16  ;;  %v9515_v42 = vpop.permute.xlu1 %9514  ;;  %v9924_v24 = vor.u32 %v9923_v26, %v9919_v10  ;;  %v9676_v40 = vld [vmem:[#allocation2 + $0x90] sm:$0xf] }
 0x5b5   : > { %9661 = vst [vmem:[#allocation2 + $0x74] sm:$0x1] %v9660_v43  ;;  %v9977_v48 = vrot.slane %v9975_v6, 5  ;;  %v9667_v45 = vsel %vm20241_vm9, %v9515_v42, %v9666_v15  ;;  %v9920_v2 = vsel %vm19659_vm2, %v22908_v22, %v9919_v10  ;;  %v22940_v19 = vld [vmem:[#allocation2 + $0x78] sm:$0xf]  ;;  %v25445_v15 = vrot.slane %v22825_v33, 9 }
 0x5b6   : > { %v9895_v53 = vrot.slane %v9893_v35, 5  ;;  %v9899_v11 = vrot.slane %v9897_v23, 4  ;;  %9668 = vst [vmem:[#allocation2 + $0x80] sm:$0x1] %v9667_v45  ;;  %v9925_v26 = vrot.slane %v9924_v24, 4  ;;  %v10004_v49 = vshrl.u32 %v22940_v19, 16 }
 0x5b7   : > { %v9513_v43 = vpop.permute.xlu0 %9512  ;;  %v22942_v6 = vld [vmem:[#allocation2 + $0x70] sm:$0xf]  ;;  %v10007_v63 = vshll.u32 %v22940_v19, 16  ;;  %v22950_v35 = vsel %vm20031_vm6, %v25445_v15, %v10793_v46  ;;  %v9978_v10 = vsel %vm19659_vm2, %v22782_v54, %v9977_v48  ;;  %v10795_v42 = vrot.slane %v10793_v46, 4 }
 0x5b8   : > { %25446 = vst [vmem:[#allocation98_spill] sm:$0xff] %v22950_v35  ;;  %9665 = vst.msk [vmem:[#allocation2 + $0x7c] sm:$0xf] %vm354_vm12, %v9513_v43  ;;  %v9900_v22 = vor.u32 %v9899_v11, %v9895_v53  ;;  %v9989_v23 = vshll.u32 %v22942_v6, 16  ;;  %v9523_v24 = vpop.permute.xlu1 %9522  ;;  %v9930_v45 = vsel %vm19659_vm2, %v9925_v26, %v9929_v57  ;;  %v9993_v33 = vshrl.u32 %v22942_v6, 16 }
 0x5b9   : > { %v10006_v55 = vrot.slane %v10004_v49, 4  ;;  %v10009_v51 = vrot.slane %v10007_v63, 5  ;;  %v9677_v15 = vsel %vm20277_vm15, %v9523_v24, %v9676_v40  ;;  %v9896_v11 = vsel %vm19659_vm2, %v9891_v58, %v9895_v53  ;;  %v22964_v48 = vld [vmem:[#allocation2 + $0x84] sm:$0xf] }
 0x5ba   : > { %v9901_v43 = vrot.slane %v9900_v22, 4  ;;  %v9991_v54 = vrot.slane %v9989_v23, 5  ;;  %25447 = vst [vmem:[#allocation99_spill] sm:$0xff] %v22964_v48  ;;  %9678 = vst [vmem:[#allocation2 + $0x90] sm:$0xf] %v9677_v15  ;;  %v25448_v57 = vsel %vm19659_vm2, %v22671_v31, %v22677_v1  ;;  %v9995_v63 = vrot.slane %v9993_v33, 4 }
 0x5bb   : > { %v9519_v46 = vpop.permute.xlu0 %9518  ;;  %v22971_v49 = vcombine.low %v25448_v57, %v9978_v10  ;;  %v10028_v40 = vshrl.u32 %v22964_v48, 16  ;;  %v10031_v26 = vshll.u32 %v22964_v48, 16  ;;  %v15775_v53 = vcombine.low %v9920_v2, %v9930_v45  ;;  %v9673_v10 = vld [vmem:[#allocation2 + $0x8c] sm:$0x1] }
 0x5bc   : > { %9672 = vst.msk [vmem:[#allocation2 + $0x88] sm:$0xf] %vm354_vm12, %v9519_v46  ;;  %v9906_v58 = vsel %vm19659_vm2, %v9901_v43, %v22914_v9  ;;  %v22979_v22 = vld [vmem:[#allocation2 + $0x74] sm:$0x1]  ;;  %v10010_v23 = vor.u32 %v10009_v51, %v10006_v55  ;;  %v25449_v24 = vrot.slane %v22815_v21, 5  ;;  %v9529_v33 = vpop.permute.xlu1 %9528  ;;  %v9992_v15 = vsel %vm19659_vm2, %v22787_v37, %v9991_v54 }
 0x5bd   : > { %v15774_v1 = vcombine.low %v9896_v11, %v9906_v58  ;;  %v9996_v46 = vor.u32 %v9995_v63, %v9991_v54  ;;  %v9999_v9 = vshll.u32 %v22979_v22, 16  ;;  %v9684_v2 = vsel %vm20277_vm15, %v9529_v33, %v9683_v13  ;;  %v9680_v55 = vld [vmem:[#allocation2 + $0x98] sm:$0x1]  ;;  %v22993_v51 = vld [vmem:[#allocation2 + $0x80] sm:$0x1] }
 0x5be   : > { %v22985_v31 = vsel %vm20031_vm6, %v10795_v42, %v25449_v24  ;;  %v10030_v21 = vrot.slane %v10028_v40, 4  ;;  %v10033_v45 = vrot.slane %v10031_v26, 5  ;;  %9685 = vst [vmem:[#allocation2 + $0x9c] sm:$0xf] %v9684_v2  ;;  %v10023_v57 = vshll.u32 %v22993_v51, 16 }
 0x5bf   : > { %25450 = vst [vmem:[#allocation100_spill] sm:$0xff] %v22985_v31  ;;  %17395 = vmatmul.mubr.msk.bf16.gmra.mrb[40].mxu1 %vm4546_vm0, %v15774_v1  ;;  %v9521_v11 = vpop.permute.xlu0 %9520  ;;  %v9997_v43 = vrot.slane %v9996_v46, 4  ;;  %v10001_v37 = vrot.slane %v9999_v9, 5  ;;  %v22998_v54 = vld [vmem:[#allocation2 + $0x7c] sm:$0xf]  ;;  %v10011_v46 = vrot.slane %v10010_v23, 4 }
 0x5c0   : > { %v9674_v63 = vsel %vm20241_vm9, %v9521_v11, %v9673_v10  ;;  %17398 = vmatprep.mubr.msk.bf16.mxu1 %vm4546_vm0, %v15775_v53  ;;  %v10013_v40 = vshll.u32 %v22998_v54, 16  ;;  %v10017_v26 = vshrl.u32 %v22998_v54, 16  ;;  %v10034_v58 = vor.u32 %v10033_v45, %v10030_v21  ;;  %v9527_v24 = vpop.permute.xlu1 %9526  ;;  %v9690_v1 = vld [vmem:[#allocation2 + $0xa8] sm:$0xf] }
 0x5c1   : > { %9675 = vst [vmem:[#allocation2 + $0x8c] sm:$0x1] %v9674_v63  ;;  %v10002_v33 = vsel %vm19659_vm2, %v9997_v43, %v10001_v37  ;;  %v10807_v2 = vrot.slane %v22919_v12, 5  ;;  %v9681_v53 = vsel %vm20241_vm9, %v9527_v24, %v9680_v55  ;;  %v10025_v13 = vrot.slane %v10023_v57, 5  ;;  %v23015_v42 = vld [vmem:[#allocation2 + $0x90] sm:$0xf] }
 0x5c2   : > { %v10015_v10 = vrot.slane %v10013_v40, 5  ;;  %v10019_v11 = vrot.slane %v10017_v26, 4  ;;  %25451 = vst [vmem:[#allocation101_spill] sm:$0xff] %v23015_v42  ;;  %9682 = vst [vmem:[#allocation2 + $0x98] sm:$0x1] %v9681_v53  ;;  %v23017_v45 = vcombine.low %v9992_v15, %v10002_v33  ;;  %v23021_v23 = vrot.slane %v10034_v58, 4 }
 0x5c3   : > { %v9525_v21 = vpop.permute.xlu0 %9524  ;;  %v23019_v63 = vld [vmem:[#allocation2 + $0x88] sm:$0xf]  ;;  %v10052_v43 = vshrl.u32 %v23015_v42, 16  ;;  %v10055_v37 = vshll.u32 %v23015_v42, 16  ;;  %v25452_v26 = vrot.slane %v22910_v8, 9  ;;  %v10809_v9 = vrot.slane %v10807_v2, 4 }
 0x5c4   : > { %9679 = vst.msk [vmem:[#allocation2 + $0x94] sm:$0xf] %vm354_vm12, %v9525_v21  ;;  %v10020_v55 = vor.u32 %v10019_v11, %v10015_v10  ;;  %v10037_v40 = vshll.u32 %v23019_v63, 16  ;;  %v10041_v57 = vshrl.u32 %v23019_v63, 16  ;;  %v9535_v24 = vpop.permute.xlu1 %9534 }
 0x5c5   : > { %v23032_v15 = vsel %vm20031_vm6, %v25452_v26, %v10807_v2  ;;  %v10054_v58 = vrot.slane %v10052_v43, 4  ;;  %v10057_v33 = vrot.slane %v10055_v37, 5  ;;  %v9691_v11 = vsel %vm20277_vm15, %v9535_v24, %v9690_v1  ;;  %v23038_v35 = vld [vmem:[#allocation2 + $0x9c] sm:$0xf]  ;;  %v9697_v43 = vld [vmem:[#allocation2 + $0xb4] sm:$0xf] }
 0x5c6   : > { %25453 = vst [vmem:[#allocation102_spill] sm:$0xff] %v23032_v15  ;;  %v10021_v21 = vrot.slane %v10020_v55, 4  ;;  %v10039_v4 = vrot.slane %v10037_v40, 5  ;;  %v10043_v31 = vrot.slane %v10041_v57, 4  ;;  %25454 = vst [vmem:[#allocation103_spill] sm:$0xff] %v23038_v35  ;;  %v10016_v37 = vsel %vm19659_vm2, %v10011_v46, %v10015_v10 }
 0x5c7   : > { %17399 = vmatmul.mubr.msk.bf16.gmra.mrb[44].mxu1 %vm4546_vm0, %v22878_v25  ;;  %v9531_v8 = vpop.permute.xlu0 %9530  ;;  %9692 = vst [vmem:[#allocation2 + $0xa8] sm:$0xf] %v9691_v11  ;;  %v10058_v26 = vor.u32 %v10057_v33, %v10054_v58  ;;  %v10076_v2 = vshrl.u32 %v23038_v35, 16  ;;  %v10079_v53 = vshll.u32 %v23038_v35, 16  ;;  %v10810_v10 = vrot.slane %v22876_v7, 5 }
 0x5c8   : > { %9686 = vst.msk [vmem:[#allocation2 + $0xa0] sm:$0xf] %vm354_vm12, %v9531_v8  ;;  %17402 = vmatprep.mubr.msk.bf16.mxu1 %vm4546_vm0, %v22971_v49  ;;  %v10026_v1 = vsel %vm19659_vm2, %v10021_v21, %v10025_v13  ;;  %v23051_v25 = vld [vmem:[#allocation2 + $0x8c] sm:$0x1]  ;;  %v10040_v55 = vsel %vm19659_vm2, %v23021_v23, %v10039_v4  ;;  %v10044_v46 = vor.u32 %v10043_v31, %v10039_v4  ;;  %v9687_v40 = vld [vmem:[#allocation2 + $0xa4] sm:$0x1]  ;;  %v9541_v57 = vpop.permute.xlu1 %9540 }
 0x5c9   : > { %v15779_v24 = vcombine.low %v10016_v37, %v10026_v1  ;;  %v10047_v58 = vshll.u32 %v23051_v25, 16  ;;  %v10078_v33 = vrot.slane %v10076_v2, 4  ;;  %v15843_v11 = vrot.slane %v10728_v62, 9  ;;  %v9694_v13 = vld [vmem:[#allocation2 + $0xb0] sm:$0x1] }
 0x5ca   : > { %v9698_v49 = vsel %vm20277_vm15, %v9541_v57, %v9697_v43  ;;  %v10045_v21 = vrot.slane %v10044_v46, 4  ;;  %v23060_v8 = vld [vmem:[#allocation2 + $0x98] sm:$0x1]  ;;  %v10081_v48 = vrot.slane %v10079_v53, 5  ;;  %v23064_v4 = vsel %vm20031_vm6, %v10809_v9, %v10810_v10 }
 0x5cb   : > { %25455 = vst [vmem:[#allocation104_spill] sm:$0xff] %v23064_v4  ;;  %v9533_v7 = vpop.permute.xlu0 %9532  ;;  %9699 = vst [vmem:[#allocation2 + $0xb4] sm:$0xf] %v9698_v49  ;;  %v10049_v31 = vrot.slane %v10047_v58, 5  ;;  %v23066_v23 = vld [vmem:[#allocation2 + $0x94] sm:$0xf] }
 0x5cc   : > { %v10071_v37 = vshll.u32 %v23060_v8, 16  ;;  %v10814_v43 = vrot.slane %v22898_v20, 5  ;;  %v9688_v2 = vsel %vm20241_vm9, %v9533_v7, %v9687_v40  ;;  %v10061_v53 = vshll.u32 %v23066_v23, 16  ;;  %v9539_v46 = vpop.permute.xlu1 %9538 }
 0x5cd   : > { %v10065_v9 = vshrl.u32 %v23066_v23, 16  ;;  %v10082_v1 = vor.u32 %v10081_v48, %v10078_v33  ;;  %9689 = vst [vmem:[#allocation2 + $0xa4] sm:$0x1] %v9688_v2  ;;  %v10050_v10 = vsel %vm19659_vm2, %v10045_v21, %v10049_v31  ;;  %v10059_v57 = vrot.slane %v10058_v26, 4 }
 0x5ce   : > { %v10073_v58 = vrot.slane %v10071_v37, 5  ;;  %v9695_v62 = vsel %vm20241_vm9, %v9539_v46, %v9694_v13  ;;  %v10063_v16 = vrot.slane %v10061_v53, 5  ;;  %v23082_v7 = vld [vmem:[#allocation2 + $0xa8] sm:$0xf]  ;;  %v23086_v48 = vsel %vm20031_vm6, %v15843_v11, %v10814_v43 }
 0x5cf   : > { %v10067_v40 = vrot.slane %v10065_v9, 4  ;;  %17403 = vmatmul.mubr.msk.bf16.gmra.mrb[48].mxu1 %vm4546_vm0, %v23017_v45  ;;  %v9537_v33 = vpop.permute.xlu0 %9536  ;;  %9696 = vst [vmem:[#allocation2 + $0xb0] sm:$0x1] %v9695_v62  ;;  %v15780_v26 = vcombine.low %v10040_v55, %v10050_v10  ;;  %v23090_v21 = vld [vmem:[#allocation2 + $0xa0] sm:$0xf]  ;;  %v23092_v31 = vrot.slane %v10082_v1, 4 }
 0x5d0   : > { %v10100_v13 = vshrl.u32 %v23082_v7, 16  ;;  %v10103_v37 = vshll.u32 %v23082_v7, 16  ;;  %9693 = vst.msk [vmem:[#allocation2 + $0xac] sm:$0xf] %vm354_vm12, %v9537_v33  ;;  %17406 = vmatprep.mubr.msk.bf16.mxu1 %vm4546_vm0, %v15779_v24  ;;  %v10085_v2 = vshll.u32 %v23090_v21, 16  ;;  %v10089_v45 = vshrl.u32 %v23090_v21, 16  ;;  %v9021_v62 = vpop.permute.xlu1 %9020 }
 0x5d1   : > { %v10068_v11 = vor.u32 %v10067_v40, %v10063_v16  ;;  %v10816_v53 = vrot.slane %v10814_v43, 4  ;;  %v10817_v46 = vrot.slane %v22891_v56, 5  ;;  %v9086_v10 = vmul.f32 %v22723_v39, %v9021_v62  ;;  %v9701_v1 = vld [vmem:[#allocation2 + $0xbc] sm:$0x1] }
 0x5d2   : > { %v10102_v55 = vrot.slane %v10100_v13, 4  ;;  %v10105_v9 = vrot.slane %v10103_v37, 5  ;;  %v10087_v33 = vrot.slane %v10085_v2, 5  ;;  %v10091_v4 = vrot.slane %v10089_v45, 4  ;;  %v23104_v24 = vld [vmem:[#allocation2 + $0xb4] sm:$0xf] }
 0x5d3   : > { %v10069_v49 = vrot.slane %v10068_v11, 4  ;;  %v9543_v40 = vpop.permute.xlu0 %9542  ;;  %v10064_v15 = vsel %vm19659_vm2, %v10059_v57, %v10063_v16  ;;  %v10124_v43 = vshrl.u32 %v23104_v24, 16  ;;  %v10127_v13 = vshll.u32 %v23104_v24, 16 }
 0x5d4   : > { %v23112_v37 = vsel %vm20031_vm6, %v10816_v53, %v10817_v46  ;;  %9700 = vst.msk [vmem:[#allocation2 + $0xb8] sm:$0xf] %vm354_vm12, %v9543_v40  ;;  %v16191_v56 = vpack.c.bf16 %v9086_v10, %v9086_v10  ;;  %v23117_v2 = vld [vmem:[#allocation2 + $0xa4] sm:$0x1]  ;;  %v10092_v45 = vor.u32 %v10091_v4, %v10087_v33  ;;  %v10106_v62 = vor.u32 %v10105_v9, %v10102_v55 }
 0x5d5   : > { %v10074_v11 = vsel %vm19659_vm2, %v10069_v49, %v10073_v58  ;;  %v10088_v57 = vsel %vm19659_vm2, %v23092_v31, %v10087_v33  ;;  %v10095_v39 = vshll.u32 %v23117_v2, 16  ;;  %v10126_v53 = vrot.slane %v10124_v43, 4 }
 0x5d6   : > { %v15781_v16 = vcombine.low %v10064_v15, %v10074_v11  ;;  %v9440_v46 = vshrl.u32 %v16191_v56, 16  ;;  %v9443_v35 = vshll.u32 %v16191_v56, 16  ;;  %v10093_v40 = vrot.slane %v10092_v45, 4  ;;  %v23123_v10 = vld [vmem:[#allocation2 + $0xb0] sm:$0x1] }
 0x5d7   : > { %v10129_v42 = vrot.slane %v10127_v13, 5  ;;  %17407 = vmatmul.mubr.msk.bf16.gmra.mrb[52].mxu1 %vm4546_vm0, %v15780_v26  ;;  %v9545_v58 = vpop.permute.xlu0 %9544  ;;  %v10097_v4 = vrot.slane %v10095_v39, 5  ;;  %v23126_v49 = vld [vmem:[#allocation2 + $0xac] sm:$0xf]  ;;  %v10119_v15 = vshll.u32 %v23123_v10, 16  ;;  %v10831_v55 = vrot.slane %v22916_v0, 5 }
 0x5d8   : > { %v23132_v9 = vrot.slane %v9440_v46, 7  ;;  %v9702_v33 = vsel %vm20241_vm9, %v9545_v58, %v9701_v1  ;;  %17410 = vmatprep.mubr.msk.bf16.mxu1 %vm4546_vm0, %v15781_v16  ;;  %v10109_v26 = vshll.u32 %v23126_v49, 16  ;;  %v10113_v39 = vshrl.u32 %v23126_v49, 16 }
 0x5d9   : > { %9703 = vst [vmem:[#allocation2 + $0xbc] sm:$0x1] %v9702_v33  ;;  %v10098_v43 = vsel %vm19659_vm2, %v10093_v40, %v10097_v4  ;;  %v10107_v13 = vrot.slane %v10106_v62, 4  ;;  %v10130_v56 = vor.u32 %v10129_v42, %v10126_v53  ;;  %v10121_v1 = vrot.slane %v10119_v15, 5 }
 0x5da   : > { %v9445_v11 = vor.u32 %v9443_v35, %v23132_v9  ;;  %v10111_v45 = vrot.slane %v10109_v26, 5  ;;  %v10115_v46 = vrot.slane %v10113_v39, 4  ;;  %v15782_v16 = vcombine.low %v10088_v57, %v10098_v43 }
 0x5db   : > { %v9023_v58 = vpop.permute.xlu0 %9022  ;;  %v9446_v31 = vrot.slane %v23132_v9, 4  ;;  %v23145_v32 = vld [vmem:[#allocation2 + $0xb8] sm:$0xf]  ;;  %v23150_v40 = vsel %vm20031_vm6, %v22706_v36, %v10831_v55  ;;  %v10835_v42 = vrot.slane %v22942_v6, 5  ;;  %v10131_v53 = vrot.slane %v10130_v56, 4 }
 0x5dc   : > { %v9087_v62 = vmul.f32 %v22738_v5, %v9023_v58  ;;  %9546 = vrot.lane.b32.xlu1 %v9445_v11, %s19317_s8  ;;  %v10116_v35 = vor.u32 %v10115_v46, %v10111_v45  ;;  %v10133_v4 = vshll.u32 %v23145_v32, 16  ;;  %v10112_v57 = vsel %vm19659_vm2, %v10107_v13, %v10111_v45  ;;  %v10732_v55 = vld [vmem:[#allocation2 + $0x78] sm:$0xe]  ;;  %v23435_v5 = vld [vmem:[#allocation2 + $0x8c] sm:$0x1] }
 0x5dd   : > { %v10137_v15 = vshrl.u32 %v23145_v32, 16  ;;  %v25456_v43 = vrot.slane %v22768_v52, 9  ;;  %v10837_v11 = vrot.slane %v10835_v42, 4  ;;  %v10838_v45 = vrot.slane %v22979_v22, 5 }
 0x5de   : > { %v16192_v33 = vpack.c.bf16 %v9087_v62, %v9087_v62  ;;  %v10117_v26 = vrot.slane %v10116_v35, 4  ;;  %v10135_v39 = vrot.slane %v10133_v4, 5  ;;  %v10842_v46 = vrot.slane %v22998_v54, 5 }
 0x5df   : > { %v23167_v56 = vsel %vm20031_vm6, %v25456_v43, %v10835_v42  ;;  %17411 = vmatmul.mubr.msk.bf16.gmra.mrb[56].mxu1 %vm4546_vm0, %v15782_v16  ;;  %v10139_v13 = vrot.slane %v10137_v15, 4  ;;  %v15847_v52 = vrot.slane %v10732_v55, 9  ;;  %v23179_v16 = vsel %vm20031_vm6, %v10837_v11, %v10838_v45  ;;  %v10733_v42 = vld [vmem:[#allocation2 + $0x84] sm:$0xe]  ;;  %v10735_v45 = vld [vmem:[#allocation2 + $0x9c] sm:$0xe] }
 0x5e0   : > { %v9448_v58 = vshrl.u32 %v16192_v33, 16  ;;  %v9451_v36 = vshll.u32 %v16192_v33, 16  ;;  %v10122_v62 = vsel %vm19659_vm2, %v10117_v26, %v10121_v1  ;;  %v23174_v35 = vld [vmem:[#allocation2 + $0xbc] sm:$0x1]  ;;  %v10136_v15 = vsel %vm19659_vm2, %v10131_v53, %v10135_v39 }
 0x5e1   : > { %v15783_v4 = vcombine.low %v10112_v57, %v10122_v62  ;;  %v10140_v9 = vor.u32 %v10139_v13, %v10135_v39  ;;  %v10143_v43 = vshll.u32 %v23174_v35, 16  ;;  %v23187_v1 = vsel %vm20031_vm6, %v15847_v52, %v10842_v46  ;;  %v10734_v57 = vld [vmem:[#allocation2 + $0x90] sm:$0xe] }
 0x5e2   : > { %v9450_v22 = vrot.slane %v9448_v58, 7  ;;  %v10844_v13 = vrot.slane %v10842_v46, 4  ;;  %v10845_v11 = vrot.slane %v22993_v51, 5  ;;  %v15848_v0 = vrot.slane %v10733_v42, 9  ;;  %v10736_v46 = vld [vmem:[#allocation2 + $0xa8] sm:$0xe] }
 0x5e3   : > { %17414 = vmatprep.mubr.msk.bf16.mxu1 %vm4546_vm0, %v15783_v4  ;;  %v10141_v55 = vrot.slane %v10140_v9, 4  ;;  %v10145_v26 = vrot.slane %v10143_v43, 5  ;;  %v10849_v53 = vrot.slane %v23019_v63, 5  ;;  %v10852_v4 = vrot.slane %v23051_v25, 5 }
 0x5e4   : > { %v9455_v58 = vrot.slane %v9450_v22, 4  ;;  %v9453_v62 = vor.u32 %v9451_v36, %v9450_v22  ;;  %v23196_v52 = vsel %vm20031_vm6, %v10844_v13, %v10845_v11  ;;  %v10856_v9 = vrot.slane %v23066_v23, 5  ;;  %v10737_v13 = vld [vmem:[#allocation2 + $0xb4] sm:$0xe] }
 0x5e5   : > { %v10146_v39 = vsel %vm19659_vm2, %v10141_v55, %v10145_v26  ;;  %v15849_v42 = vrot.slane %v10734_v57, 9  ;;  %v23208_v22 = vsel %vm20031_vm6, %v15848_v0, %v10849_v53  ;;  %v10851_v25 = vrot.slane %v10849_v53, 4 }
 0x5e6   : > { %9550 = vrot.lane.b32.xlu1 %v9455_v58, %s19317_s8  ;;  %v9454_v51 = vsel %vm20270_vm14, %v9446_v31, %v9453_v62  ;;  %v15784_v36 = vcombine.low %v10136_v15, %v10146_v39  ;;  %v10858_v55 = vrot.slane %v10856_v9, 4  ;;  %v10859_v26 = vrot.slane %v23060_v8, 5 }
 0x5e7   : > { %9548 = vrot.lane.b32.xlu0 %v9454_v51, %s19317_s8  ;;  %v23214_v17 = vsel %vm20031_vm6, %v15849_v42, %v10856_v9  ;;  %v15850_v31 = vrot.slane %v10735_v45, 9  ;;  %v10863_v15 = vrot.slane %v23090_v21, 5  ;;  %v10866_v57 = vrot.slane %v23117_v2, 5  ;;  %v12301_v2 = vld [vmem:[#allocation2 + $0x48] sm:$0xe] }
 0x5e8   : > { %17415 = vmatmul.mubr.msk.bf16.gmra.mrb[60].mxu1 %vm4546_vm0, %v15784_v36  ;;  %v25457_v0 = vcombine.low %v22495_v60, %v22497_v14  ;;  %v23224_v8 = vsel %vm20031_vm6, %v10851_v25, %v10852_v4  ;;  %v23228_v11 = vsel %vm20031_vm6, %v10858_v55, %v10859_v26  ;;  %v10870_v45 = vrot.slane %v23126_v49, 5  ;;  %v18698_v55 = vld [vmem:[#allocation11 + $0x28] sm:$0xff]   ;;  %v23383_v26 = vld [vmem:[#allocation2 + $0x68] sm:$0x1] }
 0x5e9   : > { %v10873_v58 = vrot.slane %v23123_v10, 5  ;;  %v10865_v14 = vrot.slane %v10863_v15, 4  ;;  %v15851_v62 = vrot.slane %v10736_v46, 9  ;;  %v10877_v39 = vrot.slane %v23145_v32, 5 }
 0x5ea   : > { %17422 = vmatprep.mubr.msk.bf16.mxu1 %vm4546_vm0, %v25457_v0  ;;  %v10872_v53 = vrot.slane %v10870_v45, 4  ;;  %v23239_v4 = vsel %vm20031_vm6, %v15850_v31, %v10863_v15  ;;  %v10880_v51 = vrot.slane %v23174_v35, 5  ;;  %v15852_v42 = vrot.slane %v10737_v13, 9  ;;  %v23277_v0 = vld [vmem:[#allocation11 + $0x30] sm:$0xff]  }
 0x5eb   : > { %v23243_v9 = vsel %vm20031_vm6, %v10865_v14, %v10866_v57  ;;  %v23247_v10 = vsel %vm20031_vm6, %v15851_v62, %v10870_v45  ;;  %v10879_v25 = vrot.slane %v10877_v39, 4  ;;  %v25458_v15 = vcombine.low %v22681_v59, %v22719_v50  ;;  %v25465_v45 = vld [vmem:[#allocation86_spill] sm:$0xff]  ;;  %v25473_v14 = vld [vmem:[#allocation101_spill] sm:$0xff]  ;;  %v23381_v57 = vld [vmem:[#allocation2 + $0x50] sm:$0x1] }
 0x5ec   : > { %v23254_v36 = vsel %vm20031_vm6, %v10872_v53, %v10873_v58  ;;  %v23260_v31 = vsel %vm20031_vm6, %v15852_v42, %v10877_v39  ;;  %v25459_v13 = vcombine.low %v22675_v34, %v22731_v29  ;;  %v25460_v59 = vcombine.low %v22774_v47, %v22857_v44  ;;  %v25467_v44 = vld [vmem:[#allocation84_spill] sm:$0xff]  ;;  %v25468_v58 = vld [vmem:[#allocation83_spill] sm:$0xff]  ;;  %v10722_v53 = vld [vmem:[#allocation2] sm:$0xe] }
 0x5ed   : > { %v23264_v35 = vsel %vm20031_vm6, %v10879_v25, %v10880_v51  ;;  %v25461_v50 = vcombine.low %v22748_v3, %v22827_v18  ;;  %v25462_v29 = vcombine.low %v22871_v30, %v22919_v12  ;;  %v25463_v34 = vcombine.low %v22855_v27, %v22898_v20  ;;  %v19009_v18 = vld [vmem:[#allocation2 + $0x6c] sm:$0xf]  ;;  %v25471_v20 = vld [vmem:[#allocation99_spill] sm:$0xff]  ;;  %v19010_v39 = vld [vmem:[#allocation2 + $0x4] sm:$0xf]  ;;  %25482 = vst [vmem:[#allocation83_spill] sm:$0xff] %v23383_v26 }
 0x5ee   : > { %v25469_v3 = vcombine.low %v25467_v44, %v25468_v58  ;;  %v15812_v30 = vcombine.low %v19009_v18, %v22942_v6  ;;  %v25470_v27 = vcombine.low %v22940_v19, %v22998_v54  ;;  %v25472_v12 = vcombine.low %v25471_v20, %v23019_v63  ;;  %v23318_v42 = vld [vmem:[#allocation2 + $0x10] sm:$0xf]  ;;  %v19011_v19 = vld [vmem:[#allocation2 + $0x8] sm:$0x1]  ;;  %v23322_v63 = vld [vmem:[#allocation2 + $0x14] sm:$0x1] }
 0x5ef   : > { %v25474_v62 = vcombine.low %v25473_v14, %v23066_v23  ;;  %v10772_v6 = vrot.slane %v19010_v39, 5  ;;  %v15837_v51 = vrot.slane %v10722_v53, 9  ;;  %v10775_v54 = vrot.slane %v19011_v19, 5  ;;  %v23338_v44 = vld [vmem:[#allocation2 + $0x6c] sm:$0xe] }
 0x5f0   : > { %17423 = vmatmul.mubr.msk.bf16.vlgmr.msra.gmra.mrb[32].mxu1 %vm4546_vm0, %v25458_v15  ;;  %v12303_v15 = vld [vmem:[#allocation2 + $0x60] sm:$0xe]  ;;  %v23342_v58 = vld [vmem:[#allocation2 + $0x28] sm:$0xf]  ;;  %v23349_v20 = vld [vmem:[#allocation2 + $0x34] sm:$0xf] }
 0x5f1   : > { %17426 = vmatprep.mubr.msk.bf16.mxu1 %vm4546_vm0, %v25459_v13  ;;  %17455 = vmatpush3.bf16.msra.mxu1 %v22831_v38  ;;  %v25464_v38 = vld [vmem:[#allocation85_spill] sm:$0xff]  ;;  %v10774_v25 = vrot.slane %v10772_v6, 4  ;;  %v12296_v13 = vld [vmem:[#allocation2 + $0xc] sm:$0xe]  ;;  %v12376_v19 = vrot.slane %v23342_v58, 5  ;;  %v12414_v43 = vrot.slane %v23383_v26, 5 }
 0x5f2   : > { %17456 = vmatprep.subr.bf16.mxu1 %v18698_v55  ;;  %v25466_v47 = vcombine.low %v25464_v38, %v25465_v45  ;;  %v23335_v38 = vld [vmem:[#allocation2 + $0x1c] sm:$0xf]  ;;  %v15962_v45 = vrot.slane %v12303_v15, 9  ;;  %v12298_v53 = vld [vmem:[#allocation2 + $0x24] sm:$0xe] }
 0x5f3   : > { %v23475_v26 = vld [vmem:[#allocation2 + $0xac] sm:$0xf] }
 0x5f5   : > { %17457 = vmatpush3.bf16.msra.mxu1 %v18698_v55  ;;  %v23320_v55 = vld [vmem:[#allocation2 + $0x64] sm:$0xf] }
 0x5f6   : > { %17490 = vmatprep.subr.bf16.mxu1 %v23277_v0 }
 0x5f8   : > { %17427 = vmatmul.mubr.msk.bf16.gmra.mrb[36].mxu1 %vm4546_vm0, %v25460_v59  ;;  %v25475_v59 = vld [vmem:[#allocation103_spill] sm:$0xff] }
 0x5f9   : > { %17430 = vmatprep.mubr.msk.bf16.mxu1 %vm4546_vm0, %v25461_v50  ;;  %v25476_v23 = vcombine.low %v25475_v59, %v23090_v21  ;;  %v12362_v50 = vrot.slane %v23318_v42, 5  ;;  %v10776_v21 = vsel %vm20031_vm6, %v10774_v25, %v10775_v54  ;;  %v12299_v54 = vld [vmem:[#allocation2 + $0x30] sm:$0xe]  ;;  %v23372_v59 = vld [vmem:[#allocation2 + $0x4c] sm:$0xf] }
 0x5fa   : > { %v12300_v25 = vld [vmem:[#allocation2 + $0x3c] sm:$0xe] }
 0x5fb   : > { %v12364_v18 = vrot.slane %v12362_v50, 4  ;;  %v15959_v60 = vrot.slane %v12300_v25, 9 }
 0x600   : > { %17431 = vmatmul.mubr.msk.bf16.gmra.mrb[40].mxu1 %vm4546_vm0, %v25462_v29  ;;  %v25477_v29 = vcombine.low %v23082_v7, %v23126_v49  ;;  %v12365_v7 = vrot.slane %v23322_v63, 5  ;;  %v23345_v49 = vld [vmem:[#allocation2 + $0x20] sm:$0x1] }
 0x601   : > { %17434 = vmatprep.mubr.msk.bf16.mxu1 %vm4546_vm0, %v25463_v34  ;;  %v10773_v34 = vsel %vm20031_vm6, %v15837_v51, %v10772_v6  ;;  %v23361_v51 = vld [vmem:[#allocation2 + $0x38] sm:$0x1] }
 0x602   : > { %v23357_v14 = vsel %vm20031_vm6, %v12364_v18, %v12365_v7  ;;  %v15853_v6 = vcombine.low %v10773_v34, %v10776_v21  ;;  %v15957_v21 = vrot.slane %v12298_v53, 9  ;;  %v12383_v7 = vrot.slane %v23349_v20, 5 }
 0x603   : > { %25479 = vst [vmem:[#allocation86_spill] sm:$0xff] %v23357_v14  ;;  %v15958_v53 = vrot.slane %v12299_v54, 9  ;;  %v12386_v46 = vrot.slane %v23361_v51, 5  ;;  %v23444_v14 = vld [vmem:[#allocation2 + $0x98] sm:$0x1] }
 0x604   : > { %v12385_v54 = vrot.slane %v12383_v7, 4  ;;  %25492 = vst [vmem:[#allocation111_spill] sm:$0xff] %v23444_v14 }
 0x608   : > { %17435 = vmatmul.mubr.msk.bf16.gmra.mrb[44].mxu1 %vm4546_vm0, %v25466_v47  ;;  %v12411_v47 = vrot.slane %v23320_v55, 5 }
 0x609   : > { %17438 = vmatprep.mubr.msk.bf16.mxu1 %vm4546_vm0, %v25469_v3  ;;  %v15955_v3 = vrot.slane %v12296_v13, 9  ;;  %v23370_v13 = vld [vmem:[#allocation2 + $0x40] sm:$0xf] }
 0x60a   : > { %v23368_v15 = vsel %vm20031_vm6, %v15962_v45, %v12411_v47  ;;  %v12413_v34 = vrot.slane %v12411_v47, 4  ;;  %v25481_v45 = vcombine.low %v23104_v24, %v23145_v32  ;;  %v23395_v32 = vld [vmem:[#allocation2 + $0x44] sm:$0x1]  ;;  %v23397_v24 = vld [vmem:[#allocation2 + $0x70] sm:$0xf] }
 0x60b   : > { %25480 = vst [vmem:[#allocation84_spill] sm:$0xff] %v23368_v15  ;;  %v12393_v33 = vrot.slane %v23395_v32, 5  ;;  %v12418_v39 = vrot.slane %v23397_v24, 5  ;;  %v23473_v15 = vld [vmem:[#allocation2 + $0xa4] sm:$0x1] }
 0x610   : > { %17439 = vmatmul.mubr.msk.bf16.gmra.mrb[48].mxu1 %vm4546_vm0, %v15812_v30  ;;  %v23347_v30 = vld [vmem:[#allocation2 + $0x2c] sm:$0x1] }
 0x611   : > { %17442 = vmatprep.mubr.msk.bf16.mxu1 %vm4546_vm0, %v25470_v27  ;;  %v12297_v27 = vld [vmem:[#allocation2 + $0x18] sm:$0xe]  ;;  %v12379_v18 = vrot.slane %v23347_v30, 5 }
 0x618   : > { %17443 = vmatmul.mubr.msk.bf16.gmra.mrb[52].mxu1 %vm4546_vm0, %v25472_v12  ;;  %v23353_v12 = vsel %vm20031_vm6, %v15955_v3, %v12362_v50  ;;  %v12378_v3 = vrot.slane %v12376_v19, 4 }
 0x619   : > { %17446 = vmatprep.mubr.msk.bf16.mxu1 %vm4546_vm0, %v25474_v62  ;;  %25478 = vst [vmem:[#allocation85_spill] sm:$0xff] %v23353_v12  ;;  %v12369_v62 = vrot.slane %v23335_v38, 5  ;;  %v12305_v12 = vld [vmem:[#allocation2 + $0x78] sm:$0xe] }
 0x61b   : > { %v12371_v50 = vrot.slane %v12369_v62, 4 }
 0x620   : > { %17447 = vmatmul.mubr.msk.bf16.gmra.mrb[56].mxu1 %vm4546_vm0, %v25476_v23  ;;  %v15956_v23 = vrot.slane %v12297_v27, 9 }
 0x621   : > { %17450 = vmatprep.mubr.msk.bf16.mxu1 %vm4546_vm0, %v25477_v29  ;;  %v12372_v29 = vrot.slane %v23345_v49, 5 }
 0x622   : > { %v23387_v27 = vsel %vm20031_vm6, %v15956_v23, %v12369_v62  ;;  %v23403_v62 = vsel %vm20031_vm6, %v15957_v21, %v12376_v19  ;;  %v23407_v23 = vsel %vm20031_vm6, %v12378_v3, %v12379_v18  ;;  %v23418_v19 = vld [vmem:[#allocation2 + $0x7c] sm:$0xf]  ;;  %v23420_v21 = vld [vmem:[#allocation2 + $0x80] sm:$0x1]  ;;  %v23424_v3 = vsel %vm20031_vm6, %v12385_v54, %v12386_v46  ;;  %v23437_v46 = vld [vmem:[#allocation2 + $0x94] sm:$0xf] }
 0x623   : > { %25483 = vst [vmem:[#allocation99_spill] sm:$0xff] %v23387_v27  ;;  %v23391_v47 = vsel %vm20031_vm6, %v12371_v50, %v12372_v29  ;;  %25485 = vst [vmem:[#allocation103_spill] sm:$0xff] %v23403_v62  ;;  %v23409_v50 = vld [vmem:[#allocation2 + $0x74] sm:$0x1]  ;;  %v23415_v29 = vsel %vm20031_vm6, %v15958_v53, %v12383_v7  ;;  %v12397_v18 = vrot.slane %v23372_v59, 5  ;;  %v15960_v54 = vrot.slane %v12301_v2, 9 }
 0x624   : > { %25484 = vst [vmem:[#allocation101_spill] sm:$0xff] %v23391_v47  ;;  %25486 = vst [vmem:[#allocation105_spill] sm:$0xff] %v23407_v23  ;;  %v23429_v7 = vld [vmem:[#allocation2 + $0x88] sm:$0xf]  ;;  %v23441_v62 = vsel %vm20031_vm6, %v12413_v34, %v12414_v43  ;;  %v12421_v47 = vrot.slane %v23409_v50, 5  ;;  %v18705_v27 = vld [vmem:[#allocation11 + $0x38] sm:$0xff]  }
 0x625   : > { %25487 = vst [vmem:[#allocation106_spill] sm:$0xff] %v23409_v50  ;;  %25488 = vst [vmem:[#allocation107_spill] sm:$0xff] %v23415_v29  ;;  %v12399_v23 = vrot.slane %v12397_v18, 4  ;;  %v12420_v29 = vrot.slane %v12418_v39, 4  ;;  %v23456_v43 = vld [vmem:[#allocation2 + $0xa0] sm:$0xf]  ;;  %v23462_v50 = vsel %vm20031_vm6, %v15960_v54, %v12397_v18 }
 0x626   : > { %25489 = vst [vmem:[#allocation108_spill] sm:$0xff] %v23424_v3  ;;  %25490 = vst [vmem:[#allocation109_spill] sm:$0xff] %v23437_v46  ;;  %v25499_v2 = vld [vmem:[#allocation93_spill] sm:$0xff]  ;;  %v25503_v54 = vrot.slane %v23338_v44, 9  ;;  %v25507_v34 = vld [vmem:[#allocation94_spill] sm:$0xff]  ;;  %v15964_v18 = vrot.slane %v12305_v12, 9 }
 0x627   : > { %25491 = vst [vmem:[#allocation110_spill] sm:$0xff] %v23441_v62  ;;  %25495 = vst [vmem:[#allocation114_spill] sm:$0xff] %v23456_v43 }
 0x628   : > { %17451 = vmatmul.mubr.msk.bf16.gmra.mrb[60].mxu1 %vm4546_vm0, %v25481_v45  ;;  %v12390_v45 = vrot.slane %v23370_v13, 5  ;;  %25496 = vst [vmem:[#allocation115_spill] sm:$0xff] %v23462_v50  ;;  %25502 = vst [vmem:[#allocation93_spill] sm:$0xff] %v23475_v26  ;;  %v12435_v50 = vrot.slane %v23435_v5, 5 }
 0x629   : > { %17458 = vmatprep.mubr.msk.bf16.mxu1 %vm4546_vm0, %v15853_v6  ;;  %v12400_v6 = vrot.slane %v23381_v57, 5 }
 0x62a   : > { %v12392_v53 = vrot.slane %v12390_v45, 4  ;;  %v23448_v25 = vsel %vm20031_vm6, %v15959_v60, %v12390_v45  ;;  %v12306_v45 = vld [vmem:[#allocation2 + $0x84] sm:$0xe] }
 0x62b   : > { %25493 = vst [vmem:[#allocation112_spill] sm:$0xff] %v23448_v25  ;;  %v23466_v60 = vsel %vm20031_vm6, %v12399_v23, %v12400_v6  ;;  %v23483_v23 = vsel %vm20031_vm6, %v25503_v54, %v12418_v39  ;;  %v23487_v6 = vsel %vm20031_vm6, %v12420_v29, %v12421_v47  ;;  %v12432_v54 = vrot.slane %v23429_v7, 5  ;;  %v23498_v47 = vld [vmem:[#allocation11 + $0x40] sm:$0xff]  }
 0x62c   : > { %v23452_v3 = vsel %vm20031_vm6, %v12392_v53, %v12393_v33  ;;  %25497 = vst [vmem:[#allocation116_spill] sm:$0xff] %v23466_v60  ;;  %v12425_v33 = vrot.slane %v23418_v19, 5  ;;  %v25498_v53 = vld [vmem:[#allocation92_spill] sm:$0xff]  ;;  %25504 = vst [vmem:[#allocation117_spill] sm:$0xff] %v23483_v23  ;;  %v15965_v29 = vrot.slane %v12306_v45, 9  ;;  %v12453_v45 = vrot.slane %v23475_v26, 5 }
 0x62d   : > { %25494 = vst [vmem:[#allocation113_spill] sm:$0xff] %v23452_v3  ;;  %v25500_v62 = vcombine.low %v25498_v53, %v25499_v2  ;;  %25501 = vst [vmem:[#allocation92_spill] sm:$0xff] %v23473_v15  ;;  %v12428_v2 = vrot.slane %v23420_v21, 5  ;;  %v25506_v53 = vld [vmem:[#allocation95_spill] sm:$0xff]  ;;  %v12308_v60 = vld [vmem:[#allocation2 + $0x9c] sm:$0xe] }
 0x62e   : > { %25505 = vst [vmem:[#allocation118_spill] sm:$0xff] %v23487_v6  ;;  %v25508_v3 = vcombine.low %v25506_v53, %v25507_v34  ;;  %v12427_v39 = vrot.slane %v12425_v33, 4  ;;  %v12439_v34 = vrot.slane %v23437_v46, 5  ;;  %v23503_v53 = vld [vmem:[#allocation2 + $0xb0] sm:$0x1]  ;;  %v12434_v44 = vrot.slane %v12432_v54, 4 }
 0x62f   : > { %v23513_v23 = vld [vmem:[#allocation2 + $0xb8] sm:$0xf]  ;;  %v23519_v25 = vsel %vm20031_vm6, %v15965_v29, %v12432_v54  ;;  %v12446_v46 = vrot.slane %v23456_v43, 5  ;;  %v12310_v26 = vld [vmem:[#allocation2 + $0xb4] sm:$0xe] }
 0x630   : > { %17459 = vmatmul.mubr.msk.bf16.vlgmr.msra.gmra.mrb[32].mxu1 %vm4546_vm0, %v25500_v62  ;;  %v12307_v62 = vld [vmem:[#allocation2 + $0x90] sm:$0xe]  ;;  %v23511_v12 = vsel %vm20031_vm6, %v12427_v39, %v12428_v2  ;;  %v23526_v2 = vsel %vm20031_vm6, %v12434_v44, %v12435_v50  ;;  %v12449_v39 = vrot.slane %v23473_v15, 5  ;;  %v25512_v15 = vld [vmem:[#allocation98_spill] sm:$0xff]  ;;  %v25513_v43 = vld [vmem:[#allocation100_spill] sm:$0xff] }
 0x631   : > { %17462 = vmatprep.mubr.msk.bf16.mxu1 %vm4546_vm0, %v25508_v3  ;;  %17491 = vmatpush3.bf16.msra.mxu1 %v23277_v0  ;;  %v12442_v3 = vrot.slane %v23444_v14, 5  ;;  %v23507_v0 = vsel %vm20031_vm6, %v15964_v18, %v12425_v33  ;;  %25510 = vst [vmem:[#allocation94_spill] sm:$0xff] %v23511_v12  ;;  %v15966_v6 = vrot.slane %v12307_v62, 9  ;;  %v12441_v14 = vrot.slane %v12439_v34, 4  ;;  %v12309_v33 = vld [vmem:[#allocation2 + $0xa8] sm:$0xe] }
 0x632   : > { %17492 = vmatprep.subr.bf16.mxu1 %v18705_v27  ;;  %25509 = vst [vmem:[#allocation95_spill] sm:$0xff] %v23507_v0  ;;  %v23522_v18 = vld [vmem:[#allocation2 + $0xbc] sm:$0x1]  ;;  %v15967_v62 = vrot.slane %v12308_v60, 9  ;;  %v12448_v50 = vrot.slane %v12446_v46, 4  ;;  %v15968_v44 = vrot.slane %v12309_v33, 9  ;;  %v25514_v54 = vcombine.low %v25512_v15, %v25513_v43 }
 0x633   : > { %v23535_v29 = vsel %vm20031_vm6, %v15966_v6, %v12439_v34  ;;  %v12455_v12 = vrot.slane %v12453_v45, 4  ;;  %v12456_v0 = vrot.slane %v23503_v53, 5  ;;  %v12460_v34 = vrot.slane %v23513_v23, 5  ;;  %v25515_v33 = vld [vmem:[#allocation96_spill] sm:$0xff]  ;;  %v25516_v60 = vld [vmem:[#allocation97_spill] sm:$0xff] }
 0x634   : > { %v23550_v6 = vsel %vm20031_vm6, %v15967_v62, %v12446_v46  ;;  %v23566_v46 = vsel %vm20031_vm6, %v15968_v44, %v12453_v45  ;;  %v25523_v44 = vld [vmem:[#allocation104_spill] sm:$0xff] }
 0x635   : > { %17493 = vmatpush3.bf16.msra.mxu1 %v18705_v27  ;;  %v23539_v27 = vsel %vm20031_vm6, %v12441_v14, %v12442_v3  ;;  %v23554_v14 = vsel %vm20031_vm6, %v12448_v50, %v12449_v39  ;;  %v12463_v3 = vrot.slane %v23522_v18, 5  ;;  %25518 = vst [vmem:[#allocation98_spill] sm:$0xff] %v23566_v46  ;;  %v23570_v43 = vsel %vm20031_vm6, %v12455_v12, %v12456_v0  ;;  %v25526_v12 = vld [vmem:[#allocation47_spill] sm:$0xff] }
 0x636   : > { %17526 = vmatprep.subr.bf16.mxu1 %v23498_v47  ;;  %25511 = vst [vmem:[#allocation119_spill] sm:$0xff] %v23539_v27  ;;  %v25517_v27 = vcombine.low %v25515_v33, %v25516_v60  ;;  %25519 = vst [vmem:[#allocation100_spill] sm:$0xff] %v23570_v43  ;;  %v15969_v39 = vrot.slane %v12310_v26, 9  ;;  %v25522_v60 = vld [vmem:[#allocation102_spill] sm:$0xff]  ;;  %v25525_v26 = vcombine.low %v23086_v48, %v23112_v37 }
 0x637   : > { %v25524_v0 = vcombine.low %v25522_v60, %v25523_v44  ;;  %v25531_v48 = vcombine.low %v23167_v56, %v23179_v16  ;;  %v25532_v37 = vcombine.low %v23187_v1, %v23196_v52  ;;  %v25535_v56 = vcombine.low %v23214_v17, %v23228_v11  ;;  %v18717_v11 = vld [vmem:[#allocation11 + $0x48] sm:$0xff]   ;;  %v18710_v60 = vld [vmem:[#allocation2 + $0x30] sm:$0xff]  }
 0x638   : > { %17463 = vmatmul.mubr.msk.bf16.gmra.mrb[36].mxu1 %vm4546_vm0, %v25514_v54  ;;  %v12462_v54 = vrot.slane %v12460_v34, 4  ;;  %v23576_v50 = vsel %vm20031_vm6, %v15969_v39, %v12460_v34  ;;  %v25527_v34 = vld [vmem:[#allocation87_spill] sm:$0xff]  ;;  %v9704_v39 = vld [vmem:[#allocation2 + $0xc0] sm:$0xf]  ;;  %v25536_v1 = vcombine.low %v23239_v4, %v23243_v9  ;;  %v25537_v52 = vcombine.low %v23247_v10, %v23254_v36  ;;  %v18709_v4 = vld [vmem:[#allocation2 + $0x24] sm:$0xff]  }
 0x639   : > { %17466 = vmatprep.mubr.msk.bf16.mxu1 %vm4546_vm0, %v25517_v27  ;;  %25520 = vst [vmem:[#allocation96_spill] sm:$0xff] %v23576_v50  ;;  %v25528_v33 = vcombine.low %v25526_v12, %v25527_v34  ;;  %v25538_v17 = vcombine.low %v23260_v31, %v23264_v35  ;;  %v23642_v31 = vld [vmem:[#allocation11 + $0x50] sm:$0xff]  }
 0x63a   : > { %v23580_v27 = vsel %vm20031_vm6, %v12462_v54, %v12463_v3  ;;  %v25529_v3 = vcombine.low %v22700_v41, %v23150_v40  ;;  %v25533_v41 = vcombine.low %v23208_v22, %v23224_v8  ;;  %v18706_v22 = vld [vmem:[#allocation2 + $0xc] sm:$0xff]   ;;  %v18707_v8 = vld [vmem:[#allocation2 + $0x18] sm:$0xff]  }
 0x63b   : > { %25521 = vst [vmem:[#allocation97_spill] sm:$0xff] %v23580_v27 }
 0x640   : > { %17467 = vmatmul.mubr.msk.bf16.gmra.mrb[40].mxu1 %vm4546_vm0, %v25524_v0  ;;  %v9708_v0 = vld [vmem:[#allocation2 + $0xc8] sm:$0x1] }
 0x641   : > { %17470 = vmatprep.mubr.msk.bf16.mxu1 %vm4546_vm0, %v25525_v26  ;;  %v13153_v26 = vld [vmem:[#allocation2 + $0x2c] sm:$0x1] }
 0x648   : > { %17471 = vmatmul.mubr.msk.bf16.gmra.mrb[44].mxu1 %vm4546_vm0, %v25528_v33 }
 0x649   : > { %17474 = vmatprep.mubr.msk.bf16.mxu1 %vm4546_vm0, %v25529_v3 }
 0x64e   : > { %v9547_v54 = vpop.permute.xlu1 %9546 }
 0x64f   : > { %v9705_v44 = vsel %vm20277_vm15, %v9547_v54, %v9704_v39 }
 0x650   : > { %17475 = vmatmul.mubr.msk.bf16.gmra.mrb[48].mxu1 %vm4546_vm0, %v25531_v48  ;;  %9706 = vst [vmem:[#allocation2 + $0xc0] sm:$0xf] %v9705_v44  ;;  %v18711_v44 = vld [vmem:[#allocation2 + $0x3c] sm:$0xff]  }
 0x651   : > { %17478 = vmatprep.mubr.msk.bf16.mxu1 %vm4546_vm0, %v25532_v37  ;;  %v23658_v48 = vld [vmem:[#allocation2 + $0x60] sm:$0xf]  ;;  %v13152_v37 = vld [vmem:[#allocation2 + $0x28] sm:$0xf] }
 0x657   : > { %v12311_v10 = vld [vmem:[#allocation2 + $0xc0] sm:$0xe] }
 0x658   : > { %17479 = vmatmul.mubr.msk.bf16.gmra.mrb[52].mxu1 %vm4546_vm0, %v25533_v41  ;;  %v9551_v40 = vpop.permute.xlu1 %9550  ;;  %v15970_v35 = vrot.slane %v12311_v10, 9  ;;  %v13889_v10 = vld [vmem:[#allocation2 + $0x3c] sm:$0xe] }
 0x659   : > { %v9709_v12 = vsel %vm20241_vm9, %v9551_v40, %v9708_v0  ;;  %17482 = vmatprep.mubr.msk.bf16.mxu1 %vm4546_vm0, %v25535_v56  ;;  %v9549_v16 = vpop.permute.xlu0 %9548  ;;  %v18712_v0 = vld [vmem:[#allocation2 + $0x48] sm:$0xff]   ;;  %v13155_v56 = vld [vmem:[#allocation2 + $0x34] sm:$0xf]  ;;  %v16076_v15 = vrot.slane %v13889_v10, 9  ;;  %v13892_v10 = vld [vmem:[#allocation2 + $0x60] sm:$0xe] }
 0x65a   : > { %9710 = vst [vmem:[#allocation2 + $0xc8] sm:$0x1] %v9709_v12  ;;  %9707 = vst.msk [vmem:[#allocation2 + $0xc4] sm:$0xf] %vm354_vm12, %v9549_v16  ;;  %v18713_v12 = vld [vmem:[#allocation2 + $0x54] sm:$0xff]   ;;  %v13966_v45 = vrot.slane %v13155_v56, 5 }
 0x65b   : > { %v13156_v16 = vld [vmem:[#allocation2 + $0x38] sm:$0x1] }
 0x65c   : > { %v13969_v62 = vrot.slane %v13156_v16, 5  ;;  %v13167_v16 = vld [vmem:[#allocation2 + $0x64] sm:$0xf] }
 0x660   : > { %17483 = vmatmul.mubr.msk.bf16.gmra.mrb[56].mxu1 %vm4546_vm0, %v25536_v1  ;;  %v13887_v1 = vld [vmem:[#allocation2 + $0x24] sm:$0xe] }
 0x661   : > { %17486 = vmatprep.mubr.msk.bf16.mxu1 %vm4546_vm0, %v25537_v52  ;;  %v23634_v34 = vld [vmem:[#allocation2 + $0xc4] sm:$0xf]  ;;  %v23637_v9 = vld [vmem:[#allocation2 + $0xc8] sm:$0x1]  ;;  %v13891_v52 = vld [vmem:[#allocation2 + $0x54] sm:$0xe] }
 0x662   : > { %v12467_v36 = vrot.slane %v23634_v34, 5  ;;  %v12470_v3 = vrot.slane %v23637_v9, 5 }
 0x664   : > { %v12469_v33 = vrot.slane %v12467_v36, 4  ;;  %v23647_v39 = vsel %vm20031_vm6, %v15970_v35, %v12467_v36  ;;  %v13162_v36 = vld [vmem:[#allocation2 + $0x50] sm:$0x1]  ;;  %v16074_v35 = vrot.slane %v13887_v1, 9  ;;  %v13968_v1 = vrot.slane %v13966_v45, 4 }
 0x665   : > { %25539 = vst [vmem:[#allocation102_spill] sm:$0xff] %v23647_v39  ;;  %v13170_v39 = vld [vmem:[#allocation2 + $0x70] sm:$0xf] }
 0x666   : > { %v23651_v54 = vsel %vm20031_vm6, %v12469_v33, %v12470_v3  ;;  %v13962_v33 = vrot.slane %v13153_v26, 5  ;;  %v13890_v3 = vld [vmem:[#allocation2 + $0x48] sm:$0xe] }
 0x667   : > { %25540 = vst [vmem:[#allocation104_spill] sm:$0xff] %v23651_v54  ;;  %v16077_v56 = vrot.slane %v13890_v3, 9  ;;  %v18715_v54 = vld [vmem:[#allocation2 + $0x6c] sm:$0xff]  }
 0x668   : > { %17487 = vmatmul.mubr.msk.bf16.gmra.mrb[60].mxu1 %vm4546_vm0, %v25538_v17  ;;  %v13959_v17 = vrot.slane %v13152_v37, 5 }
 0x669   : > { %17494 = vmatprep.mubr.msk.bf16.mxu1 %vm4546_vm0, %v18706_v22  ;;  %v13158_v22 = vld [vmem:[#allocation2 + $0x40] sm:$0xf] }
 0x66a   : > { %v23667_v37 = vsel %vm20031_vm6, %v16074_v35, %v13959_v17  ;;  %v13973_v40 = vrot.slane %v13158_v22, 5  ;;  %v18714_v35 = vld [vmem:[#allocation2 + $0x60] sm:$0xff]  }
 0x66b   : > { %25541 = vst [vmem:[#allocation47_spill] sm:$0xff] %v23667_v37  ;;  %v11567_v37 = vld [vmem:[#allocation2 + $0x30] sm:$0xf] }
 0x66c   : > { %v23681_v22 = vsel %vm20031_vm6, %v16076_v15, %v13973_v40 }
 0x66d   : > { %25544 = vst [vmem:[#allocation54_spill] sm:$0xff] %v23681_v22  ;;  %v13186_v22 = vld [vmem:[#allocation2 + $0xb0] sm:$0x1] }
 0x670   : > { %17495 = vmatmul.mubr.msk.bf16.vlgmr.msra.gmra.mrb[32].mxu1 %vm4546_vm0, %v18707_v8  ;;  %v13888_v8 = vld [vmem:[#allocation2 + $0x30] sm:$0xe] }
 0x671   : > { %17498 = vmatprep.mubr.msk.bf16.mxu1 %vm4546_vm0, %v18709_v4  ;;  %17527 = vmatpush3.bf16.msra.mxu1 %v23498_v47  ;;  %v13161_v4 = vld [vmem:[#allocation2 + $0x4c] sm:$0xf]  ;;  %v16075_v47 = vrot.slane %v13888_v8, 9  ;;  %v13975_v8 = vrot.slane %v13973_v40, 4 }
 0x672   : > { %17528 = vmatprep.subr.bf16.mxu1 %v18717_v11 }
 0x675   : > { %17529 = vmatpush3.bf16.msra.mxu1 %v18717_v11  ;;  %v13159_v11 = vld [vmem:[#allocation2 + $0x44] sm:$0x1] }
 0x676   : > { %17562 = vmatprep.subr.bf16.mxu1 %v23642_v31  ;;  %v13976_v41 = vrot.slane %v13159_v11, 5  ;;  %v13980_v11 = vrot.slane %v13161_v4, 5 }
 0x678   : > { %17499 = vmatmul.mubr.msk.bf16.gmra.mrb[36].mxu1 %vm4546_vm0, %v18710_v60  ;;  %v13164_v60 = vld [vmem:[#allocation2 + $0x58] sm:$0xf]  ;;  %v23691_v15 = vsel %vm20031_vm6, %v13975_v8, %v13976_v41  ;;  %v23695_v40 = vsel %vm20031_vm6, %v16077_v56, %v13980_v11  ;;  %v13982_v4 = vrot.slane %v13980_v11, 4  ;;  %v13174_v41 = vld [vmem:[#allocation2 + $0x80] sm:$0x1]  ;;  %v16079_v8 = vrot.slane %v13892_v10, 9 }
 0x679   : > { %17502 = vmatprep.mubr.msk.bf16.mxu1 %vm4546_vm0, %v18711_v44  ;;  %v13961_v44 = vrot.slane %v13959_v17, 4  ;;  %v13987_v3 = vrot.slane %v13164_v60, 5  ;;  %25546 = vst [vmem:[#allocation121_spill] sm:$0xff] %v23691_v15  ;;  %25547 = vst [vmem:[#allocation122_spill] sm:$0xff] %v23695_v40  ;;  %v13994_v11 = vrot.slane %v13167_v16, 5 }
 0x67a   : > { %v13180_v15 = vld [vmem:[#allocation2 + $0x98] sm:$0x1]  ;;  %v13183_v40 = vld [vmem:[#allocation2 + $0xa4] sm:$0x1] }
 0x67b   : > { %v23671_v26 = vsel %vm20031_vm6, %v13961_v44, %v13962_v33  ;;  %v13168_v33 = vld [vmem:[#allocation2 + $0x68] sm:$0x1]  ;;  %v23685_v44 = vsel %vm20031_vm6, %v13968_v1, %v13969_v62  ;;  %v13171_v62 = vld [vmem:[#allocation2 + $0x74] sm:$0x1]  ;;  %v13173_v1 = vld [vmem:[#allocation2 + $0x7c] sm:$0xf] }
 0x67c   : > { %25542 = vst [vmem:[#allocation87_spill] sm:$0xff] %v23671_v26  ;;  %25545 = vst [vmem:[#allocation120_spill] sm:$0xff] %v23685_v44  ;;  %v13893_v26 = vld [vmem:[#allocation2 + $0x6c] sm:$0xe]  ;;  %v13989_v60 = vrot.slane %v13987_v3, 4  ;;  %v13997_v44 = vrot.slane %v13168_v33, 5 }
 0x67d   : > { %v13996_v16 = vrot.slane %v13994_v11, 4  ;;  %v14004_v33 = vrot.slane %v13171_v62, 5 }
 0x67f   : > { %v23728_v10 = vsel %vm20031_vm6, %v13996_v16, %v13997_v44  ;;  %v18718_v16 = vld [vmem:[#allocation2 + $0x84] sm:$0xff]  }
 0x680   : > { %17503 = vmatmul.mubr.msk.bf16.gmra.mrb[40].mxu1 %vm4546_vm0, %v18712_v0  ;;  %v13165_v0 = vld [vmem:[#allocation2 + $0x5c] sm:$0x1]  ;;  %25553 = vst [vmem:[#allocation128_spill] sm:$0xff] %v23728_v10  ;;  %v14025_v10 = vrot.slane %v13180_v15, 5  ;;  %v25635_v61 = vld [vmem:[#allocation122_spill] sm:$0xff] }
 0x681   : > { %17506 = vmatprep.mubr.msk.bf16.mxu1 %vm4546_vm0, %v18713_v12  ;;  %v23675_v12 = vsel %vm20031_vm6, %v16075_v47, %v13966_v45  ;;  %v13983_v47 = vrot.slane %v13162_v36, 5  ;;  %v16078_v45 = vrot.slane %v13891_v52, 9  ;;  %v13990_v17 = vrot.slane %v13165_v0, 5 }
 0x682   : > { %25543 = vst [vmem:[#allocation56_spill] sm:$0xff] %v23675_v12  ;;  %v13176_v12 = vld [vmem:[#allocation2 + $0x88] sm:$0xf]  ;;  %v16080_v0 = vrot.slane %v13893_v26, 9  ;;  %v23720_v52 = vsel %vm20031_vm6, %v16079_v8, %v13994_v11  ;;  %v14008_v26 = vrot.slane %v13173_v1, 5 }
 0x683   : > { %v23701_v36 = vsel %vm20031_vm6, %v16078_v45, %v13987_v3  ;;  %v23706_v56 = vsel %vm20031_vm6, %v13982_v4, %v13983_v47  ;;  %v23713_v45 = vsel %vm20031_vm6, %v13989_v60, %v13990_v17  ;;  %v13894_v3 = vld [vmem:[#allocation2 + $0x78] sm:$0xe]  ;;  %v13895_v47 = vld [vmem:[#allocation2 + $0x84] sm:$0xe]  ;;  %v13179_v4 = vld [vmem:[#allocation2 + $0x94] sm:$0xf] }
 0x684   : > { %25548 = vst [vmem:[#allocation123_spill] sm:$0xff] %v23701_v36  ;;  %25549 = vst [vmem:[#allocation124_spill] sm:$0xff] %v23706_v56  ;;  %v18716_v60 = vld [vmem:[#allocation2 + $0x78] sm:$0xff]   ;;  %v16081_v62 = vrot.slane %v13894_v3, 9  ;;  %v14015_v36 = vrot.slane %v13176_v12, 5 }
 0x685   : > { %25550 = vst [vmem:[#allocation125_spill] sm:$0xff] %v23713_v45  ;;  %25551 = vst [vmem:[#allocation126_spill] sm:$0xff] %v23720_v52  ;;  %v14011_v45 = vrot.slane %v13174_v41, 5  ;;  %v13182_v56 = vld [vmem:[#allocation2 + $0xa0] sm:$0xf] }
 0x686   : > { %v13896_v1 = vld [vmem:[#allocation2 + $0x90] sm:$0xe]  ;;  %v23740_v44 = vsel %vm20031_vm6, %v16081_v62, %v14008_v26  ;;  %v14017_v12 = vrot.slane %v14015_v36, 4  ;;  %v13897_v3 = vld [vmem:[#allocation2 + $0x9c] sm:$0xe] }
 0x687   : > { %25555 = vst [vmem:[#allocation130_spill] sm:$0xff] %v23740_v44  ;;  %v13185_v8 = vld [vmem:[#allocation2 + $0xac] sm:$0xf]  ;;  %v16084_v15 = vrot.slane %v13897_v3, 9  ;;  %v14039_v3 = vrot.slane %v13186_v22, 5 }
 0x688   : > { %17507 = vmatmul.mubr.msk.bf16.gmra.mrb[44].mxu1 %vm4546_vm0, %v18714_v35  ;;  %v14001_v35 = vrot.slane %v13170_v39, 5 }
 0x689   : > { %17510 = vmatprep.mubr.msk.bf16.mxu1 %vm4546_vm0, %v18715_v54  ;;  %v13177_v54 = vld [vmem:[#allocation2 + $0x8c] sm:$0x1] }
 0x68a   : > { %v23724_v17 = vsel %vm20031_vm6, %v16080_v0, %v14001_v35  ;;  %v14003_v39 = vrot.slane %v14001_v35, 4  ;;  %v14010_v0 = vrot.slane %v14008_v26, 4  ;;  %v16082_v35 = vrot.slane %v13895_v47, 9  ;;  %v13188_v26 = vld [vmem:[#allocation2 + $0xb8] sm:$0xf] }
 0x68b   : > { %25552 = vst [vmem:[#allocation127_spill] sm:$0xff] %v23724_v17  ;;  %v14018_v41 = vrot.slane %v13177_v54, 5 }
 0x68c   : > { %v23734_v11 = vsel %vm20031_vm6, %v14003_v39, %v14004_v33  ;;  %v23744_v33 = vsel %vm20031_vm6, %v14010_v0, %v14011_v45  ;;  %v23748_v47 = vsel %vm20031_vm6, %v16082_v35, %v14015_v36  ;;  %v14022_v39 = vrot.slane %v13179_v4, 5  ;;  %v13189_v35 = vld [vmem:[#allocation2 + $0xbc] sm:$0x1]  ;;  %v11564_v36 = vld [vmem:[#allocation2 + $0x24] sm:$0xf] }
 0x68d   : > { %25554 = vst [vmem:[#allocation129_spill] sm:$0xff] %v23734_v11  ;;  %25556 = vst [vmem:[#allocation131_spill] sm:$0xff] %v23744_v33  ;;  %v23755_v62 = vsel %vm20031_vm6, %v14017_v12, %v14018_v41  ;;  %v16083_v11 = vrot.slane %v13896_v1, 9  ;;  %v14029_v45 = vrot.slane %v13182_v56, 5  ;;  %v14032_v0 = vrot.slane %v13183_v40, 5 }
 0x68e   : > { %25557 = vst [vmem:[#allocation132_spill] sm:$0xff] %v23748_v47  ;;  %25558 = vst [vmem:[#allocation133_spill] sm:$0xff] %v23755_v62  ;;  %v14024_v4 = vrot.slane %v14022_v39, 4  ;;  %v14036_v33 = vrot.slane %v13185_v8, 5  ;;  %v13899_v12 = vld [vmem:[#allocation2 + $0xb4] sm:$0xe] }
 0x68f   : > { %v23762_v17 = vsel %vm20031_vm6, %v16083_v11, %v14022_v39  ;;  %v14031_v54 = vrot.slane %v14029_v45, 4  ;;  %v11558_v41 = vld [vmem:[#allocation2 + $0xc] sm:$0xf]  ;;  %v23770_v1 = vsel %vm20031_vm6, %v16084_v15, %v14029_v45  ;;  %v14043_v40 = vrot.slane %v13188_v26, 5  ;;  %v18719_v47 = vld [vmem:[#allocation2 + $0x90] sm:$0xff]  }
 0x690   : > { %17511 = vmatmul.mubr.msk.bf16.gmra.mrb[48].mxu1 %vm4546_vm0, %v18716_v60  ;;  %v13898_v60 = vld [vmem:[#allocation2 + $0xa8] sm:$0xe]  ;;  %25559 = vst [vmem:[#allocation134_spill] sm:$0xff] %v23762_v17  ;;  %v23766_v56 = vsel %vm20031_vm6, %v14024_v4, %v14025_v10  ;;  %25561 = vst [vmem:[#allocation136_spill] sm:$0xff] %v23770_v1  ;;  %v14038_v39 = vrot.slane %v14036_v33, 4  ;;  %v16086_v10 = vrot.slane %v13899_v12, 9 }
 0x691   : > { %17514 = vmatprep.mubr.msk.bf16.mxu1 %vm4546_vm0, %v18718_v16  ;;  %25560 = vst [vmem:[#allocation135_spill] sm:$0xff] %v23766_v56  ;;  %v23776_v11 = vsel %vm20031_vm6, %v14031_v54, %v14032_v0  ;;  %v16085_v8 = vrot.slane %v13898_v60, 9  ;;  %v14045_v4 = vrot.slane %v14043_v40, 4  ;;  %v14046_v62 = vrot.slane %v13189_v35, 5  ;;  %v18720_v54 = vld [vmem:[#allocation2 + $0x9c] sm:$0xff]  }
 0x692   : > { %25562 = vst [vmem:[#allocation137_spill] sm:$0xff] %v23776_v11  ;;  %v11607_v45 = vshrl.u32 %v11558_v41, 16  ;;  %v11610_v15 = vshll.u32 %v11558_v41, 16  ;;  %v23786_v26 = vsel %vm20031_vm6, %v14038_v39, %v14039_v3  ;;  %v23792_v60 = vsel %vm20031_vm6, %v16086_v10, %v14043_v40  ;;  %v11561_v40 = vld [vmem:[#allocation2 + $0x18] sm:$0xf]  ;;  %v18721_v11 = vld [vmem:[#allocation2 + $0xa8] sm:$0xff]  }
 0x693   : > { %v23782_v22 = vsel %vm20031_vm6, %v16085_v8, %v14036_v33  ;;  %25564 = vst [vmem:[#allocation139_spill] sm:$0xff] %v23786_v26  ;;  %25565 = vst [vmem:[#allocation140_spill] sm:$0xff] %v23792_v60  ;;  %v23796_v35 = vsel %vm20031_vm6, %v14045_v4, %v14046_v62  ;;  %v25567_v33 = vshll.u32 %v23318_v42, 16  ;;  %v25568_v41 = vshrl.u32 %v23318_v42, 16  ;;  %v11576_v8 = vld [vmem:[#allocation2 + $0x54] sm:$0xf] }
 0x694   : > { %25563 = vst [vmem:[#allocation138_spill] sm:$0xff] %v23782_v22  ;;  %25566 = vst [vmem:[#allocation141_spill] sm:$0xff] %v23796_v35  ;;  %v25569_v10 = vshrl.u32 %v23658_v48, 16  ;;  %v11612_v0 = vrot.slane %v11610_v15, 5  ;;  %v11640_v42 = vshll.u32 %v23335_v38, 16  ;;  %v11664_v39 = vshll.u32 %v23342_v58, 16 }
 0x695   : > { %v23801_v12 = vrot.slane %v25567_v33, 5  ;;  %v11622_v3 = vrot.slane %v25568_v41, 4  ;;  %v11609_v33 = vrot.slane %v11607_v45, 4  ;;  %v11644_v41 = vshrl.u32 %v23335_v38, 16  ;;  %v23830_v56 = vld [vmem:[#allocation2 + $0x6c] sm:$0xf] }
 0x696   : > { %v23810_v62 = vrot.slane %v25569_v10, 4  ;;  %v11751_v16 = vshrl.u32 %v11576_v8, 16  ;;  %v11754_v35 = vshll.u32 %v11576_v8, 16  ;;  %v11631_v60 = vshrl.u32 %v11561_v40, 16 }
 0x697   : > { %v11623_v10 = vor.u32 %v11622_v3, %v23801_v12  ;;  %v11634_v26 = vshll.u32 %v11561_v40, 16  ;;  %v11655_v15 = vshrl.u32 %v11564_v36, 16  ;;  %v11613_v1 = vor.u32 %v11612_v0, %v11609_v33  ;;  %v18722_v40 = vld [vmem:[#allocation2 + $0xb4] sm:$0xff]  }
 0x698   : > { %17515 = vmatmul.mubr.msk.bf16.gmra.mrb[52].mxu1 %vm4546_vm0, %v18719_v47  ;;  %v25570_v47 = vshll.u32 %v23658_v48, 16  ;;  %v23821_v48 = vld [vmem:[#allocation2 + $0x5c] sm:$0x1]  ;;  %v23828_v8 = vrot.slane %v11640_v42, 5  ;;  %v11646_v3 = vrot.slane %v11644_v41, 4  ;;  %v23832_v17 = vrot.slane %v11664_v39, 5 }
 0x699   : > { %17518 = vmatprep.mubr.msk.bf16.mxu1 %vm4546_vm0, %v18720_v54  ;;  %v11668_v54 = vshrl.u32 %v23342_v58, 16  ;;  %v11626_v58 = vshll.u32 %v23322_v63, 16  ;;  %v23834_v44 = vrot.slane %v11751_v16, 4  ;;  %v11624_v38 = vrot.slane %v11623_v10, 4  ;;  %v19013_v41 = vld [vmem:[#allocation2 + $0x58] sm:$0xf] }
 0x69a   : > { %v23814_v4 = vrot.slane %v25570_v47, 5  ;;  %v11658_v47 = vshll.u32 %v11564_v36, 16  ;;  %v23836_v36 = vrot.slane %v11754_v35, 5  ;;  %v11633_v22 = vrot.slane %v11631_v60, 4  ;;  %v18723_v63 = vld [vmem:[#allocation2 + $0xc0] sm:$0xff]  }
 0x69b   : > { %v11670_v45 = vrot.slane %v11668_v54, 4  ;;  %v11636_v0 = vrot.slane %v11634_v26, 5  ;;  %v11657_v33 = vrot.slane %v11655_v15, 4  ;;  %v11760_v52 = vshll.u32 %v19013_v41, 16  ;;  %v11570_v15 = vld [vmem:[#allocation2 + $0x3c] sm:$0xf] }
 0x69c   : > { %v11660_v42 = vrot.slane %v11658_v47, 5  ;;  %v11614_v54 = vrot.slane %v11613_v1, 4  ;;  %v11628_v16 = vrot.slane %v11626_v58, 5  ;;  %v11647_v35 = vor.u32 %v11646_v3, %v23828_v8 }
 0x69d   : > { %v11764_v27 = vshrl.u32 %v19013_v41, 16  ;;  %v11671_v26 = vor.u32 %v11670_v45, %v23832_v17  ;;  %v11688_v60 = vshll.u32 %v23349_v20, 16  ;;  %v11692_v10 = vshrl.u32 %v23349_v20, 16 }
 0x69e   : > { %v11629_v47 = vsel %vm19659_vm2, %v11624_v38, %v11628_v16  ;;  %v11712_v1 = vshll.u32 %v23370_v13, 16  ;;  %v11716_v58 = vshrl.u32 %v23370_v13, 16  ;;  %v11661_v3 = vor.u32 %v11660_v42, %v11657_v33 }
 0x69f   : > { %v11674_v41 = vshll.u32 %v23347_v30, 16  ;;  %v11679_v39 = vshrl.u32 %v11567_v37, 16  ;;  %v11619_v45 = vsel %vm19659_vm2, %v11614_v54, %v23801_v12  ;;  %v11648_v20 = vrot.slane %v11647_v35, 4 }
 0x6a0   : > { %17519 = vmatmul.mubr.msk.bf16.gmra.mrb[56].mxu1 %vm4546_vm0, %v18721_v11  ;;  %v11650_v11 = vshll.u32 %v23345_v49, 16  ;;  %v11682_v49 = vshll.u32 %v11567_v37, 16  ;;  %v11703_v50 = vshrl.u32 %v11570_v15, 16  ;;  %v11706_v43 = vshll.u32 %v11570_v15, 16  ;;  %v11573_v15 = vld [vmem:[#allocation2 + $0x48] sm:$0xf] }
 0x6a1   : > { %17522 = vmatprep.mubr.msk.bf16.mxu1 %vm4546_vm0, %v18722_v40  ;;  %v11637_v40 = vor.u32 %v11636_v0, %v11633_v22  ;;  %v15921_v46 = vcombine.low %v11619_v45, %v11629_v47  ;;  %v11672_v38 = vrot.slane %v11671_v26, 4  ;;  %v23855_v22 = vrot.slane %v11688_v60, 5 }
 0x6a2   : > { %v11694_v0 = vrot.slane %v11692_v10, 4  ;;  %v11652_v33 = vrot.slane %v11650_v11, 5  ;;  %v23858_v30 = vrot.slane %v11712_v1, 5  ;;  %v11718_v37 = vrot.slane %v11716_v58, 4 }
 0x6a3   : > { %v11638_v13 = vrot.slane %v11637_v40, 4  ;;  %v11662_v42 = vrot.slane %v11661_v3, 4  ;;  %v11676_v16 = vrot.slane %v11674_v41, 5  ;;  %v11681_v12 = vrot.slane %v11679_v39, 4 }
 0x6a4   : > { %v11684_v54 = vrot.slane %v11682_v49, 5  ;;  %v11653_v35 = vsel %vm19659_vm2, %v11648_v20, %v11652_v33  ;;  %v11698_v26 = vshll.u32 %v23361_v51, 16  ;;  %v11705_v60 = vrot.slane %v11703_v50, 4  ;;  %v18725_v20 = vld [vmem:[#allocation11 + $0x58] sm:$0xff]  }
 0x6a5   : > { %v11708_v10 = vrot.slane %v11706_v43, 5  ;;  %v11695_v11 = vor.u32 %v11694_v0, %v23855_v22  ;;  %v11736_v47 = vshll.u32 %v23372_v59, 16  ;;  %v11643_v39 = vsel %vm19659_vm2, %v11638_v13, %v23828_v8 }
 0x6a6   : > { %v11719_v40 = vor.u32 %v11718_v37, %v23858_v30  ;;  %v23873_v1 = vrot.slane %v11760_v52, 5  ;;  %v11766_v51 = vrot.slane %v11764_v27, 4  ;;  %v11667_v43 = vsel %vm19659_vm2, %v11662_v42, %v23832_v17 }
 0x6a7   : > { %v11685_v50 = vor.u32 %v11684_v54, %v11681_v12  ;;  %v11727_v58 = vshrl.u32 %v11573_v15, 16  ;;  %v11730_v3 = vshll.u32 %v11573_v15, 16  ;;  %v15922_v41 = vcombine.low %v11643_v39, %v11653_v35 }
 0x6a8   : > { %17523 = vmatmul.mubr.msk.bf16.gmra.mrb[60].mxu1 %vm4546_vm0, %v18723_v63  ;;  %v11677_v63 = vsel %vm19659_vm2, %v11672_v38, %v11676_v16  ;;  %v11709_v45 = vor.u32 %v11708_v10, %v11705_v60  ;;  %v11696_v38 = vrot.slane %v11695_v11, 4  ;;  %v11700_v8 = vrot.slane %v11698_v26, 5 }
 0x6a9   : > { %17530 = vmatprep.mubr.msk.bf16.mxu1 %vm4546_vm0, %v15921_v46  ;;  %v11740_v46 = vshrl.u32 %v23372_v59, 16  ;;  %v15923_v49 = vcombine.low %v11667_v43, %v11677_v63  ;;  %v11722_v59 = vshll.u32 %v23395_v32, 16  ;;  %v23879_v0 = vrot.slane %v11736_v47, 5 }
 0x6aa   : > { %v11720_v27 = vrot.slane %v11719_v40, 4  ;;  %v25571_v13 = vshll.u32 %v23320_v55, 16  ;;  %v25572_v33 = vshrl.u32 %v23320_v55, 16  ;;  %v11802_v42 = vshll.u32 %v23830_v56, 16  ;;  %v23895_v55 = vld [vmem:[#allocation11 + $0x60] sm:$0xff]  }
 0x6ab   : > { %v11742_v52 = vrot.slane %v11740_v46, 4  ;;  %v11686_v32 = vrot.slane %v11685_v50, 4  ;;  %v11729_v16 = vrot.slane %v11727_v58, 4  ;;  %v11732_v12 = vrot.slane %v11730_v3, 5  ;;  %v25575_v3 = vld [vmem:[#allocation83_spill] sm:$0xff] }
 0x6ac   : > { %v23884_v17 = vrot.slane %v25571_v13, 5  ;;  %v11790_v37 = vrot.slane %v25572_v33, 4  ;;  %v11767_v54 = vor.u32 %v11766_v51, %v23873_v1  ;;  %v11710_v35 = vrot.slane %v11709_v45, 4 }
 0x6ad   : > { %v11724_v26 = vrot.slane %v11722_v59, 5  ;;  %v11746_v60 = vshll.u32 %v23381_v57, 16  ;;  %v25573_v10 = vshll.u32 %v23821_v48, 16  ;;  %v11701_v63 = vsel %vm19659_vm2, %v11696_v38, %v11700_v8 }
 0x6ae   : > { %v11757_v11 = vor.u32 %v23836_v36, %v23834_v44  ;;  %v25574_v47 = vshrl.u32 %v23830_v56, 16  ;;  %v11791_v48 = vor.u32 %v11790_v37, %v23884_v17  ;;  %v11808_v39 = vshll.u32 %v23397_v24, 16 }
 0x6af   : > { %v11772_v15 = vrot.slane %v25573_v10, 5  ;;  %v11725_v57 = vsel %vm19659_vm2, %v11720_v27, %v11724_v26  ;;  %v11812_v40 = vshrl.u32 %v23397_v24, 16  ;;  %v11691_v51 = vsel %vm19659_vm2, %v11686_v32, %v23855_v22 }
 0x6b0   : > { %17531 = vmatmul.mubr.msk.bf16.vlgmr.msra.gmra.mrb[32].mxu1 %vm4546_vm0, %v15922_v41  ;;  %v11801_v46 = vrot.slane %v25574_v47, 4  ;;  %v11733_v43 = vor.u32 %v11732_v12, %v11729_v16  ;;  %v11768_v50 = vrot.slane %v11767_v54, 4  ;;  %v11804_v58 = vrot.slane %v11802_v42, 5  ;;  %v11588_v42 = vld [vmem:[#allocation2 + $0x84] sm:$0xf] }
 0x6b1   : > { %17534 = vmatprep.mubr.msk.bf16.mxu1 %vm4546_vm0, %v15923_v49  ;;  %17563 = vmatpush3.bf16.msra.mxu1 %v23642_v31  ;;  %v11743_v31 = vor.u32 %v11742_v52, %v23879_v0  ;;  %v15924_v44 = vcombine.low %v11691_v51, %v11701_v63  ;;  %v11715_v56 = vsel %vm19659_vm2, %v11710_v35, %v23858_v30  ;;  %v11748_v36 = vrot.slane %v11746_v60, 5  ;;  %v11585_v49 = vld [vmem:[#allocation2 + $0x78] sm:$0xf]  ;;  %v25577_v60 = vld [vmem:[#allocation106_spill] sm:$0xff] }
 0x6b2   : > { %17564 = vmatprep.subr.bf16.mxu1 %v18725_v20  ;;  %v11794_v41 = vshll.u32 %v25575_v3, 16  ;;  %v15925_v24 = vcombine.low %v11715_v56, %v11725_v57  ;;  %v11832_v59 = vshll.u32 %v23418_v19, 16  ;;  %v11836_v22 = vshrl.u32 %v23418_v19, 16 }
 0x6b3   : > { %v11744_v45 = vrot.slane %v11743_v31, 4  ;;  %v25576_v38 = vor.u32 %v23814_v4, %v23810_v62  ;;  %v23923_v30 = vrot.slane %v11808_v39, 5  ;;  %v11814_v52 = vrot.slane %v11812_v40, 4 }
 0x6b4   : > { %v11734_v27 = vrot.slane %v11733_v43, 4  ;;  %v11792_v13 = vrot.slane %v11791_v48, 4  ;;  %v11823_v33 = vshrl.u32 %v11585_v49, 16  ;;  %v11826_v37 = vshll.u32 %v11585_v49, 16 }
 0x6b5   : > { %17565 = vmatpush3.bf16.msra.mxu1 %v18725_v20  ;;  %v11758_v20 = vrot.slane %v11757_v11, 4  ;;  %v11782_v8 = vrot.slane %v25576_v38, 4  ;;  %v11796_v32 = vrot.slane %v11794_v41, 5  ;;  %v11805_v16 = vor.u32 %v11804_v58, %v11801_v46  ;;  %v11591_v41 = vld [vmem:[#allocation2 + $0x90] sm:$0xf]  ;;  %v25579_v38 = vld [vmem:[#allocation114_spill] sm:$0xff] }
 0x6b6   : > { %17598 = vmatprep.subr.bf16.mxu1 %v23895_v55  ;;  %v11856_v19 = vshll.u32 %v23429_v7, 16  ;;  %v11860_v12 = vshrl.u32 %v23429_v7, 16  ;;  %v11749_v62 = vsel %vm19659_vm2, %v11744_v45, %v11748_v36  ;;  %v11773_v4 = vsel %vm19659_vm2, %v11768_v50, %v11772_v15 }
 0x6b7   : > { %v23932_v54 = vrot.slane %v11832_v59, 5  ;;  %v11838_v35 = vrot.slane %v11836_v22, 4  ;;  %v11815_v26 = vor.u32 %v11814_v52, %v23923_v30  ;;  %v11818_v10 = vshll.u32 %v25577_v60, 16  ;;  %v11594_v59 = vld [vmem:[#allocation2 + $0x9c] sm:$0xf] }
 0x6b8   : > { %17535 = vmatmul.mubr.msk.bf16.gmra.mrb[36].mxu1 %vm4546_vm0, %v15924_v44  ;;  %v11847_v63 = vshrl.u32 %v11588_v42, 16  ;;  %v11850_v31 = vshll.u32 %v11588_v42, 16  ;;  %v11739_v11 = vsel %vm19659_vm2, %v11734_v27, %v23879_v0  ;;  %v11763_v7 = vsel %vm19659_vm2, %v11758_v20, %v23873_v1 }
 0x6b9   : > { %17538 = vmatprep.mubr.msk.bf16.mxu1 %vm4546_vm0, %v15925_v24  ;;  %v11825_v47 = vrot.slane %v11823_v33, 4  ;;  %v11828_v46 = vrot.slane %v11826_v37, 5  ;;  %v15926_v15 = vcombine.low %v11739_v11, %v11749_v62  ;;  %v11797_v57 = vsel %vm19659_vm2, %v11792_v13, %v11796_v32  ;;  %v25578_v24 = vld [vmem:[#allocation109_spill] sm:$0xff] }
 0x6ba   : > { %v23944_v48 = vrot.slane %v11856_v19, 5  ;;  %v11862_v39 = vrot.slane %v11860_v12, 4  ;;  %v15927_v40 = vcombine.low %v11763_v7, %v11773_v4  ;;  %v11787_v51 = vsel %vm19659_vm2, %v11782_v8, %v23884_v17  ;;  %v25580_v7 = vld [vmem:[#allocation111_spill] sm:$0xff] }
 0x6bb   : > { %v11839_v0 = vor.u32 %v11838_v35, %v23932_v54  ;;  %v11842_v43 = vshll.u32 %v23420_v21, 16  ;;  %v11816_v1 = vrot.slane %v11815_v26, 4  ;;  %v11820_v50 = vrot.slane %v11818_v10, 5 }
 0x6bc   : > { %v11849_v58 = vrot.slane %v11847_v63, 4  ;;  %v11852_v44 = vrot.slane %v11850_v31, 5  ;;  %v15928_v56 = vcombine.low %v11787_v51, %v11797_v57  ;;  %v11806_v36 = vrot.slane %v11805_v16, 4  ;;  %v11597_v51 = vld [vmem:[#allocation2 + $0xa8] sm:$0xf] }
 0x6bd   : > { %v11829_v3 = vor.u32 %v11828_v46, %v11825_v47  ;;  %v11863_v49 = vor.u32 %v11862_v39, %v23944_v48  ;;  %v11866_v17 = vshll.u32 %v23435_v5, 16  ;;  %v11880_v45 = vshll.u32 %v25578_v24, 16 }
 0x6be   : > { %v11884_v21 = vshrl.u32 %v25578_v24, 16  ;;  %v11840_v22 = vrot.slane %v11839_v0, 4  ;;  %v11844_v20 = vrot.slane %v11842_v43, 5  ;;  %v11904_v8 = vshll.u32 %v25579_v38, 16  ;;  %v25581_v43 = vld [vmem:[#allocation92_spill] sm:$0xff] }
 0x6bf   : > { %v11908_v52 = vshrl.u32 %v25579_v38, 16  ;;  %v11821_v27 = vsel %vm19659_vm2, %v11816_v1, %v11820_v50  ;;  %v11853_v13 = vor.u32 %v11852_v44, %v11849_v58  ;;  %v11871_v33 = vshrl.u32 %v11591_v41, 16  ;;  %v25582_v50 = vld [vmem:[#allocation93_spill] sm:$0xff] }
 0x6c0   : > { %17539 = vmatmul.mubr.msk.bf16.gmra.mrb[40].mxu1 %vm4546_vm0, %v15926_v15  ;;  %v11874_v37 = vshll.u32 %v11591_v41, 16  ;;  %v11811_v5 = vsel %vm19659_vm2, %v11806_v36, %v23923_v30  ;;  %v11830_v42 = vrot.slane %v11829_v3, 4  ;;  %v11895_v32 = vshrl.u32 %v11594_v59, 16 }
 0x6c1   : > { %17542 = vmatprep.mubr.msk.bf16.mxu1 %vm4546_vm0, %v15927_v40  ;;  %v11898_v16 = vshll.u32 %v11594_v59, 16  ;;  %v11864_v19 = vrot.slane %v11863_v49, 4  ;;  %v11868_v12 = vrot.slane %v11866_v17, 5  ;;  %v23964_v62 = vrot.slane %v11880_v45, 5 }
 0x6c2   : > { %v11886_v4 = vrot.slane %v11884_v21, 4  ;;  %v15929_v35 = vcombine.low %v11811_v5, %v11821_v27  ;;  %v11845_v26 = vsel %vm19659_vm2, %v11840_v22, %v11844_v20  ;;  %v11906_v60 = vrot.slane %v11904_v8, 5 }
 0x6c3   : > { %v11910_v10 = vrot.slane %v11908_v52, 4  ;;  %v11854_v63 = vrot.slane %v11853_v13, 4  ;;  %v11873_v31 = vrot.slane %v11871_v33, 4  ;;  %v11876_v11 = vrot.slane %v11874_v37, 5 }
 0x6c4   : > { %v11835_v30 = vsel %vm19659_vm2, %v11830_v42, %v23932_v54  ;;  %v11890_v47 = vshll.u32 %v25580_v7, 16  ;;  %v11897_v46 = vrot.slane %v11895_v32, 4  ;;  %v11900_v15 = vrot.slane %v11898_v16, 5 }
 0x6c5   : > { %v15930_v57 = vcombine.low %v11835_v30, %v11845_v26  ;;  %v11869_v39 = vsel %vm19659_vm2, %v11864_v19, %v11868_v12  ;;  %v11887_v40 = vor.u32 %v11886_v4, %v23964_v62  ;;  %v11911_v0 = vor.u32 %v11910_v10, %v11906_v60  ;;  %v11603_v12 = vld [vmem:[#allocation2 + $0xc0] sm:$0xf] }
 0x6c6   : > { %v11914_v1 = vshll.u32 %v25581_v43, 16  ;;  %v11928_v58 = vshll.u32 %v25582_v50, 16  ;;  %v11932_v44 = vshrl.u32 %v25582_v50, 16  ;;  %v11859_v54 = vsel %vm19659_vm2, %v11854_v63, %v23944_v48 }
 0x6c7   : > { %v11877_v36 = vor.u32 %v11876_v11, %v11873_v31  ;;  %v11952_v3 = vshll.u32 %v23513_v23, 16  ;;  %v11956_v41 = vshrl.u32 %v23513_v23, 16  ;;  %v11892_v49 = vrot.slane %v11890_v47, 5 }
 0x6c8   : > { %17543 = vmatmul.mubr.msk.bf16.gmra.mrb[44].mxu1 %vm4546_vm0, %v15928_v56  ;;  %v11600_v56 = vld [vmem:[#allocation2 + $0xb4] sm:$0xf]  ;;  %v11901_v17 = vor.u32 %v11900_v15, %v11897_v46  ;;  %v11919_v24 = vshrl.u32 %v11597_v51, 16  ;;  %v11922_v45 = vshll.u32 %v11597_v51, 16  ;;  %v15931_v21 = vcombine.low %v11859_v54, %v11869_v39 }
 0x6c9   : > { %17546 = vmatprep.mubr.msk.bf16.mxu1 %vm4546_vm0, %v15929_v35  ;;  %v11888_v59 = vrot.slane %v11887_v40, 4  ;;  %v11943_v22 = vshrl.u32 %v11600_v56, 16  ;;  %v11946_v20 = vshll.u32 %v11600_v56, 16  ;;  %v11912_v38 = vrot.slane %v11911_v0, 4 }
 0x6ca   : > { %v11916_v8 = vrot.slane %v11914_v1, 5  ;;  %v11930_v52 = vrot.slane %v11928_v58, 5  ;;  %v11934_v27 = vrot.slane %v11932_v44, 4  ;;  %v11878_v48 = vrot.slane %v11877_v36, 4 }
 0x6cb   : > { %v11954_v13 = vrot.slane %v11952_v3, 5  ;;  %v11958_v33 = vrot.slane %v11956_v41, 4  ;;  %v11902_v23 = vrot.slane %v11901_v17, 4  ;;  %v11921_v37 = vrot.slane %v11919_v24, 4 }
 0x6cc   : > { %v11924_v5 = vrot.slane %v11922_v45, 5  ;;  %v11893_v42 = vsel %vm19659_vm2, %v11888_v59, %v11892_v49  ;;  %v11938_v32 = vshll.u32 %v23503_v53, 16  ;;  %v11945_v16 = vrot.slane %v11943_v22, 4 }
 0x6cd   : > { %v11948_v19 = vrot.slane %v11946_v20, 5  ;;  %v11917_v4 = vsel %vm19659_vm2, %v11912_v38, %v11916_v8  ;;  %v11935_v35 = vor.u32 %v11934_v27, %v11930_v52  ;;  %v11976_v26 = vshll.u32 %v23634_v34, 16  ;;  %v25584_v20 = vld [vmem:[#allocation86_spill] sm:$0xff]  ;;  %v18727_v8 = vld [vmem:[#allocation11 + $0x68] sm:$0xff]  }
 0x6ce   : > { %v11980_v10 = vshrl.u32 %v23634_v34, 16  ;;  %v11883_v63 = vsel %vm19659_vm2, %v11878_v48, %v23964_v62  ;;  %v11959_v31 = vor.u32 %v11958_v33, %v11954_v13  ;;  %v11962_v11 = vshll.u32 %v23522_v18, 16  ;;  %v25587_v27 = vld [vmem:[#allocation101_spill] sm:$0xff] }
 0x6cf   : > { %v11907_v53 = vsel %vm19659_vm2, %v11902_v23, %v11906_v60  ;;  %v11925_v30 = vor.u32 %v11924_v5, %v11921_v37  ;;  %v11967_v7 = vshrl.u32 %v11603_v12, 16  ;;  %v11970_v47 = vshll.u32 %v11603_v12, 16  ;;  %v25590_v33 = vld [vmem:[#allocation105_spill] sm:$0xff]  ;;  %v18730_v37 = vld [vmem:[#allocation11 + $0x70] sm:$0xff]   ;;  %v25592_v5 = vld [vmem:[#allocation107_spill] sm:$0xff] }
 0x6d0   : > { %17547 = vmatmul.mubr.msk.bf16.gmra.mrb[48].mxu1 %vm4546_vm0, %v15930_v57  ;;  %v15932_v46 = vcombine.low %v11883_v63, %v11893_v42  ;;  %v15933_v15 = vcombine.low %v11907_v53, %v11917_v4  ;;  %v11949_v57 = vor.u32 %v11948_v19, %v11945_v16  ;;  %v11936_v39 = vrot.slane %v11935_v35, 4  ;;  %v25593_v42 = vld [vmem:[#allocation108_spill] sm:$0xff]  ;;  %v25596_v19 = vld [vmem:[#allocation113_spill] sm:$0xff]  ;;  %v24041_v35 = vld [vmem:[#allocation2 + $0xc8] sm:$0x1] }
 0x6d1   : > { %17550 = vmatprep.mubr.msk.bf16.mxu1 %vm4546_vm0, %v15931_v21  ;;  %v11940_v40 = vrot.slane %v11938_v32, 5  ;;  %v11978_v51 = vrot.slane %v11976_v26, 5  ;;  %v11982_v34 = vrot.slane %v11980_v10, 4  ;;  %v11960_v0 = vrot.slane %v11959_v31, 4  ;;  %v25595_v16 = vld [vmem:[#allocation112_spill] sm:$0xff]  ;;  %v25598_v10 = vld [vmem:[#allocation115_spill] sm:$0xff] }
 0x6d2   : > { %v11964_v62 = vrot.slane %v11962_v11, 5  ;;  %v11926_v18 = vrot.slane %v11925_v30, 4  ;;  %v11969_v43 = vrot.slane %v11967_v7, 4  ;;  %v11972_v1 = vrot.slane %v11970_v47, 5  ;;  %v24039_v4 = vld [vmem:[#allocation2 + $0xc4] sm:$0xf] }
 0x6d3   : > { %v11950_v60 = vrot.slane %v11949_v57, 4  ;;  %v11941_v50 = vsel %vm19659_vm2, %v11936_v39, %v11940_v40  ;;  %v11983_v58 = vor.u32 %v11982_v34, %v11978_v51  ;;  %v11986_v36 = vshll.u32 %v23637_v9, 16  ;;  %v25583_v9 = vld [vmem:[#allocation85_spill] sm:$0xff]  ;;  %v25599_v63 = vld [vmem:[#allocation116_spill] sm:$0xff] }
 0x6d4   : > { %v11965_v44 = vsel %vm19659_vm2, %v11960_v0, %v11964_v62  ;;  %v11931_v56 = vsel %vm19659_vm2, %v11926_v18, %v11930_v52  ;;  %v11973_v54 = vor.u32 %v11972_v1, %v11969_v43  ;;  %v25585_v38 = vcombine.low %v25583_v9, %v25584_v20  ;;  %v25586_v52 = vld [vmem:[#allocation99_spill] sm:$0xff]  ;;  %v13900_v26 = vld [vmem:[#allocation2 + $0xc0] sm:$0xe]  ;;  %v25601_v7 = vld [vmem:[#allocation88_spill] sm:$0xff] }
 0x6d5   : > { %v15934_v3 = vcombine.low %v11931_v56, %v11941_v50  ;;  %v11955_v41 = vsel %vm19659_vm2, %v11950_v60, %v11954_v13  ;;  %v11984_v17 = vrot.slane %v11983_v58, 4  ;;  %v11988_v45 = vrot.slane %v11986_v36, 5  ;;  %v25589_v13 = vld [vmem:[#allocation103_spill] sm:$0xff]  ;;  %v25602_v47 = vld [vmem:[#allocation89_spill] sm:$0xff]  ;;  %v25604_v40 = vld [vmem:[#allocation84_spill] sm:$0xff] }
 0x6d6   : > { %v15935_v49 = vcombine.low %v11955_v41, %v11965_v44  ;;  %v11974_v24 = vrot.slane %v11973_v54, 4  ;;  %v25588_v48 = vcombine.low %v25586_v52, %v25587_v27  ;;  %v25591_v23 = vcombine.low %v25589_v13, %v25590_v33  ;;  %v25607_v0 = vld [vmem:[#allocation117_spill] sm:$0xff]  ;;  %v25608_v62 = vld [vmem:[#allocation118_spill] sm:$0xff]  ;;  %v25610_v43 = vld [vmem:[#allocation95_spill] sm:$0xff] }
 0x6d7   : > { %v11989_v21 = vsel %vm19659_vm2, %v11984_v17, %v11988_v45  ;;  %v25594_v32 = vcombine.low %v25592_v5, %v25593_v42  ;;  %v25597_v12 = vcombine.low %v25595_v16, %v25596_v19  ;;  %v25600_v31 = vcombine.low %v25598_v10, %v25599_v63  ;;  %v25611_v1 = vld [vmem:[#allocation94_spill] sm:$0xff]  ;;  %v25614_v58 = vld [vmem:[#allocation119_spill] sm:$0xff]  ;;  %v25618_v36 = vld [vmem:[#allocation100_spill] sm:$0xff] }
 0x6d8   : > { %17551 = vmatmul.mubr.msk.bf16.gmra.mrb[52].mxu1 %vm4546_vm0, %v15932_v46  ;;  %v11979_v59 = vsel %vm19659_vm2, %v11974_v24, %v11978_v51  ;;  %v16087_v11 = vrot.slane %v13900_v26, 9  ;;  %v14053_v30 = vrot.slane %v24041_v35, 5  ;;  %v25603_v46 = vcombine.low %v25601_v7, %v25602_v47  ;;  %v25605_v51 = vld [vmem:[#allocation110_spill] sm:$0xff]  ;;  %v25620_v41 = vld [vmem:[#allocation96_spill] sm:$0xff]  ;;  %v18731_v45 = vld [vmem:[#allocation2 + $0x30] sm:$0xff]  }
 0x6d9   : > { %17554 = vmatprep.mubr.msk.bf16.mxu1 %vm4546_vm0, %v15933_v15  ;;  %v15936_v22 = vcombine.low %v11979_v59, %v11989_v21  ;;  %v25606_v34 = vcombine.low %v25604_v40, %v25605_v51  ;;  %v25609_v18 = vcombine.low %v25607_v0, %v25608_v62  ;;  %v25612_v60 = vcombine.low %v25610_v43, %v25611_v1  ;;  %v25617_v54 = vld [vmem:[#allocation98_spill] sm:$0xff]  ;;  %v24102_v21 = vld [vmem:[#allocation11 + $0x80] sm:$0xff]   ;;  %v18735_v20 = vld [vmem:[#allocation2 + $0x60] sm:$0xff]  }
 0x6da   : > { %v25613_v50 = vcombine.low %v23519_v25, %v23526_v2  ;;  %v25615_v44 = vcombine.low %v23535_v29, %v25614_v58  ;;  %v25616_v56 = vcombine.low %v23550_v6, %v23554_v14  ;;  %v18728_v2 = vld [vmem:[#allocation2 + $0x18] sm:$0xff]   ;;  %v25623_v17 = vld [vmem:[#allocation102_spill] sm:$0xff]  ;;  %v18739_v14 = vld [vmem:[#allocation11 + $0x78] sm:$0xff]  }
 0x6db   : > { %v25624_v29 = vld [vmem:[#allocation104_spill] sm:$0xff]  ;;  %v18729_v6 = vld [vmem:[#allocation2 + $0x24] sm:$0xff]   ;;  %v24117_v26 = vld [vmem:[#allocation2 + $0x20] sm:$0x1] }
 0x6dc   : > { %v25625_v24 = vcombine.low %v25623_v17, %v25624_v29  ;;  %v18732_v59 = vld [vmem:[#allocation2 + $0x3c] sm:$0xff]   ;;  %v18734_v9 = vld [vmem:[#allocation2 + $0x54] sm:$0xff]   ;;  %v13154_v63 = vld [vmem:[#allocation2 + $0x30] sm:$0xf]  ;;  %v13216_v47 = vshll.u32 %v24117_v26, 16 }
 0x6dd   : > { %v13148_v52 = vld [vmem:[#allocation2 + $0x18] sm:$0xf]  ;;  %v24111_v27 = vld [vmem:[#allocation2 + $0x1c] sm:$0xf]  ;;  %v18742_v7 = vld [vmem:[#allocation2 + $0xa8] sm:$0xff]   ;;  %v13245_v0 = vshrl.u32 %v13154_v63, 16 }
 0x6de   : > { %v13197_v13 = vshrl.u32 %v13148_v52, 16  ;;  %v13200_v33 = vshll.u32 %v13148_v52, 16  ;;  %v13206_v5 = vshll.u32 %v24111_v27, 16  ;;  %v13210_v42 = vshrl.u32 %v24111_v27, 16  ;;  %v19016_v1 = vld [vmem:[#allocation2 + $0x34] sm:$0xf] }
 0x6df   : > { %v13248_v62 = vshll.u32 %v13154_v63, 16  ;;  %v13160_v17 = vld [vmem:[#allocation2 + $0x48] sm:$0xf] }
 0x6e0   : > { %17555 = vmatmul.mubr.msk.bf16.gmra.mrb[56].mxu1 %vm4546_vm0, %v15934_v3  ;;  %v25619_v3 = vcombine.low %v25617_v54, %v25618_v36  ;;  %v13202_v16 = vrot.slane %v13200_v33, 5  ;;  %v13212_v10 = vrot.slane %v13210_v42, 4  ;;  %v13218_v54 = vrot.slane %v13216_v47, 5  ;;  %v19018_v33 = vld [vmem:[#allocation2 + $0x4c] sm:$0xf] }
 0x6e1   : > { %17558 = vmatprep.mubr.msk.bf16.mxu1 %vm4546_vm0, %v15935_v49  ;;  %v25621_v49 = vld [vmem:[#allocation97_spill] sm:$0xff] }
 0x6e2   : > { %v25622_v25 = vcombine.low %v25620_v41, %v25621_v49 }
 0x6e8   : > { %17559 = vmatmul.mubr.msk.bf16.gmra.mrb[60].mxu1 %vm4546_vm0, %v15936_v22  ;;  %v18733_v22 = vld [vmem:[#allocation2 + $0x48] sm:$0xff]  }
 0x6e9   : > { %17566 = vmatprep.mubr.msk.bf16.mxu1 %vm4546_vm0, %v25585_v38  ;;  %v18736_v38 = vld [vmem:[#allocation2 + $0x6c] sm:$0xff]  }
 0x6f0   : > { %17567 = vmatmul.mubr.msk.bf16.vlgmr.msra.gmra.mrb[32].mxu1 %vm4546_vm0, %v25588_v48  ;;  %v18738_v48 = vld [vmem:[#allocation2 + $0x84] sm:$0xff]  }
 0x6f1   : > { %17570 = vmatprep.mubr.msk.bf16.mxu1 %vm4546_vm0, %v25591_v23  ;;  %17599 = vmatpush3.bf16.msra.mxu1 %v23895_v55  ;;  %v14050_v55 = vrot.slane %v24039_v4, 5  ;;  %v18740_v23 = vld [vmem:[#allocation2 + $0x90] sm:$0xff]  }
 0x6f2   : > { %17600 = vmatprep.subr.bf16.mxu1 %v18727_v8 }
 0x6f3   : > { %v14052_v53 = vrot.slane %v14050_v55, 4  ;;  %v24055_v15 = vsel %vm20031_vm6, %v16087_v11, %v14050_v55  ;;  %v24119_v55 = vrot.slane %v13206_v5, 5 }
 0x6f5   : > { %17601 = vmatpush3.bf16.msra.mxu1 %v18727_v8  ;;  %v24059_v57 = vsel %vm20031_vm6, %v14052_v53, %v14053_v30  ;;  %v18737_v8 = vld [vmem:[#allocation2 + $0x78] sm:$0xff]  }
 0x6f6   : > { %17634 = vmatprep.subr.bf16.mxu1 %v18730_v37  ;;  %v16103_v39 = vcombine.low %v24055_v15, %v24059_v57 }
 0x6f8   : > { %17571 = vmatmul.mubr.msk.bf16.gmra.mrb[36].mxu1 %vm4546_vm0, %v25594_v32  ;;  %v13199_v32 = vrot.slane %v13197_v13, 4  ;;  %v13296_v13 = vshll.u32 %v13160_v17, 16 }
 0x6f9   : > { %17574 = vmatprep.mubr.msk.bf16.mxu1 %vm4546_vm0, %v25597_v12 }
 0x6fa   : > { %v13203_v11 = vor.u32 %v13202_v16, %v13199_v32  ;;  %v19019_v32 = vld [vmem:[#allocation2 + $0x38] sm:$0x1] }
 0x6fb   : > { %v13264_v16 = vshll.u32 %v19019_v32, 16 }
 0x6fc   : > { %v13204_v58 = vrot.slane %v13203_v11, 4 }
 0x6fe   : > { %v13209_v41 = vsel %vm19659_vm2, %v13204_v58, %v24119_v55 }
 0x700   : > { %17575 = vmatmul.mubr.msk.bf16.gmra.mrb[40].mxu1 %vm4546_vm0, %v25600_v31  ;;  %v18741_v31 = vld [vmem:[#allocation2 + $0x9c] sm:$0xff]  }
 0x701   : > { %17578 = vmatprep.mubr.msk.bf16.mxu1 %vm4546_vm0, %v25603_v46  ;;  %v19014_v46 = vld [vmem:[#allocation2 + $0x28] sm:$0xf] }
 0x702   : > { %v13230_v40 = vshll.u32 %v19014_v46, 16  ;;  %v13234_v51 = vshrl.u32 %v19014_v46, 16 }
 0x704   : > { %v24125_v36 = vrot.slane %v13230_v40, 5 }
 0x708   : > { %17579 = vmatmul.mubr.msk.bf16.gmra.mrb[44].mxu1 %vm4546_vm0, %v25606_v34  ;;  %v13213_v34 = vor.u32 %v13212_v10, %v24119_v55  ;;  %v24142_v55 = vld [vmem:[#allocation2 + $0xd4] sm:$0x1] }
 0x709   : > { %17582 = vmatprep.mubr.msk.bf16.mxu1 %vm4546_vm0, %v25609_v18  ;;  %v19015_v18 = vld [vmem:[#allocation2 + $0x2c] sm:$0x1] }
 0x70a   : > { %v13240_v43 = vshll.u32 %v19015_v18, 16  ;;  %v13214_v49 = vrot.slane %v13213_v34, 4 }
 0x70c   : > { %v24130_v29 = vrot.slane %v13240_v43, 5  ;;  %v13219_v5 = vsel %vm19659_vm2, %v13214_v49, %v13218_v54  ;;  %v19020_v49 = vld [vmem:[#allocation2 + $0x44] sm:$0x1] }
 0x710   : > { %17583 = vmatmul.mubr.msk.bf16.gmra.mrb[48].mxu1 %vm4546_vm0, %v25612_v60  ;;  %v13254_v60 = vshll.u32 %v19016_v1, 16 }
 0x711   : > { %17586 = vmatprep.mubr.msk.bf16.mxu1 %vm4546_vm0, %v25613_v50  ;;  %v13258_v50 = vshrl.u32 %v19016_v1, 16 }
 0x718   : > { %17587 = vmatmul.mubr.msk.bf16.gmra.mrb[52].mxu1 %vm4546_vm0, %v25615_v44 }
 0x719   : > { %17590 = vmatprep.mubr.msk.bf16.mxu1 %vm4546_vm0, %v25616_v56  ;;  %v13157_v56 = vld [vmem:[#allocation2 + $0x3c] sm:$0xf] }
 0x720   : > { %17591 = vmatmul.mubr.msk.bf16.gmra.mrb[56].mxu1 %vm4546_vm0, %v25619_v3  ;;  %v13236_v3 = vrot.slane %v13234_v51, 4  ;;  %v13298_v51 = vrot.slane %v13296_v13, 5 }
 0x721   : > { %17594 = vmatprep.mubr.msk.bf16.mxu1 %vm4546_vm0, %v25622_v25  ;;  %v13247_v25 = vrot.slane %v13245_v0, 4 }
 0x722   : > { %v13237_v52 = vor.u32 %v13236_v3, %v24125_v36  ;;  %v13266_v3 = vrot.slane %v13264_v16, 5  ;;  %v19025_v16 = vld [vmem:[%s19607_s11 + $0x8] sm:$0xff] }
 0x723   : > { %14562 = vrot.lane.b32.xlu1 %v19025_v16, %s19318_s13 }
 0x728   : > { %17595 = vmatmul.mubr.msk.bf16.gmra.mrb[60].mxu1 %vm4546_vm0, %v25625_v24  ;;  %v24132_v24 = vrot.slane %v13254_v60, 5 }
 0x729   : > { %17602 = vmatprep.mubr.msk.bf16.mxu1 %vm4546_vm0, %v18728_v2  ;;  %v13250_v2 = vrot.slane %v13248_v62, 5  ;;  %v18745_v62 = vld [vmem:[#allocation2 + $0xcc] sm:$0xff]  }
 0x72b   : > { %v13251_v42 = vor.u32 %v13250_v2, %v13247_v25  ;;  %v13288_v25 = vshll.u32 %v19020_v49, 16  ;;  %v13166_v2 = vld [vmem:[#allocation2 + $0x60] sm:$0xf]  ;;  %v19028_v49 = vld [vmem:[#allocation2 + $0x5c] sm:$0x1] }
 0x72c   : > { %v13344_v13 = vshll.u32 %v13166_v2, 16 }
 0x72d   : > { %v13252_v54 = vrot.slane %v13251_v42, 4 }
 0x730   : > { %17603 = vmatmul.mubr.msk.bf16.vlgmr.msra.gmra.mrb[32].mxu1 %vm4546_vm0, %v18729_v6  ;;  %v13260_v6 = vrot.slane %v13258_v50, 4  ;;  %v16039_v50 = vcombine.low %v13209_v41, %v13219_v5  ;;  %v19024_v5 = vld [vmem:[#allocation2 + $0x64] sm:$0xf] }
 0x731   : > { %17606 = vmatprep.mubr.msk.bf16.mxu1 %vm4546_vm0, %v18731_v45  ;;  %17635 = vmatpush3.bf16.msra.mxu1 %v18730_v37  ;;  %v13151_v37 = vld [vmem:[#allocation2 + $0x24] sm:$0xf]  ;;  %v18743_v45 = vld [vmem:[#allocation2 + $0xb4] sm:$0xff]   ;;  %v13350_v42 = vshll.u32 %v19024_v5, 16  ;;  %v13354_v32 = vshrl.u32 %v19024_v5, 16 }
 0x732   : > { %17636 = vmatprep.subr.bf16.mxu1 %v18739_v14  ;;  %v13221_v19 = vshrl.u32 %v13151_v37, 16  ;;  %v13224_v12 = vshll.u32 %v13151_v37, 16  ;;  %v13163_v37 = vld [vmem:[#allocation2 + $0x54] sm:$0xf]  ;;  %v13261_v10 = vor.u32 %v13260_v6, %v24132_v24  ;;  %v19033_v5 = vld [vmem:[%s19607_s11 + $0x28] sm:$0xff] }
 0x733   : > { %v13317_v43 = vshrl.u32 %v13163_v37, 16  ;;  %v13320_v1 = vshll.u32 %v13163_v37, 16  ;;  %v13257_v37 = vsel %vm19659_vm2, %v13252_v54, %v24132_v24 }
 0x734   : > { %v13223_v53 = vrot.slane %v13221_v19, 4  ;;  %v13226_v30 = vrot.slane %v13224_v12, 5  ;;  %v13306_v19 = vshrl.u32 %v19018_v33, 16  ;;  %v24140_v12 = vld [vmem:[#allocation2 + $0xd0] sm:$0xf]  ;;  %v13262_v6 = vrot.slane %v13261_v10, 4 }
 0x735   : > { %17637 = vmatpush3.bf16.msra.mxu1 %v18739_v14  ;;  %v13269_v14 = vshrl.u32 %v13157_v56, 16  ;;  %v14057_v11 = vrot.slane %v24140_v12, 5 }
 0x736   : > { %17670 = vmatprep.subr.bf16.mxu1 %v24102_v21  ;;  %v13227_v44 = vor.u32 %v13226_v30, %v13223_v53  ;;  %v14060_v53 = vrot.slane %v24142_v55, 5  ;;  %v13308_v18 = vrot.slane %v13306_v19, 4  ;;  %v13267_v19 = vsel %vm19659_vm2, %v13262_v6, %v13266_v3 }
 0x737   : > { %v13271_v63 = vrot.slane %v13269_v14, 4  ;;  %v14059_v0 = vrot.slane %v14057_v11, 4 }
 0x738   : > { %17607 = vmatmul.mubr.msk.bf16.gmra.mrb[36].mxu1 %vm4546_vm0, %v18732_v59  ;;  %v24134_v59 = vrot.slane %v13227_v44, 4  ;;  %v13238_v44 = vrot.slane %v13237_v52, 4 }
 0x739   : > { %17610 = vmatprep.mubr.msk.bf16.mxu1 %vm4546_vm0, %v18733_v22  ;;  %v13272_v22 = vshll.u32 %v13157_v56, 16  ;;  %v24162_v56 = vsel %vm20031_vm6, %v14059_v0, %v14060_v53 }
 0x73a   : > { %v13233_v58 = vsel %vm19659_vm2, %v24134_v59, %v24125_v36  ;;  %v19021_v59 = vld [vmem:[#allocation2 + $0x50] sm:$0x1] }
 0x73b   : > { %v13274_v30 = vrot.slane %v13272_v22, 5  ;;  %v13312_v22 = vshll.u32 %v19021_v59, 16  ;;  %v19030_v59 = vld [vmem:[#allocation2 + $0x68] sm:$0x1] }
 0x73d   : > { %v13275_v41 = vor.u32 %v13274_v30, %v13271_v63  ;;  %v13314_v53 = vrot.slane %v13312_v22, 5  ;;  %v13360_v22 = vshll.u32 %v19030_v59, 16  ;;  %v19039_v59 = vld [vmem:[%s19607_s11 + $0x40] sm:$0xff] }
 0x73f   : > { %v13276_v10 = vrot.slane %v13275_v41, 4 }
 0x740   : > { %17611 = vmatmul.mubr.msk.bf16.gmra.mrb[40].mxu1 %vm4546_vm0, %v18734_v9  ;;  %v19017_v9 = vld [vmem:[#allocation2 + $0x40] sm:$0xf] }
 0x741   : > { %17614 = vmatprep.mubr.msk.bf16.mxu1 %vm4546_vm0, %v18735_v20  ;;  %v13278_v20 = vshll.u32 %v19017_v9, 16 }
 0x748   : > { %17615 = vmatmul.mubr.msk.bf16.gmra.mrb[44].mxu1 %vm4546_vm0, %v18736_v38  ;;  %v13282_v38 = vshrl.u32 %v19017_v9, 16  ;;  %v13319_v9 = vrot.slane %v13317_v43, 4  ;;  %v13356_v43 = vrot.slane %v13354_v32, 4 }
 0x749   : > { %17618 = vmatprep.mubr.msk.bf16.mxu1 %vm4546_vm0, %v18737_v8  ;;  %v18744_v8 = vld [vmem:[#allocation2 + $0xc0] sm:$0xff]  }
 0x74a   : > { %v13284_v47 = vrot.slane %v13282_v38, 4  ;;  %v19022_v38 = vld [vmem:[#allocation2 + $0x58] sm:$0xf] }
 0x74b   : > { %v13330_v52 = vshrl.u32 %v19022_v38, 16 }
 0x74d   : > { %v13332_v24 = vrot.slane %v13330_v52, 4 }
 0x750   : > { %17619 = vmatmul.mubr.msk.bf16.gmra.mrb[48].mxu1 %vm4546_vm0, %v18738_v48  ;;  %v13293_v48 = vshrl.u32 %v13160_v17, 16 }
 0x751   : > { %17622 = vmatprep.mubr.msk.bf16.mxu1 %vm4546_vm0, %v18740_v23  ;;  %v13302_v23 = vshll.u32 %v19018_v33, 16  ;;  %v19023_v33 = vld [vmem:[%s19607_s11] sm:$0xff] }
 0x752   : > { %v13295_v40 = vrot.slane %v13293_v48, 4  ;;  %v13341_v48 = vshrl.u32 %v13166_v2, 16  ;;  %14560 = vrot.lane.b32.xlu0 %v19023_v33, %s19318_s13  ;;  %v13172_v2 = vld [vmem:[#allocation2 + $0x78] sm:$0xf] }
 0x753   : > { %v24150_v34 = vrot.slane %v13302_v23, 5  ;;  %v13243_v23 = vsel %vm19659_vm2, %v13238_v44, %v24130_v29  ;;  %v19027_v44 = vld [vmem:[%s19607_s11 + $0x18] sm:$0xff]  ;;  %v13392_v52 = vshll.u32 %v13172_v2, 16 }
 0x754   : > { %v16040_v0 = vcombine.low %v13233_v58, %v13243_v23  ;;  %14566 = vrot.lane.b32.xlu1 %v19027_v44, %s19318_s13  ;;  %v19032_v23 = vld [vmem:[#allocation2 + $0x7c] sm:$0xf]  ;;  %v19036_v44 = vld [vmem:[#allocation2 + $0x74] sm:$0x1] }
 0x755   : > { %v13309_v36 = vor.u32 %v13308_v18, %v24150_v34  ;;  %v24186_v18 = vrot.slane %v13350_v42, 5 }
 0x757   : > { %v13310_v29 = vrot.slane %v13309_v36, 4 }
 0x758   : > { %17623 = vmatmul.mubr.msk.bf16.gmra.mrb[52].mxu1 %vm4546_vm0, %v18741_v31  ;;  %v13901_v31 = vld [vmem:[#allocation2 + $0xcc] sm:$0xe]  ;;  %14570 = vrot.lane.b32.xlu1 %v19033_v5, %s19318_s13 }
 0x759   : > { %17626 = vmatprep.mubr.msk.bf16.mxu1 %vm4546_vm0, %v18742_v7  ;;  %v24148_v7 = vrot.slane %v13278_v20, 5  ;;  %v16088_v46 = vrot.slane %v13901_v31, 9  ;;  %v13322_v20 = vrot.slane %v13320_v1, 5  ;;  %v13169_v1 = vld [vmem:[#allocation2 + $0x6c] sm:$0xf]  ;;  %v13315_v6 = vsel %vm19659_vm2, %v13310_v29, %v13314_v53 }
 0x75b   : > { %v24154_v60 = vsel %vm20031_vm6, %v16088_v46, %v14057_v11  ;;  %v13285_v14 = vor.u32 %v13284_v47, %v24148_v7  ;;  %v13290_v11 = vrot.slane %v13288_v25, 5  ;;  %v13323_v30 = vor.u32 %v13322_v20, %v13319_v9 }
 0x75c   : > { %v16104_v17 = vcombine.low %v24154_v60, %v24162_v56  ;;  %v13343_v46 = vrot.slane %v13341_v48, 4  ;;  %v13281_v54 = vsel %vm19659_vm2, %v13276_v10, %v24148_v7  ;;  %v13336_v25 = vshll.u32 %v19028_v49, 16  ;;  %v19031_v48 = vld [vmem:[%s19607_s11 + $0x20] sm:$0xff]  ;;  %v13175_v10 = vld [vmem:[#allocation2 + $0x84] sm:$0xf] }
 0x75d   : > { %v13286_v63 = vrot.slane %v13285_v14, 4  ;;  %v24201_v41 = vrot.slane %v13323_v30, 4  ;;  %v19029_v14 = vld [vmem:[#allocation2 + $0x70] sm:$0xf]  ;;  %v13365_v9 = vshrl.u32 %v13169_v1, 16  ;;  %v13357_v20 = vor.u32 %v13356_v43, %v24186_v18 }
 0x75e   : > { %v13374_v7 = vshll.u32 %v19029_v14, 16  ;;  %v13338_v32 = vrot.slane %v13336_v25, 5  ;;  %v13416_v43 = vshll.u32 %v13175_v10, 16 }
 0x75f   : > { %v13291_v3 = vsel %vm19659_vm2, %v13286_v63, %v13290_v11  ;;  %v13362_v11 = vrot.slane %v13360_v22, 5  ;;  %v24217_v29 = vrot.slane %v13365_v9, 4  ;;  %v13358_v53 = vrot.slane %v13357_v20, 4  ;;  %v19040_v9 = vld [vmem:[#allocation2 + $0x80] sm:$0x1] }
 0x760   : > { %17627 = vmatmul.mubr.msk.bf16.gmra.mrb[56].mxu1 %vm4546_vm0, %v18743_v45  ;;  %v13299_v45 = vor.u32 %v13298_v51, %v13295_v40  ;;  %v13346_v40 = vrot.slane %v13344_v13, 5  ;;  %v19026_v51 = vld [vmem:[%s19607_s11 + $0x10] sm:$0xff]  ;;  %v16042_v13 = vcombine.low %v13281_v54, %v13291_v3  ;;  %v24215_v16 = vrot.slane %v13374_v7, 5 }
 0x761   : > { %17630 = vmatprep.mubr.msk.bf16.mxu1 %vm4546_vm0, %v18744_v8  ;;  %v13326_v8 = vshll.u32 %v19022_v38, 16  ;;  %14564 = vrot.lane.b32.xlu0 %v19026_v51, %s19318_s13  ;;  %v13368_v38 = vshll.u32 %v13169_v1, 16  ;;  %v19034_v51 = vld [vmem:[%s19607_s11 + $0x30] sm:$0xff]  ;;  %v19035_v1 = vld [vmem:[%s19607_s11 + $0x38] sm:$0xff]  ;;  %v13384_v54 = vshll.u32 %v19036_v44, 16  ;;  %v13408_v20 = vshll.u32 %v19040_v9, 16 }
 0x762   : > { %v13300_v31 = vrot.slane %v13299_v45, 4  ;;  %v13378_v45 = vshrl.u32 %v19029_v14, 16  ;;  %v13347_v36 = vor.u32 %v13346_v40, %v13343_v46  ;;  %v13394_v46 = vrot.slane %v13392_v52, 5  ;;  %v13178_v40 = vld [vmem:[#allocation2 + $0x90] sm:$0xf]  ;;  %14574 = vrot.lane.b32.xlu1 %v19035_v1, %s19318_s13  ;;  %v19041_v52 = vld [vmem:[%s19607_s11 + $0x48] sm:$0xff] }
 0x763   : > { %v24182_v47 = vrot.slane %v13326_v8, 5  ;;  %v13389_v8 = vshrl.u32 %v13172_v2, 16  ;;  %v13370_v30 = vrot.slane %v13368_v38, 5  ;;  %v19037_v3 = vld [vmem:[#allocation2 + $0x88] sm:$0xf]  ;;  %v13363_v2 = vsel %vm19659_vm2, %v13358_v53, %v13362_v11 }
 0x764   : > { %v13305_v58 = vsel %vm19659_vm2, %v13300_v31, %v24150_v34  ;;  %v13348_v31 = vrot.slane %v13347_v36, 4  ;;  %v13426_v49 = vshrl.u32 %v19037_v3, 16  ;;  %v24246_v53 = vld [vmem:[%s19607_s11 + $0x50] sm:$0xff] }
 0x765   : > { %v13333_v34 = vor.u32 %v13332_v24, %v24182_v47  ;;  %14568 = vrot.lane.b32.xlu0 %v19031_v48, %s19318_s13  ;;  %v16043_v33 = vcombine.low %v13305_v58, %v13315_v6  ;;  %v13329_v42 = vsel %vm19659_vm2, %v24201_v41, %v24182_v47  ;;  %v13391_v24 = vrot.slane %v13389_v8, 4 }
 0x766   : > { %v13422_v58 = vshll.u32 %v19037_v3, 16  ;;  %v13437_v6 = vshrl.u32 %v13178_v40, 16  ;;  %v13440_v41 = vshll.u32 %v13178_v40, 16  ;;  %v13371_v14 = vor.u32 %v13370_v30, %v24217_v29  ;;  %14578 = vrot.lane.b32.xlu1 %v19041_v52, %s19318_s13  ;;  %v13181_v29 = vld [vmem:[#allocation2 + $0x9c] sm:$0xf] }
 0x767   : > { %v13334_v63 = vrot.slane %v13333_v34, 4  ;;  %v13395_v7 = vor.u32 %v13394_v46, %v13391_v24  ;;  %v13418_v8 = vrot.slane %v13416_v43, 5  ;;  %v19043_v46 = vld [vmem:[#allocation2 + $0x8c] sm:$0x1]  ;;  %v13464_v44 = vshll.u32 %v13181_v29, 16 }
 0x768   : > { %17631 = vmatmul.mubr.msk.bf16.gmra.mrb[60].mxu1 %vm4546_vm0, %v18745_v62  ;;  %v16041_v62 = vcombine.low %v13257_v37, %v13267_v19  ;;  %v13402_v37 = vshrl.u32 %v19032_v23, 16  ;;  %v13380_v19 = vrot.slane %v13378_v45, 4  ;;  %v19038_v45 = vld [vmem:[#allocation2 + $0x94] sm:$0xf]  ;;  %v13439_v5 = vrot.slane %v13437_v6, 4  ;;  %v24268_v6 = vld [vmem:[%s19607_s11 + $0x60] sm:$0xff] }
 0x769   : > { %17638 = vmatprep.mubr.msk.bf16.mxu1 %vm4546_vm0, %v16039_v50  ;;  %v18747_v50 = vld [vmem:[#allocation11 + $0x88] sm:$0xff]   ;;  %14572 = vrot.lane.b32.xlu0 %v19034_v51, %s19318_s13  ;;  %v13339_v25 = vsel %vm19659_vm2, %v13334_v63, %v13338_v32  ;;  %v13446_v34 = vshll.u32 %v19038_v45, 16  ;;  %v13450_v36 = vshrl.u32 %v19038_v45, 16  ;;  %v13442_v32 = vrot.slane %v13440_v41, 5  ;;  %v24251_v51 = vld [vmem:[%s19607_s11 + $0x58] sm:$0xff] }
 0x76a   : > { %v13432_v40 = vshll.u32 %v19043_v46, 16  ;;  %14582 = vrot.lane.b32.xlu1 %v24251_v51, %s19318_s13  ;;  %v19052_v46 = vld [vmem:[#allocation2 + $0xa4] sm:$0x1] }
 0x76b   : > { %v24243_v63 = vrot.slane %v13446_v34, 5  ;;  %v13452_v11 = vrot.slane %v13450_v36, 4  ;;  %v13443_v1 = vor.u32 %v13442_v32, %v13439_v5  ;;  %v13184_v34 = vld [vmem:[#allocation2 + $0xa8] sm:$0xf]  ;;  %v24287_v32 = vld [vmem:[%s19607_s11 + $0x78] sm:$0xff] }
 0x76c   : > { %v13434_v45 = vrot.slane %v13432_v40, 5  ;;  %v13480_v40 = vshll.u32 %v19052_v46, 16 }
 0x76d   : > { %14576 = vrot.lane.b32.xlu0 %v19039_v59, %s19318_s13  ;;  %v19049_v59 = vld [vmem:[#allocation2 + $0xac] sm:$0xf] }
 0x76e   : > { %v13498_v9 = vshrl.u32 %v19049_v59, 16 }
 0x770   : > { %17639 = vmatmul.mubr.msk.bf16.vlgmr.msra.gmra.mrb[32].mxu1 %vm4546_vm0, %v16040_v0  ;;  %v13404_v0 = vrot.slane %v13402_v37, 4  ;;  %v13353_v37 = vsel %vm19659_vm2, %v13348_v31, %v24186_v18  ;;  %v13372_v18 = vrot.slane %v13371_v14, 4 }
 0x771   : > { %17642 = vmatprep.mubr.msk.bf16.mxu1 %vm4546_vm0, %v16041_v62  ;;  %17671 = vmatpush3.bf16.msra.mxu1 %v24102_v21  ;;  %v13398_v21 = vshll.u32 %v19032_v23, 16  ;;  %v13413_v62 = vshrl.u32 %v13175_v10, 16  ;;  %v13428_v23 = vrot.slane %v13426_v49, 4  ;;  %v13396_v10 = vrot.slane %v13395_v7, 4 }
 0x772   : > { %17672 = vmatprep.subr.bf16.mxu1 %v18747_v50  ;;  %14580 = vrot.lane.b32.xlu0 %v24246_v53, %s19318_s13 }
 0x773   : > { %v24221_v47 = vrot.slane %v13398_v21, 5  ;;  %v13415_v38 = vrot.slane %v13413_v62, 4  ;;  %v16044_v21 = vcombine.low %v13329_v42, %v13339_v25  ;;  %v13410_v42 = vrot.slane %v13408_v20, 5  ;;  %v19045_v62 = vld [vmem:[#allocation2 + $0x98] sm:$0x1] }
 0x774   : > { %v13456_v43 = vshll.u32 %v19045_v62, 16  ;;  %v13453_v25 = vor.u32 %v13452_v11, %v24243_v63  ;;  %v13444_v20 = vrot.slane %v13443_v1, 4  ;;  %v13500_v11 = vrot.slane %v13498_v9, 4  ;;  %v24307_v62 = vld [vmem:[%s19607_s11 + $0x80] sm:$0xff]  ;;  %v13193_v9 = vld [vmem:[#allocation2 + $0xcc] sm:$0xf] }
 0x775   : > { %17673 = vmatpush3.bf16.msra.mxu1 %v18747_v50  ;;  %v13381_v50 = vor.u32 %v13380_v19, %v24215_v16  ;;  %v13405_v22 = vor.u32 %v13404_v0, %v24221_v47  ;;  %v16045_v19 = vcombine.low %v13353_v37, %v13363_v2  ;;  %v13419_v24 = vor.u32 %v13418_v8, %v13415_v38  ;;  %v24282_v37 = vld [vmem:[%s19607_s11 + $0x70] sm:$0xff] }
 0x776   : > { %v13401_v49 = vsel %vm19659_vm2, %v13396_v10, %v24221_v47  ;;  %14584 = vrot.lane.b32.xlu0 %v24268_v6, %s19318_s13  ;;  %v13458_v36 = vrot.slane %v13456_v43, 5  ;;  %v13466_v8 = vrot.slane %v13464_v44, 5  ;;  %v19054_v43 = vld [vmem:[#allocation2 + $0xb0] sm:$0x1] }
 0x777   : > { %v13382_v48 = vrot.slane %v13381_v50, 4  ;;  %v13406_v30 = vrot.slane %v13405_v22, 4  ;;  %v13461_v50 = vshrl.u32 %v13181_v29, 16  ;;  %v13420_v7 = vrot.slane %v13419_v24, 4  ;;  %v13187_v29 = vld [vmem:[#allocation2 + $0xb4] sm:$0xf] }
 0x778   : > { %17643 = vmatmul.mubr.msk.bf16.gmra.mrb[36].mxu1 %vm4546_vm0, %v16042_v13  ;;  %v13386_v13 = vrot.slane %v13384_v54, 5  ;;  %v19046_v54 = vld [vmem:[#allocation2 + $0xa0] sm:$0xf]  ;;  %v13494_v22 = vshll.u32 %v19049_v59, 16  ;;  %v13504_v1 = vshll.u32 %v19054_v43, 16 }
 0x779   : > { %17646 = vmatprep.mubr.msk.bf16.mxu1 %vm4546_vm0, %v16043_v33  ;;  %v24238_v33 = vrot.slane %v13422_v58, 5  ;;  %v13470_v3 = vshll.u32 %v19046_v54, 16  ;;  %v13377_v58 = vsel %vm19659_vm2, %v13372_v18, %v24215_v16  ;;  %v13474_v2 = vshrl.u32 %v19046_v54, 16  ;;  %v24275_v16 = vld [vmem:[%s19607_s11 + $0x68] sm:$0xff] }
 0x77a   : > { %v13387_v31 = vsel %vm19659_vm2, %v13382_v48, %v13386_v13  ;;  %v13411_v14 = vsel %vm19659_vm2, %v13406_v30, %v13410_v42  ;;  %14586 = vrot.lane.b32.xlu1 %v24275_v16, %s19318_s13  ;;  %v13463_v38 = vrot.slane %v13461_v50, 4  ;;  %v13454_v48 = vrot.slane %v13453_v25, 4  ;;  %14588 = vrot.lane.b32.xlu0 %v24282_v37, %s19318_s13 }
 0x77b   : > { %v13429_v0 = vor.u32 %v13428_v23, %v24238_v33  ;;  %v16046_v41 = vcombine.low %v13377_v58, %v13387_v31  ;;  %v24279_v52 = vrot.slane %v13470_v3, 5  ;;  %v13476_v13 = vrot.slane %v13474_v2, 4  ;;  %v13190_v3 = vld [vmem:[#allocation2 + $0xc0] sm:$0xf] }
 0x77c   : > { %v13485_v23 = vshrl.u32 %v13184_v34, 16  ;;  %v16047_v5 = vcombine.low %v13401_v49, %v13411_v14  ;;  %v24295_v10 = vrot.slane %v13494_v22, 5  ;;  %v13449_v42 = vsel %vm19659_vm2, %v13444_v20, %v24243_v63  ;;  %v19055_v63 = vld [vmem:[#allocation2 + $0xb8] sm:$0xf]  ;;  %v24312_v58 = vld [vmem:[%s19607_s11 + $0x88] sm:$0xff]  ;;  %v24320_v20 = vld [vmem:[%s19607_s11 + $0x90] sm:$0xff] }
 0x77d   : > { %v13430_v47 = vrot.slane %v13429_v0, 4  ;;  %v13467_v24 = vor.u32 %v13466_v8, %v13463_v38  ;;  %v13477_v18 = vor.u32 %v13476_v13, %v24279_v52  ;;  %v13509_v50 = vshrl.u32 %v13187_v29, 16  ;;  %v24327_v13 = vld [vmem:[%s19607_s11 + $0x98] sm:$0xff] }
 0x77e   : > { %14590 = vrot.lane.b32.xlu1 %v24287_v32, %s19318_s13  ;;  %v13487_v31 = vrot.slane %v13485_v23, 4  ;;  %14592 = vrot.lane.b32.xlu0 %v24307_v62, %s19318_s13  ;;  %v13518_v44 = vshll.u32 %v19055_v63, 16  ;;  %v13522_v54 = vshrl.u32 %v19055_v63, 16  ;;  %v13501_v49 = vor.u32 %v13500_v11, %v24295_v10 }
 0x77f   : > { %v13435_v30 = vsel %vm19659_vm2, %v13430_v47, %v13434_v45  ;;  %v13512_v25 = vshll.u32 %v13187_v29, 16  ;;  %v13542_v2 = vshll.u32 %v24039_v4, 16  ;;  %v13468_v45 = vrot.slane %v13467_v24, 4 }
 0x780   : > { %17647 = vmatmul.mubr.msk.bf16.gmra.mrb[40].mxu1 %vm4546_vm0, %v16044_v21  ;;  %v13488_v21 = vshll.u32 %v13184_v34, 16  ;;  %v13482_v34 = vrot.slane %v13480_v40, 5  ;;  %v13478_v47 = vrot.slane %v13477_v18, 4  ;;  %v13533_v59 = vshrl.u32 %v13190_v3, 16 }
 0x781   : > { %17650 = vmatprep.mubr.msk.bf16.mxu1 %vm4546_vm0, %v16045_v19  ;;  %v13425_v19 = vsel %vm19659_vm2, %v13420_v7, %v24238_v33  ;;  %v13459_v33 = vsel %vm19659_vm2, %v13454_v48, %v13458_v36  ;;  %v13536_v22 = vshll.u32 %v13190_v3, 16  ;;  %v13506_v38 = vrot.slane %v13504_v1, 5  ;;  %v24344_v1 = vld [vmem:[%s19607_s11 + $0xa8] sm:$0xff] }
 0x782   : > { %v13490_v0 = vrot.slane %v13488_v21, 5  ;;  %14594 = vrot.lane.b32.xlu1 %v24312_v58, %s19318_s13  ;;  %v16048_v14 = vcombine.low %v13425_v19, %v13435_v30  ;;  %v16049_v7 = vcombine.low %v13449_v42, %v13459_v33  ;;  %14596 = vrot.lane.b32.xlu0 %v24320_v20, %s19318_s13  ;;  %v13511_v8 = vrot.slane %v13509_v50, 4  ;;  %v24336_v33 = vld [vmem:[%s19607_s11 + $0xa0] sm:$0xff] }
 0x783   : > { %v24324_v48 = vrot.slane %v13518_v44, 5  ;;  %v13502_v23 = vrot.slane %v13501_v49, 4  ;;  %v13514_v21 = vrot.slane %v13512_v25, 5  ;;  %v13557_v11 = vshrl.u32 %v13193_v9, 16 }
 0x784   : > { %v13491_v36 = vor.u32 %v13490_v0, %v13487_v31  ;;  %v13560_v29 = vshll.u32 %v13193_v9, 16  ;;  %v13566_v30 = vshll.u32 %v24140_v12, 16  ;;  %v13570_v42 = vshrl.u32 %v24140_v12, 16  ;;  %v19060_v0 = vld [vmem:[#allocation2 + $0xbc] sm:$0x1] }
 0x785   : > { %v13535_v46 = vrot.slane %v13533_v59, 4  ;;  %v13538_v40 = vrot.slane %v13536_v22, 5  ;;  %v13483_v18 = vsel %vm19659_vm2, %v13478_v47, %v13482_v34  ;;  %v13528_v43 = vshll.u32 %v19060_v0, 16  ;;  %v24358_v34 = vld [vmem:[%s19607_s11 + $0xb0] sm:$0xff] }
 0x786   : > { %14598 = vrot.lane.b32.xlu1 %v24327_v13, %s19318_s13  ;;  %v13492_v24 = vrot.slane %v13491_v36, 4  ;;  %14600 = vrot.lane.b32.xlu0 %v24336_v33, %s19318_s13  ;;  %v13473_v12 = vsel %vm19659_vm2, %v13468_v45, %v24279_v52  ;;  %v13507_v50 = vsel %vm19659_vm2, %v13502_v23, %v13506_v38  ;;  %v13515_v63 = vor.u32 %v13514_v21, %v13511_v8  ;;  %v24363_v36 = vld [vmem:[%s19607_s11 + $0xb8] sm:$0xff]  ;;  %v24378_v21 = vld [vmem:[%s19607_s11 + $0xc8] sm:$0xff] }
 0x787   : > { %v13562_v3 = vrot.slane %v13560_v29, 5  ;;  %v13568_v49 = vrot.slane %v13566_v30, 5  ;;  %v13572_v25 = vrot.slane %v13570_v42, 4  ;;  %v13530_v47 = vrot.slane %v13528_v43, 5 }
 0x788   : > { %17651 = vmatmul.mubr.msk.bf16.gmra.mrb[44].mxu1 %vm4546_vm0, %v16046_v41  ;;  %v13546_v41 = vshrl.u32 %v24039_v4, 16  ;;  %v13524_v4 = vrot.slane %v13522_v54, 4  ;;  %v13559_v54 = vrot.slane %v13557_v11, 4  ;;  %v13576_v9 = vshll.u32 %v24142_v55, 16 }
 0x789   : > { %17654 = vmatprep.mubr.msk.bf16.mxu1 %vm4546_vm0, %v16047_v5  ;;  %v13544_v5 = vrot.slane %v13542_v2, 5  ;;  %v16050_v2 = vcombine.low %v13473_v12, %v13483_v18  ;;  %v13573_v22 = vor.u32 %v13572_v25, %v13568_v49  ;;  %v13952_v55 = vrot.slane %v24111_v27, 5  ;;  %v25632_v25 = vld [vmem:[#allocation54_spill] sm:$0xff] }
 0x78a   : > { %v13548_v19 = vrot.slane %v13546_v41, 4  ;;  %v13525_v31 = vor.u32 %v13524_v4, %v24324_v48  ;;  %14602 = vrot.lane.b32.xlu1 %v24344_v1, %s19318_s13  ;;  %v13497_v41 = vsel %vm19659_vm2, %v13492_v24, %v24295_v10  ;;  %14604 = vrot.lane.b32.xlu0 %v24358_v34, %s19318_s13  ;;  %v13563_v59 = vor.u32 %v13562_v3, %v13559_v54  ;;  %v24371_v4 = vld [vmem:[%s19607_s11 + $0xc0] sm:$0xff]  ;;  %v25627_v54 = vld [vmem:[#allocation87_spill] sm:$0xff] }
 0x78b   : > { %v16051_v52 = vcombine.low %v13497_v41, %v13507_v50  ;;  %v13574_v30 = vrot.slane %v13573_v22, 4  ;;  %v13578_v42 = vrot.slane %v13576_v9, 5  ;;  %v13954_v18 = vrot.slane %v13952_v55, 4  ;;  %v25629_v3 = vld [vmem:[#allocation56_spill] sm:$0xff]  ;;  %v25644_v22 = vld [vmem:[#allocation127_spill] sm:$0xff]  ;;  %v25645_v9 = vld [vmem:[#allocation129_spill] sm:$0xff] }
 0x78c   : > { %v13549_v44 = vor.u32 %v13548_v19, %v13544_v5  ;;  %v13526_v45 = vrot.slane %v13525_v31, 4  ;;  %v13564_v29 = vrot.slane %v13563_v59, 4  ;;  %v13955_v0 = vrot.slane %v24117_v26, 5  ;;  %v25630_v26 = vld [vmem:[#allocation120_spill] sm:$0xff] }
 0x78d   : > { %v13579_v31 = vsel %vm19659_vm2, %v13574_v30, %v13578_v42  ;;  %v25653_v30 = vld [vmem:[#allocation134_spill] sm:$0xff]  ;;  %v25654_v42 = vld [vmem:[#allocation135_spill] sm:$0xff] }
 0x78e   : > { %14606 = vrot.lane.b32.xlu1 %v24363_v36, %s19318_s13  ;;  %v13550_v10 = vrot.slane %v13549_v44, 4  ;;  %14608 = vrot.lane.b32.xlu0 %v24371_v4, %s19318_s13  ;;  %v13531_v23 = vsel %vm19659_vm2, %v13526_v45, %v13530_v47  ;;  %v13569_v27 = vsel %vm19659_vm2, %v13564_v29, %v13568_v49  ;;  %v25626_v44 = vld [vmem:[#allocation47_spill] sm:$0xff]  ;;  %v25631_v49 = vcombine.low %v25629_v3, %v25630_v26  ;;  %v25639_v45 = vld [vmem:[#allocation125_spill] sm:$0xff] }
 0x78f   : > { %v16054_v43 = vcombine.low %v13569_v27, %v13579_v31  ;;  %v25628_v28 = vcombine.low %v25626_v44, %v25627_v54  ;;  %v25659_v27 = vld [vmem:[#allocation138_spill] sm:$0xff]  ;;  %v25660_v31 = vld [vmem:[#allocation139_spill] sm:$0xff] }
 0x790   : > { %17655 = vmatmul.mubr.msk.bf16.gmra.mrb[48].mxu1 %vm4546_vm0, %v16048_v14  ;;  %v13539_v14 = vor.u32 %v13538_v40, %v13535_v46 }
 0x791   : > { %17658 = vmatprep.mubr.msk.bf16.mxu1 %vm4546_vm0, %v16049_v7  ;;  %v13552_v7 = vshll.u32 %v24041_v35, 16  ;;  %v13516_v35 = vrot.slane %v13515_v63, 4 }
 0x792   : > { %v13540_v38 = vrot.slane %v13539_v14, 4  ;;  %14610 = vrot.lane.b32.xlu1 %v24378_v21, %s19318_s13  ;;  %v25636_v14 = vld [vmem:[#allocation124_spill] sm:$0xff] }
 0x793   : > { %v13554_v8 = vrot.slane %v13552_v7, 5  ;;  %v13521_v11 = vsel %vm19659_vm2, %v13516_v35, %v24324_v48  ;;  %v13886_v48 = vld [vmem:[#allocation2 + $0x18] sm:$0xe]  ;;  %v25637_v7 = vcombine.low %v25635_v61, %v25636_v14 }
 0x794   : > { %v16052_v24 = vcombine.low %v13521_v11, %v13531_v23  ;;  %v13545_v46 = vsel %vm19659_vm2, %v13540_v38, %v13544_v5  ;;  %v16073_v12 = vrot.slane %v13886_v48, 9  ;;  %v13956_v5 = vsel %vm20031_vm6, %v13954_v18, %v13955_v0  ;;  %v25642_v35 = vld [vmem:[#allocation128_spill] sm:$0xff]  ;;  %v25648_v23 = vld [vmem:[#allocation131_spill] sm:$0xff]  ;;  %v25651_v11 = vld [vmem:[#allocation133_spill] sm:$0xff] }
 0x795   : > { %v13555_v19 = vsel %vm19659_vm2, %v13550_v10, %v13554_v8  ;;  %v25641_v10 = vld [vmem:[#allocation126_spill] sm:$0xff]  ;;  %v25646_v38 = vcombine.low %v25644_v22, %v25645_v9  ;;  %v25661_v48 = vcombine.low %v25659_v27, %v25660_v31  ;;  %v25662_v0 = vld [vmem:[#allocation140_spill] sm:$0xff]  ;;  %v24521_v31 = vld [vmem:[%s19607_s11 + $0xd8] sm:$0xff] }
 0x796   : > { %v16053_v40 = vcombine.low %v13545_v46, %v13555_v19  ;;  %v13953_v50 = vsel %vm20031_vm6, %v16073_v12, %v13952_v55  ;;  %v25643_v59 = vcombine.low %v25641_v10, %v25642_v35  ;;  %v25647_v8 = vld [vmem:[#allocation130_spill] sm:$0xff]  ;;  %v25650_v55 = vld [vmem:[#allocation132_spill] sm:$0xff] }
 0x797   : > { %v16089_v63 = vcombine.low %v13953_v50, %v13956_v5  ;;  %v25649_v19 = vcombine.low %v25647_v8, %v25648_v23  ;;  %v25652_v29 = vcombine.low %v25650_v55, %v25651_v11  ;;  %v25656_v46 = vld [vmem:[#allocation136_spill] sm:$0xff]  ;;  %v24516_v27 = vld [vmem:[%s19607_s11 + $0xd0] sm:$0xff] }
 0x798   : > { %17659 = vmatmul.mubr.msk.bf16.gmra.mrb[52].mxu1 %vm4546_vm0, %v16050_v2  ;;  %v25633_v2 = vld [vmem:[#allocation121_spill] sm:$0xff] }
 0x799   : > { %17662 = vmatprep.mubr.msk.bf16.mxu1 %vm4546_vm0, %v16051_v52  ;;  %v25634_v41 = vcombine.low %v25632_v25, %v25633_v2  ;;  %v25638_v52 = vld [vmem:[#allocation123_spill] sm:$0xff] }
 0x79a   : > { %v25640_v47 = vcombine.low %v25638_v52, %v25639_v45  ;;  %v24485_v52 = vpop.permute.xlu1 %14562 }
 0x7a0   : > { %17663 = vmatmul.mubr.msk.bf16.gmra.mrb[56].mxu1 %vm4546_vm0, %v16052_v24  ;;  %v25655_v24 = vcombine.low %v25653_v30, %v25654_v42 }
 0x7a1   : > { %17666 = vmatprep.mubr.msk.bf16.mxu1 %vm4546_vm0, %v16053_v40  ;;  %v25657_v40 = vld [vmem:[#allocation137_spill] sm:$0xff] }
 0x7a2   : > { %v25658_v18 = vcombine.low %v25656_v46, %v25657_v40 }
 0x7a8   : > { %17667 = vmatmul.mubr.msk.bf16.gmra.mrb[60].mxu1 %vm4546_vm0, %v16054_v43  ;;  %v25663_v43 = vld [vmem:[#allocation141_spill] sm:$0xff] }
 0x7a9   : > { %17674 = vmatprep.mubr.msk.bf16.mxu1 %vm4546_vm0, %v16089_v63  ;;  %v25664_v12 = vcombine.low %v25662_v0, %v25663_v43  ;;  %v24528_v0 = vld [vmem:[%s19607_s11 + $0xe0] sm:$0xff] }
 0x7b0   : > { %17675 = vmatmul.mubr.msk.bf16.vlgmr.msra.gmra.mrb[32].mxu1 %vm4546_vm0, %v25628_v28 }
 0x7b1   : > { %17678 = vmatprep.mubr.msk.bf16.mxu1 %vm4546_vm0, %v25631_v49 }
 0x7b8   : > { %17679 = vmatmul.mubr.msk.bf16.gmra.mrb[36].mxu1 %vm4546_vm0, %v25634_v41 }
 0x7b9   : > { %17682 = vmatprep.mubr.msk.bf16.mxu1 %vm4546_vm0, %v25637_v7 }
 0x7c0   : > { %17683 = vmatmul.mubr.msk.bf16.gmra.mrb[40].mxu1 %vm4546_vm0, %v25640_v47 }
 0x7c1   : > { %17686 = vmatprep.mubr.msk.bf16.mxu1 %vm4546_vm0, %v25643_v59 }
 0x7c4   : > { %v24482_v7 = vpop.permute.xlu0 %14560 }
 0x7c6   : > { %v24492_v22 = vpop.permute.xlu1 %14566 }
 0x7c8   : > { %17687 = vmatmul.mubr.msk.bf16.gmra.mrb[44].mxu1 %vm4546_vm0, %v25646_v38 }
 0x7c9   : > { %17690 = vmatprep.mubr.msk.bf16.mxu1 %vm4546_vm0, %v25649_v19 }
 0x7ca   : > { %v24499_v55 = vpop.permute.xlu1 %14570 }
 0x7d0   : > { %17691 = vmatmul.mubr.msk.bf16.gmra.mrb[48].mxu1 %vm4546_vm0, %v25652_v29 }
 0x7d1   : > { %17694 = vmatprep.mubr.msk.bf16.mxu1 %vm4546_vm0, %v25655_v24 }
 0x7d3   : > { %v24489_v59 = vpop.permute.xlu0 %14564 }
 0x7d4   : > { %v24506_v42 = vpop.permute.xlu1 %14574 }
 0x7d7   : > { %v24496_v8 = vpop.permute.xlu0 %14568 }
 0x7d8   : > { %17695 = vmatmul.mubr.msk.bf16.gmra.mrb[52].mxu1 %vm4546_vm0, %v25658_v18  ;;  %v24513_v18 = vpop.permute.xlu1 %14578 }
 0x7d9   : > { %17698 = vmatprep.mubr.msk.bf16.mxu1 %vm4546_vm0, %v25661_v48 }
 0x7db   : > { %v24503_v11 = vpop.permute.xlu0 %14572 }
 0x7dc   : > { %v24532_v43 = vpop.permute.xlu1 %14582 }
 0x7df   : > { %v24510_v40 = vpop.permute.xlu0 %14576 }
 0x7e0   : > { %17699 = vmatmul.mubr.msk.bf16.gmra.mrb[56].mxu1 %vm4546_vm0, %v25664_v12  ;;  %v24535_v12 = vld [vmem:[%s19607_s11 + $0xe8] sm:$0xff] }
 0x7e1   : > { %17702 = vmatprep.mubr.msk.bf16.mxu1 %vm4546_vm0, %v16103_v39 }
 0x7e4   : > { %v24525_v48 = vpop.permute.xlu0 %14580 }
 0x7e8   : > { %17703 = vmatmul.mubr.msk.bf16.gmra.mrb[60].mxu1 %vm4546_vm0, %v16104_v17 }
 0x883   : > { %v17676_v5 = vpop.f32.mrb[32].mxu1 }
 0x884   : > { %14404 = vrot.lane.b32.xlu0 %v17676_v5, %s19318_s13  ;;  %v14209_v50 = vpop.f32.mrb[33].mxu1  ;;  %v24540_v5 = vld [vmem:[%s19607_s11 + $0xf0] sm:$0xff] }
 0x885   : > { %v17677_v63 = vpop.f32.mrb[34].mxu1 }
 0x886   : > { %14406 = vrot.lane.b32.xlu1 %v17677_v63, %s19318_s13  ;;  %v14212_v44 = vpop.f32.mrb[35].mxu1  ;;  %v24547_v63 = vld [vmem:[%s19607_s11 + $0xf8] sm:$0xff] }
 0x887   : > { %25665 = vst [vmem:[#allocation83_spill] sm:$0xff] %v24547_v63 }
 0x888   : > { %14400 = vrot.lane.b32.xlu0 %v14209_v50, %s19318_s13  ;;  %v24544_v50 = vpop.permute.xlu0 %14584 }
 0x88a   : > { %14402 = vrot.lane.b32.xlu1 %v14212_v44, %s19318_s13  ;;  %v24551_v44 = vpop.permute.xlu1 %14586 }
 0x88b   : > { %v17680_v15 = vpop.f32.mrb[36].mxu1 }
 0x88c   : > { %14412 = vrot.lane.b32.xlu0 %v17680_v15, %s19318_s13  ;;  %v14225_v57 = vpop.f32.mrb[37].mxu1  ;;  %v24553_v15 = vpop.permute.xlu0 %14588 }
 0x88d   : > { %v17681_v39 = vpop.f32.mrb[38].mxu1 }
 0x88e   : > { %14414 = vrot.lane.b32.xlu1 %v17681_v39, %s19318_s13  ;;  %v14228_v60 = vpop.f32.mrb[39].mxu1 }
 0x890   : > { %14408 = vrot.lane.b32.xlu0 %v14225_v57, %s19318_s13  ;;  %v24555_v57 = vpop.permute.xlu1 %14590  ;;  %v24557_v39 = vpop.permute.xlu0 %14592 }
 0x892   : > { %14410 = vrot.lane.b32.xlu1 %v14228_v60, %s19318_s13 }
 0x893   : > { %v17684_v56 = vpop.f32.mrb[40].mxu1 }
 0x894   : > { %14420 = vrot.lane.b32.xlu0 %v17684_v56, %s19318_s13  ;;  %v14241_v17 = vpop.f32.mrb[41].mxu1  ;;  %v24559_v60 = vpop.permute.xlu1 %14594 }
 0x895   : > { %v17685_v54 = vpop.f32.mrb[42].mxu1  ;;  %v24561_v56 = vpop.permute.xlu0 %14596 }
 0x896   : > { %14422 = vrot.lane.b32.xlu1 %v17685_v54, %s19318_s13  ;;  %v14244_v28 = vpop.f32.mrb[43].mxu1 }
 0x898   : > { %14416 = vrot.lane.b32.xlu0 %v14241_v17, %s19318_s13  ;;  %v24563_v17 = vpop.permute.xlu1 %14598 }
 0x899   : > { %v24565_v54 = vpop.permute.xlu0 %14600 }
 0x89a   : > { %14418 = vrot.lane.b32.xlu1 %v14244_v28, %s19318_s13 }
 0x89b   : > { %v17688_v3 = vpop.f32.mrb[44].mxu1 }
 0x89c   : > { %14428 = vrot.lane.b32.xlu0 %v17688_v3, %s19318_s13  ;;  %v14257_v26 = vpop.f32.mrb[45].mxu1  ;;  %v24567_v28 = vpop.permute.xlu1 %14602 }
 0x89d   : > { %v17689_v49 = vpop.f32.mrb[46].mxu1  ;;  %v24569_v3 = vpop.permute.xlu0 %14604 }
 0x89e   : > { %14430 = vrot.lane.b32.xlu1 %v17689_v49, %s19318_s13  ;;  %v14260_v25 = vpop.f32.mrb[47].mxu1 }
 0x8a0   : > { %14424 = vrot.lane.b32.xlu0 %v14257_v26, %s19318_s13  ;;  %v24571_v26 = vpop.permute.xlu1 %14606 }
 0x8a1   : > { %v24573_v49 = vpop.permute.xlu0 %14608 }
 0x8a2   : > { %14426 = vrot.lane.b32.xlu1 %v14260_v25, %s19318_s13 }
 0x8a3   : > { %v17692_v2 = vpop.f32.mrb[48].mxu1 }
 0x8a4   : > { %14436 = vrot.lane.b32.xlu0 %v17692_v2, %s19318_s13  ;;  %v14273_v41 = vpop.f32.mrb[49].mxu1  ;;  %v24575_v25 = vpop.permute.xlu1 %14610 }
 0x8a5   : > { %v17693_v61 = vpop.f32.mrb[50].mxu1 }
 0x8a6   : > { %14438 = vrot.lane.b32.xlu1 %v17693_v61, %s19318_s13  ;;  %v14276_v14 = vpop.f32.mrb[51].mxu1 }
 0x8a8   : > { %14432 = vrot.lane.b32.xlu0 %v14273_v41, %s19318_s13  ;;  %v25666_v41 = vld [vmem:[#allocation28_spill] sm:$0xff] }
 0x8aa   : > { %14434 = vrot.lane.b32.xlu1 %v14276_v14, %s19318_s13 }
 0x8ab   : > { %v17696_v45 = vpop.f32.mrb[52].mxu1 }
 0x8ac   : > { %14444 = vrot.lane.b32.xlu0 %v17696_v45, %s19318_s13  ;;  %v14289_v47 = vpop.f32.mrb[53].mxu1  ;;  %v25667_v45 = vld [vmem:[#allocation42_spill] sm:$0xff] }
 0x8ad   : > { %v17697_v10 = vpop.f32.mrb[54].mxu1 }
 0x8ae   : > { %14446 = vrot.lane.b32.xlu1 %v17697_v10, %s19318_s13  ;;  %v14292_v35 = vpop.f32.mrb[55].mxu1 }
 0x8b0   : > { %14440 = vrot.lane.b32.xlu0 %v14289_v47, %s19318_s13 }
 0x8b2   : > { %14442 = vrot.lane.b32.xlu1 %v14292_v35, %s19318_s13  ;;  %v25668_v35 = vld [vmem:[#allocation29_spill] sm:$0xff] }
 0x8b3   : > { %v17700_v9 = vpop.f32.mrb[56].mxu1 }
 0x8b4   : > { %14452 = vrot.lane.b32.xlu0 %v17700_v9, %s19318_s13  ;;  %v14305_v38 = vpop.f32.mrb[57].mxu1 }
 0x8b5   : > { %v17701_v23 = vpop.f32.mrb[58].mxu1 }
 0x8b6   : > { %14454 = vrot.lane.b32.xlu1 %v17701_v23, %s19318_s13  ;;  %v14308_v19 = vpop.f32.mrb[59].mxu1  ;;  %v25669_v23 = vld [vmem:[#allocation32_spill] sm:$0xff] }
 0x8b8   : > { %14448 = vrot.lane.b32.xlu0 %v14305_v38, %s19318_s13 }
 0x8ba   : > { %14450 = vrot.lane.b32.xlu1 %v14308_v19, %s19318_s13 }
 0x8bb   : > { %v17704_v29 = vpop.f32.mrb[60].mxu1 }
 0x8bc   : > { %14460 = vrot.lane.b32.xlu0 %v17704_v29, %s19318_s13  ;;  %v14321_v30 = vpop.f32.mrb[61].mxu1 }
 0x8bd   : > { %v17705_v24 = vpop.f32.mrb[62].mxu1 }
 0x8be   : > { %14462 = vrot.lane.b32.xlu1 %v17705_v24, %s19318_s13  ;;  %v14324_v46 = vpop.f32.mrb[63].mxu1 }
 0x8c0   : > { %14456 = vrot.lane.b32.xlu0 %v14321_v30, %s19318_s13  ;;  %v25670_v30 = vld [vmem:[#allocation34_spill] sm:$0xff] }
 0x8c2   : > { %14458 = vrot.lane.b32.xlu1 %v14324_v46, %s19318_s13 }
 0x8c4   : > { %14612 = vrot.lane.b32.xlu0 %v24516_v27, %s19318_s13 }
 0x8c6   : > { %14614 = vrot.lane.b32.xlu1 %v24521_v31, %s19318_s13 }
 0x8c8   : > { %14616 = vrot.lane.b32.xlu0 %v24528_v0, %s19318_s13 }
 0x8ca   : > { %14618 = vrot.lane.b32.xlu1 %v24535_v12, %s19318_s13 }
 0x8cc   : > { %14620 = vrot.lane.b32.xlu0 %v24540_v5, %s19318_s13 }
 0x8ce   : > { %14622 = vrot.lane.b32.xlu1 %v24547_v63, %s19318_s13  ;;  %v25671_v63 = vld [vmem:[#allocation58_spill] sm:$0xff] }
 0x8f6   : > { %v14405_v2 = vpop.permute.xlu0 %14404 }
 0x8f7   : > { %v14498_v61 = vadd.f32 %v14405_v2, %v25666_v41 }
 0x8f8   : > { %v14407_v14 = vpop.permute.xlu1 %14406 }
 0x8f9   : > { %18876 = vtanh.f32 %v14498_v61  ;;  %v14499_v47 = vadd.f32 %v14407_v14, %v25667_v45  ;;  %v25672_v14 = vld [vmem:[#allocation18_spill] sm:$0xff] }
 0x8fa   : > { %v14401_v10 = vpop.permute.xlu0 %14400 }
 0x8fb   : > { %18878 = vtanh.f32 %v14499_v47  ;;  %v14496_v9 = vadd.f32 %v14401_v10, %v25668_v35 }
 0x8fc   : > { %v14403_v38 = vpop.permute.xlu1 %14402 }
 0x8fd   : > { %18880 = vtanh.f32 %v14496_v9  ;;  %v14497_v19 = vadd.f32 %v14403_v38, %v25669_v23  ;;  %v25673_v9 = vld [vmem:[#allocation43_spill] sm:$0xff] }
 0x8fe   : > { %v14413_v29 = vpop.permute.xlu0 %14412 }
 0x8ff   : > { %18882 = vtanh.f32 %v14497_v19  ;;  %v14502_v24 = vadd.f32 %v14413_v29, %v25670_v30 }
 0x900   : > { %v14415_v46 = vpop.permute.xlu1 %14414 }
 0x901   : > { %18884 = vtanh.f32 %v14502_v24  ;;  %v14503_v2 = vadd.f32 %v14415_v46, %v25671_v63  ;;  %v25674_v63 = vld [vmem:[#allocation44_spill] sm:$0xff] }
 0x902   : > { %v14409_v41 = vpop.permute.xlu0 %14408 }
 0x903   : > { %v18877_v61 = vpop.eup %18876  ;;  %18886 = vtanh.f32 %v14503_v2  ;;  %v14500_v45 = vadd.f32 %v14409_v41, %v25672_v14 }
 0x904   : > { %v14411_v47 = vpop.permute.xlu1 %14410  ;;  %v14658_v10 = vsub.f32 %v18877_v61, %v24489_v59  ;;  %v25675_v59 = vld [vmem:[#allocation41_spill] sm:$0xff] }
 0x905   : > { %v18879_v35 = vpop.eup %18878  ;;  %18888 = vtanh.f32 %v14500_v45  ;;  %v14501_v38 = vadd.f32 %v14411_v47, %v25673_v9 }
 0x906   : > { %14724 = vrot.lane.b32.xlu0 %v14658_v10, %s19318_s13  ;;  %v14421_v23 = vpop.permute.xlu0 %14420  ;;  %v14659_v19 = vsub.f32 %v18879_v35, %v24492_v22  ;;  %v25676_v22 = vld [vmem:[#allocation38_spill] sm:$0xff] }
 0x907   : > { %v18881_v29 = vpop.eup %18880  ;;  %18890 = vtanh.f32 %v14501_v38  ;;  %v14506_v30 = vadd.f32 %v14421_v23, %v25674_v63 }
 0x908   : > { %v14423_v24 = vpop.permute.xlu1 %14422  ;;  %14726 = vrot.lane.b32.xlu1 %v14659_v19, %s19318_s13  ;;  %v14656_v46 = vsub.f32 %v18881_v29, %v24482_v7  ;;  %v25677_v7 = vld [vmem:[#allocation45_spill] sm:$0xff] }
 0x909   : > { %v18883_v2 = vpop.eup %18882  ;;  %18892 = vtanh.f32 %v14506_v30  ;;  %v14507_v41 = vadd.f32 %v14423_v24, %v25675_v59 }
 0x90a   : > { %14720 = vrot.lane.b32.xlu0 %v14656_v46, %s19318_s13  ;;  %v14417_v61 = vpop.permute.xlu0 %14416  ;;  %v14657_v14 = vsub.f32 %v18883_v2, %v24485_v52  ;;  %v25678_v52 = vld [vmem:[#allocation61_spill] sm:$0xff] }
 0x90b   : > { %v18885_v45 = vpop.eup %18884  ;;  %18894 = vtanh.f32 %v14507_v41  ;;  %v14504_v47 = vadd.f32 %v14417_v61, %v25676_v22 }
 0x90c   : > { %v14419_v10 = vpop.permute.xlu1 %14418  ;;  %14722 = vrot.lane.b32.xlu1 %v14657_v14, %s19318_s13  ;;  %v14662_v35 = vsub.f32 %v18885_v45, %v24503_v11  ;;  %v25679_v11 = vld [vmem:[#allocation63_spill] sm:$0xff] }
 0x90d   : > { %v18887_v9 = vpop.eup %18886  ;;  %18896 = vtanh.f32 %v14504_v47  ;;  %v14505_v38 = vadd.f32 %v14419_v10, %v25677_v7 }
 0x90e   : > { %14732 = vrot.lane.b32.xlu0 %v14662_v35, %s19318_s13  ;;  %v14429_v23 = vpop.permute.xlu0 %14428  ;;  %v14663_v19 = vsub.f32 %v18887_v9, %v24506_v42  ;;  %v25680_v42 = vld [vmem:[#allocation62_spill] sm:$0xff] }
 0x90f   : > { %v18889_v29 = vpop.eup %18888  ;;  %18898 = vtanh.f32 %v14505_v38  ;;  %v14510_v63 = vadd.f32 %v14429_v23, %v25678_v52 }
 0x910   : > { %v14431_v30 = vpop.permute.xlu1 %14430  ;;  %14734 = vrot.lane.b32.xlu1 %v14663_v19, %s19318_s13  ;;  %v14660_v24 = vsub.f32 %v18889_v29, %v24496_v8  ;;  %v25681_v8 = vld [vmem:[#allocation64_spill] sm:$0xff] }
 0x911   : > { %v18891_v46 = vpop.eup %18890  ;;  %18900 = vtanh.f32 %v14510_v63  ;;  %v14511_v2 = vadd.f32 %v14431_v30, %v25679_v11 }
 0x912   : > { %14728 = vrot.lane.b32.xlu0 %v14660_v24, %s19318_s13  ;;  %v14425_v59 = vpop.permute.xlu0 %14424  ;;  %v14661_v41 = vsub.f32 %v18891_v46, %v24499_v55  ;;  %v25682_v55 = vld [vmem:[#allocation57_spill] sm:$0xff] }
 0x913   : > { %v18893_v61 = vpop.eup %18892  ;;  %18902 = vtanh.f32 %v14511_v2  ;;  %v14508_v14 = vadd.f32 %v14425_v59, %v25680_v42 }
 0x914   : > { %v14427_v45 = vpop.permute.xlu1 %14426  ;;  %14730 = vrot.lane.b32.xlu1 %v14661_v41, %s19318_s13  ;;  %v14666_v22 = vsub.f32 %v18893_v61, %v24525_v48  ;;  %v25683_v48 = vld [vmem:[#allocation19_spill] sm:$0xff] }
 0x915   : > { %v18895_v47 = vpop.eup %18894  ;;  %18904 = vtanh.f32 %v14508_v14  ;;  %v14509_v10 = vadd.f32 %v14427_v45, %v25681_v8 }
 0x916   : > { %14740 = vrot.lane.b32.xlu0 %v14666_v22, %s19318_s13  ;;  %v14437_v35 = vpop.permute.xlu0 %14436  ;;  %v14667_v9 = vsub.f32 %v18895_v47, %v24532_v43  ;;  %v25684_v43 = vld [vmem:[#allocation65_spill] sm:$0xff] }
 0x917   : > { %v18897_v7 = vpop.eup %18896  ;;  %18906 = vtanh.f32 %v14509_v10  ;;  %v14514_v38 = vadd.f32 %v14437_v35, %v25682_v55 }
 0x918   : > { %v14439_v23 = vpop.permute.xlu1 %14438  ;;  %14742 = vrot.lane.b32.xlu1 %v14667_v9, %s19318_s13  ;;  %v14664_v19 = vsub.f32 %v18897_v7, %v24510_v40  ;;  %v25685_v40 = vld [vmem:[#allocation20_spill] sm:$0xff] }
 0x919   : > { %v18899_v29 = vpop.eup %18898  ;;  %18908 = vtanh.f32 %v14514_v38  ;;  %v14515_v52 = vadd.f32 %v14439_v23, %v25683_v48 }
 0x91a   : > { %14736 = vrot.lane.b32.xlu0 %v14664_v19, %s19318_s13  ;;  %v14433_v63 = vpop.permute.xlu0 %14432  ;;  %v14665_v30 = vsub.f32 %v18899_v29, %v24513_v18  ;;  %v25686_v18 = vld [vmem:[#allocation21_spill] sm:$0xff] }
 0x91b   : > { %v18901_v24 = vpop.eup %18900  ;;  %18910 = vtanh.f32 %v14515_v52  ;;  %v14512_v46 = vadd.f32 %v14433_v63, %v25684_v43 }
 0x91c   : > { %v14435_v11 = vpop.permute.xlu1 %14434  ;;  %14738 = vrot.lane.b32.xlu1 %v14665_v30, %s19318_s13  ;;  %v14670_v2 = vsub.f32 %v18901_v24, %v24553_v15  ;;  %v25687_v15 = vld [vmem:[#allocation25_spill] sm:$0xff] }
 0x91d   : > { %v18903_v59 = vpop.eup %18902  ;;  %18912 = vtanh.f32 %v14512_v46  ;;  %v14513_v41 = vadd.f32 %v14435_v11, %v25685_v40 }
 0x91e   : > { %14748 = vrot.lane.b32.xlu0 %v14670_v2, %s19318_s13  ;;  %v14445_v61 = vpop.permute.xlu0 %14444  ;;  %v14671_v42 = vsub.f32 %v18903_v59, %v24555_v57  ;;  %v25688_v57 = vld [vmem:[#allocation23_spill] sm:$0xff] }
 0x91f   : > { %v18905_v14 = vpop.eup %18904  ;;  %18914 = vtanh.f32 %v14513_v41  ;;  %v14518_v45 = vadd.f32 %v14445_v61, %v25686_v18  ;;  %v25692_v41 = vld [vmem:[#allocation31_spill] sm:$0xff] }
 0x920   : > { %v14447_v22 = vpop.permute.xlu1 %14446  ;;  %14750 = vrot.lane.b32.xlu1 %v14671_v42, %s19318_s13  ;;  %v14668_v47 = vsub.f32 %v18905_v14, %v24544_v50  ;;  %v25689_v50 = vld [vmem:[#allocation27_spill] sm:$0xff] }
 0x921   : > { %v18907_v8 = vpop.eup %18906  ;;  %18916 = vtanh.f32 %v14518_v45  ;;  %v14519_v10 = vadd.f32 %v14447_v22, %v25687_v15 }
 0x922   : > { %14744 = vrot.lane.b32.xlu0 %v14668_v47, %s19318_s13  ;;  %v14441_v35 = vpop.permute.xlu0 %14440  ;;  %v14669_v9 = vsub.f32 %v18907_v8, %v24551_v44  ;;  %v25690_v44 = vld [vmem:[#allocation30_spill] sm:$0xff] }
 0x923   : > { %v18909_v7 = vpop.eup %18908  ;;  %18918 = vtanh.f32 %v14519_v10  ;;  %v14516_v55 = vadd.f32 %v14441_v35, %v25688_v57  ;;  %v25694_v35 = vld [vmem:[#allocation46_spill] sm:$0xff]  ;;  %v25695_v57 = vld [vmem:[#allocation39_spill] sm:$0xff] }
 0x924   : > { %v14443_v38 = vpop.permute.xlu1 %14442  ;;  %14746 = vrot.lane.b32.xlu1 %v14669_v9, %s19318_s13  ;;  %v14674_v23 = vsub.f32 %v18909_v7, %v24561_v56  ;;  %v25691_v56 = vld [vmem:[#allocation33_spill] sm:$0xff] }
 0x925   : > { %v18911_v19 = vpop.eup %18910  ;;  %18920 = vtanh.f32 %v14516_v55  ;;  %v14517_v29 = vadd.f32 %v14443_v38, %v25689_v50  ;;  %v25696_v55 = vld [vmem:[#allocation60_spill] sm:$0xff] }
 0x926   : > { %14756 = vrot.lane.b32.xlu0 %v14674_v23, %s19318_s13  ;;  %v14453_v48 = vpop.permute.xlu0 %14452  ;;  %v14675_v52 = vsub.f32 %v18911_v19, %v24563_v17 }
 0x927   : > { %v18913_v63 = vpop.eup %18912  ;;  %18922 = vtanh.f32 %v14517_v29  ;;  %v14522_v30 = vadd.f32 %v14453_v48, %v25690_v44 }
 0x928   : > { %v14455_v24 = vpop.permute.xlu1 %14454  ;;  %14758 = vrot.lane.b32.xlu1 %v14675_v52, %s19318_s13  ;;  %v14672_v43 = vsub.f32 %v18913_v63, %v24557_v39  ;;  %v25693_v39 = vld [vmem:[#allocation36_spill] sm:$0xff] }
 0x929   : > { %v18915_v46 = vpop.eup %18914  ;;  %v14523_v11 = vadd.f32 %v14455_v24, %v25691_v56  ;;  %18924 = vtanh.f32 %v14522_v30 }
 0x92a   : > { %14752 = vrot.lane.b32.xlu0 %v14672_v43, %s19318_s13  ;;  %v14449_v2 = vpop.permute.xlu0 %14448  ;;  %v14673_v59 = vsub.f32 %v18915_v46, %v24559_v60 }
 0x92b   : > { %v18917_v40 = vpop.eup %18916  ;;  %v14520_v17 = vadd.f32 %v14449_v2, %v25692_v41  ;;  %18926 = vtanh.f32 %v14523_v11 }
 0x92c   : > { %v14451_v61 = vpop.permute.xlu1 %14450  ;;  %14754 = vrot.lane.b32.xlu1 %v14673_v59, %s19318_s13  ;;  %v14678_v42 = vsub.f32 %v18917_v40, %v24569_v3 }
 0x92d   : > { %v18919_v14 = vpop.eup %18918  ;;  %v14521_v18 = vadd.f32 %v14451_v61, %v25693_v39  ;;  %18928 = vtanh.f32 %v14520_v17 }
 0x92e   : > { %14764 = vrot.lane.b32.xlu0 %v14678_v42, %s19318_s13  ;;  %v14461_v45 = vpop.permute.xlu0 %14460  ;;  %v14679_v22 = vsub.f32 %v18919_v14, %v24571_v26  ;;  %v25698_v14 = vld [vmem:[#allocation35_spill] sm:$0xff] }
 0x92f   : > { %v18921_v60 = vpop.eup %18920  ;;  %18930 = vtanh.f32 %v14521_v18  ;;  %v14526_v26 = vadd.f32 %v14461_v45, %v25695_v57  ;;  %v19072_v45 = vld [vmem:[%s19607_s11 + $0x10] sm:$0xff] }
 0x930   : > { %v14463_v47 = vpop.permute.xlu1 %14462  ;;  %14766 = vrot.lane.b32.xlu1 %v14679_v22, %s19318_s13  ;;  %v14676_v8 = vsub.f32 %v18921_v60, %v24565_v54  ;;  %v25697_v54 = vld [vmem:[#allocation59_spill] sm:$0xff] }
 0x931   : > { %v18923_v15 = vpop.eup %18922  ;;  %v14527_v29 = vadd.f32 %v14463_v47, %v25697_v54  ;;  %v25699_v60 = vld [vmem:[#allocation51_spill] sm:$0xff] }
 0x932   : > { %14760 = vrot.lane.b32.xlu0 %v14676_v8, %s19318_s13  ;;  %v14457_v3 = vpop.permute.xlu0 %14456  ;;  %v14677_v10 = vsub.f32 %v18923_v15, %v24567_v28  ;;  %v19073_v15 = vld [vmem:[%s19607_s11 + $0x18] sm:$0xff] }
 0x933   : > { %v14524_v9 = vadd.f32 %v14457_v3, %v25694_v35  ;;  %v18925_v23 = vpop.eup %18924 }
 0x934   : > { %14762 = vrot.lane.b32.xlu1 %v14677_v10, %s19318_s13  ;;  %v14459_v7 = vpop.permute.xlu1 %14458  ;;  %v25700_v10 = vld [vmem:[#allocation55_spill] sm:$0xff] }
 0x935   : > { %18932 = vtanh.f32 %v14524_v9  ;;  %v14525_v38 = vadd.f32 %v14459_v7, %v25696_v55  ;;  %v18927_v50 = vpop.eup %18926  ;;  %v19074_v7 = vld [vmem:[%s19607_s11] sm:$0xff] }
 0x936   : > { %v14613_v19 = vpop.permute.xlu0 %14612 }
 0x937   : > { %18934 = vtanh.f32 %v14525_v38  ;;  %v14682_v48 = vsub.f32 %v18925_v23, %v14613_v19  ;;  %v18929_v52 = vpop.eup %18928  ;;  %v19075_v23 = vld [vmem:[%s19607_s11 + $0x8] sm:$0xff] }
 0x938   : > { %v14615_v63 = vpop.permute.xlu1 %14614  ;;  %18936 = vtanh.f32 %v14526_v26  ;;  %v14680_v24 = vsub.f32 %v18929_v52, %v24573_v49  ;;  %v25701_v26 = vld [vmem:[#allocation53_spill] sm:$0xff] }
 0x939   : > { %v14683_v28 = vsub.f32 %v18927_v50, %v14615_v63  ;;  %14772 = vrot.lane.b32.xlu0 %v14682_v48, %s19318_s13  ;;  %v18931_v44 = vpop.eup %18930  ;;  %18938 = vtanh.f32 %v14527_v29  ;;  %v25702_v50 = vld [vmem:[#allocation49_spill] sm:$0xff]  ;;  %v19076_v48 = vld [vmem:[%s19607_s11 + $0x30] sm:$0xff]  ;;  %v25703_v63 = vld [vmem:[#allocation40_spill] sm:$0xff] }
 0x93a   : > { %v14617_v30 = vpop.permute.xlu0 %14616  ;;  %v14681_v46 = vsub.f32 %v18931_v44, %v24575_v25 }
 0x93b   : > { %14774 = vrot.lane.b32.xlu1 %v14683_v28, %s19318_s13 }
 0x93c   : > { %v14619_v43 = vpop.permute.xlu1 %14618 }
 0x93d   : > { %14768 = vrot.lane.b32.xlu0 %v14680_v24, %s19318_s13 }
 0x93e   : > { %v14621_v59 = vpop.permute.xlu0 %14620 }
 0x93f   : > { %v18933_v56 = vpop.eup %18932  ;;  %14770 = vrot.lane.b32.xlu1 %v14681_v46, %s19318_s13 }
 0x940   : > { %v14684_v11 = vsub.f32 %v18933_v56, %v14617_v30  ;;  %v14623_v17 = vpop.permute.xlu1 %14622  ;;  %v19077_v30 = vld [vmem:[%s19607_s11 + $0x38] sm:$0xff] }
 0x941   : > { %v18935_v2 = vpop.eup %18934 }
 0x942   : > { %v14685_v40 = vsub.f32 %v18935_v2, %v14619_v43  ;;  %14776 = vrot.lane.b32.xlu0 %v14684_v11, %s19318_s13  ;;  %v18937_v41 = vpop.eup %18936  ;;  %v25704_v43 = vld [vmem:[#allocation37_spill] sm:$0xff]  ;;  %v19078_v11 = vld [vmem:[%s19607_s11 + $0x20] sm:$0xff] }
 0x943   : > { %v14686_v49 = vsub.f32 %v18937_v41, %v14621_v59  ;;  %v18939_v61 = vpop.eup %18938  ;;  %v25705_v59 = vld [vmem:[#allocation22_spill] sm:$0xff] }
 0x944   : > { %14778 = vrot.lane.b32.xlu1 %v14685_v40, %s19318_s13  ;;  %v14687_v42 = vsub.f32 %v18939_v61, %v14623_v17  ;;  %v19079_v17 = vld [vmem:[%s19607_s11 + $0x28] sm:$0xff]  ;;  %v25706_v61 = vld [vmem:[#allocation24_spill] sm:$0xff] }
 0x946   : > { %14780 = vrot.lane.b32.xlu0 %v14686_v49, %s19318_s13 }
 0x948   : > { %14782 = vrot.lane.b32.xlu1 %v14687_v42, %s19318_s13 }
 0x978   : > { %v14725_v25 = vpop.permute.xlu0 %14724 }
 0x979   : > { %v14818_v39 = vmul.f32 %v25698_v14, %v14725_v25 }
 0x97a   : > { %v14727_v18 = vpop.permute.xlu1 %14726 }
 0x97b   : > { %v14850_v22 = vadd.f32 %v19072_v45, %v14818_v39  ;;  %v14819_v47 = vmul.f32 %v25699_v60, %v14727_v18  ;;  %v25707_v39 = vld [vmem:[#allocation71_spill] sm:$0xff]  ;;  %v25708_v60 = vld [vmem:[#allocation26_spill] sm:$0xff] }
 0x97c   : > { %v14721_v8 = vpop.permute.xlu0 %14720 }
 0x97d   : > { %14882 = vst.msk [vmem:[%s24672_s0 + $0x10] sm:$0xff] %vm4546_vm0, %v14850_v22  ;;  %v14851_v3 = vadd.f32 %v19073_v15, %v14819_v47  ;;  %v14816_v35 = vmul.f32 %v25700_v10, %v14721_v8  ;;  %v19080_v15 = vld [vmem:[%s19607_s11 + $0x40] sm:$0xff] }
 0x97e   : > { %v14723_v9 = vpop.permute.xlu1 %14722  ;;  %v25709_v10 = vld [vmem:[#allocation72_spill] sm:$0xff] }
 0x97f   : > { %14883 = vst.msk [vmem:[%s24672_s0 + $0x18] sm:$0xff] %vm4546_vm0, %v14851_v3  ;;  %v14848_v57 = vadd.f32 %v19074_v7, %v14816_v35  ;;  %v14817_v55 = vmul.f32 %v25701_v26, %v14723_v9  ;;  %v19081_v9 = vld [vmem:[%s19607_s11 + $0x48] sm:$0xff]  ;;  %s19230_s11 = sshll.u32 %s19319_s16, 4  ;;  %s19231_s11 = int_to_ptr.vmem [resolvable:$false] %s19230_s11 }
 0x980   : > { %v14733_v38 = vpop.permute.xlu0 %14732  ;;  %s19232_s2 = scalar_lea.vmem %s19231_s11, 8192  ;;  %p19233_p8 = scmp.lt.s32.totalorder %s24801_s7, %s19231_s11 }
 0x981   : > { %14880 = vst.msk [vmem:[%s24672_s0] sm:$0xff] %vm4546_vm0, %v14848_v57  ;;  %v14849_v19 = vadd.f32 %v19075_v23, %v14817_v55  ;;  %v14822_v54 = vmul.f32 %v25702_v50, %v14733_v38  ;;  %v25710_v57 = vld [vmem:[#allocation66_spill] sm:$0xff]  ;;  %v25711_v38 = vld [vmem:[#allocation69_spill] sm:$0xff]  ;;  %p19234_p6 = scmp.lt.s32.totalorder %s19232_s2, %s19226_s20 }
 0x982   : > { %v14735_v29 = vpop.permute.xlu1 %14734 }
 0x983   : > { %14881 = vst.msk [vmem:[%s24672_s0 + $0x8] sm:$0xff] %vm4546_vm0, %v14849_v19  ;;  %v14854_v52 = vadd.f32 %v19076_v48, %v14822_v54  ;;  %v14823_v28 = vmul.f32 %v25703_v63, %v14735_v29  ;;  %v25712_v54 = vld [vmem:[#allocation68_spill] sm:$0xff]  ;;  %v25713_v63 = vld [vmem:[#allocation67_spill] sm:$0xff]  ;;  %p19235_p10 = por %p19234_p6, %p19233_p8 }
 0x984   : > { %v14729_v44 = vpop.permute.xlu0 %14728 }
 0x985   : > { %14886 = vst.msk [vmem:[%s24672_s0 + $0x30] sm:$0xff] %vm4546_vm0, %v14854_v52  ;;  %v14855_v24 = vadd.f32 %v19077_v30, %v14823_v28  ;;  %v14820_v46 = vmul.f32 %v25704_v43, %v14729_v44  ;;  %v25714_v30 = vld [vmem:[#allocation52_spill] sm:$0xff]  ;;  %p19236_p3 = pnand %p19235_p10, %p19229_p0 }
 0x986   : > { %v14731_v56 = vpop.permute.xlu1 %14730 }
 0x987   : > { %14887 = vst.msk [vmem:[%s24672_s0 + $0x38] sm:$0xff] %vm4546_vm0, %v14855_v24  ;;  %v14852_v2 = vadd.f32 %v19078_v11, %v14820_v46  ;;  %v14821_v40 = vmul.f32 %v25705_v59, %v14731_v56  ;;  %v25715_v46 = vld [vmem:[#allocation48_spill] sm:$0xff] }
 0x988   : > { %v14741_v41 = vpop.permute.xlu0 %14740 }
 0x989   : > { %14884 = vst.msk [vmem:[%s24672_s0 + $0x20] sm:$0xff] %vm4546_vm0, %v14852_v2  ;;  %v14853_v49 = vadd.f32 %v19079_v17, %v14821_v40  ;;  %v14826_v42 = vmul.f32 %v25706_v61, %v14741_v41  ;;  %v25716_v2 = vld [vmem:[#allocation70_spill] sm:$0xff]  ;;  %v25718_v61 = vld [vmem:[#allocation73_spill] sm:$0xff] }
 0x98a   : > { %v14743_v25 = vpop.permute.xlu1 %14742  ;;  %v25717_v41 = vld [vmem:[#allocation50_spill] sm:$0xff] }
 0x98b   : > { %14885 = vst.msk [vmem:[%s24672_s0 + $0x28] sm:$0xff] %vm4546_vm0, %v14853_v49  ;;  %v14858_v14 = vadd.f32 %v24246_v53, %v14826_v42  ;;  %v14827_v18 = vmul.f32 %v25707_v39, %v14743_v25 }
 0x98c   : > { %v14737_v45 = vpop.permute.xlu0 %14736 }
 0x98d   : > { %14890 = vst.msk [vmem:[%s24672_s0 + $0x50] sm:$0xff] %vm4546_vm0, %v14858_v14  ;;  %v14859_v22 = vadd.f32 %v24251_v51, %v14827_v18  ;;  %v14824_v47 = vmul.f32 %v25708_v60, %v14737_v45  ;;  %v25719_v14 = vld [vmem:[#allocation75_spill] sm:$0xff]  ;;  %v25720_v45 = vld [vmem:[#allocation74_spill] sm:$0xff] }
 0x98e   : > { %v14739_v8 = vpop.permute.xlu1 %14738 }
 0x98f   : > { %14891 = vst.msk [vmem:[%s24672_s0 + $0x58] sm:$0xff] %vm4546_vm0, %v14859_v22  ;;  %v14856_v3 = vadd.f32 %v19080_v15, %v14824_v47  ;;  %v14825_v35 = vmul.f32 %v25709_v10, %v14739_v8  ;;  %v25721_v47 = vld [vmem:[#allocation76_spill] sm:$0xff] }
 0x990   : > { %v14749_v53 = vpop.permute.xlu0 %14748 }
 0x991   : > { %14888 = vst.msk [vmem:[%s24672_s0 + $0x40] sm:$0xff] %vm4546_vm0, %v14856_v3  ;;  %v14857_v7 = vadd.f32 %v19081_v9, %v14825_v35  ;;  %v14830_v26 = vmul.f32 %v25710_v57, %v14749_v53  ;;  %v25722_v3 = vld [vmem:[#allocation77_spill] sm:$0xff]  ;;  %v25724_v57 = vld [vmem:[#allocation78_spill] sm:$0xff] }
 0x992   : > { %v14751_v51 = vpop.permute.xlu1 %14750  ;;  %v25723_v53 = vld [vmem:[#allocation81_spill] sm:$0xff] }
 0x993   : > { %14889 = vst.msk [vmem:[%s24672_s0 + $0x48] sm:$0xff] %vm4546_vm0, %v14857_v7  ;;  %v14862_v55 = vadd.f32 %v24282_v37, %v14830_v26  ;;  %v14831_v23 = vmul.f32 %v25711_v38, %v14751_v51 }
 0x994   : > { %v14745_v19 = vpop.permute.xlu0 %14744 }
 0x995   : > { %14894 = vst.msk [vmem:[%s24672_s0 + $0x70] sm:$0xff] %vm4546_vm0, %v14862_v55  ;;  %v14863_v50 = vadd.f32 %v24287_v32, %v14831_v23  ;;  %v14828_v29 = vmul.f32 %v25712_v54, %v14745_v19  ;;  %v25725_v55 = vld [vmem:[#allocation79_spill] sm:$0xff]  ;;  %v25726_v19 = vld [vmem:[#allocation80_spill] sm:$0xff] }
 0x996   : > { %v14747_v48 = vpop.permute.xlu1 %14746 }
 0x997   : > { %14895 = vst.msk [vmem:[%s24672_s0 + $0x78] sm:$0xff] %vm4546_vm0, %v14863_v50  ;;  %v14860_v52 = vadd.f32 %v24268_v6, %v14828_v29  ;;  %v14829_v28 = vmul.f32 %v25713_v63, %v14747_v48  ;;  %v25727_v29 = vld [vmem:[#allocation82_spill] sm:$0xff] }
 0x998   : > { %v14757_v44 = vpop.permute.xlu0 %14756  ;;  %v25728_v63 = vld [vmem:[#allocation90_spill] sm:$0xff] }
 0x999   : > { %14892 = vst.msk [vmem:[%s24672_s0 + $0x60] sm:$0xff] %vm4546_vm0, %v14860_v52  ;;  %v14861_v37 = vadd.f32 %v24275_v16, %v14829_v28  ;;  %v14834_v24 = vmul.f32 %v25714_v30, %v14757_v44 }
 0x99a   : > { %v14759_v43 = vpop.permute.xlu1 %14758 }
 0x99b   : > { %14893 = vst.msk [vmem:[%s24672_s0 + $0x68] sm:$0xff] %vm4546_vm0, %v14861_v37  ;;  %v14866_v32 = vadd.f32 %v24320_v20, %v14834_v24  ;;  %v14835_v56 = vmul.f32 %v25715_v46, %v14759_v43 }
 0x99c   : > { %v14753_v11 = vpop.permute.xlu0 %14752 }
 0x99d   : > { %14898 = vst.msk [vmem:[%s24672_s0 + $0x90] sm:$0xff] %vm4546_vm0, %v14866_v32  ;;  %v14867_v6 = vadd.f32 %v24327_v13, %v14835_v56  ;;  %v14832_v59 = vmul.f32 %v25716_v2, %v14753_v11 }
 0x99e   : > { %v14755_v40 = vpop.permute.xlu1 %14754 }
 0x99f   : > { %14899 = vst.msk [vmem:[%s24672_s0 + $0x98] sm:$0xff] %vm4546_vm0, %v14867_v6  ;;  %v14864_v16 = vadd.f32 %v24307_v62, %v14832_v59  ;;  %v14833_v17 = vmul.f32 %v25717_v41, %v14755_v40 }
 0x9a0   : > { %v14765_v49 = vpop.permute.xlu0 %14764 }
 0x9a1   : > { %14896 = vst.msk [vmem:[%s24672_s0 + $0x80] sm:$0xff] %vm4546_vm0, %v14864_v16  ;;  %v14865_v20 = vadd.f32 %v24312_v58, %v14833_v17  ;;  %v14838_v42 = vmul.f32 %v25718_v61, %v14765_v49 }
 0x9a2   : > { %v14767_v13 = vpop.permute.xlu1 %14766 }
 0x9a3   : > { %14897 = vst.msk [vmem:[%s24672_s0 + $0x88] sm:$0xff] %vm4546_vm0, %v14865_v20  ;;  %v14870_v25 = vadd.f32 %v24358_v34, %v14838_v42  ;;  %v14839_v39 = vmul.f32 %v25719_v14, %v14767_v13 }
 0x9a4   : > { %v14761_v18 = vpop.permute.xlu0 %14760 }
 0x9a5   : > { %14902 = vst.msk [vmem:[%s24672_s0 + $0xb0] sm:$0xff] %vm4546_vm0, %v14870_v25  ;;  %v14871_v62 = vadd.f32 %v24363_v36, %v14839_v39  ;;  %v14836_v22 = vmul.f32 %v25720_v45, %v14761_v18 }
 0x9a6   : > { %v14763_v60 = vpop.permute.xlu1 %14762 }
 0x9a7   : > { %14903 = vst.msk [vmem:[%s24672_s0 + $0xb8] sm:$0xff] %vm4546_vm0, %v14871_v62  ;;  %v14868_v58 = vadd.f32 %v24336_v33, %v14836_v22  ;;  %v14837_v8 = vmul.f32 %v25721_v47, %v14763_v60 }
 0x9a9   : > { %14900 = vst.msk [vmem:[%s24672_s0 + $0xa0] sm:$0xff] %vm4546_vm0, %v14868_v58  ;;  %v14869_v34 = vadd.f32 %v24344_v1, %v14837_v8 }
 0x9ab   : > { %14901 = vst.msk [vmem:[%s24672_s0 + $0xa8] sm:$0xff] %vm4546_vm0, %v14869_v34  ;;  %v14773_v15 = vpop.permute.xlu0 %14772 }
 0x9ac   : > { %v14842_v36 = vmul.f32 %v25722_v3, %v14773_v15 }
 0x9ad   : > { %v14775_v10 = vpop.permute.xlu1 %14774 }
 0x9ae   : > { %v14874_v35 = vadd.f32 %v24516_v27, %v14842_v36  ;;  %v14843_v9 = vmul.f32 %v25723_v53, %v14775_v10 }
 0x9af   : > { %v14769_v7 = vpop.permute.xlu0 %14768 }
 0x9b0   : > { %14906 = vst.msk [vmem:[%s24672_s0 + $0xd0] sm:$0xff] %vm4546_vm0, %v14874_v35  ;;  %v14875_v33 = vadd.f32 %v24521_v31, %v14843_v9  ;;  %v14840_v26 = vmul.f32 %v25724_v57, %v14769_v7 }
 0x9b1   : > { %v14771_v1 = vpop.permute.xlu1 %14770 }
 0x9b2   : > { %14907 = vst.msk [vmem:[%s24672_s0 + $0xd8] sm:$0xff] %vm4546_vm0, %v14875_v33  ;;  %v14872_v51 = vadd.f32 %v24371_v4, %v14840_v26  ;;  %v14841_v38 = vmul.f32 %v25725_v55, %v14771_v1 }
 0x9b4   : > { %14904 = vst.msk [vmem:[%s24672_s0 + $0xc0] sm:$0xff] %vm4546_vm0, %v14872_v51  ;;  %v14873_v27 = vadd.f32 %v24378_v21, %v14841_v38  ;;  %v14777_v23 = vpop.permute.xlu0 %14776 }
 0x9b5   : > { %v14844_v50 = vmul.f32 %v25726_v19, %v14777_v23 }
 0x9b6   : > { %14905 = vst.msk [vmem:[%s24672_s0 + $0xc8] sm:$0xff] %vm4546_vm0, %v14873_v27  ;;  %v14779_v31 = vpop.permute.xlu1 %14778 }
 0x9b7   : > { %v14876_v54 = vadd.f32 %v24528_v0, %v14844_v50  ;;  %v14845_v48 = vmul.f32 %v25727_v29, %v14779_v31  ;;  %v25729_v0 = vld [vmem:[#allocation91_spill] sm:$0xff] }
 0x9b8   : > { %v14781_v4 = vpop.permute.xlu0 %14780 }
 0x9b9   : > { %14908 = vst.msk [vmem:[%s24672_s0 + $0xe0] sm:$0xff] %vm4546_vm0, %v14876_v54  ;;  %v14877_v52 = vadd.f32 %v24535_v12, %v14845_v48  ;;  %v14846_v21 = vmul.f32 %v25728_v63, %v14781_v4  ;;  %v25730_v12 = vld [vmem:[#allocation83_spill] sm:$0xff] }
 0x9ba   : > { %v14783_v28 = vpop.permute.xlu1 %14782 }
 0x9bb   : > { %14909 = vst.msk [vmem:[%s24672_s0 + $0xe8] sm:$0xff] %vm4546_vm0, %v14877_v52  ;;  %v14878_v44 = vadd.f32 %v24540_v5, %v14846_v21  ;;  %v14847_v37 = vmul.f32 %v25729_v0, %v14783_v28 }
 0x9bd   : > { %14910 = vst.msk [vmem:[%s24672_s0 + $0xf0] sm:$0xff] %vm4546_vm0, %v14878_v44  ;;  %v14879_v30 = vadd.f32 %v25730_v12, %v14847_v37 }
 0x9bf   : > { %14911 = vst.msk [vmem:[%s24672_s0 + $0xf8] sm:$0xff] %vm4546_vm0, %v14879_v30 }
 0x9c0   : > { %19239 = shalt.err (!%p19236_p3)
}
 0x9c1   : > { %s19240_s3 = scalar_lea.hbm %s24799_s17, 4096  ;;  %s19244_s27 = scalar_lea.hbm %s24856_s6, 8192 }
 0x9c2   : > { %p19241_p9 = scmp.ne.s32.totalorder %s24799_s17, %s19240_s3  ;;  %p19245_p7 = scmp.lt.u32.totalorder %s24799_s17, %s24856_s6 }
 0x9c3   : > { %p19246_p12 = scmp.lt.u32.totalorder %s19244_s27, %s19240_s3  ;;  %p19248_p2 = scmp.lt.u32.totalorder %s19240_s3, %s24799_s17 }
 0x9c4   : > { %p19242_p13 = pnand %p19241_p9, %p19511_p5 }
 0x9c5   : > { %p19247_p1 = por %p19246_p12, %p19245_p7 }
 0x9c6   : > { %p19243_p11 = pneg %p19242_p13 }
 0x9c7   : > { %p19249_p4 = por %p19248_p2, %p19247_p1 }
 0x9c9   : > { %p19250_p0 = pnand %p19249_p4, %p19243_p11 }
 0x9cb   : > { %19253 = shalt.err (!%p19250_p0)
}
 0x9cc   : > { %s19320_s8 = smov 128   ;;  %s19321_s13 = smov 8  }
 0x9cd   : > { %18497 = dma.vmem_to_hbm [thread:$0]  (%p19511_p5), %s24801_s7, 4096, %s24799_s17, %s14913_s25, %s19320_s8, %s19320_s8, %s19321_s13  }
 0x9ce PF: > { %s14941_s0 = sand.u32 1, %s19292_s21   ;;  %p25731_p8 = scmp.ne.s32.totalorder %s25111_s28, 0 }
 0x9cf   : > { %p25732_p6 = scmp.ge.s32.totalorder %s19304_s24, 2  ;;  %s14942_s19 = scalar_lea.sflag [#allocation5], %s14941_s0 }
 0x9d1   : > { %p18517_p10 = pnand %p25732_p6, %p25731_p8 }
 0x9d3   : > { %19287 = dma.done.wait (!%p18517_p10), %s14942_s19, 4096  }
 0x9d4   : > { %19289 = vsyncadd (!%p18517_p10), %s14942_s19, 4294963200  ;;  %p23_p3 = scmp.ge.s32.totalorder %s19497_s18, 4   ;;  %s25733_s21 = smov %s19296_s22 }
 0x9d5   : > { %s25734_s22 = smov %s19300_s23  ;;  %s25735_s23 = smov %s19507_s14 }
 0x9d6   : > { %s25736_s24 = smov %s19497_s18  ;;  %25 = sbr.rel (!%p23_p3) target bundleno = 13 (0xd), region = 141 }
 0x9dd   :  { %14947 = vsyncpa [#allocation4], 1 }
 0x9de   :  { %14949 = vsyncpa [#allocation4 + $0x1], 1 }
 0x9df   :  { %14950 = vsyncpa [#allocation7], 1 }
 0x9e0   :  { %14952 = vsyncpa [#allocation7 + $0x1], 1 }
 0x9e1   :  { %14953 = vsyncpa [#allocation10], 1 }
 0x9e2   :  { %14954 = vsyncpa [#allocation5], 1 }
 0x9e3   :  { %14956 = vsyncpa [#allocation5 + $0x1], 1 }

</bundles_post_ra>
